<compile_context>
chip_gen: v6e
topology: v6e:2x2x1
jax: 0.10.0
libtpu: 0.0.40
codegen_flags: <defaults>
</compile_context>

<pallas_src>
import jax
import jax.numpy as jnp
from jax.experimental import pallas as pl
from jax.experimental.pallas import tpu as pltpu


# ----------------------------- Pallas kernels --------------------------------

def _conv1_pool_bn_relu_kernel(p_ref, w_ref, vec_ref, o_ref):
    """One view: conv1 (as 4 corner matmuls) + MaxPool2d(2) + eval-BN + ReLU."""
    p = p_ref[0]                                   # (4, M, 25)   corner-separated patches
    w = w_ref[0]                                   # (25, C)
    y = jnp.maximum(
        jnp.maximum(jnp.dot(p[0], w, preferred_element_type=jnp.float32),
                    jnp.dot(p[1], w, preferred_element_type=jnp.float32)),
        jnp.maximum(jnp.dot(p[2], w, preferred_element_type=jnp.float32),
                    jnp.dot(p[3], w, preferred_element_type=jnp.float32)))   # pooled conv (M, C)
    vec = vec_ref[0]                               # (3, C): conv_bias, bn_scale, bn_shift
    # conv bias commutes with max-pool (per-channel constant); BN(eval) is an affine.
    o_ref[0] = jnp.maximum((y + vec[0:1]) * vec[1:2] + vec[2:3], 0.0)


def conv1_pool_bn_relu(patches, w1, vecs1):
    """patches:(V,4,M,KK), w1:(V,KK,C), vecs1:(V,3,C) -> (V,M,C). Grid over views."""
    V, NC, M, KK = patches.shape
    C = w1.shape[-1]
    cost = pl.CostEstimate(
        flops=2 * V * NC * M * KK * C,
        transcendentals=0,
        bytes_accessed=4 * (patches.size + w1.size + vecs1.size + V * M * C))
    return pl.pallas_call(
        _conv1_pool_bn_relu_kernel,
        out_shape=jax.ShapeDtypeStruct((V, M, C), jnp.float32),
        grid=(V,),
        in_specs=[
            pl.BlockSpec((1, NC, M, KK), lambda v: (v, 0, 0, 0)),
            pl.BlockSpec((1, KK, C), lambda v: (v, 0, 0)),
            pl.BlockSpec((1, 3, C), lambda v: (v, 0, 0)),
        ],
        out_specs=pl.BlockSpec((1, M, C), lambda v: (v, 0, 0)),
        compiler_params=pltpu.CompilerParams(dimension_semantics=("parallel",)),
        cost_estimate=cost,
    )(patches, w1, vecs1)


def _conv2_head_tail_kernel(p_ref, w2_ref, w3_ref, vec_ref, o_ref):
    """One view: conv2 + MaxPool2d(2) + eval-BN + ReLU + Flatten + Linear + ReLU."""
    p = p_ref[0]                                   # (4, B, KK*C)  corner-separated patches
    w2 = w2_ref[0]                                 # (KK*C, C)
    y = jnp.maximum(
        jnp.maximum(jnp.dot(p[0], w2, preferred_element_type=jnp.float32),
                    jnp.dot(p[1], w2, preferred_element_type=jnp.float32)),
        jnp.maximum(jnp.dot(p[2], w2, preferred_element_type=jnp.float32),
                    jnp.dot(p[3], w2, preferred_element_type=jnp.float32)))   # (B, C)
    vec = vec_ref[0]                               # (4, C): conv2_b, bn2_scale, bn2_shift, lin_b
    h = jnp.maximum((y + vec[0:1]) * vec[1:2] + vec[2:3], 0.0)
    # Flatten is trivial (1x1 spatial after pool); Dropout = identity in eval; Linear + ReLU:
    o_ref[0] = jnp.maximum(
        jnp.dot(h, w3_ref[0], preferred_element_type=jnp.float32) + vec[3:4], 0.0)


def conv2_head_tail(patches, w2, w3, vecs2):
    """patches:(V,4,B,KK*C), w2:(V,KK*C,C), w3:(V,C,L), vecs2:(V,4,C) -> (V,B,L)."""
    V, NC, B, KKC = patches.shape
    C = w2.shape[-1]
    L = w3.shape[-1]
    cost = pl.CostEstimate(
        flops=2 * V * (NC * B * KKC * C + B * C * L),
        transcendentals=0,
        bytes_accessed=4 * (patches.size + w2.size + w3.size + vecs2.size + V * B * L))
    return pl.pallas_call(
        _conv2_head_tail_kernel,
        out_shape=jax.ShapeDtypeStruct((V, B, L), jnp.float32),
        grid=(V,),
        in_specs=[
            pl.BlockSpec((1, NC, B, KKC), lambda v: (v, 0, 0, 0)),
            pl.BlockSpec((1, KKC, C), lambda v: (v, 0, 0)),
            pl.BlockSpec((1, C, L), lambda v: (v, 0, 0)),
            pl.BlockSpec((1, 4, C), lambda v: (v, 0, 0)),
        ],
        out_specs=pl.BlockSpec((1, B, L), lambda v: (v, 0, 0)),
        compiler_params=pltpu.CompilerParams(dimension_semantics=("parallel",)),
        cost_estimate=cost,
    )(patches, w2, w3, vecs2)


def _attention_kernel(x_ref, w1_ref, b1_ref, w2_ref, b2_ref, o_ref):
    """x:(4,B,L) view embeddings -> tanh-MLP scores -> per-row softmax over views -> (B,L)."""
    x = x_ref[...]                                  # (4, B, L)
    xs = [x[v] for v in range(4)]
    es = []
    for xv in xs:
        h = jnp.tanh(jnp.dot(xv, w1_ref[...], preferred_element_type=jnp.float32) + b1_ref[...])
        es.append(jnp.dot(h, w2_ref[...], preferred_element_type=jnp.float32) + b2_ref[...])  # (B,1)
    m = jnp.maximum(jnp.maximum(es[0], es[1]), jnp.maximum(es[2], es[3]))   # per-batch-row max
    ps = [jnp.exp(e - m) for e in es]
    denom = ps[0] + ps[1] + ps[2] + ps[3]                                   # (B, 1)
    num = ps[0] * xs[0] + ps[1] * xs[1] + ps[2] * xs[2] + ps[3] * xs[3]     # (B, L) lane-dense
    o_ref[...] = num / denom


def attention_pool(heads, w1, b1, w2, b2):
    """heads:(4,B,L) -> (B,L) attention-weighted sum over views (single-block kernel)."""
    V, B, L = heads.shape
    assert V == 4
    return pl.pallas_call(
        _attention_kernel,
        out_shape=jax.ShapeDtypeStruct((B, L), jnp.float32),
    )(heads, w1, b1, w2, b2)


# ------------------------------ JAX glue --------------------------------------

def multi_views_attention_res(x, params):
    """x: (B, 4, H, W) float32 (NCHW at the module boundary, like PyTorch)."""
    B, V, H, W = x.shape
    assert V == 4
    K = 5
    C = params["w1"].shape[-1]                      # 128 conv channels
    OH1, OW1 = H - K + 1, W - K + 1
    assert OH1 % 2 == 0 and OW1 % 2 == 0, "MaxPool2d(2) floor mode (odd dims) not implemented"
    PH1, PW1 = OH1 // 2, OW1 // 2
    OH2, OW2 = PH1 - K + 1, PW1 - K + 1
    assert OH2 == 2 and OW2 == 2, "tail kernel assumes conv2 output is 2x2 (pools to 1x1)"

    # --- conv1 im2col (channel-last), split into the 4 pool-window corners, per view ---
    cols = [x[:, :, kh:kh + OH1, kw:kw + OW1] for kh in range(K) for kw in range(K)]
    p1 = jnp.stack(cols, axis=-1)                                   # (B, V, OH1, OW1, 25)
    p1 = p1.reshape(B, V, PH1, 2, PW1, 2, K * K)
    p1 = jnp.transpose(p1, (1, 3, 5, 0, 2, 4, 6))                   # (V, dh, dw, B, PH1, PW1, 25)
    p1 = p1.reshape(V, 4, B * PH1 * PW1, K * K)                     # (4, 4, B*36, 25)

    # --- fused conv1 + MaxPool + BN + ReLU (grid over views, parallel) ---
    h1 = conv1_pool_bn_relu(p1, params["w1"], params["vecs1"])      # (4, B*36, C)

    # TODO(synk): res_blocks(arch) helper source is not provided in the reference file; treated as identity.

    # --- conv2 im2col from the channel-last feature map, corner-separated ---
    h1r = h1.reshape(V, B, PH1, PW1, C)
    cols2 = [h1r[:, :, kh:kh + OH2, kw:kw + OW2, :] for kh in range(K) for kw in range(K)]
    p2 = jnp.stack(cols2, axis=-2)                                  # (V, B, 2, 2, 25, C)
    p2 = jnp.transpose(p2, (0, 2, 3, 1, 4, 5))                      # (V, oh, ow, B, 25, C)
    p2 = p2.reshape(V, 4, B, K * K * C)                             # (4, 4, B, 3200)

    # --- fused conv2 + MaxPool + BN + ReLU + Linear + ReLU (grid over views, parallel) ---
    heads = conv2_head_tail(p2, params["w2"], params["w3"], params["vecs2"])   # (4, B, latent)

    # --- attention pooling over the 4 views ---
    # TODO(synk): AttentionModule source not provided; standard tanh-MLP attention pooling assumed.
    a = params["attn"]
    return attention_pool(heads, a["w1"], a["b1"], a["w2"], a["b2"])           # (B, latent)


# --------------------------- deterministic params ------------------------------

def init_params(key, latent=128, hidden=64, eps=1e-5):
    assert latent == 128, "demo packs lin_b together with the 128-channel BN vectors"
    keys = iter(jax.random.split(key, 128))

    def nrm(shape, fan_in):
        return jax.random.normal(next(keys), shape, jnp.float32) / jnp.sqrt(float(fan_in))

    def bn(c):
        gamma = 1.0 + 0.1 * jax.random.normal(next(keys), (c,), jnp.float32)
        beta = 0.1 * jax.random.normal(next(keys), (c,), jnp.float32)
        # eval-mode BN with running stats at init (mean=0, var=1) folded to scale/shift.
        # NOTE: with a real checkpoint use shift = beta - running_mean * scale.
        return gamma / jnp.sqrt(1.0 + eps), beta

    w1_l, w2_l, w3_l, v1_l, v2_l = [], [], [], [], []
    for _ in range(4):
        conv1_w = nrm((128, 1, 5, 5), 1 * 5 * 5)            # PyTorch (Cout, Cin, KH, KW)
        conv1_b = nrm((128,), 1 * 5 * 5)
        bn1_s, bn1_b = bn(128)
        conv2_w = nrm((128, 128, 5, 5), 128 * 5 * 5)
        conv2_b = nrm((128,), 128 * 5 * 5)
        bn2_s, bn2_b = bn(128)
        lin_w = nrm((latent, 128), 128)                     # PyTorch Linear (out, in)
        lin_b = nrm((latent,), 128)

        # Kernel-side layouts: contraction axis ordered (kh, kw[, ci]) to match the im2col glue.
        w1_l.append(conv1_w.reshape(128, 25).T)                                   # (25, 128)
        w2_l.append(jnp.transpose(conv2_w, (2, 3, 1, 0)).reshape(25 * 128, 128))  # (3200, 128)
        w3_l.append(lin_w.T)                                                      # (128, latent)
        v1_l.append(jnp.stack([conv1_b, bn1_s, bn1_b], axis=0))                   # (3, 128)
        v2_l.append(jnp.stack([conv2_b, bn2_s, bn2_b, lin_b], axis=0))            # (4, 128)

    attn = dict(
        w1=nrm((latent, hidden), latent),
        b1=nrm((hidden,), latent).reshape(1, hidden),
        w2=nrm((hidden, 1), hidden),
        b2=nrm((1,), hidden).reshape(1, 1),
    )
    return dict(
        w1=jnp.stack(w1_l), w2=jnp.stack(w2_l), w3=jnp.stack(w3_l),
        vecs1=jnp.stack(v1_l), vecs2=jnp.stack(v2_l), attn=attn)


# ------------------------------------ main -------------------------------------

if __name__ == "__main__":
    key = jax.random.PRNGKey(0)
    kx, kp = jax.random.split(key)

    # x: (batch=2, views=4, H=16, W=16) -> per head: 16 ->conv5-> 12 ->pool-> 6 ->conv5-> 2 ->pool-> 1
    x = jax.random.normal(kx, (2, 4, 16, 16), jnp.float32)
    params = init_params(kp, latent=128, hidden=64)

    out = jax.jit(multi_views_attention_res)(x, params)
    out = jax.block_until_ready(out)
    assert out.shape == (2, 128) and out.dtype == jnp.float32
    print("KERNEL_OK")
</pallas_src>

<mosaic_0001>
module attributes {stable_mosaic.version = 11 : i64} {
  func.func @_conv1_pool_bn_relu_kernel(%arg0: i32, %arg1: memref<1x4x72x25xf32, #tpu.memory_space<vmem>>, %arg2: memref<1x25x128xf32, #tpu.memory_space<vmem>>, %arg3: memref<1x3x128xf32, #tpu.memory_space<vmem>>, %arg4: memref<1x72x128xf32, #tpu.memory_space<vmem>>) attributes {dimension_semantics = [#tpu.dimension_semantics<parallel>], iteration_bounds = array<i64: 4>, scalar_prefetch = 0 : i64, scratch_operands = 0 : i64, tpu.core_type = #tpu.core_type<tc>, window_params = [{transform_indices = @transform_0, window_bounds = array<i64: 1, 4, 72, 25>}, {transform_indices = @transform_1, window_bounds = array<i64: 1, 25, 128>}, {transform_indices = @transform_2, window_bounds = array<i64: 1, 3, 128>}, {transform_indices = @transform_3, window_bounds = array<i64: 1, 72, 128>}]} {
    %c0 = arith.constant 0 : index
    %c0_0 = arith.constant 0 : index
    %c0_1 = arith.constant 0 : index
    %c0_2 = arith.constant 0 : index
    %0 = vector.load %arg1[%c0, %c0_0, %c0_1, %c0_2] : memref<1x4x72x25xf32, #tpu.memory_space<vmem>>, vector<1x4x72x25xf32>
    %1 = vector.shape_cast %0 : vector<1x4x72x25xf32> to vector<4x72x25xf32>
    %c0_3 = arith.constant 0 : index
    %c0_4 = arith.constant 0 : index
    %c0_5 = arith.constant 0 : index
    %2 = vector.load %arg2[%c0_3, %c0_4, %c0_5] : memref<1x25x128xf32, #tpu.memory_space<vmem>>, vector<1x25x128xf32>
    %3 = vector.shape_cast %2 : vector<1x25x128xf32> to vector<25x128xf32>
    %4 = vector.extract_strided_slice %1 {offsets = [0, 0, 0], sizes = [1, 72, 25], strides = [1, 1, 1]} : vector<4x72x25xf32> to vector<1x72x25xf32>
    %5 = vector.shape_cast %4 : vector<1x72x25xf32> to vector<72x25xf32>
    %cst = arith.constant dense<0.000000e+00> : vector<72x128xf32>
    %6 = tpu.matmul %5, %3, %cst {dimension_numbers = #tpu.dot_dimension_numbers<[1], [0], [0], [1], [0, 0, 1, 1], [], []>} : vector<72x25xf32>, vector<25x128xf32>, vector<72x128xf32> -> vector<72x128xf32>
    %7 = vector.extract_strided_slice %1 {offsets = [1, 0, 0], sizes = [1, 72, 25], strides = [1, 1, 1]} : vector<4x72x25xf32> to vector<1x72x25xf32>
    %8 = vector.shape_cast %7 : vector<1x72x25xf32> to vector<72x25xf32>
    %cst_6 = arith.constant dense<0.000000e+00> : vector<72x128xf32>
    %9 = tpu.matmul %8, %3, %cst_6 {dimension_numbers = #tpu.dot_dimension_numbers<[1], [0], [0], [1], [0, 0, 1, 1], [], []>} : vector<72x25xf32>, vector<25x128xf32>, vector<72x128xf32> -> vector<72x128xf32>
    %10 = arith.maximumf %6, %9 : vector<72x128xf32>
    %11 = vector.extract_strided_slice %1 {offsets = [2, 0, 0], sizes = [1, 72, 25], strides = [1, 1, 1]} : vector<4x72x25xf32> to vector<1x72x25xf32>
    %12 = vector.shape_cast %11 : vector<1x72x25xf32> to vector<72x25xf32>
    %cst_7 = arith.constant dense<0.000000e+00> : vector<72x128xf32>
    %13 = tpu.matmul %12, %3, %cst_7 {dimension_numbers = #tpu.dot_dimension_numbers<[1], [0], [0], [1], [0, 0, 1, 1], [], []>} : vector<72x25xf32>, vector<25x128xf32>, vector<72x128xf32> -> vector<72x128xf32>
    %14 = vector.extract_strided_slice %1 {offsets = [3, 0, 0], sizes = [1, 72, 25], strides = [1, 1, 1]} : vector<4x72x25xf32> to vector<1x72x25xf32>
    %15 = vector.shape_cast %14 : vector<1x72x25xf32> to vector<72x25xf32>
    %cst_8 = arith.constant dense<0.000000e+00> : vector<72x128xf32>
    %16 = tpu.matmul %15, %3, %cst_8 {dimension_numbers = #tpu.dot_dimension_numbers<[1], [0], [0], [1], [0, 0, 1, 1], [], []>} : vector<72x25xf32>, vector<25x128xf32>, vector<72x128xf32> -> vector<72x128xf32>
    %17 = arith.maximumf %13, %16 : vector<72x128xf32>
    %18 = arith.maximumf %10, %17 : vector<72x128xf32>
    %c0_9 = arith.constant 0 : index
    %c0_10 = arith.constant 0 : index
    %c0_11 = arith.constant 0 : index
    %19 = vector.load %arg3[%c0_9, %c0_10, %c0_11] : memref<1x3x128xf32, #tpu.memory_space<vmem>>, vector<1x3x128xf32>
    %20 = vector.shape_cast %19 : vector<1x3x128xf32> to vector<3x128xf32>
    %21 = vector.extract_strided_slice %20 {offsets = [0, 0], sizes = [1, 128], strides = [1, 1]} : vector<3x128xf32> to vector<1x128xf32>
    %22 = vector.broadcast %21 : vector<1x128xf32> to vector<72x128xf32>
    %23 = arith.addf %18, %22 : vector<72x128xf32>
    %24 = vector.extract_strided_slice %20 {offsets = [1, 0], sizes = [1, 128], strides = [1, 1]} : vector<3x128xf32> to vector<1x128xf32>
    %25 = vector.broadcast %24 : vector<1x128xf32> to vector<72x128xf32>
    %26 = arith.mulf %23, %25 : vector<72x128xf32>
    %27 = vector.extract_strided_slice %20 {offsets = [2, 0], sizes = [1, 128], strides = [1, 1]} : vector<3x128xf32> to vector<1x128xf32>
    %28 = vector.broadcast %27 : vector<1x128xf32> to vector<72x128xf32>
    %29 = arith.addf %26, %28 : vector<72x128xf32>
    %cst_12 = arith.constant 0.000000e+00 : f32
    %30 = vector.broadcast %cst_12 : f32 to vector<72x128xf32>
    %31 = arith.maximumf %29, %30 : vector<72x128xf32>
    %c0_13 = arith.constant 0 : index
    %c0_14 = arith.constant 0 : index
    %c0_15 = arith.constant 0 : index
    %32 = vector.load %arg4[%c0_13, %c0_14, %c0_15] : memref<1x72x128xf32, #tpu.memory_space<vmem>>, vector<1x72x128xf32>
    %33 = vector.shape_cast %32 : vector<1x72x128xf32> to vector<72x128xf32>
    %34 = vector.shape_cast %31 : vector<72x128xf32> to vector<1x72x128xf32>
    tpu.vector_store %arg4[%c0_13, %c0_14, %c0_15], %34 {strides = array<i32>} : memref<1x72x128xf32, #tpu.memory_space<vmem>>, vector<1x72x128xf32>,
    return
  }
  func.func @transform_0(%arg0: i32) -> (i32, i32, i32, i32) {
    %c0_i32 = arith.constant 0 : i32
    %c0_i32_0 = arith.constant 0 : i32
    %c0_i32_1 = arith.constant 0 : i32
    %c0_i32_2 = arith.constant 0 : i32
    return %arg0, %c0_i32, %c0_i32_0, %c0_i32_1 : i32, i32, i32, i32
  }
  func.func @transform_1(%arg0: i32) -> (i32, i32, i32) {
    %c0_i32 = arith.constant 0 : i32
    %c0_i32_0 = arith.constant 0 : i32
    %c0_i32_1 = arith.constant 0 : i32
    return %arg0, %c0_i32, %c0_i32_0 : i32, i32, i32
  }
  func.func @transform_2(%arg0: i32) -> (i32, i32, i32) {
    %c0_i32 = arith.constant 0 : i32
    %c0_i32_0 = arith.constant 0 : i32
    %c0_i32_1 = arith.constant 0 : i32
    return %arg0, %c0_i32, %c0_i32_0 : i32, i32, i32
  }
  func.func @transform_3(%arg0: i32) -> (i32, i32, i32) {
    %c0_i32 = arith.constant 0 : i32
    %c0_i32_0 = arith.constant 0 : i32
    %c0_i32_1 = arith.constant 0 : i32
    return %arg0, %c0_i32, %c0_i32_0 : i32, i32, i32
  }
}

module attributes {stable_mosaic.version = 11 : i64} {
  func.func @_conv2_head_tail_kernel(%arg0: i32, %arg1: memref<1x4x2x3200xf32, #tpu.memory_space<vmem>>, %arg2: memref<1x3200x128xf32, #tpu.memory_space<vmem>>, %arg3: memref<1x128x128xf32, #tpu.memory_space<vmem>>, %arg4: memref<1x4x128xf32, #tpu.memory_space<vmem>>, %arg5: memref<1x2x128xf32, #tpu.memory_space<vmem>>) attributes {dimension_semantics = [#tpu.dimension_semantics<parallel>], iteration_bounds = array<i64: 4>, scalar_prefetch = 0 : i64, scratch_operands = 0 : i64, tpu.core_type = #tpu.core_type<tc>, window_params = [{transform_indices = @transform_0, window_bounds = array<i64: 1, 4, 2, 3200>}, {transform_indices = @transform_1, window_bounds = array<i64: 1, 3200, 128>}, {transform_indices = @transform_2, window_bounds = array<i64: 1, 128, 128>}, {transform_indices = @transform_3, window_bounds = array<i64: 1, 4, 128>}, {transform_indices = @transform_4, window_bounds = array<i64: 1, 2, 128>}]} {
    %c0 = arith.constant 0 : index
    %c0_0 = arith.constant 0 : index
    %c0_1 = arith.constant 0 : index
    %c0_2 = arith.constant 0 : index
    %0 = vector.load %arg1[%c0, %c0_0, %c0_1, %c0_2] : memref<1x4x2x3200xf32, #tpu.memory_space<vmem>>, vector<1x4x2x3200xf32>
    %1 = vector.shape_cast %0 : vector<1x4x2x3200xf32> to vector<4x2x3200xf32>
    %c0_3 = arith.constant 0 : index
    %c0_4 = arith.constant 0 : index
    %c0_5 = arith.constant 0 : index
    %2 = vector.load %arg2[%c0_3, %c0_4, %c0_5] : memref<1x3200x128xf32, #tpu.memory_space<vmem>>, vector<1x3200x128xf32>
    %3 = vector.shape_cast %2 : vector<1x3200x128xf32> to vector<3200x128xf32>
    %4 = vector.extract_strided_slice %1 {offsets = [0, 0, 0], sizes = [1, 2, 3200], strides = [1, 1, 1]} : vector<4x2x3200xf32> to vector<1x2x3200xf32>
    %5 = vector.shape_cast %4 : vector<1x2x3200xf32> to vector<2x3200xf32>
    %cst = arith.constant dense<0.000000e+00> : vector<2x128xf32>
    %6 = tpu.matmul %5, %3, %cst {dimension_numbers = #tpu.dot_dimension_numbers<[1], [0], [0], [1], [0, 0, 1, 1], [], []>} : vector<2x3200xf32>, vector<3200x128xf32>, vector<2x128xf32> -> vector<2x128xf32>
    %7 = vector.extract_strided_slice %1 {offsets = [1, 0, 0], sizes = [1, 2, 3200], strides = [1, 1, 1]} : vector<4x2x3200xf32> to vector<1x2x3200xf32>
    %8 = vector.shape_cast %7 : vector<1x2x3200xf32> to vector<2x3200xf32>
    %cst_6 = arith.constant dense<0.000000e+00> : vector<2x128xf32>
    %9 = tpu.matmul %8, %3, %cst_6 {dimension_numbers = #tpu.dot_dimension_numbers<[1], [0], [0], [1], [0, 0, 1, 1], [], []>} : vector<2x3200xf32>, vector<3200x128xf32>, vector<2x128xf32> -> vector<2x128xf32>
    %10 = arith.maximumf %6, %9 : vector<2x128xf32>
    %11 = vector.extract_strided_slice %1 {offsets = [2, 0, 0], sizes = [1, 2, 3200], strides = [1, 1, 1]} : vector<4x2x3200xf32> to vector<1x2x3200xf32>
    %12 = vector.shape_cast %11 : vector<1x2x3200xf32> to vector<2x3200xf32>
    %cst_7 = arith.constant dense<0.000000e+00> : vector<2x128xf32>
    %13 = tpu.matmul %12, %3, %cst_7 {dimension_numbers = #tpu.dot_dimension_numbers<[1], [0], [0], [1], [0, 0, 1, 1], [], []>} : vector<2x3200xf32>, vector<3200x128xf32>, vector<2x128xf32> -> vector<2x128xf32>
    %14 = vector.extract_strided_slice %1 {offsets = [3, 0, 0], sizes = [1, 2, 3200], strides = [1, 1, 1]} : vector<4x2x3200xf32> to vector<1x2x3200xf32>
    %15 = vector.shape_cast %14 : vector<1x2x3200xf32> to vector<2x3200xf32>
    %cst_8 = arith.constant dense<0.000000e+00> : vector<2x128xf32>
    %16 = tpu.matmul %15, %3, %cst_8 {dimension_numbers = #tpu.dot_dimension_numbers<[1], [0], [0], [1], [0, 0, 1, 1], [], []>} : vector<2x3200xf32>, vector<3200x128xf32>, vector<2x128xf32> -> vector<2x128xf32>
    %17 = arith.maximumf %13, %16 : vector<2x128xf32>
    %18 = arith.maximumf %10, %17 : vector<2x128xf32>
    %c0_9 = arith.constant 0 : index
    %c0_10 = arith.constant 0 : index
    %c0_11 = arith.constant 0 : index
    %19 = vector.load %arg4[%c0_9, %c0_10, %c0_11] : memref<1x4x128xf32, #tpu.memory_space<vmem>>, vector<1x4x128xf32>
    %20 = vector.shape_cast %19 : vector<1x4x128xf32> to vector<4x128xf32>
    %21 = vector.extract_strided_slice %20 {offsets = [0, 0], sizes = [1, 128], strides = [1, 1]} : vector<4x128xf32> to vector<1x128xf32>
    %22 = vector.broadcast %21 : vector<1x128xf32> to vector<2x128xf32>
    %23 = arith.addf %18, %22 : vector<2x128xf32>
    %24 = vector.extract_strided_slice %20 {offsets = [1, 0], sizes = [1, 128], strides = [1, 1]} : vector<4x128xf32> to vector<1x128xf32>
    %25 = vector.broadcast %24 : vector<1x128xf32> to vector<2x128xf32>
    %26 = arith.mulf %23, %25 : vector<2x128xf32>
    %27 = vector.extract_strided_slice %20 {offsets = [2, 0], sizes = [1, 128], strides = [1, 1]} : vector<4x128xf32> to vector<1x128xf32>
    %28 = vector.broadcast %27 : vector<1x128xf32> to vector<2x128xf32>
    %29 = arith.addf %26, %28 : vector<2x128xf32>
    %cst_12 = arith.constant 0.000000e+00 : f32
    %30 = vector.broadcast %cst_12 : f32 to vector<2x128xf32>
    %31 = arith.maximumf %29, %30 : vector<2x128xf32>
    %c0_13 = arith.constant 0 : index
    %c0_14 = arith.constant 0 : index
    %c0_15 = arith.constant 0 : index
    %32 = vector.load %arg3[%c0_13, %c0_14, %c0_15] : memref<1x128x128xf32, #tpu.memory_space<vmem>>, vector<1x128x128xf32>
    %33 = vector.shape_cast %32 : vector<1x128x128xf32> to vector<128x128xf32>
    %cst_16 = arith.constant dense<0.000000e+00> : vector<2x128xf32>
    %34 = tpu.matmul %31, %33, %cst_16 {dimension_numbers = #tpu.dot_dimension_numbers<[1], [0], [0], [1], [0, 0, 1, 1], [], []>} : vector<2x128xf32>, vector<128x128xf32>, vector<2x128xf32> -> vector<2x128xf32>
    %35 = vector.extract_strided_slice %20 {offsets = [3, 0], sizes = [1, 128], strides = [1, 1]} : vector<4x128xf32> to vector<1x128xf32>
    %36 = vector.broadcast %35 : vector<1x128xf32> to vector<2x128xf32>
    %37 = arith.addf %34, %36 : vector<2x128xf32>
    %cst_17 = arith.constant 0.000000e+00 : f32
    %38 = vector.broadcast %cst_17 : f32 to vector<2x128xf32>
    %39 = arith.maximumf %37, %38 : vector<2x128xf32>
    %c0_18 = arith.constant 0 : index
    %c0_19 = arith.constant 0 : index
    %c0_20 = arith.constant 0 : index
    %40 = vector.load %arg5[%c0_18, %c0_19, %c0_20] : memref<1x2x128xf32, #tpu.memory_space<vmem>>, vector<1x2x128xf32>
    %41 = vector.shape_cast %40 : vector<1x2x128xf32> to vector<2x128xf32>
    %42 = vector.shape_cast %39 : vector<2x128xf32> to vector<1x2x128xf32>
    tpu.vector_store %arg5[%c0_18, %c0_19, %c0_20], %42 {strides = array<i32>} : memref<1x2x128xf32, #tpu.memory_space<vmem>>, vector<1x2x128xf32>,
    return
  }
  func.func @transform_0(%arg0: i32) -> (i32, i32, i32, i32) {
    %c0_i32 = arith.constant 0 : i32
    %c0_i32_0 = arith.constant 0 : i32
    %c0_i32_1 = arith.constant 0 : i32
    %c0_i32_2 = arith.constant 0 : i32
    return %arg0, %c0_i32, %c0_i32_0, %c0_i32_1 : i32, i32, i32, i32
  }
  func.func @transform_1(%arg0: i32) -> (i32, i32, i32) {
    %c0_i32 = arith.constant 0 : i32
    %c0_i32_0 = arith.constant 0 : i32
    %c0_i32_1 = arith.constant 0 : i32
    return %arg0, %c0_i32, %c0_i32_0 : i32, i32, i32
  }
  func.func @transform_2(%arg0: i32) -> (i32, i32, i32) {
    %c0_i32 = arith.constant 0 : i32
    %c0_i32_0 = arith.constant 0 : i32
    %c0_i32_1 = arith.constant 0 : i32
    return %arg0, %c0_i32, %c0_i32_0 : i32, i32, i32
  }
  func.func @transform_3(%arg0: i32) -> (i32, i32, i32) {
    %c0_i32 = arith.constant 0 : i32
    %c0_i32_0 = arith.constant 0 : i32
    %c0_i32_1 = arith.constant 0 : i32
    return %arg0, %c0_i32, %c0_i32_0 : i32, i32, i32
  }
  func.func @transform_4(%arg0: i32) -> (i32, i32, i32) {
    %c0_i32 = arith.constant 0 : i32
    %c0_i32_0 = arith.constant 0 : i32
    %c0_i32_1 = arith.constant 0 : i32
    return %arg0, %c0_i32, %c0_i32_0 : i32, i32, i32
  }
}

module attributes {stable_mosaic.version = 11 : i64} {
  func.func @_attention_kernel(%arg0: memref<4x2x128xf32, #tpu.memory_space<vmem>>, %arg1: memref<128x64xf32, #tpu.memory_space<vmem>>, %arg2: memref<1x64xf32, #tpu.memory_space<vmem>>, %arg3: memref<64x1xf32, #tpu.memory_space<vmem>>, %arg4: memref<1x1xf32, #tpu.memory_space<vmem>>, %arg5: memref<2x128xf32, #tpu.memory_space<vmem>>) attributes {dimension_semantics = [], scalar_prefetch = 0 : i64, scratch_operands = 0 : i64, tpu.core_type = #tpu.core_type<tc>} {
    %c0 = arith.constant 0 : index
    %c0_0 = arith.constant 0 : index
    %c0_1 = arith.constant 0 : index
    %0 = vector.load %arg0[%c0, %c0_0, %c0_1] : memref<4x2x128xf32, #tpu.memory_space<vmem>>, vector<4x2x128xf32>
    %1 = vector.extract_strided_slice %0 {offsets = [0, 0, 0], sizes = [1, 2, 128], strides = [1, 1, 1]} : vector<4x2x128xf32> to vector<1x2x128xf32>
    %2 = vector.shape_cast %1 : vector<1x2x128xf32> to vector<2x128xf32>
    %3 = vector.extract_strided_slice %0 {offsets = [1, 0, 0], sizes = [1, 2, 128], strides = [1, 1, 1]} : vector<4x2x128xf32> to vector<1x2x128xf32>
    %4 = vector.shape_cast %3 : vector<1x2x128xf32> to vector<2x128xf32>
    %5 = vector.extract_strided_slice %0 {offsets = [2, 0, 0], sizes = [1, 2, 128], strides = [1, 1, 1]} : vector<4x2x128xf32> to vector<1x2x128xf32>
    %6 = vector.shape_cast %5 : vector<1x2x128xf32> to vector<2x128xf32>
    %7 = vector.extract_strided_slice %0 {offsets = [3, 0, 0], sizes = [1, 2, 128], strides = [1, 1, 1]} : vector<4x2x128xf32> to vector<1x2x128xf32>
    %8 = vector.shape_cast %7 : vector<1x2x128xf32> to vector<2x128xf32>
    %c0_2 = arith.constant 0 : index
    %c0_3 = arith.constant 0 : index
    %9 = vector.load %arg1[%c0_2, %c0_3] : memref<128x64xf32, #tpu.memory_space<vmem>>, vector<128x64xf32>
    %cst = arith.constant dense<0.000000e+00> : vector<2x64xf32>
    %10 = tpu.matmul %2, %9, %cst {dimension_numbers = #tpu.dot_dimension_numbers<[1], [0], [0], [1], [0, 0, 1, 1], [], []>} : vector<2x128xf32>, vector<128x64xf32>, vector<2x64xf32> -> vector<2x64xf32>
    %c0_4 = arith.constant 0 : index
    %c0_5 = arith.constant 0 : index
    %11 = vector.load %arg2[%c0_4, %c0_5] : memref<1x64xf32, #tpu.memory_space<vmem>>, vector<1x64xf32>
    %12 = vector.broadcast %11 : vector<1x64xf32> to vector<2x64xf32>
    %13 = arith.addf %10, %12 : vector<2x64xf32>
    %14 = math.tanh %13 : vector<2x64xf32>
    %c0_6 = arith.constant 0 : index
    %c0_7 = arith.constant 0 : index
    %15 = vector.load %arg3[%c0_6, %c0_7] : memref<64x1xf32, #tpu.memory_space<vmem>>, vector<64x1xf32>
    %cst_8 = arith.constant dense<0.000000e+00> : vector<2x1xf32>
    %16 = tpu.matmul %14, %15, %cst_8 {dimension_numbers = #tpu.dot_dimension_numbers<[1], [0], [0], [1], [0, 0, 1, 1], [], []>} : vector<2x64xf32>, vector<64x1xf32>, vector<2x1xf32> -> vector<2x1xf32>
    %c0_9 = arith.constant 0 : index
    %c0_10 = arith.constant 0 : index
    %17 = vector.load %arg4[%c0_9, %c0_10] : memref<1x1xf32, #tpu.memory_space<vmem>>, vector<1x1xf32>
    %18 = vector.broadcast %17 : vector<1x1xf32> to vector<2x1xf32>
    %19 = arith.addf %16, %18 : vector<2x1xf32>
    %c0_11 = arith.constant 0 : index
    %c0_12 = arith.constant 0 : index
    %20 = vector.load %arg1[%c0_11, %c0_12] : memref<128x64xf32, #tpu.memory_space<vmem>>, vector<128x64xf32>
    %cst_13 = arith.constant dense<0.000000e+00> : vector<2x64xf32>
    %21 = tpu.matmul %4, %20, %cst_13 {dimension_numbers = #tpu.dot_dimension_numbers<[1], [0], [0], [1], [0, 0, 1, 1], [], []>} : vector<2x128xf32>, vector<128x64xf32>, vector<2x64xf32> -> vector<2x64xf32>
    %c0_14 = arith.constant 0 : index
    %c0_15 = arith.constant 0 : index
    %22 = vector.load %arg2[%c0_14, %c0_15] : memref<1x64xf32, #tpu.memory_space<vmem>>, vector<1x64xf32>
    %23 = vector.broadcast %22 : vector<1x64xf32> to vector<2x64xf32>
    %24 = arith.addf %21, %23 : vector<2x64xf32>
    %25 = math.tanh %24 : vector<2x64xf32>
    %c0_16 = arith.constant 0 : index
    %c0_17 = arith.constant 0 : index
    %26 = vector.load %arg3[%c0_16, %c0_17] : memref<64x1xf32, #tpu.memory_space<vmem>>, vector<64x1xf32>
    %cst_18 = arith.constant dense<0.000000e+00> : vector<2x1xf32>
    %27 = tpu.matmul %25, %26, %cst_18 {dimension_numbers = #tpu.dot_dimension_numbers<[1], [0], [0], [1], [0, 0, 1, 1], [], []>} : vector<2x64xf32>, vector<64x1xf32>, vector<2x1xf32> -> vector<2x1xf32>
    %c0_19 = arith.constant 0 : index
    %c0_20 = arith.constant 0 : index
    %28 = vector.load %arg4[%c0_19, %c0_20] : memref<1x1xf32, #tpu.memory_space<vmem>>, vector<1x1xf32>
    %29 = vector.broadcast %28 : vector<1x1xf32> to vector<2x1xf32>
    %30 = arith.addf %27, %29 : vector<2x1xf32>
    %c0_21 = arith.constant 0 : index
    %c0_22 = arith.constant 0 : index
    %31 = vector.load %arg1[%c0_21, %c0_22] : memref<128x64xf32, #tpu.memory_space<vmem>>, vector<128x64xf32>
    %cst_23 = arith.constant dense<0.000000e+00> : vector<2x64xf32>
    %32 = tpu.matmul %6, %31, %cst_23 {dimension_numbers = #tpu.dot_dimension_numbers<[1], [0], [0], [1], [0, 0, 1, 1], [], []>} : vector<2x128xf32>, vector<128x64xf32>, vector<2x64xf32> -> vector<2x64xf32>
    %c0_24 = arith.constant 0 : index
    %c0_25 = arith.constant 0 : index
    %33 = vector.load %arg2[%c0_24, %c0_25] : memref<1x64xf32, #tpu.memory_space<vmem>>, vector<1x64xf32>
    %34 = vector.broadcast %33 : vector<1x64xf32> to vector<2x64xf32>
    %35 = arith.addf %32, %34 : vector<2x64xf32>
    %36 = math.tanh %35 : vector<2x64xf32>
    %c0_26 = arith.constant 0 : index
    %c0_27 = arith.constant 0 : index
    %37 = vector.load %arg3[%c0_26, %c0_27] : memref<64x1xf32, #tpu.memory_space<vmem>>, vector<64x1xf32>
    %cst_28 = arith.constant dense<0.000000e+00> : vector<2x1xf32>
    %38 = tpu.matmul %36, %37, %cst_28 {dimension_numbers = #tpu.dot_dimension_numbers<[1], [0], [0], [1], [0, 0, 1, 1], [], []>} : vector<2x64xf32>, vector<64x1xf32>, vector<2x1xf32> -> vector<2x1xf32>
    %c0_29 = arith.constant 0 : index
    %c0_30 = arith.constant 0 : index
    %39 = vector.load %arg4[%c0_29, %c0_30] : memref<1x1xf32, #tpu.memory_space<vmem>>, vector<1x1xf32>
    %40 = vector.broadcast %39 : vector<1x1xf32> to vector<2x1xf32>
    %41 = arith.addf %38, %40 : vector<2x1xf32>
    %c0_31 = arith.constant 0 : index
    %c0_32 = arith.constant 0 : index
    %42 = vector.load %arg1[%c0_31, %c0_32] : memref<128x64xf32, #tpu.memory_space<vmem>>, vector<128x64xf32>
    %cst_33 = arith.constant dense<0.000000e+00> : vector<2x64xf32>
    %43 = tpu.matmul %8, %42, %cst_33 {dimension_numbers = #tpu.dot_dimension_numbers<[1], [0], [0], [1], [0, 0, 1, 1], [], []>} : vector<2x128xf32>, vector<128x64xf32>, vector<2x64xf32> -> vector<2x64xf32>
    %c0_34 = arith.constant 0 : index
    %c0_35 = arith.constant 0 : index
    %44 = vector.load %arg2[%c0_34, %c0_35] : memref<1x64xf32, #tpu.memory_space<vmem>>, vector<1x64xf32>
    %45 = vector.broadcast %44 : vector<1x64xf32> to vector<2x64xf32>
    %46 = arith.addf %43, %45 : vector<2x64xf32>
    %47 = math.tanh %46 : vector<2x64xf32>
    %c0_36 = arith.constant 0 : index
    %c0_37 = arith.constant 0 : index
    %48 = vector.load %arg3[%c0_36, %c0_37] : memref<64x1xf32, #tpu.memory_space<vmem>>, vector<64x1xf32>
    %cst_38 = arith.constant dense<0.000000e+00> : vector<2x1xf32>
    %49 = tpu.matmul %47, %48, %cst_38 {dimension_numbers = #tpu.dot_dimension_numbers<[1], [0], [0], [1], [0, 0, 1, 1], [], []>} : vector<2x64xf32>, vector<64x1xf32>, vector<2x1xf32> -> vector<2x1xf32>
    %c0_39 = arith.constant 0 : index
    %c0_40 = arith.constant 0 : index
    %50 = vector.load %arg4[%c0_39, %c0_40] : memref<1x1xf32, #tpu.memory_space<vmem>>, vector<1x1xf32>
    %51 = vector.broadcast %50 : vector<1x1xf32> to vector<2x1xf32>
    %52 = arith.addf %49, %51 : vector<2x1xf32>
    %53 = arith.maximumf %19, %30 : vector<2x1xf32>
    %54 = arith.maximumf %41, %52 : vector<2x1xf32>
    %55 = arith.maximumf %53, %54 : vector<2x1xf32>
    %56 = arith.subf %19, %55 : vector<2x1xf32>
    %57 = math.exp %56 : vector<2x1xf32>
    %58 = arith.subf %30, %55 : vector<2x1xf32>
    %59 = math.exp %58 : vector<2x1xf32>
    %60 = arith.subf %41, %55 : vector<2x1xf32>
    %61 = math.exp %60 : vector<2x1xf32>
    %62 = arith.subf %52, %55 : vector<2x1xf32>
    %63 = math.exp %62 : vector<2x1xf32>
    %64 = arith.addf %57, %59 : vector<2x1xf32>
    %65 = arith.addf %64, %61 : vector<2x1xf32>
    %66 = arith.addf %65, %63 : vector<2x1xf32>
    %67 = vector.broadcast %57 : vector<2x1xf32> to vector<2x128xf32>
    %68 = arith.mulf %67, %2 : vector<2x128xf32>
    %69 = vector.broadcast %59 : vector<2x1xf32> to vector<2x128xf32>
    %70 = arith.mulf %69, %4 : vector<2x128xf32>
    %71 = arith.addf %68, %70 : vector<2x128xf32>
    %72 = vector.broadcast %61 : vector<2x1xf32> to vector<2x128xf32>
    %73 = arith.mulf %72, %6 : vector<2x128xf32>
    %74 = arith.addf %71, %73 : vector<2x128xf32>
    %75 = vector.broadcast %63 : vector<2x1xf32> to vector<2x128xf32>
    %76 = arith.mulf %75, %8 : vector<2x128xf32>
    %77 = arith.addf %74, %76 : vector<2x128xf32>
    %78 = vector.broadcast %66 : vector<2x1xf32> to vector<2x128xf32>
    %79 = arith.divf %77, %78 : vector<2x128xf32>
    %c0_41 = arith.constant 0 : index
    %c0_42 = arith.constant 0 : index
    %80 = vector.load %arg5[%c0_41, %c0_42] : memref<2x128xf32, #tpu.memory_space<vmem>>, vector<2x128xf32>
    tpu.vector_store %arg5[%c0_41, %c0_42], %79 {strides = array<i32>} : memref<2x128xf32, #tpu.memory_space<vmem>>, vector<2x128xf32>,
    return
  }
}

</mosaic_0001>

<bundles_post_ra>
// kernel: multi_views_attention_res.3
= control target key start
LH: loop header
LB: loop body
LE: loop exit
PB: predicated region body
PF: predicated region fallthrough
CT: control target
= control target key end

     0   :  { %s1252_s12 = smov 0   ;;  %s1533_s0 = inlined_call_operand.vmem [shape: f32[4,4,72,25], index: 0, kind: input, shape index: {}]   ;;  %s1534_s1 = inlined_call_operand.vmem [shape: f32[4,25,128], index: 1, kind: input, shape index: {}]   ;;  %s1535_s2 = inlined_call_operand.vmem [shape: f32[4,3,128], index: 2, kind: input, shape index: {}]   ;;  %s1536_s3 = inlined_call_operand.vmem [shape: f32[4,72,128], index: 3, kind: output, shape index: {}]  }
   0x1 LB: > { %s965_s13 = sadd.s32 4294967295, %s1228_s12   ;;  %p969_p0 = scmp.ge.s32.totalorder %s1228_s12, 1  ;;  %s1228_s12 = sphi %s1252_s12, %s13_s12  }
   0x2   : > { %p156_p1 = scmp.lt.s32.totalorder %s1228_s12, 5 }
   0x4   : > { %p157_p2 = pnand %p969_p0, %p156_p1 }
   0x5   : > { %p189_p3 = scmp.lt.s32.totalorder (!%p157_p2), %s965_s13, 3 }
   0x6   : > { %160 = sbr.rel (%p157_p2) target bundleno = 296 (0x128), region = 32 }
   0xb   : > { %v1230_v0 = vmov 0.0   ;;  %s1538_s13 = smov (!%p189_p3, %s965_s13), 3  ;;  %vm1231_vm0 = vmmov 0   ;;  %vm276_vm1 = vcmask 1040384   ;;  %vm248_vm2 = vcmask 203776  }
   0xc   : > { %1070 = vmatprep.subr.mxu0 %v1230_v0  ;;  %1105 = vmatprep.subr.mxu1 %v1230_v0  ;;  %s1210_s14 = smul.u32 288, %s1538_s13  ;;  %s1017_s15 = sshll.u32 %s1538_s13, 5 }
   0xd   : > { %1078 = vmatprep.mubr.msk.f32.mxu0 %vm1231_vm0, %v1230_v0  ;;  %1113 = vmatprep.mubr.msk.f32.mxu1 %vm1231_vm0, %v1230_v0  ;;  %s198_s18 = scalar_lea.vmem %s1534_s1, %s1017_s15  ;;  %s973_s22 = sshll.u32 %s1538_s13, 2 }
   0xe   : > { %v247_v1 = vld [vmem:[%s198_s18 + $0x18] sm:$0x1]  ;;  %v246_v2 = vld [vmem:[%s198_s18 + $0x10] sm:$0xff]  ;;  %s1278_s21 = scalar_lea.vmem %s1533_s0, %s1210_s14  ;;  %v245_v3 = vld [vmem:[%s198_s18 + $0x8] sm:$0xff]  ;;  %s202_s25 = scalar_lea.vmem %s1535_s2, %s973_s22 }
   0xf   : > { %1071 = vmatpush3.msk.msra.mxu0 %vm276_vm1, %v247_v1  ;;  %1106 = vmatpush3.msk.msra.mxu1 %vm276_vm1, %v247_v1  ;;  %v244_v4 = vld [vmem:[%s198_s18] sm:$0xff]  ;;  %v217_v6 = vld [vmem:[%s1278_s21 + $0x48] sm:$0xff]  ;;  %v218_v8 = vld [vmem:[%s1278_s21 + $0x50] sm:$0xff]  ;;  %s1211_s26 = smul.u32 72, %s1538_s13 }
  0x10   : > { %1072 = vmatprep.subr.mxu0 %v1230_v0  ;;  %1107 = vmatprep.subr.mxu1 %v1230_v0  ;;  %v208_v5 = vld [vmem:[%s1278_s21] sm:$0xff]  ;;  %v209_v7 = vld [vmem:[%s1278_s21 + $0x8] sm:$0xff]  ;;  %v210_v9 = vld [vmem:[%s1278_s21 + $0x10] sm:$0xff] }
  0x11   : > { %1073 = vmatpush3.msra.mxu0 %v246_v2  ;;  %1108 = vmatpush3.msra.mxu1 %v246_v2  ;;  %v219_v10 = vld [vmem:[%s1278_s21 + $0x58] sm:$0xff]  ;;  %v220_v12 = vld [vmem:[%s1278_s21 + $0x60] sm:$0xff]  ;;  %v221_v14 = vld [vmem:[%s1278_s21 + $0x68] sm:$0xff]  ;;  %s1484_s29 = scalar_lea.vmem %s1536_s3, %s1211_s26 }
  0x12   : > { %1074 = vmatprep.subr.mxu0 %v1230_v0  ;;  %1109 = vmatprep.subr.mxu1 %v1230_v0  ;;  %v211_v11 = vld [vmem:[%s1278_s21 + $0x18] sm:$0xff]  ;;  %v212_v13 = vld [vmem:[%s1278_s21 + $0x20] sm:$0xff]  ;;  %v213_v15 = vld [vmem:[%s1278_s21 + $0x28] sm:$0xff] }
  0x13   : > { %1075 = vmatpush3.msra.mxu0 %v245_v3  ;;  %1110 = vmatpush3.msra.mxu1 %v245_v3  ;;  %v222_v16 = vld [vmem:[%s1278_s21 + $0x70] sm:$0xff]  ;;  %v223_v18 = vld [vmem:[%s1278_s21 + $0x78] sm:$0xff]  ;;  %v224_v20 = vld [vmem:[%s1278_s21 + $0x80] sm:$0xff] }
  0x14   : > { %1076 = vmatprep.subr.mxu0 %v1230_v0  ;;  %1111 = vmatprep.subr.mxu1 %v1230_v0  ;;  %v214_v17 = vld [vmem:[%s1278_s21 + $0x30] sm:$0xff]  ;;  %v215_v19 = vld [vmem:[%s1278_s21 + $0x38] sm:$0xff]  ;;  %v216_v21 = vld [vmem:[%s1278_s21 + $0x40] sm:$0xff] }
  0x15   : > { %1077 = vmatpush3.msra.mxu0 %v244_v4  ;;  %1112 = vmatpush3.msra.mxu1 %v244_v4  ;;  %v225_v22 = vld [vmem:[%s1278_s21 + $0x88] sm:$0xff]  ;;  %v226_v23 = vld [vmem:[%s1278_s21 + $0x90] sm:$0xff]  ;;  %v235_v24 = vld [vmem:[%s1278_s21 + $0xd8] sm:$0xff] }
  0x16   : > { %1079 = vmatmul.mubr.msk.f32.vlgmr.msra.gmra.mxu0 %vm248_vm2, %v208_v5  ;;  %1114 = vmatmul.mubr.msk.f32.vlgmr.msra.gmra.mxu1 %vm248_vm2, %v217_v6  ;;  %v227_v25 = vld [vmem:[%s1278_s21 + $0x98] sm:$0xff]  ;;  %v236_v26 = vld [vmem:[%s1278_s21 + $0xe0] sm:$0xff]  ;;  %v237_v28 = vld [vmem:[%s1278_s21 + $0xe8] sm:$0xff] }
  0x17   : > { %1140 = vmatprep.subr.mxu0 %v1230_v0  ;;  %1175 = vmatprep.subr.mxu1 %v1230_v0  ;;  %v228_v27 = vld [vmem:[%s1278_s21 + $0xa0] sm:$0xff]  ;;  %v229_v29 = vld [vmem:[%s1278_s21 + $0xa8] sm:$0xff]  ;;  %v238_v30 = vld [vmem:[%s1278_s21 + $0xf0] sm:$0xff] }
  0x18   : > { %1141 = vmatpush3.msk.msra.mxu0 %vm276_vm1, %v247_v1  ;;  %1176 = vmatpush3.msk.msra.mxu1 %vm276_vm1, %v247_v1  ;;  %v230_v31 = vld [vmem:[%s1278_s21 + $0xb0] sm:$0xff]  ;;  %v239_v32 = vld [vmem:[%s1278_s21 + $0xf8] sm:$0xff]  ;;  %v240_v34 = vld [vmem:[%s1278_s21 + $0x100] sm:$0xff] }
  0x19   : > { %1081 = vmatprep.mubr.msk.f32.mxu0 %vm1231_vm0, %v1230_v0  ;;  %1116 = vmatprep.mubr.msk.f32.mxu1 %vm1231_vm0, %v1230_v0  ;;  %v231_v33 = vld [vmem:[%s1278_s21 + $0xb8] sm:$0xff]  ;;  %v232_v35 = vld [vmem:[%s1278_s21 + $0xc0] sm:$0xff]  ;;  %v241_v36 = vld [vmem:[%s1278_s21 + $0x108] sm:$0xff] }
  0x1a   : > { %1082 = vmatmul.mubr.msk.f32.gmra.mxu0 %vm248_vm2, %v209_v7  ;;  %1117 = vmatmul.mubr.msk.f32.gmra.mxu1 %vm248_vm2, %v218_v8  ;;  %v233_v37 = vld [vmem:[%s1278_s21 + $0xc8] sm:$0xff]  ;;  %v242_v38 = vld [vmem:[%s1278_s21 + $0x110] sm:$0xff]  ;;  %v243_v40 = vld [vmem:[%s1278_s21 + $0x118] sm:$0xff] }
  0x1b   : > { %1084 = vmatprep.mubr.msk.f32.mxu0 %vm1231_vm0, %v1230_v0  ;;  %1119 = vmatprep.mubr.msk.f32.mxu1 %vm1231_vm0, %v1230_v0  ;;  %v234_v39 = vld [vmem:[%s1278_s21 + $0xd0] sm:$0xff] }
  0x1c   : > { %1142 = vmatprep.subr.mxu0 %v1230_v0  ;;  %1177 = vmatprep.subr.mxu1 %v1230_v0 }
  0x1d   : > { %1143 = vmatpush3.msra.mxu0 %v246_v2  ;;  %1178 = vmatpush3.msra.mxu1 %v246_v2 }
  0x1e   : > { %1085 = vmatmul.mubr.msk.f32.gmra.mxu0 %vm248_vm2, %v210_v9  ;;  %1120 = vmatmul.mubr.msk.f32.gmra.mxu1 %vm248_vm2, %v219_v10 }
  0x1f   : > { %1087 = vmatprep.mubr.msk.f32.mxu0 %vm1231_vm0, %v1230_v0  ;;  %1122 = vmatprep.mubr.msk.f32.mxu1 %vm1231_vm0, %v1230_v0 }
  0x20   : > { %1144 = vmatprep.subr.mxu0 %v1230_v0  ;;  %1179 = vmatprep.subr.mxu1 %v1230_v0 }
  0x21   : > { %1145 = vmatpush3.msra.mxu0 %v245_v3  ;;  %1180 = vmatpush3.msra.mxu1 %v245_v3  ;;  %v829_v3 = vlaneseq }
  0x22   : > { %1088 = vmatmul.mubr.msk.f32.gmra.mxu0 %vm248_vm2, %v211_v11  ;;  %1123 = vmatmul.mubr.msk.f32.gmra.mxu1 %vm248_vm2, %v220_v12 }
  0x23   : > { %1090 = vmatprep.mubr.msk.f32.mxu0 %vm1231_vm0, %v1230_v0  ;;  %1125 = vmatprep.mubr.msk.f32.mxu1 %vm1231_vm0, %v1230_v0  ;;  %v830_v8 = vshrl.u32 %v829_v3, 7 }
  0x24   : > { %1146 = vmatprep.subr.mxu0 %v1230_v0  ;;  %1181 = vmatprep.subr.mxu1 %v1230_v0 }
  0x25   : > { %1147 = vmatpush3.msra.mxu0 %v244_v4  ;;  %1182 = vmatpush3.msra.mxu1 %v244_v4 }
  0x26   : > { %1091 = vmatmul.mubr.msk.f32.gmra.mxu0 %vm248_vm2, %v212_v13  ;;  %1126 = vmatmul.mubr.msk.f32.gmra.mxu1 %vm248_vm2, %v221_v14  ;;  %v831_v13 = vsub.s32 0, %v830_v8  ;;  %v828_v14 = vld [vmem:[%s202_s25] sm:$0x7] }
  0x27   : > { %1093 = vmatprep.mubr.msk.f32.mxu0 %vm1231_vm0, %v1230_v0  ;;  %1128 = vmatprep.mubr.msk.f32.mxu1 %vm1231_vm0, %v1230_v0 }
  0x2a   : > { %1094 = vmatmul.mubr.msk.f32.gmra.mxu0 %vm248_vm2, %v213_v15  ;;  %1129 = vmatmul.mubr.msk.f32.gmra.mxu1 %vm248_vm2, %v222_v16 }
  0x2b   : > { %1096 = vmatprep.mubr.msk.f32.mxu0 %vm1231_vm0, %v1230_v0  ;;  %1131 = vmatprep.mubr.msk.f32.mxu1 %vm1231_vm0, %v1230_v0 }
  0x2e   : > { %1097 = vmatmul.mubr.msk.f32.gmra.mxu0 %vm248_vm2, %v214_v17  ;;  %1132 = vmatmul.mubr.msk.f32.gmra.mxu1 %vm248_vm2, %v223_v18  ;;  %v844_v17 = vsub.s32 1, %v830_v8 }
  0x2f   : > { %1099 = vmatprep.mubr.msk.f32.mxu0 %vm1231_vm0, %v1230_v0  ;;  %1134 = vmatprep.mubr.msk.f32.mxu1 %vm1231_vm0, %v1230_v0 }
  0x32   : > { %1100 = vmatmul.mubr.msk.f32.gmra.mxu0 %vm248_vm2, %v215_v19  ;;  %1135 = vmatmul.mubr.msk.f32.gmra.mxu1 %vm248_vm2, %v224_v20  ;;  %v1468_v20 = vrot.slane %v828_v14, %v831_v13 }
  0x33   : > { %1102 = vmatprep.mubr.msk.f32.mxu0 %vm1231_vm0, %v1230_v0  ;;  %1137 = vmatprep.mubr.msk.f32.mxu1 %vm1231_vm0, %v1230_v0 }
  0x36   : > { %1103 = vmatmul.mubr.msk.f32.gmra.mxu0 %vm248_vm2, %v216_v21  ;;  %1138 = vmatmul.mubr.msk.f32.gmra.mxu1 %vm248_vm2, %v225_v22  ;;  %v857_v21 = vsub.s32 2, %v830_v8 }
  0x37   : > { %1148 = vmatprep.mubr.msk.f32.mxu0 %vm1231_vm0, %v1230_v0  ;;  %1183 = vmatprep.mubr.msk.f32.mxu1 %vm1231_vm0, %v1230_v0 }
  0x3a   : > { %1149 = vmatmul.mubr.msk.f32.vlgmr.msra.gmra.mxu0 %vm248_vm2, %v226_v23  ;;  %1184 = vmatmul.mubr.msk.f32.vlgmr.msra.gmra.mxu1 %vm248_vm2, %v235_v24 }
  0x3b   : > { %1151 = vmatprep.mubr.msk.f32.mxu0 %vm1231_vm0, %v1230_v0  ;;  %1186 = vmatprep.mubr.msk.f32.mxu1 %vm1231_vm0, %v1230_v0 }
  0x3e   : > { %1152 = vmatmul.mubr.msk.f32.gmra.mxu0 %vm248_vm2, %v227_v25  ;;  %1187 = vmatmul.mubr.msk.f32.gmra.mxu1 %vm248_vm2, %v236_v26  ;;  %v1470_v26 = vrot.slane %v828_v14, %v844_v17 }
  0x3f   : > { %1154 = vmatprep.mubr.msk.f32.mxu0 %vm1231_vm0, %v1230_v0  ;;  %1189 = vmatprep.mubr.msk.f32.mxu1 %vm1231_vm0, %v1230_v0 }
  0x42   : > { %1155 = vmatmul.mubr.msk.f32.gmra.mxu0 %vm248_vm2, %v228_v27  ;;  %1190 = vmatmul.mubr.msk.f32.gmra.mxu1 %vm248_vm2, %v237_v28 }
  0x43   : > { %1157 = vmatprep.mubr.msk.f32.mxu0 %vm1231_vm0, %v1230_v0  ;;  %1192 = vmatprep.mubr.msk.f32.mxu1 %vm1231_vm0, %v1230_v0 }
  0x46   : > { %1158 = vmatmul.mubr.msk.f32.gmra.mxu0 %vm248_vm2, %v229_v29  ;;  %1193 = vmatmul.mubr.msk.f32.gmra.mxu1 %vm248_vm2, %v238_v30  ;;  %v1472_v30 = vrot.slane %v828_v14, %v857_v21 }
  0x47   : > { %1160 = vmatprep.mubr.msk.f32.mxu0 %vm1231_vm0, %v1230_v0  ;;  %1195 = vmatprep.mubr.msk.f32.mxu1 %vm1231_vm0, %v1230_v0 }
  0x4a   : > { %1161 = vmatmul.mubr.msk.f32.gmra.mxu0 %vm248_vm2, %v230_v31  ;;  %1196 = vmatmul.mubr.msk.f32.gmra.mxu1 %vm248_vm2, %v239_v32 }
  0x4b   : > { %1163 = vmatprep.mubr.msk.f32.mxu0 %vm1231_vm0, %v1230_v0  ;;  %1198 = vmatprep.mubr.msk.f32.mxu1 %vm1231_vm0, %v1230_v0 }
  0x4e   : > { %1164 = vmatmul.mubr.msk.f32.gmra.mxu0 %vm248_vm2, %v231_v33  ;;  %1199 = vmatmul.mubr.msk.f32.gmra.mxu1 %vm248_vm2, %v240_v34 }
  0x4f   : > { %1166 = vmatprep.mubr.msk.f32.mxu0 %vm1231_vm0, %v1230_v0  ;;  %1201 = vmatprep.mubr.msk.f32.mxu1 %vm1231_vm0, %v1230_v0 }
  0x52   : > { %1167 = vmatmul.mubr.msk.f32.gmra.mxu0 %vm248_vm2, %v232_v35  ;;  %1202 = vmatmul.mubr.msk.f32.gmra.mxu1 %vm248_vm2, %v241_v36 }
  0x53   : > { %1169 = vmatprep.mubr.msk.f32.mxu0 %vm1231_vm0, %v1230_v0  ;;  %1204 = vmatprep.mubr.msk.f32.mxu1 %vm1231_vm0, %v1230_v0 }
  0x56   : > { %1170 = vmatmul.mubr.msk.f32.gmra.mxu0 %vm248_vm2, %v233_v37  ;;  %1205 = vmatmul.mubr.msk.f32.gmra.mxu1 %vm248_vm2, %v242_v38 }
  0x57   : > { %1172 = vmatprep.mubr.msk.f32.mxu0 %vm1231_vm0, %v1230_v0  ;;  %1207 = vmatprep.mubr.msk.f32.mxu1 %vm1231_vm0, %v1230_v0 }
  0x5a   : > { %1173 = vmatmul.mubr.msk.f32.gmra.mxu0 %vm248_vm2, %v234_v39  ;;  %1208 = vmatmul.mubr.msk.f32.gmra.mxu1 %vm248_vm2, %v243_v40 }
  0xd6   : > { %v346_v41 = vpop.f32.mrf.mxu0  ;;  %v483_v42 = vpop.f32.mrf.mxu1 }
  0xd7   : > { %v527_v22 = vmax.f32 %v346_v41, %v483_v42 }
  0xd8   : > { %v1080_v43 = vpop.f32.mrf.mxu0  ;;  %v1115_v44 = vpop.f32.mrf.mxu1 }
  0xda   : > { %v351_v45 = vpop.f32.mrf.mxu0  ;;  %v488_v46 = vpop.f32.mrf.mxu1 }
  0xdb   : > { %v528_v31 = vmax.f32 %v351_v45, %v488_v46 }
  0xdc   : > { %v1083_v47 = vpop.f32.mrf.mxu0  ;;  %v1118_v48 = vpop.f32.mrf.mxu1 }
  0xde   : > { %v1436_v49 = vpop.f32.mrf.mxu0  ;;  %v1438_v50 = vpop.f32.mrf.mxu1 }
  0xdf   : > { %v529_v40 = vmax.f32 %v1436_v49, %v1438_v50 }
  0xe0   : > { %v1086_v51 = vpop.f32.mrf.mxu0  ;;  %v1121_v52 = vpop.f32.mrf.mxu1 }
  0xe2   : > { %v1440_v53 = vpop.f32.mrf.mxu0  ;;  %v1442_v54 = vpop.f32.mrf.mxu1 }
  0xe3   : > { %v530_v50 = vmax.f32 %v1440_v53, %v1442_v54 }
  0xe4   : > { %v1089_v55 = vpop.f32.mrf.mxu0  ;;  %v1124_v56 = vpop.f32.mrf.mxu1 }
  0xe6   : > { %v1444_v57 = vpop.f32.mrf.mxu0  ;;  %v1446_v58 = vpop.f32.mrf.mxu1 }
  0xe7   : > { %v531_v8 = vmax.f32 %v1444_v57, %v1446_v58 }
  0xe8   : > { %v1092_v59 = vpop.f32.mrf.mxu0  ;;  %v1127_v60 = vpop.f32.mrf.mxu1 }
  0xea   : > { %v1448_v61 = vpop.f32.mrf.mxu0  ;;  %v1450_v62 = vpop.f32.mrf.mxu1 }
  0xec   : > { %v1095_v63 = vpop.f32.mrf.mxu0  ;;  %v1130_v0 = vpop.f32.mrf.mxu1 }
  0xee   : > { %v1452_v1 = vpop.f32.mrf.mxu0  ;;  %v1454_v2 = vpop.f32.mrf.mxu1 }
  0xf0   : > { %v1098_v4 = vpop.f32.mrf.mxu0  ;;  %v1133_v5 = vpop.f32.mrf.mxu1 }
  0xf2   : > { %v1457_v6 = vpop.f32.mrf.mxu0  ;;  %v1459_v7 = vpop.f32.mrf.mxu1 }
  0xf4   : > { %v1101_v9 = vpop.f32.mrf.mxu0  ;;  %v1136_v10 = vpop.f32.mrf.mxu1 }
  0xf6   : > { %v1464_v11 = vpop.f32.mrf.mxu0  ;;  %v1466_v12 = vpop.f32.mrf.mxu1 }
  0xf8   : > { %v1104_v15 = vpop.f32.mrf.mxu0  ;;  %v1139_v16 = vpop.f32.mrf.mxu1 }
  0xfa   : > { %v629_v18 = vpop.f32.mrf.mxu0  ;;  %v766_v19 = vpop.f32.mrf.mxu1 }
  0xfb   : > { %v810_v23 = vmax.f32 %v629_v18, %v766_v19  ;;  %v532_v19 = vmax.f32 %v1448_v61, %v1450_v62 }
  0xfc   : > { %v1150_v24 = vpop.f32.mrf.mxu0  ;;  %v1185_v25 = vpop.f32.mrf.mxu1 }
  0xfd   : > { %v819_v27 = vmax.f32 %v527_v22, %v810_v23 }
  0xfe   : > { %v634_v28 = vpop.f32.mrf.mxu0  ;;  %v771_v29 = vpop.f32.mrf.mxu1 }
  0xff   : > { %v833_v32 = vadd.f32 %v1468_v20, %v819_v27  ;;  %v811_v33 = vmax.f32 %v634_v28, %v771_v29 }
 0x100   : > { %v1153_v34 = vpop.f32.mrf.mxu0  ;;  %v1188_v35 = vpop.f32.mrf.mxu1 }
 0x101   : > { %v846_v36 = vmul.f32 %v1470_v26, %v833_v32  ;;  %v820_v37 = vmax.f32 %v528_v31, %v811_v33  ;;  %v533_v31 = vmax.f32 %v1452_v1, %v1454_v2 }
 0x102   : > { %v639_v38 = vpop.f32.mrf.mxu0  ;;  %v776_v39 = vpop.f32.mrf.mxu1 }
 0x103   : > { %v859_v41 = vadd.f32 %v1472_v30, %v846_v36  ;;  %v834_v42 = vadd.f32 %v1468_v20, %v820_v37  ;;  %v812_v43 = vmax.f32 %v639_v38, %v776_v39 }
 0x104   : > { %v1156_v44 = vpop.f32.mrf.mxu0  ;;  %v1191_v45 = vpop.f32.mrf.mxu1 }
 0x105   : > { %v868_v46 = vmax.f32 %v859_v41, 0.0  ;;  %v847_v47 = vmul.f32 %v1470_v26, %v834_v42  ;;  %v821_v48 = vmax.f32 %v529_v40, %v812_v43  ;;  %v534_v40 = vmax.f32 %v1457_v6, %v1459_v7 }
 0x106   : > { %v644_v51 = vpop.f32.mrf.mxu0  ;;  %v781_v49 = vpop.f32.mrf.mxu1 }
 0x107   : > { %877 = vst [vmem:[%s1484_s29] sm:$0xff] %v868_v46  ;;  %v860_v52 = vadd.f32 %v1472_v30, %v847_v47  ;;  %v835_v55 = vadd.f32 %v1468_v20, %v821_v48  ;;  %v813_v56 = vmax.f32 %v644_v51, %v781_v49  ;;  %v535_v51 = vmax.f32 %v1464_v11, %v1466_v12 }
 0x108   : > { %v1159_v59 = vpop.f32.mrf.mxu0  ;;  %v1194_v60 = vpop.f32.mrf.mxu1 }
 0x109   : > { %v869_v63 = vmax.f32 %v860_v52, 0.0  ;;  %v848_v0 = vmul.f32 %v1470_v26, %v835_v55  ;;  %v822_v3 = vmax.f32 %v530_v50, %v813_v56 }
 0x10a   : > { %v649_v4 = vpop.f32.mrf.mxu0  ;;  %v786_v5 = vpop.f32.mrf.mxu1 }
 0x10b   : > { %878 = vst [vmem:[%s1484_s29 + $0x8] sm:$0xff] %v869_v63  ;;  %v861_v53 = vadd.f32 %v1472_v30, %v848_v0  ;;  %v836_v54 = vadd.f32 %v1468_v20, %v822_v3  ;;  %v814_v9 = vmax.f32 %v649_v4, %v786_v5 }
 0x10c   : > { %v1162_v10 = vpop.f32.mrf.mxu0  ;;  %v1197_v13 = vpop.f32.mrf.mxu1 }
 0x10d   : > { %v870_v14 = vmax.f32 %v861_v53, 0.0  ;;  %v849_v15 = vmul.f32 %v1470_v26, %v836_v54  ;;  %v823_v16 = vmax.f32 %v531_v8, %v814_v9 }
 0x10e   : > { %v654_v17 = vpop.f32.mrf.mxu0  ;;  %v791_v18 = vpop.f32.mrf.mxu1 }
 0x10f   : > { %879 = vst [vmem:[%s1484_s29 + $0x10] sm:$0xff] %v870_v14  ;;  %v862_v57 = vadd.f32 %v1472_v30, %v849_v15  ;;  %v837_v58 = vadd.f32 %v1468_v20, %v823_v16  ;;  %v815_v21 = vmax.f32 %v654_v17, %v791_v18 }
 0x110   : > { %v1165_v22 = vpop.f32.mrf.mxu0  ;;  %v1200_v23 = vpop.f32.mrf.mxu1 }
 0x111   : > { %v871_v24 = vmax.f32 %v862_v57, 0.0  ;;  %v850_v25 = vmul.f32 %v1470_v26, %v837_v58  ;;  %v824_v27 = vmax.f32 %v532_v19, %v815_v21 }
 0x112   : > { %v659_v28 = vpop.f32.mrf.mxu0  ;;  %v796_v29 = vpop.f32.mrf.mxu1 }
 0x113   : > { %880 = vst [vmem:[%s1484_s29 + $0x18] sm:$0xff] %v871_v24  ;;  %v863_v61 = vadd.f32 %v1472_v30, %v850_v25  ;;  %v838_v62 = vadd.f32 %v1468_v20, %v824_v27  ;;  %v816_v32 = vmax.f32 %v659_v28, %v796_v29 }
 0x114   : > { %v1168_v33 = vpop.f32.mrf.mxu0  ;;  %v1203_v34 = vpop.f32.mrf.mxu1 }
 0x115   : > { %v872_v35 = vmax.f32 %v863_v61, 0.0  ;;  %v851_v36 = vmul.f32 %v1470_v26, %v838_v62  ;;  %v825_v37 = vmax.f32 %v533_v31, %v816_v32 }
 0x116   : > { %v664_v38 = vpop.f32.mrf.mxu0  ;;  %v801_v39 = vpop.f32.mrf.mxu1 }
 0x117   : > { %881 = vst [vmem:[%s1484_s29 + $0x20] sm:$0xff] %v872_v35  ;;  %v864_v1 = vadd.f32 %v1472_v30, %v851_v36  ;;  %v839_v2 = vadd.f32 %v1468_v20, %v825_v37  ;;  %v817_v41 = vmax.f32 %v664_v38, %v801_v39 }
 0x118   : > { %v1171_v42 = vpop.f32.mrf.mxu0  ;;  %v1206_v43 = vpop.f32.mrf.mxu1 }
 0x119   : > { %v873_v44 = vmax.f32 %v864_v1, 0.0  ;;  %v852_v45 = vmul.f32 %v1470_v26, %v839_v2  ;;  %v826_v46 = vmax.f32 %v534_v40, %v817_v41 }
 0x11a   : > { %v669_v47 = vpop.f32.mrf.mxu0  ;;  %v806_v48 = vpop.f32.mrf.mxu1 }
 0x11b   : > { %882 = vst [vmem:[%s1484_s29 + $0x28] sm:$0xff] %v873_v44  ;;  %v865_v6 = vadd.f32 %v1472_v30, %v852_v45  ;;  %v840_v7 = vadd.f32 %v1468_v20, %v826_v46  ;;  %v818_v49 = vmax.f32 %v669_v47, %v806_v48 }
 0x11c   : > { %v1174_v50 = vpop.f32.mrf.mxu0  ;;  %v1209_v52 = vpop.f32.mrf.mxu1 }
 0x11d   : > { %v874_v55 = vmax.f32 %v865_v6, 0.0  ;;  %v853_v56 = vmul.f32 %v1470_v26, %v840_v7  ;;  %v827_v59 = vmax.f32 %v535_v51, %v818_v49 }
 0x11f   : > { %883 = vst [vmem:[%s1484_s29 + $0x30] sm:$0xff] %v874_v55  ;;  %v866_v60 = vadd.f32 %v1472_v30, %v853_v56  ;;  %v841_v63 = vadd.f32 %v1468_v20, %v827_v59 }
 0x121   : > { %v875_v0 = vmax.f32 %v866_v60, 0.0  ;;  %v854_v11 = vmul.f32 %v1470_v26, %v841_v63 }
 0x123   : > { %884 = vst [vmem:[%s1484_s29 + $0x38] sm:$0xff] %v875_v0  ;;  %v867_v12 = vadd.f32 %v1472_v30, %v854_v11 }
 0x125   : > { %v876_v3 = vmax.f32 %v867_v12, 0.0 }
 0x127   : > { %885 = vst [vmem:[%s1484_s29 + $0x40] sm:$0xff] %v876_v3 }
 0x128 PF: > { %s13_s12 = sadd.s32 1, %s1228_s12  }
 0x129   : > { %p10_p4 = scmp.ge.s32.totalorder %s13_s12, 6  }
 0x12b   :  { %12 = sbr.rel (!%p10_p4) target bundleno = 1 (0x1), region = 68 }

// kernel: multi_views_attention_res.5
= control target key start
LH: loop header
LB: loop body
LE: loop exit
PB: predicated region body
PF: predicated region fallthrough
CT: control target
= control target key end

     0   :  { %s1494_s0 = inlined_call_operand.vmem [shape: f32[4,2,128], index: 0, kind: input, shape index: {}]   ;;  %s1495_s1 = inlined_call_operand.vmem [shape: f32[128,64], index: 1, kind: input, shape index: {}]   ;;  %s1496_s2 = inlined_call_operand.vmem [shape: f32[1,64], index: 2, kind: input, shape index: {}]   ;;  %s1497_s3 = inlined_call_operand.vmem [shape: f32[64,1], index: 3, kind: input, shape index: {}]   ;;  %s1498_s4 = inlined_call_operand.<no memory space> [shape: f32[1,1], index: 4, kind: input, shape index: {}]   ;;  %s1499_s5 = inlined_call_operand.hbm [shape: f32[2,128], index: 5, kind: output, shape index: {}]  }
   0x1   :  { %v10_v0 = vstv %s1498_s4 }
   0x2   :  { %11 = vst [vmem:[#allocation2] sm:$0x1] %v10_v0 }
   0x3   :  { %v1121_v1 = vld [vmem:[%s1495_s1 + $0x78] sm:$0xff]  ;;  %v1081_v2 = vmov 0.0   ;;  %v1127_v3 = vld [vmem:[%s1495_s1 + $0x70] sm:$0xff]  ;;  %vm1082_vm0 = vmmov 0   ;;  %v1137_v4 = vld [vmem:[%s1495_s1 + $0x68] sm:$0xff] }
   0x4   :  { %819 = vmatprep.subr.mxu0 %v1081_v2  ;;  %851 = vmatprep.mubr.msk.f32.mxu0 %vm1082_vm0, %v1081_v2  ;;  %v1146_v5 = vld [vmem:[%s1495_s1 + $0x60] sm:$0xff] }
   0x5   :  { %820 = vmatpush3.msra.mxu0 %v1121_v1  ;;  %854 = vmatprep.subr.mxu1 %v1081_v2 }
   0x6   :  { %821 = vmatprep.subr.mxu0 %v1081_v2  ;;  %870 = vmatprep.mubr.msk.f32.mxu1 %vm1082_vm0, %v1081_v2 }
   0x7   :  { %822 = vmatpush3.msra.mxu0 %v1127_v3 }
   0x8   :  { %823 = vmatprep.subr.mxu0 %v1081_v2 }
   0x9   :  { %824 = vmatpush3.msra.mxu0 %v1137_v4 }
   0xa   :  { %12 = vsyncpa [#allocation4], 0  ;;  %825 = vmatprep.subr.mxu0 %v1081_v2  ;;  %v1153_v6 = vld [vmem:[%s1495_s1 + $0x58] sm:$0xff]  ;;  %v1160_v7 = vld [vmem:[%s1495_s1 + $0x50] sm:$0xff]  ;;  %vm136_vm1 = vcmask 523264   ;;  %v1083_v57 = vmov 0  }
   0xb   :  { %826 = vmatpush3.msra.mxu0 %v1146_v5  ;;  %v1167_v8 = vld [vmem:[%s1495_s1 + $0x48] sm:$0xff]  ;;  %v1174_v9 = vld [vmem:[%s1495_s1 + $0x40] sm:$0xff]  ;;  %v1181_v10 = vld [vmem:[%s1495_s1 + $0x38] sm:$0xff]  ;;  %1040 = vset.pattern.permute.xlu1 %v1083_v57 }
   0xc   :  { %827 = vmatprep.subr.mxu0 %v1081_v2  ;;  %v1188_v11 = vld [vmem:[%s1495_s1 + $0x30] sm:$0xff]  ;;  %v1195_v12 = vld [vmem:[%s1495_s1 + $0x28] sm:$0xff]  ;;  %v1202_v13 = vld [vmem:[%s1495_s1 + $0x20] sm:$0xff]  ;;  %1039 = vset.pattern.permute.xlu0 %v1083_v57 }
   0xd   :  { %828 = vmatpush3.msra.mxu0 %v1153_v6  ;;  %v1209_v14 = vld [vmem:[%s1495_s1 + $0x18] sm:$0xff]  ;;  %v1216_v15 = vld [vmem:[%s1495_s1 + $0x10] sm:$0xff]  ;;  %v1223_v16 = vld [vmem:[%s1495_s1 + $0x8] sm:$0xff] }
   0xe   :  { %829 = vmatprep.subr.mxu0 %v1081_v2  ;;  %v1230_v17 = vld [vmem:[%s1495_s1] sm:$0xff]  ;;  %v1247_v19 = vld [vmem:[%s1497_s3 + $0x38] sm:$0xff]  ;;  %v1255_v20 = vld [vmem:[%s1497_s3 + $0x30] sm:$0xff] }
   0xf   :  { %830 = vmatpush3.msra.mxu0 %v1160_v7  ;;  %v1236_v18 = vld [vmem:[%s1494_s0] sm:$0x3]  ;;  %855 = vmatpush3.msra.mxu1 %v1247_v19  ;;  %v1262_v21 = vld [vmem:[%s1497_s3 + $0x28] sm:$0xff]  ;;  %v1278_v23 = vld [vmem:[%s1497_s3 + $0x18] sm:$0xff] }
  0x10   :  { %831 = vmatprep.subr.mxu0 %v1081_v2  ;;  %856 = vmatprep.subr.mxu1 %v1081_v2  ;;  %v1269_v22 = vld [vmem:[%s1497_s3 + $0x20] sm:$0xff]  ;;  %v1287_v24 = vld [vmem:[%s1497_s3 + $0x10] sm:$0xff]  ;;  %v1296_v25 = vld [vmem:[%s1497_s3 + $0x8] sm:$0xff] }
  0x11   :  { %832 = vmatpush3.msra.mxu0 %v1167_v8  ;;  %857 = vmatpush3.msra.mxu1 %v1255_v20  ;;  %v1305_v26 = vld [vmem:[%s1497_s3] sm:$0xff] }
  0x12   :  { %833 = vmatprep.subr.mxu0 %v1081_v2  ;;  %858 = vmatprep.subr.mxu1 %v1081_v2  ;;  %v1319_v27 = vld [vmem:[%s1496_s2] ss:$0 sm:$0xff]  ;;  %v1357_v32 = vld [vmem:[%s1494_s0 + $0x2] sm:$0x3]  ;;  %v1417_v39 = vld [vmem:[%s1494_s0 + $0x4] sm:$0x3] }
  0x13   :  { %834 = vmatpush3.msra.mxu0 %v1174_v9  ;;  %859 = vmatpush3.msra.mxu1 %v1262_v21  ;;  %v710_v40 = vld [vmem:[#allocation2] ss:$0 sm:$0xff]  ;;  %v26_v50 = vld [vmem:[%s1494_s0 + $0x6] sm:$0x3]  ;;  %s1084_s0 = smov [#allocation3]  }
  0x14   :  { %835 = vmatprep.subr.mxu0 %v1081_v2  ;;  %860 = vmatprep.subr.mxu1 %v1081_v2  ;;  %s701_s23 = sshll.u32 %s1084_s0, 4  ;;  %s702_s23 = int_to_ptr.vmem [resolvable:$true] %s701_s23 }
  0x15   :  { %836 = vmatpush3.msra.mxu0 %v1181_v10  ;;  %861 = vmatpush3.msra.mxu1 %v1269_v22  ;;  %s1059_s4 = scalar_lea.vmem %s702_s23, 32  ;;  %p1064_p1 = scmp.lt.s32.totalorder %s702_s23, %s702_s23 }
  0x16   :  { %837 = vmatprep.subr.mxu0 %v1081_v2  ;;  %862 = vmatprep.subr.mxu1 %v1081_v2  ;;  %p1060_p0 = scmp.ne.s32.totalorder %s702_s23, %s1059_s4  ;;  %p1065_p2 = scmp.lt.s32.totalorder %s1059_s4, %s1059_s4 }
  0x17   :  { %838 = vmatpush3.msra.mxu0 %v1188_v11  ;;  %863 = vmatpush3.msra.mxu1 %v1278_v23 }
  0x18   :  { %839 = vmatprep.subr.mxu0 %v1081_v2  ;;  %864 = vmatprep.subr.mxu1 %v1081_v2  ;;  %p1066_p3 = por %p1065_p2, %p1064_p1 }
  0x19   :  { %840 = vmatpush3.msra.mxu0 %v1195_v12  ;;  %865 = vmatpush3.msra.mxu1 %v1287_v24 }
  0x1a   :  { %841 = vmatprep.subr.mxu0 %v1081_v2  ;;  %866 = vmatprep.subr.mxu1 %v1081_v2  ;;  %p1067_p4 = pnand %p1066_p3, %p1060_p0 }
  0x1b   :  { %842 = vmatpush3.msra.mxu0 %v1202_v13  ;;  %867 = vmatpush3.msra.mxu1 %v1296_v25 }
  0x1c   :  { %843 = vmatprep.subr.mxu0 %v1081_v2  ;;  %868 = vmatprep.subr.mxu1 %v1081_v2 }
  0x1d   :  { %844 = vmatpush3.msra.mxu0 %v1209_v14  ;;  %869 = vmatpush3.msra.mxu1 %v1305_v26 }
  0x1e   :  { %845 = vmatprep.subr.mxu0 %v1081_v2  ;;  %873 = vmatprep.subr.mxu1 %v1081_v2 }
  0x1f   :  { %846 = vmatpush3.msra.mxu0 %v1216_v15 }
  0x20   :  { %847 = vmatprep.subr.mxu0 %v1081_v2 }
  0x21   :  { %848 = vmatpush3.msra.mxu0 %v1223_v16 }
  0x22   :  { %849 = vmatprep.subr.mxu0 %v1081_v2 }
  0x23   :  { %850 = vmatpush3.msra.mxu0 %v1230_v17 }
  0x24   :  { %852 = vmatmul.mubr.f32.vlgmr.msra.gmra.mxu0 %v1236_v18  ;;  %908 = vmatprep.subr.mxu0 %v1081_v2 }
  0x25   :  { %924 = vmatprep.mubr.msk.f32.mxu0 %vm1082_vm0, %v1081_v2  ;;  %909 = vmatpush3.msra.mxu0 %v1247_v19 }
  0x26   :  { %910 = vmatprep.subr.mxu0 %v1081_v2 }
  0x27   :  { %911 = vmatpush3.msra.mxu0 %v1255_v20 }
  0x28   :  { %912 = vmatprep.subr.mxu0 %v1081_v2 }
  0x29   :  { %913 = vmatpush3.msra.mxu0 %v1262_v21 }
  0x2a   :  { %914 = vmatprep.subr.mxu0 %v1081_v2 }
  0x2b   :  { %915 = vmatpush3.msra.mxu0 %v1269_v22 }
  0x2c   :  { %916 = vmatprep.subr.mxu0 %v1081_v2 }
  0x2d   :  { %917 = vmatpush3.msra.mxu0 %v1278_v23 }
  0x2e   :  { %918 = vmatprep.subr.mxu0 %v1081_v2 }
  0x2f   :  { %919 = vmatpush3.msra.mxu0 %v1287_v24 }
  0x30   :  { %920 = vmatprep.subr.mxu0 %v1081_v2 }
  0x31   :  { %921 = vmatpush3.msra.mxu0 %v1296_v25 }
  0x32   :  { %922 = vmatprep.subr.mxu0 %v1081_v2 }
  0x33   :  { %923 = vmatpush3.msra.mxu0 %v1305_v26 }
  0x34   :  { %927 = vmatprep.subr.mxu0 %v1081_v2 }
  0xe4   :  { %v116_v28 = vpop.f32.mrf.mxu0 }
  0xe5   :  { %v117_v29 = vadd.f32 %v1319_v27, %v116_v28 }
  0xe6   :  { %v853_v30 = vpop.f32.mrf.mxu0 }
  0xe7   :  { %1041 = vtanh.f32 %v117_v29 }
  0xf4   :  { %v1042_v31 = vpop.eup %1041 }
  0xf5   :  { %871 = vmatmul.mubr.msk.f32.vlgmr.msra.gmra.mxu1 %vm136_vm1, %v1042_v31 }
  0xf6   :  { %874 = vmatpush3.msra.mxu1 %v1121_v1  ;;  %905 = vmatprep.mubr.msk.f32.mxu1 %vm1082_vm0, %v1081_v2 }
  0xf7   :  { %875 = vmatprep.subr.mxu1 %v1081_v2 }
  0xf8   :  { %876 = vmatpush3.msra.mxu1 %v1127_v3 }
  0xf9   :  { %877 = vmatprep.subr.mxu1 %v1081_v2 }
  0xfa   :  { %878 = vmatpush3.msra.mxu1 %v1137_v4 }
  0xfb   :  { %879 = vmatprep.subr.mxu1 %v1081_v2 }
  0xfc   :  { %880 = vmatpush3.msra.mxu1 %v1146_v5 }
  0xfd   :  { %881 = vmatprep.subr.mxu1 %v1081_v2 }
  0xfe   :  { %882 = vmatpush3.msra.mxu1 %v1153_v6 }
  0xff   :  { %883 = vmatprep.subr.mxu1 %v1081_v2 }
 0x100   :  { %884 = vmatpush3.msra.mxu1 %v1160_v7 }
 0x101   :  { %885 = vmatprep.subr.mxu1 %v1081_v2 }
 0x102   :  { %886 = vmatpush3.msra.mxu1 %v1167_v8 }
 0x103   :  { %887 = vmatprep.subr.mxu1 %v1081_v2 }
 0x104   :  { %888 = vmatpush3.msra.mxu1 %v1174_v9 }
 0x105   :  { %889 = vmatprep.subr.mxu1 %v1081_v2 }
 0x106   :  { %890 = vmatpush3.msra.mxu1 %v1181_v10 }
 0x107   :  { %891 = vmatprep.subr.mxu1 %v1081_v2 }
 0x108   :  { %892 = vmatpush3.msra.mxu1 %v1188_v11 }
 0x109   :  { %893 = vmatprep.subr.mxu1 %v1081_v2 }
 0x10a   :  { %894 = vmatpush3.msra.mxu1 %v1195_v12 }
 0x10b   :  { %895 = vmatprep.subr.mxu1 %v1081_v2 }
 0x10c   :  { %896 = vmatpush3.msra.mxu1 %v1202_v13 }
 0x10d   :  { %897 = vmatprep.subr.mxu1 %v1081_v2 }
 0x10e   :  { %898 = vmatpush3.msra.mxu1 %v1209_v14 }
 0x10f   :  { %899 = vmatprep.subr.mxu1 %v1081_v2 }
 0x110   :  { %900 = vmatpush3.msra.mxu1 %v1216_v15 }
 0x111   :  { %901 = vmatprep.subr.mxu1 %v1081_v2 }
 0x112   :  { %902 = vmatpush3.msra.mxu1 %v1223_v16 }
 0x113   :  { %903 = vmatprep.subr.mxu1 %v1081_v2 }
 0x114   :  { %904 = vmatpush3.msra.mxu1 %v1230_v17 }
 0x115   :  { %906 = vmatmul.mubr.f32.vlgmr.msra.gmra.mxu1 %v1357_v32  ;;  %962 = vmatprep.subr.mxu1 %v1081_v2 }
 0x116   :  { %963 = vmatpush3.msra.mxu1 %v1247_v19  ;;  %978 = vmatprep.mubr.msk.f32.mxu1 %vm1082_vm0, %v1081_v2 }
 0x117   :  { %964 = vmatprep.subr.mxu1 %v1081_v2 }
 0x118   :  { %965 = vmatpush3.msra.mxu1 %v1255_v20 }
 0x119   :  { %966 = vmatprep.subr.mxu1 %v1081_v2 }
 0x11a   :  { %967 = vmatpush3.msra.mxu1 %v1262_v21 }
 0x11b   :  { %968 = vmatprep.subr.mxu1 %v1081_v2 }
 0x11c   :  { %969 = vmatpush3.msra.mxu1 %v1269_v22 }
 0x11d   :  { %970 = vmatprep.subr.mxu1 %v1081_v2 }
 0x11e   :  { %971 = vmatpush3.msra.mxu1 %v1278_v23 }
 0x11f   :  { %972 = vmatprep.subr.mxu1 %v1081_v2 }
 0x120   :  { %973 = vmatpush3.msra.mxu1 %v1287_v24 }
 0x121   :  { %974 = vmatprep.subr.mxu1 %v1081_v2 }
 0x122   :  { %975 = vmatpush3.msra.mxu1 %v1296_v25 }
 0x123   :  { %976 = vmatprep.subr.mxu1 %v1081_v2 }
 0x124   :  { %977 = vmatpush3.msra.mxu1 %v1305_v26 }
 0x125   :  { %981 = vmatprep.subr.mxu1 %v1081_v2 }
 0x1b5   :  { %v206_v33 = vpop.f32.mrf.mxu1 }
 0x1b6   :  { %v1440_v42 = vadd.f32 %v710_v40, %v206_v33 }
 0x1b7   :  { %v872_v34 = vpop.f32.mrf.mxu1 }
 0x1d5   :  { %v276_v35 = vpop.f32.mrf.mxu1 }
 0x1d6   :  { %v277_v36 = vadd.f32 %v1319_v27, %v276_v35 }
 0x1d7   :  { %v907_v37 = vpop.f32.mrf.mxu1 }
 0x1d8   :  { %1043 = vtanh.f32 %v277_v36 }
 0x1e5   :  { %v1044_v38 = vpop.eup %1043 }
 0x1e6   :  { %925 = vmatmul.mubr.msk.f32.vlgmr.msra.gmra.mxu0 %vm136_vm1, %v1044_v38 }
 0x1e7   :  { %928 = vmatpush3.msra.mxu0 %v1121_v1  ;;  %959 = vmatprep.mubr.msk.f32.mxu0 %vm1082_vm0, %v1081_v2 }
 0x1e8   :  { %929 = vmatprep.subr.mxu0 %v1081_v2 }
 0x1e9   :  { %930 = vmatpush3.msra.mxu0 %v1127_v3 }
 0x1ea   :  { %931 = vmatprep.subr.mxu0 %v1081_v2 }
 0x1eb   :  { %932 = vmatpush3.msra.mxu0 %v1137_v4 }
 0x1ec   :  { %933 = vmatprep.subr.mxu0 %v1081_v2 }
 0x1ed   :  { %934 = vmatpush3.msra.mxu0 %v1146_v5 }
 0x1ee   :  { %935 = vmatprep.subr.mxu0 %v1081_v2 }
 0x1ef   :  { %936 = vmatpush3.msra.mxu0 %v1153_v6 }
 0x1f0   :  { %937 = vmatprep.subr.mxu0 %v1081_v2 }
 0x1f1   :  { %938 = vmatpush3.msra.mxu0 %v1160_v7 }
 0x1f2   :  { %939 = vmatprep.subr.mxu0 %v1081_v2 }
 0x1f3   :  { %940 = vmatpush3.msra.mxu0 %v1167_v8 }
 0x1f4   :  { %941 = vmatprep.subr.mxu0 %v1081_v2 }
 0x1f5   :  { %942 = vmatpush3.msra.mxu0 %v1174_v9 }
 0x1f6   :  { %943 = vmatprep.subr.mxu0 %v1081_v2 }
 0x1f7   :  { %944 = vmatpush3.msra.mxu0 %v1181_v10 }
 0x1f8   :  { %945 = vmatprep.subr.mxu0 %v1081_v2 }
 0x1f9   :  { %946 = vmatpush3.msra.mxu0 %v1188_v11 }
 0x1fa   :  { %947 = vmatprep.subr.mxu0 %v1081_v2 }
 0x1fb   :  { %948 = vmatpush3.msra.mxu0 %v1195_v12 }
 0x1fc   :  { %949 = vmatprep.subr.mxu0 %v1081_v2 }
 0x1fd   :  { %950 = vmatpush3.msra.mxu0 %v1202_v13 }
 0x1fe   :  { %951 = vmatprep.subr.mxu0 %v1081_v2 }
 0x1ff   :  { %952 = vmatpush3.msra.mxu0 %v1209_v14 }
 0x200   :  { %953 = vmatprep.subr.mxu0 %v1081_v2 }
 0x201   :  { %954 = vmatpush3.msra.mxu0 %v1216_v15 }
 0x202   :  { %955 = vmatprep.subr.mxu0 %v1081_v2 }
 0x203   :  { %956 = vmatpush3.msra.mxu0 %v1223_v16 }
 0x204   :  { %957 = vmatprep.subr.mxu0 %v1081_v2 }
 0x205   :  { %958 = vmatpush3.msra.mxu0 %v1230_v17 }
 0x206   :  { %960 = vmatmul.mubr.f32.vlgmr.msra.gmra.mxu0 %v1417_v39  ;;  %1016 = vmatprep.subr.mxu0 %v1081_v2 }
 0x207   :  { %1017 = vmatpush3.msra.mxu0 %v1247_v19  ;;  %1032 = vmatprep.mubr.msk.f32.mxu0 %vm1082_vm0, %v1081_v2 }
 0x208   :  { %1018 = vmatprep.subr.mxu0 %v1081_v2 }
 0x209   :  { %1019 = vmatpush3.msra.mxu0 %v1255_v20 }
 0x20a   :  { %1020 = vmatprep.subr.mxu0 %v1081_v2 }
 0x20b   :  { %1021 = vmatpush3.msra.mxu0 %v1262_v21 }
 0x20c   :  { %1022 = vmatprep.subr.mxu0 %v1081_v2 }
 0x20d   :  { %1023 = vmatpush3.msra.mxu0 %v1269_v22 }
 0x20e   :  { %1024 = vmatprep.subr.mxu0 %v1081_v2 }
 0x20f   :  { %1025 = vmatpush3.msra.mxu0 %v1278_v23 }
 0x210   :  { %1026 = vmatprep.subr.mxu0 %v1081_v2 }
 0x211   :  { %1027 = vmatpush3.msra.mxu0 %v1287_v24 }
 0x212   :  { %1028 = vmatprep.subr.mxu0 %v1081_v2 }
 0x213   :  { %1029 = vmatpush3.msra.mxu0 %v1296_v25 }
 0x214   :  { %1030 = vmatprep.subr.mxu0 %v1081_v2 }
 0x215   :  { %1031 = vmatpush3.msra.mxu0 %v1305_v26 }
 0x2a6   :  { %v350_v41 = vpop.f32.mrf.mxu0 }
 0x2a7   :  { %v1442_v43 = vadd.f32 %v710_v40, %v350_v41 }
 0x2a8   :  { %v926_v44 = vpop.f32.mrf.mxu0 }
 0x2a9   :  { %v642_v45 = vmax.f32 %v1440_v42, %v1442_v43 }
 0x2c6   :  { %v420_v46 = vpop.f32.mrf.mxu0 }
 0x2c7   :  { %v421_v47 = vadd.f32 %v1319_v27, %v420_v46 }
 0x2c8   :  { %v961_v48 = vpop.f32.mrf.mxu0 }
 0x2c9   :  { %1045 = vtanh.f32 %v421_v47 }
 0x2d6   :  { %v1046_v49 = vpop.eup %1045 }
 0x2d7   :  { %979 = vmatmul.mubr.msk.f32.vlgmr.msra.gmra.mxu1 %vm136_vm1, %v1046_v49 }
 0x2d8   :  { %982 = vmatpush3.msra.mxu1 %v1121_v1  ;;  %1013 = vmatprep.mubr.msk.f32.mxu1 %vm1082_vm0, %v1081_v2 }
 0x2d9   :  { %983 = vmatprep.subr.mxu1 %v1081_v2 }
 0x2da   :  { %984 = vmatpush3.msra.mxu1 %v1127_v3 }
 0x2db   :  { %985 = vmatprep.subr.mxu1 %v1081_v2 }
 0x2dc   :  { %986 = vmatpush3.msra.mxu1 %v1137_v4 }
 0x2dd   :  { %987 = vmatprep.subr.mxu1 %v1081_v2 }
 0x2de   :  { %988 = vmatpush3.msra.mxu1 %v1146_v5 }
 0x2df   :  { %989 = vmatprep.subr.mxu1 %v1081_v2 }
 0x2e0   :  { %990 = vmatpush3.msra.mxu1 %v1153_v6 }
 0x2e1   :  { %991 = vmatprep.subr.mxu1 %v1081_v2 }
 0x2e2   :  { %992 = vmatpush3.msra.mxu1 %v1160_v7 }
 0x2e3   :  { %993 = vmatprep.subr.mxu1 %v1081_v2 }
 0x2e4   :  { %994 = vmatpush3.msra.mxu1 %v1167_v8 }
 0x2e5   :  { %995 = vmatprep.subr.mxu1 %v1081_v2 }
 0x2e6   :  { %996 = vmatpush3.msra.mxu1 %v1174_v9 }
 0x2e7   :  { %997 = vmatprep.subr.mxu1 %v1081_v2 }
 0x2e8   :  { %998 = vmatpush3.msra.mxu1 %v1181_v10 }
 0x2e9   :  { %999 = vmatprep.subr.mxu1 %v1081_v2 }
 0x2ea   :  { %1000 = vmatpush3.msra.mxu1 %v1188_v11 }
 0x2eb   :  { %1001 = vmatprep.subr.mxu1 %v1081_v2 }
 0x2ec   :  { %1002 = vmatpush3.msra.mxu1 %v1195_v12 }
 0x2ed   :  { %1003 = vmatprep.subr.mxu1 %v1081_v2 }
 0x2ee   :  { %1004 = vmatpush3.msra.mxu1 %v1202_v13 }
 0x2ef   :  { %1005 = vmatprep.subr.mxu1 %v1081_v2 }
 0x2f0   :  { %1006 = vmatpush3.msra.mxu1 %v1209_v14 }
 0x2f1   :  { %1007 = vmatprep.subr.mxu1 %v1081_v2 }
 0x2f2   :  { %1008 = vmatpush3.msra.mxu1 %v1216_v15 }
 0x2f3   :  { %1009 = vmatprep.subr.mxu1 %v1081_v2 }
 0x2f4   :  { %1010 = vmatpush3.msra.mxu1 %v1223_v16 }
 0x2f5   :  { %1011 = vmatprep.subr.mxu1 %v1081_v2 }
 0x2f6   :  { %1012 = vmatpush3.msra.mxu1 %v1230_v17 }
 0x2f7   :  { %1014 = vmatmul.mubr.f32.vlgmr.msra.gmra.mxu1 %v26_v50 }
 0x397   :  { %v494_v51 = vpop.f32.mrf.mxu1 }
 0x398   :  { %v495_v59 = vadd.f32 %v710_v40, %v494_v51 }
 0x399   :  { %v980_v52 = vpop.f32.mrf.mxu1 }
 0x3b7   :  { %v564_v53 = vpop.f32.mrf.mxu1 }
 0x3b8   :  { %v565_v54 = vadd.f32 %v1319_v27, %v564_v53 }
 0x3b9   :  { %v1015_v55 = vpop.f32.mrf.mxu1 }
 0x3ba   :  { %1047 = vtanh.f32 %v565_v54 }
 0x3c7   :  { %v1048_v56 = vpop.eup %1047 }
 0x3c8   :  { %1033 = vmatmul.mubr.msk.f32.vlgmr.msra.gmra.mxu0 %vm136_vm1, %v1048_v56 }
 0x488   :  { %v638_v58 = vpop.f32.mrf.mxu0 }
 0x489   :  { %v639_v60 = vadd.f32 %v710_v40, %v638_v58 }
 0x48a   :  { %v1034_v61 = vpop.f32.mrf.mxu0 }
 0x48b   :  { %v643_v62 = vmax.f32 %v495_v59, %v639_v60 }
 0x48d   :  { %v644_v63 = vmax.f32 %v642_v45, %v643_v62 }
 0x48f   :  { %v645_v0 = vsub.f32 %v1440_v42, %v644_v63  ;;  %v648_v1 = vsub.f32 %v1442_v43, %v644_v63  ;;  %v651_v2 = vsub.f32 %v495_v59, %v644_v63  ;;  %v654_v5 = vsub.f32 %v639_v60, %v644_v63 }
 0x491   :  { %v646_v3 = vmul.f32 1.442695, %v645_v0  ;;  %v649_v4 = vmul.f32 1.442695, %v648_v1  ;;  %v652_v6 = vmul.f32 1.442695, %v651_v2 }
 0x492   :  { %v655_v7 = vmul.f32 1.442695, %v654_v5 }
 0x493   :  { %1049 = vpow2.f32 %v646_v3 }
 0x494   :  { %1051 = vpow2.f32 %v649_v4 }
 0x495   :  { %1053 = vpow2.f32 %v652_v6 }
 0x496   :  { %1055 = vpow2.f32 %v655_v7 }
 0x4a0   :  { %v1050_v8 = vpop.eup %1049 }
 0x4a1   :  { %v1052_v9 = vpop.eup %1051 }
 0x4a2   :  { %668 = vperm.xlu1 %1040, %v1052_v9   ;;  %v657_v10 = vadd.f32 %v1052_v9, %v1050_v8  ;;  %v1054_v11 = vpop.eup %1053 }
 0x4a3   :  { %v1056_v13 = vpop.eup %1055 }
 0x4a4   :  { %v658_v12 = vadd.f32 %v1054_v11, %v657_v10 }
 0x4a6   :  { %675 = vperm.xlu1 %1040, %v1054_v11   ;;  %v659_v14 = vadd.f32 %v1056_v13, %v658_v12 }
 0x4a8   :  { %689 = vperm.xlu0 %1039, %v659_v14  }
 0x4ac   :  { %662 = vperm.xlu0 %1039, %v1050_v8  }
 0x4b0   :  { %682 = vperm.xlu0 %1039, %v1056_v13  }
 0x51d   :  { %v669_v15 = vpop.permute.xlu1 %668 }
 0x51e   :  { %v671_v20 = vmul.f32 %v669_v15, %v1357_v32 }
 0x521   :  { %v676_v17 = vpop.permute.xlu1 %675 }
 0x522   :  { %v678_v22 = vmul.f32 %v676_v17, %v1417_v39 }
 0x523   :  { %v690_v16 = vpop.permute.xlu0 %689 }
 0x524   :  { %1057 = vrcp.f32 %v690_v16 }
 0x527   :  { %v663_v19 = vpop.permute.xlu0 %662 }
 0x528   :  { %v665_v21 = vmul.f32 %v663_v19, %v1236_v18 }
 0x52a   :  { %v672_v23 = vadd.f32 %v671_v20, %v665_v21 }
 0x52b   :  { %v683_v24 = vpop.permute.xlu0 %682 }
 0x52c   :  { %v679_v25 = vadd.f32 %v678_v22, %v672_v23  ;;  %v685_v26 = vmul.f32 %v683_v24, %v26_v50 }
 0x52e   :  { %v686_v27 = vadd.f32 %v685_v26, %v679_v25 }
 0x531   :  { %v1058_v28 = vpop.eup %1057 }
 0x532   :  { %v693_v29 = vmul.f32 %v1058_v28, %v686_v27 }
 0x534   :  { %694 = vst [vmem:[#allocation3] sm:$0x3] %v693_v29 }
 0x535   :  { %1070 = shalt.err (!%p1067_p4)
}
 0x536   :  { %704 = dma.vmem_to_hbm [thread:$0]  %s702_s23, 32, %s1499_s5, [#allocation4]  }
 0x537   :  { %1079 = dma.done.wait [#allocation4], 32  }
 0x538   :  { %1080 = vsyncadd [#allocation4], 4294967264 }
 0x539   :  { %708 = vsyncpa [#allocation4], 1 }

// kernel: multi_views_attention_res.4
= control target key start
LH: loop header
LB: loop body
LE: loop exit
PB: predicated region body
PF: predicated region fallthrough
CT: control target
= control target key end

     0   :  { %s7901_s15 = smov 0   ;;  %s11105_s0 = inlined_call_operand.vmem [shape: f32[4,4,2,3200], index: 0, kind: input, shape index: {}]   ;;  %s11106_s1 = inlined_call_operand.vmem [shape: f32[4,3200,128], index: 1, kind: input, shape index: {}]   ;;  %s11107_s2 = inlined_call_operand.vmem [shape: f32[4,128,128], index: 2, kind: input, shape index: {}]   ;;  %s11108_s3 = inlined_call_operand.vmem [shape: f32[4,4,128], index: 3, kind: input, shape index: {}]   ;;  %s11109_s4 = inlined_call_operand.vmem [shape: f32[4,2,128], index: 4, kind: output, shape index: {}]  }
   0x1 LB: > { %s5086_s16 = sadd.s32 4294967295, %s7871_s15   ;;  %p5090_p0 = scmp.ge.s32.totalorder %s7871_s15, 1  ;;  %s7871_s15 = sphi %s7901_s15, %s14_s15  }
   0x2   : > { %p191_p1 = scmp.lt.s32.totalorder %s7871_s15, 5 }
   0x4   : > { %p192_p2 = pnand %p5090_p0, %p191_p1 }
   0x6   : > { %195 = sbr.rel (%p192_p2) target bundleno = 1311 (0x51f), region = 36 }
   0xb   : > { %p230_p3 = scmp.lt.s32.totalorder %s5086_s16, 3  ;;  %v7873_v30 = vmov 1983009808   ;;  %v692_v32 = vlaneseq  ;;  %vm7875_vm0 = vmmov 0  }
   0xc   : > { %v690_v31 = vunpack.c.l.s4 %v7873_v30 }
   0xd   : > { %s11961_s16 = smov (!%p230_p3, %s5086_s16), 3  ;;  %v7956_v42 = vshrl.u32 %v692_v32, 7 }
   0xe   : > { %s7045_s17 = smul.u32 3200, %s11961_s16  ;;  %v691_v41 = vunpack.c.0.s8 %v690_v31  ;;  %s5103_s25 = sshll.u32 %s11961_s16, 7 }
   0xf   : > { %s7044_s21 = smul.u32 200, %s11961_s16  ;;  %11395 = vst [vmem:[#allocation2_spill] sm:$0xff] %v7956_v42  ;;  %s11053_s28 = scalar_lea.vmem %s11107_s2, %s5103_s25 }
  0x10   : > { %s7915_s20 = scalar_lea.vmem %s11106_s1, %s7045_s17  ;;  %v7972_v51 = vsub.s32 %v691_v41, %v7956_v42  ;;  %s5095_s29 = sshll.u32 %s11961_s16, 2 }
  0x11   : > { %v312_v0 = vld [vmem:[%s7915_s20 + $0xf8] sm:$0xff]  ;;  %v311_v4 = vld [vmem:[%s7915_s20 + $0xf0] sm:$0xff]  ;;  %v310_v8 = vld [vmem:[%s7915_s20 + $0xe8] sm:$0xff]  ;;  %s7965_s24 = scalar_lea.vmem %s11105_s0, %s7044_s21  ;;  %s248_s6 = scalar_lea.vmem %s11108_s3, %s5095_s29 }
  0x12   : > { %v344_v1 = vld [vmem:[%s7915_s20 + $0x1f8] sm:$0xff]  ;;  %5104 = vmatprep.subr.mxu0 %v312_v0  ;;  %v343_v5 = vld [vmem:[%s7915_s20 + $0x1f0] sm:$0xff]  ;;  %v342_v9 = vld [vmem:[%s7915_s20 + $0x1e8] sm:$0xff]  ;;  %s5096_s7 = sshll.u32 %s11961_s16, 1 }
  0x13   : > { %v296_v2 = vld [vmem:[%s7915_s20 + $0x78] sm:$0xff]  ;;  %5139 = vmatprep.subr.mxu1 %v344_v1  ;;  %v295_v6 = vld [vmem:[%s7915_s20 + $0x70] sm:$0xff]  ;;  %v294_v10 = vld [vmem:[%s7915_s20 + $0x68] sm:$0xff]  ;;  %s252_s10 = scalar_lea.vmem %s11109_s4, %s5096_s7 }
  0x14   : > { %v328_v3 = vld [vmem:[%s7915_s20 + $0x178] sm:$0xff]  ;;  %5105 = vmatpush3.msra.mxu0 %v296_v2  ;;  %v327_v7 = vld [vmem:[%s7915_s20 + $0x170] sm:$0xff]  ;;  %v326_v11 = vld [vmem:[%s7915_s20 + $0x168] sm:$0xff] }
  0x15   : > { %5140 = vmatpush3.msra.mxu1 %v328_v3  ;;  %5106 = vmatprep.subr.mxu0 %v311_v4  ;;  %v309_v12 = vld [vmem:[%s7915_s20 + $0xe0] sm:$0xff]  ;;  %v308_v16 = vld [vmem:[%s7915_s20 + $0xd8] sm:$0xff]  ;;  %v307_v20 = vld [vmem:[%s7915_s20 + $0xd0] sm:$0xff] }
  0x16   : > { %5141 = vmatprep.subr.mxu1 %v343_v5  ;;  %5107 = vmatpush3.msra.mxu0 %v295_v6  ;;  %v341_v13 = vld [vmem:[%s7915_s20 + $0x1e0] sm:$0xff]  ;;  %v340_v17 = vld [vmem:[%s7915_s20 + $0x1d8] sm:$0xff]  ;;  %v339_v21 = vld [vmem:[%s7915_s20 + $0x1d0] sm:$0xff] }
  0x17   : > { %5142 = vmatpush3.msra.mxu1 %v327_v7  ;;  %5108 = vmatprep.subr.mxu0 %v310_v8  ;;  %v293_v14 = vld [vmem:[%s7915_s20 + $0x60] sm:$0xff]  ;;  %v292_v18 = vld [vmem:[%s7915_s20 + $0x58] sm:$0xff]  ;;  %v291_v22 = vld [vmem:[%s7915_s20 + $0x50] sm:$0xff] }
  0x18   : > { %5143 = vmatprep.subr.mxu1 %v342_v9  ;;  %v325_v15 = vld [vmem:[%s7915_s20 + $0x160] sm:$0xff]  ;;  %5109 = vmatpush3.msra.mxu0 %v294_v10  ;;  %v324_v19 = vld [vmem:[%s7915_s20 + $0x158] sm:$0xff]  ;;  %v323_v23 = vld [vmem:[%s7915_s20 + $0x150] sm:$0xff] }
  0x19   : > { %5144 = vmatpush3.msra.mxu1 %v326_v11  ;;  %5110 = vmatprep.subr.mxu0 %v309_v12  ;;  %v306_v24 = vld [vmem:[%s7915_s20 + $0xc8] sm:$0xff]  ;;  %v305_v28 = vld [vmem:[%s7915_s20 + $0xc0] sm:$0xff]  ;;  %v304_v35 = vld [vmem:[%s7915_s20 + $0xb8] sm:$0xff] }
  0x1a   : > { %5145 = vmatprep.subr.mxu1 %v341_v13  ;;  %5111 = vmatpush3.msra.mxu0 %v293_v14  ;;  %v338_v25 = vld [vmem:[%s7915_s20 + $0x1c8] sm:$0xff]  ;;  %v337_v29 = vld [vmem:[%s7915_s20 + $0x1c0] sm:$0xff]  ;;  %v336_v36 = vld [vmem:[%s7915_s20 + $0x1b8] sm:$0xff] }
  0x1b   : > { %5146 = vmatpush3.msra.mxu1 %v325_v15  ;;  %5112 = vmatprep.subr.mxu0 %v308_v16  ;;  %v290_v26 = vld [vmem:[%s7915_s20 + $0x48] sm:$0xff]  ;;  %v289_v33 = vld [vmem:[%s7915_s20 + $0x40] sm:$0xff]  ;;  %v288_v37 = vld [vmem:[%s7915_s20 + $0x38] sm:$0xff] }
  0x1c   : > { %5147 = vmatprep.subr.mxu1 %v340_v17  ;;  %5113 = vmatpush3.msra.mxu0 %v292_v18  ;;  %v322_v27 = vld [vmem:[%s7915_s20 + $0x148] sm:$0xff]  ;;  %v321_v34 = vld [vmem:[%s7915_s20 + $0x140] sm:$0xff]  ;;  %v320_v38 = vld [vmem:[%s7915_s20 + $0x138] sm:$0xff] }
  0x1d   : > { %5148 = vmatpush3.msra.mxu1 %v324_v19  ;;  %5114 = vmatprep.subr.mxu0 %v307_v20  ;;  %v303_v39 = vld [vmem:[%s7915_s20 + $0xb0] sm:$0xff]  ;;  %v302_v45 = vld [vmem:[%s7915_s20 + $0xa8] sm:$0xff]  ;;  %v301_v49 = vld [vmem:[%s7915_s20 + $0xa0] sm:$0xff] }
  0x1e   : > { %5149 = vmatprep.subr.mxu1 %v339_v21  ;;  %5115 = vmatpush3.msra.mxu0 %v291_v22  ;;  %v335_v40 = vld [vmem:[%s7915_s20 + $0x1b0] sm:$0xff]  ;;  %v334_v46 = vld [vmem:[%s7915_s20 + $0x1a8] sm:$0xff]  ;;  %v333_v50 = vld [vmem:[%s7915_s20 + $0x1a0] sm:$0xff] }
  0x1f   : > { %5150 = vmatpush3.msra.mxu1 %v323_v23  ;;  %5116 = vmatprep.subr.mxu0 %v306_v24  ;;  %v287_v43 = vld [vmem:[%s7915_s20 + $0x30] sm:$0xff]  ;;  %v286_v47 = vld [vmem:[%s7915_s20 + $0x28] sm:$0xff]  ;;  %v285_v52 = vld [vmem:[%s7915_s20 + $0x20] sm:$0xff] }
  0x20   : > { %5151 = vmatprep.subr.mxu1 %v338_v25  ;;  %5117 = vmatpush3.msra.mxu0 %v290_v26  ;;  %v319_v44 = vld [vmem:[%s7915_s20 + $0x130] sm:$0xff]  ;;  %v318_v48 = vld [vmem:[%s7915_s20 + $0x128] sm:$0xff]  ;;  %v317_v53 = vld [vmem:[%s7915_s20 + $0x120] sm:$0xff] }
  0x21   : > { %5152 = vmatpush3.msra.mxu1 %v322_v27  ;;  %5118 = vmatprep.subr.mxu0 %v305_v28  ;;  %v253_v54 = vld [vmem:[%s7965_s24] sm:$0xff]  ;;  %v300_v55 = vld [vmem:[%s7915_s20 + $0x98] sm:$0xff]  ;;  %v299_v60 = vld [vmem:[%s7915_s20 + $0x90] sm:$0xff] }
  0x22   : > { %5153 = vmatprep.subr.mxu1 %v337_v29  ;;  %5119 = vmatpush3.msra.mxu0 %v289_v33  ;;  %v332_v56 = vld [vmem:[%s7915_s20 + $0x198] sm:$0xff]  ;;  %v688_v57 = vcombine.high %v253_v54, %v253_v54  ;;  %v331_v61 = vld [vmem:[%s7915_s20 + $0x190] sm:$0xff]  ;;  %v695_v62 = vrot.slane %v253_v54, %v7972_v51  ;;  %v298_v2 = vld [vmem:[%s7915_s20 + $0x88] sm:$0xff] }
  0x23   : > { %5154 = vmatpush3.msra.mxu1 %v321_v34  ;;  %5120 = vmatprep.subr.mxu0 %v304_v35  ;;  %v284_v58 = vld [vmem:[%s7915_s20 + $0x18] sm:$0xff]  ;;  %v283_v63 = vld [vmem:[%s7915_s20 + $0x10] sm:$0xff]  ;;  %v330_v3 = vld [vmem:[%s7915_s20 + $0x188] sm:$0xff] }
  0x24   : > { %5155 = vmatprep.subr.mxu1 %v336_v36  ;;  %5121 = vmatpush3.msra.mxu0 %v288_v37  ;;  %v316_v59 = vld [vmem:[%s7915_s20 + $0x118] sm:$0xff]  ;;  %v315_v0 = vld [vmem:[%s7915_s20 + $0x110] sm:$0xff]  ;;  %v702_v1 = vrot.slane %v688_v57, %v7972_v51  ;;  %v282_v4 = vld [vmem:[%s7915_s20 + $0x8] sm:$0xff]  ;;  %v703_v8 = vcombine.high %v695_v62, %v695_v62 }
  0x25   : > { %5156 = vmatpush3.msra.mxu1 %v320_v38  ;;  %5122 = vmatprep.subr.mxu0 %v303_v39  ;;  %v314_v5 = vld [vmem:[%s7915_s20 + $0x108] sm:$0xff]  ;;  %v297_v6 = vld [vmem:[%s7915_s20 + $0x80] sm:$0xff]  ;;  %v376_v12 = vld [vmem:[%s7915_s20 + $0x2f8] sm:$0xff] }
  0x26   : > { %5157 = vmatprep.subr.mxu1 %v335_v40  ;;  %5123 = vmatpush3.msra.mxu0 %v287_v43  ;;  %v329_v7 = vld [vmem:[%s7915_s20 + $0x180] sm:$0xff]  ;;  %v704_v10 = vcombine.high %v702_v1, %v702_v1  ;;  %v408_v13 = vld [vmem:[%s7915_s20 + $0x3f8] sm:$0xff]  ;;  %v375_v16 = vld [vmem:[%s7915_s20 + $0x2f0] sm:$0xff] }
  0x27   : > { %5158 = vmatpush3.msra.mxu1 %v319_v44  ;;  %5124 = vmatprep.subr.mxu0 %v302_v45  ;;  %v281_v9 = vld [vmem:[%s7915_s20] sm:$0xff]  ;;  %v360_v14 = vld [vmem:[%s7915_s20 + $0x278] sm:$0xff]  ;;  %v407_v17 = vld [vmem:[%s7915_s20 + $0x3f0] sm:$0xff] }
  0x28   : > { %5159 = vmatprep.subr.mxu1 %v334_v46  ;;  %5125 = vmatpush3.msra.mxu0 %v286_v47  ;;  %v313_v11 = vld [vmem:[%s7915_s20 + $0x100] sm:$0xff]  ;;  %v392_v15 = vld [vmem:[%s7915_s20 + $0x378] sm:$0xff]  ;;  %v359_v18 = vld [vmem:[%s7915_s20 + $0x270] sm:$0xff] }
  0x29   : > { %5160 = vmatpush3.msra.mxu1 %v318_v48  ;;  %5126 = vmatprep.subr.mxu0 %v301_v49  ;;  %v391_v19 = vld [vmem:[%s7915_s20 + $0x370] sm:$0xff]  ;;  %v374_v20 = vld [vmem:[%s7915_s20 + $0x2e8] sm:$0xff]  ;;  %v373_v24 = vld [vmem:[%s7915_s20 + $0x2e0] sm:$0xff] }
  0x2a   : > { %5161 = vmatprep.subr.mxu1 %v333_v50  ;;  %5127 = vmatpush3.msra.mxu0 %v285_v52  ;;  %v406_v21 = vld [vmem:[%s7915_s20 + $0x3e8] sm:$0xff]  ;;  %v405_v25 = vld [vmem:[%s7915_s20 + $0x3e0] sm:$0xff]  ;;  %v372_v28 = vld [vmem:[%s7915_s20 + $0x2d8] sm:$0xff] }
  0x2b   : > { %5162 = vmatpush3.msra.mxu1 %v317_v53  ;;  %5128 = vmatprep.subr.mxu0 %v300_v55  ;;  %v358_v22 = vld [vmem:[%s7915_s20 + $0x268] sm:$0xff]  ;;  %v357_v26 = vld [vmem:[%s7915_s20 + $0x260] sm:$0xff]  ;;  %v404_v29 = vld [vmem:[%s7915_s20 + $0x3d8] sm:$0xff] }
  0x2c   : > { %5163 = vmatprep.subr.mxu1 %v332_v56  ;;  %5129 = vmatpush3.msra.mxu0 %v284_v58  ;;  %v390_v23 = vld [vmem:[%s7915_s20 + $0x368] sm:$0xff]  ;;  %v389_v27 = vld [vmem:[%s7915_s20 + $0x360] sm:$0xff]  ;;  %v356_v30 = vld [vmem:[%s7915_s20 + $0x258] sm:$0xff] }
  0x2d   : > { %5164 = vmatpush3.msra.mxu1 %v316_v59  ;;  %5130 = vmatprep.subr.mxu0 %v299_v60  ;;  %v388_v31 = vld [vmem:[%s7915_s20 + $0x358] sm:$0xff]  ;;  %v371_v32 = vld [vmem:[%s7915_s20 + $0x2d0] sm:$0xff]  ;;  %v370_v36 = vld [vmem:[%s7915_s20 + $0x2c8] sm:$0xff] }
  0x2e   : > { %5165 = vmatprep.subr.mxu1 %v331_v61  ;;  %5131 = vmatpush3.msra.mxu0 %v283_v63  ;;  %v403_v33 = vld [vmem:[%s7915_s20 + $0x3d0] sm:$0xff]  ;;  %v402_v37 = vld [vmem:[%s7915_s20 + $0x3c8] sm:$0xff]  ;;  %v369_v40 = vld [vmem:[%s7915_s20 + $0x2c0] sm:$0xff] }
  0x2f   : > { %5166 = vmatpush3.msra.mxu1 %v315_v0  ;;  %5132 = vmatprep.subr.mxu0 %v298_v2  ;;  %v355_v34 = vld [vmem:[%s7915_s20 + $0x250] sm:$0xff]  ;;  %v354_v38 = vld [vmem:[%s7915_s20 + $0x248] sm:$0xff]  ;;  %v401_v41 = vld [vmem:[%s7915_s20 + $0x3c0] sm:$0xff] }
  0x30   : > { %5167 = vmatprep.subr.mxu1 %v330_v3  ;;  %5133 = vmatpush3.msra.mxu0 %v282_v4  ;;  %v387_v35 = vld [vmem:[%s7915_s20 + $0x350] sm:$0xff]  ;;  %v386_v39 = vld [vmem:[%s7915_s20 + $0x348] sm:$0xff]  ;;  %v353_v43 = vld [vmem:[%s7915_s20 + $0x240] sm:$0xff] }
  0x31   : > { %5168 = vmatpush3.msra.mxu1 %v314_v5  ;;  %5134 = vmatprep.subr.mxu0 %v297_v6  ;;  %v385_v44 = vld [vmem:[%s7915_s20 + $0x340] sm:$0xff]  ;;  %v368_v45 = vld [vmem:[%s7915_s20 + $0x2b8] sm:$0xff]  ;;  %v367_v49 = vld [vmem:[%s7915_s20 + $0x2b0] sm:$0xff] }
  0x32   : > { %5169 = vmatprep.subr.mxu1 %v329_v7  ;;  %5135 = vmatpush3.msra.mxu0 %v281_v9  ;;  %v400_v46 = vld [vmem:[%s7915_s20 + $0x3b8] sm:$0xff]  ;;  %v399_v50 = vld [vmem:[%s7915_s20 + $0x3b0] sm:$0xff]  ;;  %v366_v54 = vld [vmem:[%s7915_s20 + $0x2a8] sm:$0xff] }
  0x33   : > { %886 = vmatprep.mubr.f32.mxu0 %v703_v8  ;;  %5170 = vmatpush3.msra.mxu1 %v313_v11  ;;  %v352_v47 = vld [vmem:[%s7915_s20 + $0x238] sm:$0xff]  ;;  %v351_v52 = vld [vmem:[%s7915_s20 + $0x230] sm:$0xff]  ;;  %v398_v55 = vld [vmem:[%s7915_s20 + $0x3a8] sm:$0xff] }
  0x34   : > { %956 = vmatprep.mubr.f32.mxu1 %v704_v10  ;;  %887 = vmatmul.mubr.f32.vlgmr.msra.gmra.mxu0 %v695_v62  ;;  %v384_v48 = vld [vmem:[%s7915_s20 + $0x338] sm:$0xff]  ;;  %v383_v53 = vld [vmem:[%s7915_s20 + $0x330] sm:$0xff]  ;;  %v350_v56 = vld [vmem:[%s7915_s20 + $0x228] sm:$0xff] }
  0x35   : > { %957 = vmatmul.mubr.f32.vlgmr.msra.gmra.mxu1 %v702_v1  ;;  %5174 = vmatprep.subr.mxu0 %v376_v12  ;;  %v382_v57 = vld [vmem:[%s7915_s20 + $0x328] sm:$0xff]  ;;  %v365_v59 = vld [vmem:[%s7915_s20 + $0x2a0] sm:$0xff]  ;;  %v364_v63 = vld [vmem:[%s7915_s20 + $0x298] sm:$0xff] }
  0x36   : > { %5209 = vmatprep.subr.mxu1 %v408_v13  ;;  %5175 = vmatpush3.msra.mxu0 %v360_v14  ;;  %v254_v58 = vld [vmem:[%s7965_s24 + $0x8] sm:$0xff]  ;;  %v397_v60 = vld [vmem:[%s7915_s20 + $0x3a0] sm:$0xff]  ;;  %v396_v0 = vld [vmem:[%s7915_s20 + $0x398] sm:$0xff] }
  0x37   : > { %5210 = vmatpush3.msra.mxu1 %v392_v15  ;;  %5176 = vmatprep.subr.mxu0 %v375_v16  ;;  %v349_v61 = vld [vmem:[%s7915_s20 + $0x220] sm:$0xff]  ;;  %v705_v1 = vcombine.high %v254_v58, %v254_v58  ;;  %v348_v2 = vld [vmem:[%s7915_s20 + $0x218] sm:$0xff]  ;;  %v363_v4 = vld [vmem:[%s7915_s20 + $0x290] sm:$0xff]  ;;  %v712_v6 = vrot.slane %v254_v58, %v7972_v51 }
  0x38   : > { %5211 = vmatprep.subr.mxu1 %v407_v17  ;;  %5177 = vmatpush3.msra.mxu0 %v359_v18  ;;  %v381_v62 = vld [vmem:[%s7915_s20 + $0x320] sm:$0xff]  ;;  %v380_v3 = vld [vmem:[%s7915_s20 + $0x318] sm:$0xff]  ;;  %v395_v5 = vld [vmem:[%s7915_s20 + $0x390] sm:$0xff] }
  0x39   : > { %5212 = vmatpush3.msra.mxu1 %v391_v19  ;;  %5178 = vmatprep.subr.mxu0 %v374_v20  ;;  %v347_v7 = vld [vmem:[%s7915_s20 + $0x210] sm:$0xff]  ;;  %v362_v9 = vld [vmem:[%s7915_s20 + $0x288] sm:$0xff]  ;;  %v719_v11 = vrot.slane %v705_v1, %v7972_v51  ;;  %v361_v14 = vld [vmem:[%s7915_s20 + $0x280] sm:$0xff]  ;;  %v720_v16 = vcombine.high %v712_v6, %v712_v6 }
  0x3a   : > { %5213 = vmatprep.subr.mxu1 %v406_v21  ;;  %5179 = vmatpush3.msra.mxu0 %v358_v22  ;;  %v379_v8 = vld [vmem:[%s7915_s20 + $0x310] sm:$0xff]  ;;  %v394_v10 = vld [vmem:[%s7915_s20 + $0x388] sm:$0xff]  ;;  %v393_v15 = vld [vmem:[%s7915_s20 + $0x380] sm:$0xff] }
  0x3b   : > { %5214 = vmatpush3.msra.mxu1 %v390_v23  ;;  %5180 = vmatprep.subr.mxu0 %v373_v24  ;;  %v346_v12 = vld [vmem:[%s7915_s20 + $0x208] sm:$0xff]  ;;  %v345_v17 = vld [vmem:[%s7915_s20 + $0x200] sm:$0xff]  ;;  %v721_v19 = vcombine.high %v719_v11, %v719_v11  ;;  %v440_v20 = vld [vmem:[%s7915_s20 + $0x4f8] sm:$0xff] }
  0x3c   : > { %5215 = vmatprep.subr.mxu1 %v405_v25  ;;  %5181 = vmatpush3.msra.mxu0 %v357_v26  ;;  %v378_v13 = vld [vmem:[%s7915_s20 + $0x308] sm:$0xff]  ;;  %v377_v18 = vld [vmem:[%s7915_s20 + $0x300] sm:$0xff]  ;;  %v472_v21 = vld [vmem:[%s7915_s20 + $0x5f8] sm:$0xff] }
  0x3d   : > { %5216 = vmatpush3.msra.mxu1 %v389_v27  ;;  %5182 = vmatprep.subr.mxu0 %v372_v28  ;;  %v424_v22 = vld [vmem:[%s7915_s20 + $0x478] sm:$0xff]  ;;  %v439_v24 = vld [vmem:[%s7915_s20 + $0x4f0] sm:$0xff]  ;;  %v438_v28 = vld [vmem:[%s7915_s20 + $0x4e8] sm:$0xff] }
  0x3e   : > { %5217 = vmatprep.subr.mxu1 %v404_v29  ;;  %5183 = vmatpush3.msra.mxu0 %v356_v30  ;;  %v456_v23 = vld [vmem:[%s7915_s20 + $0x578] sm:$0xff]  ;;  %v471_v25 = vld [vmem:[%s7915_s20 + $0x5f0] sm:$0xff]  ;;  %v470_v29 = vld [vmem:[%s7915_s20 + $0x5e8] sm:$0xff] }
  0x3f   : > { %5218 = vmatpush3.msra.mxu1 %v388_v31  ;;  %5184 = vmatprep.subr.mxu0 %v371_v32  ;;  %v423_v26 = vld [vmem:[%s7915_s20 + $0x470] sm:$0xff]  ;;  %v422_v30 = vld [vmem:[%s7915_s20 + $0x468] sm:$0xff]  ;;  %v437_v32 = vld [vmem:[%s7915_s20 + $0x4e0] sm:$0xff] }
  0x40   : > { %5219 = vmatprep.subr.mxu1 %v403_v33  ;;  %5185 = vmatpush3.msra.mxu0 %v355_v34  ;;  %v455_v27 = vld [vmem:[%s7915_s20 + $0x570] sm:$0xff]  ;;  %v454_v31 = vld [vmem:[%s7915_s20 + $0x568] sm:$0xff]  ;;  %v469_v33 = vld [vmem:[%s7915_s20 + $0x5e0] sm:$0xff] }
  0x41   : > { %5220 = vmatpush3.msra.mxu1 %v387_v35  ;;  %5186 = vmatprep.subr.mxu0 %v370_v36  ;;  %v421_v34 = vld [vmem:[%s7915_s20 + $0x460] sm:$0xff]  ;;  %v436_v36 = vld [vmem:[%s7915_s20 + $0x4d8] sm:$0xff]  ;;  %v431_v58 = vld [vmem:[%s7915_s20 + $0x4b0] sm:$0xff] }
  0x42   : > { %5221 = vmatprep.subr.mxu1 %v402_v37  ;;  %5187 = vmatpush3.msra.mxu0 %v354_v38  ;;  %v453_v35 = vld [vmem:[%s7915_s20 + $0x560] sm:$0xff]  ;;  %v468_v37 = vld [vmem:[%s7915_s20 + $0x5d8] sm:$0xff]  ;;  %v446_v1 = vld [vmem:[%s7915_s20 + $0x528] sm:$0xff] }
  0x43   : > { %5222 = vmatpush3.msra.mxu1 %v386_v39  ;;  %5188 = vmatprep.subr.mxu0 %v369_v40  ;;  %v420_v38 = vld [vmem:[%s7915_s20 + $0x458] sm:$0xff]  ;;  %v435_v40 = vld [vmem:[%s7915_s20 + $0x4d0] sm:$0xff] }
  0x44   : > { %5223 = vmatprep.subr.mxu1 %v401_v41  ;;  %5189 = vmatpush3.msra.mxu0 %v353_v43  ;;  %v452_v39 = vld [vmem:[%s7915_s20 + $0x558] sm:$0xff]  ;;  %v467_v41 = vld [vmem:[%s7915_s20 + $0x5d0] sm:$0xff] }
  0x45   : > { %5224 = vmatpush3.msra.mxu1 %v385_v44  ;;  %5190 = vmatprep.subr.mxu0 %v368_v45  ;;  %v419_v43 = vld [vmem:[%s7915_s20 + $0x450] sm:$0xff]  ;;  %v434_v45 = vld [vmem:[%s7915_s20 + $0x4c8] sm:$0xff]  ;;  %v8669_v42 = vld [vmem:[%s7915_s20 + $0x358] sm:$0xff] }
  0x46   : > { %5225 = vmatprep.subr.mxu1 %v400_v46  ;;  %5191 = vmatpush3.msra.mxu0 %v352_v47  ;;  %v451_v44 = vld [vmem:[%s7915_s20 + $0x550] sm:$0xff]  ;;  %v466_v46 = vld [vmem:[%s7915_s20 + $0x5c8] sm:$0xff]  ;;  %11404 = vst [vmem:[#allocation11_spill] sm:$0xff] %v8669_v42 }
  0x47   : > { %5226 = vmatpush3.msra.mxu1 %v384_v48  ;;  %5192 = vmatprep.subr.mxu0 %v367_v49  ;;  %v418_v47 = vld [vmem:[%s7915_s20 + $0x448] sm:$0xff]  ;;  %v433_v49 = vld [vmem:[%s7915_s20 + $0x4c0] sm:$0xff] }
  0x48   : > { %5227 = vmatprep.subr.mxu1 %v399_v50  ;;  %5193 = vmatpush3.msra.mxu0 %v351_v52  ;;  %v450_v48 = vld [vmem:[%s7915_s20 + $0x548] sm:$0xff]  ;;  %v465_v50 = vld [vmem:[%s7915_s20 + $0x5c0] sm:$0xff] }
  0x49   : > { %5228 = vmatpush3.msra.mxu1 %v383_v53  ;;  %5194 = vmatprep.subr.mxu0 %v366_v54  ;;  %v417_v52 = vld [vmem:[%s7915_s20 + $0x440] sm:$0xff]  ;;  %v432_v54 = vld [vmem:[%s7915_s20 + $0x4b8] sm:$0xff] }
  0x4a   : > { %5229 = vmatprep.subr.mxu1 %v398_v55  ;;  %5195 = vmatpush3.msra.mxu0 %v350_v56  ;;  %v449_v53 = vld [vmem:[%s7915_s20 + $0x540] sm:$0xff]  ;;  %v464_v55 = vld [vmem:[%s7915_s20 + $0x5b8] sm:$0xff] }
  0x4b   : > { %5230 = vmatpush3.msra.mxu1 %v382_v57  ;;  %5196 = vmatprep.subr.mxu0 %v365_v59  ;;  %v416_v56 = vld [vmem:[%s7915_s20 + $0x438] sm:$0xff]  ;;  %v463_v59 = vld [vmem:[%s7915_s20 + $0x5b0] sm:$0xff] }
  0x4c   : > { %5231 = vmatprep.subr.mxu1 %v397_v60  ;;  %5197 = vmatpush3.msra.mxu0 %v349_v61  ;;  %v448_v57 = vld [vmem:[%s7915_s20 + $0x538] sm:$0xff]  ;;  %v415_v60 = vld [vmem:[%s7915_s20 + $0x430] sm:$0xff] }
  0x4d   : > { %5232 = vmatpush3.msra.mxu1 %v381_v62  ;;  %5198 = vmatprep.subr.mxu0 %v364_v63  ;;  %v447_v61 = vld [vmem:[%s7915_s20 + $0x530] sm:$0xff]  ;;  %v430_v62 = vld [vmem:[%s7915_s20 + $0x4a8] sm:$0xff] }
  0x4e   : > { %5233 = vmatprep.subr.mxu1 %v396_v0  ;;  %5199 = vmatpush3.msra.mxu0 %v348_v2  ;;  %v462_v63 = vld [vmem:[%s7915_s20 + $0x5a8] sm:$0xff]  ;;  %v255_v2 = vld [vmem:[%s7965_s24 + $0x10] sm:$0xff] }
  0x4f   : > { %5234 = vmatpush3.msra.mxu1 %v380_v3  ;;  %5200 = vmatprep.subr.mxu0 %v363_v4  ;;  %v414_v0 = vld [vmem:[%s7915_s20 + $0x428] sm:$0xff]  ;;  %v429_v3 = vld [vmem:[%s7915_s20 + $0x4a0] sm:$0xff] }
  0x50   : > { %5235 = vmatprep.subr.mxu1 %v395_v5  ;;  %5201 = vmatpush3.msra.mxu0 %v347_v7  ;;  %v461_v4 = vld [vmem:[%s7915_s20 + $0x5a0] sm:$0xff]  ;;  %v428_v7 = vld [vmem:[%s7915_s20 + $0x498] sm:$0xff] }
  0x51   : > { %5236 = vmatpush3.msra.mxu1 %v379_v8  ;;  %5202 = vmatprep.subr.mxu0 %v362_v9  ;;  %v413_v5 = vld [vmem:[%s7915_s20 + $0x420] sm:$0xff]  ;;  %v460_v8 = vld [vmem:[%s7915_s20 + $0x598] sm:$0xff]  ;;  %v722_v9 = vcombine.high %v255_v2, %v255_v2 }
  0x52   : > { %5237 = vmatprep.subr.mxu1 %v394_v10  ;;  %5203 = vmatpush3.msra.mxu0 %v346_v12  ;;  %v412_v10 = vld [vmem:[%s7915_s20 + $0x418] sm:$0xff]  ;;  %v427_v12 = vld [vmem:[%s7915_s20 + $0x490] sm:$0xff] }
  0x53   : > { %5238 = vmatpush3.msra.mxu1 %v378_v13  ;;  %5204 = vmatprep.subr.mxu0 %v361_v14  ;;  %v459_v13 = vld [vmem:[%s7915_s20 + $0x590] sm:$0xff]  ;;  %v729_v14 = vrot.slane %v255_v2, %v7972_v51 }
  0x54   : > { %5239 = vmatprep.subr.mxu1 %v393_v15  ;;  %5205 = vmatpush3.msra.mxu0 %v345_v17  ;;  %v411_v15 = vld [vmem:[%s7915_s20 + $0x410] sm:$0xff]  ;;  %v426_v17 = vld [vmem:[%s7915_s20 + $0x488] sm:$0xff] }
  0x55   : > { %1026 = vmatprep.mubr.f32.mxu0 %v720_v16  ;;  %5240 = vmatpush3.msra.mxu1 %v377_v18  ;;  %v443_v16 = vld [vmem:[%s7915_s20 + $0x510] sm:$0xff]  ;;  %v458_v18 = vld [vmem:[%s7915_s20 + $0x588] sm:$0xff] }
  0x56   : > { %1027 = vmatmul.mubr.f32.vlgmr.msra.gmra.mxu0 %v712_v6  ;;  %1096 = vmatprep.mubr.f32.mxu1 %v721_v19  ;;  %v445_v6 = vld [vmem:[%s7915_s20 + $0x520] sm:$0xff]  ;;  %v736_v19 = vrot.slane %v722_v9, %v7972_v51  ;;  %v495_v2 = vld [vmem:[%s7915_s20 + $0x6b0] sm:$0xff]  ;;  %v510_v9 = vld [vmem:[%s7915_s20 + $0x728] sm:$0xff] }
  0x57   : > { %5244 = vmatprep.subr.mxu0 %v440_v20  ;;  %5279 = vmatprep.subr.mxu1 %v472_v21  ;;  %v410_v20 = vld [vmem:[%s7915_s20 + $0x408] sm:$0xff] }
  0x58   : > { %1097 = vmatmul.mubr.f32.vlgmr.msra.gmra.mxu1 %v719_v11  ;;  %5245 = vmatpush3.msra.mxu0 %v424_v22  ;;  %v444_v11 = vld [vmem:[%s7915_s20 + $0x518] sm:$0xff]  ;;  %v442_v21 = vld [vmem:[%s7915_s20 + $0x508] sm:$0xff]  ;;  %v425_v22 = vld [vmem:[%s7915_s20 + $0x480] sm:$0xff] }
  0x59   : > { %5280 = vmatpush3.msra.mxu1 %v456_v23  ;;  %5246 = vmatprep.subr.mxu0 %v439_v24  ;;  %v457_v23 = vld [vmem:[%s7915_s20 + $0x580] sm:$0xff]  ;;  %v737_v24 = vcombine.high %v729_v14, %v729_v14 }
  0x5a   : > { %5281 = vmatprep.subr.mxu1 %v471_v25  ;;  %5247 = vmatpush3.msra.mxu0 %v423_v26  ;;  %v409_v25 = vld [vmem:[%s7915_s20 + $0x400] sm:$0xff] }
  0x5b   : > { %5282 = vmatpush3.msra.mxu1 %v455_v27  ;;  %5248 = vmatprep.subr.mxu0 %v438_v28  ;;  %v441_v26 = vld [vmem:[%s7915_s20 + $0x500] sm:$0xff]  ;;  %v738_v27 = vcombine.high %v736_v19, %v736_v19  ;;  %v504_v28 = vld [vmem:[%s7915_s20 + $0x6f8] sm:$0xff] }
  0x5c   : > { %5283 = vmatprep.subr.mxu1 %v470_v29  ;;  %5249 = vmatpush3.msra.mxu0 %v422_v30  ;;  %v536_v29 = vld [vmem:[%s7915_s20 + $0x7f8] sm:$0xff] }
  0x5d   : > { %5284 = vmatpush3.msra.mxu1 %v454_v31  ;;  %5250 = vmatprep.subr.mxu0 %v437_v32  ;;  %v488_v30 = vld [vmem:[%s7915_s20 + $0x678] sm:$0xff]  ;;  %v503_v32 = vld [vmem:[%s7915_s20 + $0x6f0] sm:$0xff] }
  0x5e   : > { %5285 = vmatprep.subr.mxu1 %v469_v33  ;;  %5251 = vmatpush3.msra.mxu0 %v421_v34  ;;  %v520_v31 = vld [vmem:[%s7915_s20 + $0x778] sm:$0xff]  ;;  %v535_v33 = vld [vmem:[%s7915_s20 + $0x7f0] sm:$0xff] }
  0x5f   : > { %5286 = vmatpush3.msra.mxu1 %v453_v35  ;;  %5252 = vmatprep.subr.mxu0 %v436_v36  ;;  %v487_v34 = vld [vmem:[%s7915_s20 + $0x670] sm:$0xff]  ;;  %v502_v36 = vld [vmem:[%s7915_s20 + $0x6e8] sm:$0xff] }
  0x60   : > { %5287 = vmatprep.subr.mxu1 %v468_v37  ;;  %5253 = vmatpush3.msra.mxu0 %v420_v38  ;;  %v519_v35 = vld [vmem:[%s7915_s20 + $0x770] sm:$0xff]  ;;  %v534_v37 = vld [vmem:[%s7915_s20 + $0x7e8] sm:$0xff] }
  0x61   : > { %5288 = vmatpush3.msra.mxu1 %v452_v39  ;;  %5254 = vmatprep.subr.mxu0 %v435_v40  ;;  %v486_v38 = vld [vmem:[%s7915_s20 + $0x668] sm:$0xff]  ;;  %v501_v40 = vld [vmem:[%s7915_s20 + $0x6e0] sm:$0xff] }
  0x62   : > { %5289 = vmatprep.subr.mxu1 %v467_v41  ;;  %5255 = vmatpush3.msra.mxu0 %v419_v43  ;;  %v518_v39 = vld [vmem:[%s7915_s20 + $0x768] sm:$0xff]  ;;  %v533_v41 = vld [vmem:[%s7915_s20 + $0x7e0] sm:$0xff] }
  0x63   : > { %5290 = vmatpush3.msra.mxu1 %v451_v44  ;;  %5256 = vmatprep.subr.mxu0 %v434_v45  ;;  %v485_v43 = vld [vmem:[%s7915_s20 + $0x660] sm:$0xff]  ;;  %v500_v45 = vld [vmem:[%s7915_s20 + $0x6d8] sm:$0xff] }
  0x64   : > { %5291 = vmatprep.subr.mxu1 %v466_v46  ;;  %5257 = vmatpush3.msra.mxu0 %v418_v47  ;;  %v517_v44 = vld [vmem:[%s7915_s20 + $0x760] sm:$0xff]  ;;  %v532_v46 = vld [vmem:[%s7915_s20 + $0x7d8] sm:$0xff] }
  0x65   : > { %5292 = vmatpush3.msra.mxu1 %v450_v48  ;;  %5258 = vmatprep.subr.mxu0 %v433_v49  ;;  %v484_v47 = vld [vmem:[%s7915_s20 + $0x658] sm:$0xff]  ;;  %v499_v49 = vld [vmem:[%s7915_s20 + $0x6d0] sm:$0xff] }
  0x66   : > { %5293 = vmatprep.subr.mxu1 %v465_v50  ;;  %5259 = vmatpush3.msra.mxu0 %v417_v52  ;;  %v516_v48 = vld [vmem:[%s7915_s20 + $0x758] sm:$0xff]  ;;  %v531_v50 = vld [vmem:[%s7915_s20 + $0x7d0] sm:$0xff] }
  0x67   : > { %5294 = vmatpush3.msra.mxu1 %v449_v53  ;;  %5260 = vmatprep.subr.mxu0 %v432_v54  ;;  %v483_v52 = vld [vmem:[%s7915_s20 + $0x650] sm:$0xff]  ;;  %v498_v54 = vld [vmem:[%s7915_s20 + $0x6c8] sm:$0xff] }
  0x68   : > { %5295 = vmatprep.subr.mxu1 %v464_v55  ;;  %5261 = vmatpush3.msra.mxu0 %v416_v56  ;;  %v515_v53 = vld [vmem:[%s7915_s20 + $0x750] sm:$0xff]  ;;  %v530_v55 = vld [vmem:[%s7915_s20 + $0x7c8] sm:$0xff] }
  0x69   : > { %5296 = vmatpush3.msra.mxu1 %v448_v57  ;;  %5262 = vmatprep.subr.mxu0 %v431_v58  ;;  %v482_v56 = vld [vmem:[%s7915_s20 + $0x648] sm:$0xff]  ;;  %v497_v58 = vld [vmem:[%s7915_s20 + $0x6c0] sm:$0xff] }
  0x6a   : > { %5297 = vmatprep.subr.mxu1 %v463_v59  ;;  %5263 = vmatpush3.msra.mxu0 %v415_v60  ;;  %v514_v57 = vld [vmem:[%s7915_s20 + $0x748] sm:$0xff]  ;;  %v529_v59 = vld [vmem:[%s7915_s20 + $0x7c0] sm:$0xff] }
  0x6b   : > { %5298 = vmatpush3.msra.mxu1 %v447_v61  ;;  %5264 = vmatprep.subr.mxu0 %v430_v62  ;;  %v481_v60 = vld [vmem:[%s7915_s20 + $0x640] sm:$0xff]  ;;  %v496_v62 = vld [vmem:[%s7915_s20 + $0x6b8] sm:$0xff] }
  0x6c   : > { %5299 = vmatprep.subr.mxu1 %v462_v63  ;;  %5265 = vmatpush3.msra.mxu0 %v414_v0  ;;  %v513_v61 = vld [vmem:[%s7915_s20 + $0x740] sm:$0xff]  ;;  %v528_v63 = vld [vmem:[%s7915_s20 + $0x7b8] sm:$0xff] }
  0x6d   : > { %5300 = vmatpush3.msra.mxu1 %v446_v1  ;;  %5266 = vmatprep.subr.mxu0 %v429_v3  ;;  %v480_v0 = vld [vmem:[%s7915_s20 + $0x638] sm:$0xff]  ;;  %v527_v3 = vld [vmem:[%s7915_s20 + $0x7b0] sm:$0xff] }
  0x6e   : > { %5301 = vmatprep.subr.mxu1 %v461_v4  ;;  %5267 = vmatpush3.msra.mxu0 %v413_v5  ;;  %v512_v1 = vld [vmem:[%s7915_s20 + $0x738] sm:$0xff]  ;;  %v479_v4 = vld [vmem:[%s7915_s20 + $0x630] sm:$0xff] }
  0x6f   : > { %5302 = vmatpush3.msra.mxu1 %v445_v6  ;;  %5268 = vmatprep.subr.mxu0 %v428_v7  ;;  %v511_v5 = vld [vmem:[%s7915_s20 + $0x730] sm:$0xff]  ;;  %v494_v6 = vld [vmem:[%s7915_s20 + $0x6a8] sm:$0xff] }
  0x70   : > { %5303 = vmatprep.subr.mxu1 %v460_v8  ;;  %5269 = vmatpush3.msra.mxu0 %v412_v10  ;;  %v526_v7 = vld [vmem:[%s7915_s20 + $0x7a8] sm:$0xff]  ;;  %v256_v10 = vld [vmem:[%s7965_s24 + $0x18] sm:$0xff] }
  0x71   : > { %5304 = vmatpush3.msra.mxu1 %v444_v11  ;;  %5270 = vmatprep.subr.mxu0 %v427_v12  ;;  %v478_v8 = vld [vmem:[%s7915_s20 + $0x628] sm:$0xff]  ;;  %v493_v11 = vld [vmem:[%s7915_s20 + $0x6a0] sm:$0xff] }
  0x72   : > { %5305 = vmatprep.subr.mxu1 %v459_v13  ;;  %5271 = vmatpush3.msra.mxu0 %v411_v15  ;;  %v525_v12 = vld [vmem:[%s7915_s20 + $0x7a0] sm:$0xff]  ;;  %v492_v15 = vld [vmem:[%s7915_s20 + $0x698] sm:$0xff] }
  0x73   : > { %5306 = vmatpush3.msra.mxu1 %v443_v16  ;;  %5272 = vmatprep.subr.mxu0 %v426_v17  ;;  %v477_v13 = vld [vmem:[%s7915_s20 + $0x620] sm:$0xff]  ;;  %v524_v16 = vld [vmem:[%s7915_s20 + $0x798] sm:$0xff]  ;;  %v739_v17 = vcombine.high %v256_v10, %v256_v10 }
  0x74   : > { %5307 = vmatprep.subr.mxu1 %v458_v18  ;;  %5273 = vmatpush3.msra.mxu0 %v410_v20  ;;  %v476_v18 = vld [vmem:[%s7915_s20 + $0x618] sm:$0xff]  ;;  %v491_v20 = vld [vmem:[%s7915_s20 + $0x690] sm:$0xff] }
  0x75   : > { %5308 = vmatpush3.msra.mxu1 %v442_v21  ;;  %5274 = vmatprep.subr.mxu0 %v425_v22  ;;  %v523_v21 = vld [vmem:[%s7915_s20 + $0x790] sm:$0xff]  ;;  %v746_v22 = vrot.slane %v256_v10, %v7972_v51 }
  0x76   : > { %5309 = vmatprep.subr.mxu1 %v457_v23  ;;  %5275 = vmatpush3.msra.mxu0 %v409_v25  ;;  %v475_v23 = vld [vmem:[%s7915_s20 + $0x610] sm:$0xff]  ;;  %v490_v25 = vld [vmem:[%s7915_s20 + $0x688] sm:$0xff] }
  0x77   : > { %1166 = vmatprep.mubr.f32.mxu0 %v737_v24  ;;  %5310 = vmatpush3.msra.mxu1 %v441_v26  ;;  %v507_v24 = vld [vmem:[%s7915_s20 + $0x710] sm:$0xff]  ;;  %v522_v26 = vld [vmem:[%s7915_s20 + $0x788] sm:$0xff] }
  0x78   : > { %1167 = vmatmul.mubr.f32.vlgmr.msra.gmra.mxu0 %v729_v14  ;;  %1236 = vmatprep.mubr.f32.mxu1 %v738_v27  ;;  %v509_v14 = vld [vmem:[%s7915_s20 + $0x720] sm:$0xff]  ;;  %v753_v27 = vrot.slane %v739_v17, %v7972_v51  ;;  %v559_v10 = vld [vmem:[%s7915_s20 + $0x8b0] sm:$0xff]  ;;  %v574_v17 = vld [vmem:[%s7915_s20 + $0x928] sm:$0xff] }
  0x79   : > { %5314 = vmatprep.subr.mxu0 %v504_v28  ;;  %5349 = vmatprep.subr.mxu1 %v536_v29  ;;  %v474_v28 = vld [vmem:[%s7915_s20 + $0x608] sm:$0xff] }
  0x7a   : > { %1237 = vmatmul.mubr.f32.vlgmr.msra.gmra.mxu1 %v736_v19  ;;  %5315 = vmatpush3.msra.mxu0 %v488_v30  ;;  %v508_v19 = vld [vmem:[%s7915_s20 + $0x718] sm:$0xff]  ;;  %v506_v29 = vld [vmem:[%s7915_s20 + $0x708] sm:$0xff]  ;;  %v489_v30 = vld [vmem:[%s7915_s20 + $0x680] sm:$0xff] }
  0x7b   : > { %5350 = vmatpush3.msra.mxu1 %v520_v31  ;;  %5316 = vmatprep.subr.mxu0 %v503_v32  ;;  %v521_v31 = vld [vmem:[%s7915_s20 + $0x780] sm:$0xff]  ;;  %v754_v32 = vcombine.high %v746_v22, %v746_v22 }
  0x7c   : > { %5351 = vmatprep.subr.mxu1 %v535_v33  ;;  %5317 = vmatpush3.msra.mxu0 %v487_v34  ;;  %v473_v33 = vld [vmem:[%s7915_s20 + $0x600] sm:$0xff] }
  0x7d   : > { %5352 = vmatpush3.msra.mxu1 %v519_v35  ;;  %5318 = vmatprep.subr.mxu0 %v502_v36  ;;  %v505_v34 = vld [vmem:[%s7915_s20 + $0x700] sm:$0xff]  ;;  %v755_v35 = vcombine.high %v753_v27, %v753_v27  ;;  %v568_v36 = vld [vmem:[%s7915_s20 + $0x8f8] sm:$0xff] }
  0x7e   : > { %5353 = vmatprep.subr.mxu1 %v534_v37  ;;  %5319 = vmatpush3.msra.mxu0 %v486_v38  ;;  %v600_v37 = vld [vmem:[%s7915_s20 + $0x9f8] sm:$0xff] }
  0x7f   : > { %5354 = vmatpush3.msra.mxu1 %v518_v39  ;;  %5320 = vmatprep.subr.mxu0 %v501_v40  ;;  %v552_v38 = vld [vmem:[%s7915_s20 + $0x878] sm:$0xff]  ;;  %v567_v40 = vld [vmem:[%s7915_s20 + $0x8f0] sm:$0xff] }
  0x80   : > { %5355 = vmatprep.subr.mxu1 %v533_v41  ;;  %5321 = vmatpush3.msra.mxu0 %v485_v43  ;;  %v584_v39 = vld [vmem:[%s7915_s20 + $0x978] sm:$0xff]  ;;  %v599_v41 = vld [vmem:[%s7915_s20 + $0x9f0] sm:$0xff] }
  0x81   : > { %5356 = vmatpush3.msra.mxu1 %v517_v44  ;;  %5322 = vmatprep.subr.mxu0 %v500_v45  ;;  %v551_v43 = vld [vmem:[%s7915_s20 + $0x870] sm:$0xff]  ;;  %v566_v45 = vld [vmem:[%s7915_s20 + $0x8e8] sm:$0xff] }
  0x82   : > { %5357 = vmatprep.subr.mxu1 %v532_v46  ;;  %5323 = vmatpush3.msra.mxu0 %v484_v47  ;;  %v583_v44 = vld [vmem:[%s7915_s20 + $0x970] sm:$0xff]  ;;  %v598_v46 = vld [vmem:[%s7915_s20 + $0x9e8] sm:$0xff] }
  0x83   : > { %5358 = vmatpush3.msra.mxu1 %v516_v48  ;;  %5324 = vmatprep.subr.mxu0 %v499_v49  ;;  %v550_v47 = vld [vmem:[%s7915_s20 + $0x868] sm:$0xff]  ;;  %v565_v49 = vld [vmem:[%s7915_s20 + $0x8e0] sm:$0xff] }
  0x84   : > { %5359 = vmatprep.subr.mxu1 %v531_v50  ;;  %5325 = vmatpush3.msra.mxu0 %v483_v52  ;;  %v582_v48 = vld [vmem:[%s7915_s20 + $0x968] sm:$0xff]  ;;  %v597_v50 = vld [vmem:[%s7915_s20 + $0x9e0] sm:$0xff] }
  0x85   : > { %5360 = vmatpush3.msra.mxu1 %v515_v53  ;;  %5326 = vmatprep.subr.mxu0 %v498_v54  ;;  %v549_v52 = vld [vmem:[%s7915_s20 + $0x860] sm:$0xff]  ;;  %v564_v54 = vld [vmem:[%s7915_s20 + $0x8d8] sm:$0xff] }
  0x86   : > { %5361 = vmatprep.subr.mxu1 %v530_v55  ;;  %5327 = vmatpush3.msra.mxu0 %v482_v56  ;;  %v581_v53 = vld [vmem:[%s7915_s20 + $0x960] sm:$0xff]  ;;  %v596_v55 = vld [vmem:[%s7915_s20 + $0x9d8] sm:$0xff] }
  0x87   : > { %5362 = vmatpush3.msra.mxu1 %v514_v57  ;;  %5328 = vmatprep.subr.mxu0 %v497_v58  ;;  %v548_v56 = vld [vmem:[%s7915_s20 + $0x858] sm:$0xff]  ;;  %v563_v58 = vld [vmem:[%s7915_s20 + $0x8d0] sm:$0xff] }
  0x88   : > { %5363 = vmatprep.subr.mxu1 %v529_v59  ;;  %5329 = vmatpush3.msra.mxu0 %v481_v60  ;;  %v580_v57 = vld [vmem:[%s7915_s20 + $0x958] sm:$0xff]  ;;  %v595_v59 = vld [vmem:[%s7915_s20 + $0x9d0] sm:$0xff] }
  0x89   : > { %5364 = vmatpush3.msra.mxu1 %v513_v61  ;;  %5330 = vmatprep.subr.mxu0 %v496_v62  ;;  %v547_v60 = vld [vmem:[%s7915_s20 + $0x850] sm:$0xff]  ;;  %v562_v62 = vld [vmem:[%s7915_s20 + $0x8c8] sm:$0xff] }
  0x8a   : > { %5365 = vmatprep.subr.mxu1 %v528_v63  ;;  %5331 = vmatpush3.msra.mxu0 %v480_v0  ;;  %v579_v61 = vld [vmem:[%s7915_s20 + $0x950] sm:$0xff]  ;;  %v594_v63 = vld [vmem:[%s7915_s20 + $0x9c8] sm:$0xff] }
  0x8b   : > { %5366 = vmatpush3.msra.mxu1 %v512_v1  ;;  %5332 = vmatprep.subr.mxu0 %v495_v2  ;;  %v546_v0 = vld [vmem:[%s7915_s20 + $0x848] sm:$0xff]  ;;  %v561_v2 = vld [vmem:[%s7915_s20 + $0x8c0] sm:$0xff] }
  0x8c   : > { %5367 = vmatprep.subr.mxu1 %v527_v3  ;;  %5333 = vmatpush3.msra.mxu0 %v479_v4  ;;  %v578_v1 = vld [vmem:[%s7915_s20 + $0x948] sm:$0xff]  ;;  %v593_v3 = vld [vmem:[%s7915_s20 + $0x9c0] sm:$0xff] }
  0x8d   : > { %5368 = vmatpush3.msra.mxu1 %v511_v5  ;;  %5334 = vmatprep.subr.mxu0 %v494_v6  ;;  %v545_v4 = vld [vmem:[%s7915_s20 + $0x840] sm:$0xff]  ;;  %v560_v6 = vld [vmem:[%s7915_s20 + $0x8b8] sm:$0xff] }
  0x8e   : > { %5369 = vmatprep.subr.mxu1 %v526_v7  ;;  %5335 = vmatpush3.msra.mxu0 %v478_v8  ;;  %v577_v5 = vld [vmem:[%s7915_s20 + $0x940] sm:$0xff]  ;;  %v592_v7 = vld [vmem:[%s7915_s20 + $0x9b8] sm:$0xff] }
  0x8f   : > { %5370 = vmatpush3.msra.mxu1 %v510_v9  ;;  %5336 = vmatprep.subr.mxu0 %v493_v11  ;;  %v544_v8 = vld [vmem:[%s7915_s20 + $0x838] sm:$0xff]  ;;  %v591_v11 = vld [vmem:[%s7915_s20 + $0x9b0] sm:$0xff] }
  0x90   : > { %5371 = vmatprep.subr.mxu1 %v525_v12  ;;  %5337 = vmatpush3.msra.mxu0 %v477_v13  ;;  %v576_v9 = vld [vmem:[%s7915_s20 + $0x938] sm:$0xff]  ;;  %v543_v12 = vld [vmem:[%s7915_s20 + $0x830] sm:$0xff] }
  0x91   : > { %5372 = vmatpush3.msra.mxu1 %v509_v14  ;;  %5338 = vmatprep.subr.mxu0 %v492_v15  ;;  %v575_v13 = vld [vmem:[%s7915_s20 + $0x930] sm:$0xff]  ;;  %v558_v14 = vld [vmem:[%s7915_s20 + $0x8a8] sm:$0xff] }
  0x92   : > { %5373 = vmatprep.subr.mxu1 %v524_v16  ;;  %5339 = vmatpush3.msra.mxu0 %v476_v18  ;;  %v590_v15 = vld [vmem:[%s7915_s20 + $0x9a8] sm:$0xff]  ;;  %v257_v18 = vld [vmem:[%s7965_s24 + $0x20] sm:$0xff] }
  0x93   : > { %5374 = vmatpush3.msra.mxu1 %v508_v19  ;;  %5340 = vmatprep.subr.mxu0 %v491_v20  ;;  %v542_v16 = vld [vmem:[%s7915_s20 + $0x828] sm:$0xff]  ;;  %v557_v19 = vld [vmem:[%s7915_s20 + $0x8a0] sm:$0xff] }
  0x94   : > { %5375 = vmatprep.subr.mxu1 %v523_v21  ;;  %5341 = vmatpush3.msra.mxu0 %v475_v23  ;;  %v589_v20 = vld [vmem:[%s7915_s20 + $0x9a0] sm:$0xff]  ;;  %v556_v23 = vld [vmem:[%s7915_s20 + $0x898] sm:$0xff] }
  0x95   : > { %5376 = vmatpush3.msra.mxu1 %v507_v24  ;;  %5342 = vmatprep.subr.mxu0 %v490_v25  ;;  %v541_v21 = vld [vmem:[%s7915_s20 + $0x820] sm:$0xff]  ;;  %v588_v24 = vld [vmem:[%s7915_s20 + $0x998] sm:$0xff]  ;;  %v756_v25 = vcombine.high %v257_v18, %v257_v18 }
  0x96   : > { %5377 = vmatprep.subr.mxu1 %v522_v26  ;;  %5343 = vmatpush3.msra.mxu0 %v474_v28  ;;  %v540_v26 = vld [vmem:[%s7915_s20 + $0x818] sm:$0xff]  ;;  %v555_v28 = vld [vmem:[%s7915_s20 + $0x890] sm:$0xff] }
  0x97   : > { %5378 = vmatpush3.msra.mxu1 %v506_v29  ;;  %5344 = vmatprep.subr.mxu0 %v489_v30  ;;  %v587_v29 = vld [vmem:[%s7915_s20 + $0x990] sm:$0xff]  ;;  %v763_v30 = vrot.slane %v257_v18, %v7972_v51 }
  0x98   : > { %5379 = vmatprep.subr.mxu1 %v521_v31  ;;  %5345 = vmatpush3.msra.mxu0 %v473_v33  ;;  %v539_v31 = vld [vmem:[%s7915_s20 + $0x810] sm:$0xff]  ;;  %v554_v33 = vld [vmem:[%s7915_s20 + $0x888] sm:$0xff] }
  0x99   : > { %1306 = vmatprep.mubr.f32.mxu0 %v754_v32  ;;  %5380 = vmatpush3.msra.mxu1 %v505_v34  ;;  %v571_v32 = vld [vmem:[%s7915_s20 + $0x910] sm:$0xff]  ;;  %v586_v34 = vld [vmem:[%s7915_s20 + $0x988] sm:$0xff] }
  0x9a   : > { %1307 = vmatmul.mubr.f32.vlgmr.msra.gmra.mxu0 %v746_v22  ;;  %1376 = vmatprep.mubr.f32.mxu1 %v755_v35  ;;  %v573_v22 = vld [vmem:[%s7915_s20 + $0x920] sm:$0xff]  ;;  %v770_v35 = vrot.slane %v756_v25, %v7972_v51  ;;  %v623_v18 = vld [vmem:[%s7915_s20 + $0xab0] sm:$0xff]  ;;  %v638_v25 = vld [vmem:[%s7915_s20 + $0xb28] sm:$0xff] }
  0x9b   : > { %5384 = vmatprep.subr.mxu0 %v568_v36  ;;  %5419 = vmatprep.subr.mxu1 %v600_v37  ;;  %v538_v36 = vld [vmem:[%s7915_s20 + $0x808] sm:$0xff] }
  0x9c   : > { %1377 = vmatmul.mubr.f32.vlgmr.msra.gmra.mxu1 %v753_v27  ;;  %5385 = vmatpush3.msra.mxu0 %v552_v38  ;;  %v572_v27 = vld [vmem:[%s7915_s20 + $0x918] sm:$0xff]  ;;  %v570_v37 = vld [vmem:[%s7915_s20 + $0x908] sm:$0xff]  ;;  %v553_v38 = vld [vmem:[%s7915_s20 + $0x880] sm:$0xff] }
  0x9d   : > { %5420 = vmatpush3.msra.mxu1 %v584_v39  ;;  %5386 = vmatprep.subr.mxu0 %v567_v40  ;;  %v585_v39 = vld [vmem:[%s7915_s20 + $0x980] sm:$0xff]  ;;  %v771_v40 = vcombine.high %v763_v30, %v763_v30 }
  0x9e   : > { %5421 = vmatprep.subr.mxu1 %v599_v41  ;;  %5387 = vmatpush3.msra.mxu0 %v551_v43  ;;  %v537_v41 = vld [vmem:[%s7915_s20 + $0x800] sm:$0xff] }
  0x9f   : > { %5422 = vmatpush3.msra.mxu1 %v583_v44  ;;  %5388 = vmatprep.subr.mxu0 %v566_v45  ;;  %v569_v43 = vld [vmem:[%s7915_s20 + $0x900] sm:$0xff]  ;;  %v772_v44 = vcombine.high %v770_v35, %v770_v35  ;;  %v632_v45 = vld [vmem:[%s7915_s20 + $0xaf8] sm:$0xff] }
  0xa0   : > { %5423 = vmatprep.subr.mxu1 %v598_v46  ;;  %5389 = vmatpush3.msra.mxu0 %v550_v47  ;;  %v664_v46 = vld [vmem:[%s7915_s20 + $0xbf8] sm:$0xff] }
  0xa1   : > { %5424 = vmatpush3.msra.mxu1 %v582_v48  ;;  %5390 = vmatprep.subr.mxu0 %v565_v49  ;;  %v616_v47 = vld [vmem:[%s7915_s20 + $0xa78] sm:$0xff]  ;;  %v631_v49 = vld [vmem:[%s7915_s20 + $0xaf0] sm:$0xff] }
  0xa2   : > { %5425 = vmatprep.subr.mxu1 %v597_v50  ;;  %5391 = vmatpush3.msra.mxu0 %v549_v52  ;;  %v648_v48 = vld [vmem:[%s7915_s20 + $0xb78] sm:$0xff]  ;;  %v663_v50 = vld [vmem:[%s7915_s20 + $0xbf0] sm:$0xff] }
  0xa3   : > { %5426 = vmatpush3.msra.mxu1 %v581_v53  ;;  %5392 = vmatprep.subr.mxu0 %v564_v54  ;;  %v615_v52 = vld [vmem:[%s7915_s20 + $0xa70] sm:$0xff]  ;;  %v630_v54 = vld [vmem:[%s7915_s20 + $0xae8] sm:$0xff] }
  0xa4   : > { %5427 = vmatprep.subr.mxu1 %v596_v55  ;;  %5393 = vmatpush3.msra.mxu0 %v548_v56  ;;  %v647_v53 = vld [vmem:[%s7915_s20 + $0xb70] sm:$0xff]  ;;  %v662_v55 = vld [vmem:[%s7915_s20 + $0xbe8] sm:$0xff] }
  0xa5   : > { %5428 = vmatpush3.msra.mxu1 %v580_v57  ;;  %5394 = vmatprep.subr.mxu0 %v563_v58  ;;  %v614_v56 = vld [vmem:[%s7915_s20 + $0xa68] sm:$0xff]  ;;  %v629_v58 = vld [vmem:[%s7915_s20 + $0xae0] sm:$0xff] }
  0xa6   : > { %5429 = vmatprep.subr.mxu1 %v595_v59  ;;  %5395 = vmatpush3.msra.mxu0 %v547_v60  ;;  %v646_v57 = vld [vmem:[%s7915_s20 + $0xb68] sm:$0xff]  ;;  %v661_v59 = vld [vmem:[%s7915_s20 + $0xbe0] sm:$0xff] }
  0xa7   : > { %5430 = vmatpush3.msra.mxu1 %v579_v61  ;;  %5396 = vmatprep.subr.mxu0 %v562_v62  ;;  %v613_v60 = vld [vmem:[%s7915_s20 + $0xa60] sm:$0xff]  ;;  %v628_v62 = vld [vmem:[%s7915_s20 + $0xad8] sm:$0xff] }
  0xa8   : > { %5431 = vmatprep.subr.mxu1 %v594_v63  ;;  %5397 = vmatpush3.msra.mxu0 %v546_v0  ;;  %v645_v61 = vld [vmem:[%s7915_s20 + $0xb60] sm:$0xff]  ;;  %v660_v63 = vld [vmem:[%s7915_s20 + $0xbd8] sm:$0xff] }
  0xa9   : > { %5432 = vmatpush3.msra.mxu1 %v578_v1  ;;  %5398 = vmatprep.subr.mxu0 %v561_v2  ;;  %v612_v0 = vld [vmem:[%s7915_s20 + $0xa58] sm:$0xff]  ;;  %v627_v2 = vld [vmem:[%s7915_s20 + $0xad0] sm:$0xff] }
  0xaa   : > { %5433 = vmatprep.subr.mxu1 %v593_v3  ;;  %5399 = vmatpush3.msra.mxu0 %v545_v4  ;;  %v644_v1 = vld [vmem:[%s7915_s20 + $0xb58] sm:$0xff]  ;;  %v659_v3 = vld [vmem:[%s7915_s20 + $0xbd0] sm:$0xff] }
  0xab   : > { %5434 = vmatpush3.msra.mxu1 %v577_v5  ;;  %5400 = vmatprep.subr.mxu0 %v560_v6  ;;  %v611_v4 = vld [vmem:[%s7915_s20 + $0xa50] sm:$0xff]  ;;  %v626_v6 = vld [vmem:[%s7915_s20 + $0xac8] sm:$0xff] }
  0xac   : > { %5435 = vmatprep.subr.mxu1 %v592_v7  ;;  %5401 = vmatpush3.msra.mxu0 %v544_v8  ;;  %v643_v5 = vld [vmem:[%s7915_s20 + $0xb50] sm:$0xff]  ;;  %v658_v7 = vld [vmem:[%s7915_s20 + $0xbc8] sm:$0xff] }
  0xad   : > { %5436 = vmatpush3.msra.mxu1 %v576_v9  ;;  %5402 = vmatprep.subr.mxu0 %v559_v10  ;;  %v610_v8 = vld [vmem:[%s7915_s20 + $0xa48] sm:$0xff]  ;;  %v625_v10 = vld [vmem:[%s7915_s20 + $0xac0] sm:$0xff] }
  0xae   : > { %5437 = vmatprep.subr.mxu1 %v591_v11  ;;  %5403 = vmatpush3.msra.mxu0 %v543_v12  ;;  %v642_v9 = vld [vmem:[%s7915_s20 + $0xb48] sm:$0xff]  ;;  %v657_v11 = vld [vmem:[%s7915_s20 + $0xbc0] sm:$0xff] }
  0xaf   : > { %5438 = vmatpush3.msra.mxu1 %v575_v13  ;;  %5404 = vmatprep.subr.mxu0 %v558_v14  ;;  %v609_v12 = vld [vmem:[%s7915_s20 + $0xa40] sm:$0xff]  ;;  %v624_v14 = vld [vmem:[%s7915_s20 + $0xab8] sm:$0xff] }
  0xb0   : > { %5439 = vmatprep.subr.mxu1 %v590_v15  ;;  %5405 = vmatpush3.msra.mxu0 %v542_v16  ;;  %v641_v13 = vld [vmem:[%s7915_s20 + $0xb40] sm:$0xff]  ;;  %v656_v15 = vld [vmem:[%s7915_s20 + $0xbb8] sm:$0xff] }
  0xb1   : > { %5440 = vmatpush3.msra.mxu1 %v574_v17  ;;  %5406 = vmatprep.subr.mxu0 %v557_v19  ;;  %v608_v16 = vld [vmem:[%s7915_s20 + $0xa38] sm:$0xff]  ;;  %v655_v19 = vld [vmem:[%s7915_s20 + $0xbb0] sm:$0xff] }
  0xb2   : > { %5441 = vmatprep.subr.mxu1 %v589_v20  ;;  %5407 = vmatpush3.msra.mxu0 %v541_v21  ;;  %v640_v17 = vld [vmem:[%s7915_s20 + $0xb38] sm:$0xff]  ;;  %v607_v20 = vld [vmem:[%s7915_s20 + $0xa30] sm:$0xff] }
  0xb3   : > { %5442 = vmatpush3.msra.mxu1 %v573_v22  ;;  %5408 = vmatprep.subr.mxu0 %v556_v23  ;;  %v639_v21 = vld [vmem:[%s7915_s20 + $0xb30] sm:$0xff]  ;;  %v622_v22 = vld [vmem:[%s7915_s20 + $0xaa8] sm:$0xff] }
  0xb4   : > { %5443 = vmatprep.subr.mxu1 %v588_v24  ;;  %5409 = vmatpush3.msra.mxu0 %v540_v26  ;;  %v654_v23 = vld [vmem:[%s7915_s20 + $0xba8] sm:$0xff] }
  0xb5   : > { %5444 = vmatpush3.msra.mxu1 %v572_v27  ;;  %5410 = vmatprep.subr.mxu0 %v555_v28  ;;  %v606_v24 = vld [vmem:[%s7915_s20 + $0xa28] sm:$0xff]  ;;  %v621_v27 = vld [vmem:[%s7915_s20 + $0xaa0] sm:$0xff] }
  0xb6   : > { %5445 = vmatprep.subr.mxu1 %v587_v29  ;;  %5411 = vmatpush3.msra.mxu0 %v539_v31  ;;  %v258_v26 = vld [vmem:[%s7965_s24 + $0x28] sm:$0xff]  ;;  %v653_v28 = vld [vmem:[%s7915_s20 + $0xba0] sm:$0xff]  ;;  %v620_v31 = vld [vmem:[%s7915_s20 + $0xa98] sm:$0xff] }
  0xb7   : > { %5446 = vmatpush3.msra.mxu1 %v571_v32  ;;  %5412 = vmatprep.subr.mxu0 %v554_v33  ;;  %v605_v29 = vld [vmem:[%s7915_s20 + $0xa20] sm:$0xff]  ;;  %v652_v32 = vld [vmem:[%s7915_s20 + $0xb98] sm:$0xff]  ;;  %v773_v33 = vcombine.high %v258_v26, %v258_v26 }
  0xb8   : > { %5447 = vmatprep.subr.mxu1 %v586_v34  ;;  %5413 = vmatpush3.msra.mxu0 %v538_v36  ;;  %v604_v34 = vld [vmem:[%s7915_s20 + $0xa18] sm:$0xff]  ;;  %v619_v36 = vld [vmem:[%s7915_s20 + $0xa90] sm:$0xff] }
  0xb9   : > { %5448 = vmatpush3.msra.mxu1 %v570_v37  ;;  %5414 = vmatprep.subr.mxu0 %v553_v38  ;;  %v651_v37 = vld [vmem:[%s7915_s20 + $0xb90] sm:$0xff]  ;;  %v780_v38 = vrot.slane %v258_v26, %v7972_v51 }
  0xba   : > { %5449 = vmatprep.subr.mxu1 %v585_v39  ;;  %5415 = vmatpush3.msra.mxu0 %v537_v41  ;;  %v603_v39 = vld [vmem:[%s7915_s20 + $0xa10] sm:$0xff]  ;;  %v618_v41 = vld [vmem:[%s7915_s20 + $0xa88] sm:$0xff] }
  0xbb   : > { %1446 = vmatprep.mubr.f32.mxu0 %v771_v40  ;;  %5450 = vmatpush3.msra.mxu1 %v569_v43  ;;  %v635_v40 = vld [vmem:[%s7915_s20 + $0xb10] sm:$0xff]  ;;  %v650_v43 = vld [vmem:[%s7915_s20 + $0xb88] sm:$0xff] }
  0xbc   : > { %1447 = vmatmul.mubr.f32.vlgmr.msra.gmra.mxu0 %v763_v30  ;;  %1516 = vmatprep.mubr.f32.mxu1 %v772_v44  ;;  %v637_v30 = vld [vmem:[%s7915_s20 + $0xb20] sm:$0xff]  ;;  %v787_v44 = vrot.slane %v773_v33, %v7972_v51  ;;  %v7105_v33 = vld [vmem:[%s7915_s20 + $0x98] sm:$0xff] }
  0xbd   : > { %5454 = vmatprep.subr.mxu0 %v632_v45  ;;  %5489 = vmatprep.subr.mxu1 %v664_v46  ;;  %v602_v45 = vld [vmem:[%s7915_s20 + $0xa08] sm:$0xff] }
  0xbe   : > { %1517 = vmatmul.mubr.f32.vlgmr.msra.gmra.mxu1 %v770_v35  ;;  %5455 = vmatpush3.msra.mxu0 %v616_v47  ;;  %v636_v35 = vld [vmem:[%s7915_s20 + $0xb18] sm:$0xff]  ;;  %v634_v46 = vld [vmem:[%s7915_s20 + $0xb08] sm:$0xff]  ;;  %v617_v47 = vld [vmem:[%s7915_s20 + $0xa80] sm:$0xff] }
  0xbf   : > { %5490 = vmatpush3.msra.mxu1 %v648_v48  ;;  %5456 = vmatprep.subr.mxu0 %v631_v49  ;;  %v649_v48 = vld [vmem:[%s7915_s20 + $0xb80] sm:$0xff]  ;;  %v788_v49 = vcombine.high %v780_v38, %v780_v38 }
  0xc0   : > { %5491 = vmatprep.subr.mxu1 %v663_v50  ;;  %5457 = vmatpush3.msra.mxu0 %v615_v52  ;;  %v601_v50 = vld [vmem:[%s7915_s20 + $0xa00] sm:$0xff] }
  0xc1   : > { %5492 = vmatpush3.msra.mxu1 %v647_v53  ;;  %5458 = vmatprep.subr.mxu0 %v630_v54  ;;  %v633_v52 = vld [vmem:[%s7915_s20 + $0xb00] sm:$0xff]  ;;  %v789_v53 = vcombine.high %v787_v44, %v787_v44  ;;  %v8331_v54 = vld [vmem:[%s7915_s20 + $0xc78] sm:$0xff] }
  0xc2   : > { %5493 = vmatprep.subr.mxu1 %v662_v55  ;;  %5459 = vmatpush3.msra.mxu0 %v614_v56  ;;  %v11110_v55 = vmov 0.0   ;;  %v7081_v56 = vld [vmem:[%s7915_s20 + $0xf8] sm:$0xff] }
  0xc3   : > { %5494 = vmatpush3.msra.mxu1 %v646_v57  ;;  %5460 = vmatprep.subr.mxu0 %v629_v58  ;;  %v8336_v57 = vld [vmem:[%s7915_s20 + $0xc70] sm:$0xff]  ;;  %v7082_v58 = vld [vmem:[%s7915_s20 + $0x78] sm:$0xff] }
  0xc4   : > { %5495 = vmatprep.subr.mxu1 %v661_v59  ;;  %5461 = vmatpush3.msra.mxu0 %v613_v60  ;;  %v7083_v59 = vld [vmem:[%s7915_s20 + $0xf0] sm:$0xff]  ;;  %v8343_v60 = vld [vmem:[%s7915_s20 + $0xc68] sm:$0xff] }
  0xc5   : > { %5496 = vmatpush3.msra.mxu1 %v645_v61  ;;  %5462 = vmatprep.subr.mxu0 %v628_v62  ;;  %v7084_v61 = vld [vmem:[%s7915_s20 + $0x70] sm:$0xff]  ;;  %v7085_v62 = vld [vmem:[%s7915_s20 + $0xe8] sm:$0xff] }
  0xc6   : > { %5497 = vmatprep.subr.mxu1 %v660_v63  ;;  %5463 = vmatpush3.msra.mxu0 %v612_v0  ;;  %v8350_v63 = vld [vmem:[%s7915_s20 + $0xc60] sm:$0xff]  ;;  %v7086_v0 = vld [vmem:[%s7915_s20 + $0x68] sm:$0xff] }
  0xc7   : > { %5498 = vmatpush3.msra.mxu1 %v644_v1  ;;  %5464 = vmatprep.subr.mxu0 %v627_v2  ;;  %v7087_v1 = vld [vmem:[%s7915_s20 + $0xe0] sm:$0xff]  ;;  %v8357_v2 = vld [vmem:[%s7915_s20 + $0xc58] sm:$0xff] }
  0xc8   : > { %5499 = vmatprep.subr.mxu1 %v659_v3  ;;  %5465 = vmatpush3.msra.mxu0 %v611_v4  ;;  %v7088_v3 = vld [vmem:[%s7915_s20 + $0x60] sm:$0xff]  ;;  %v7089_v4 = vld [vmem:[%s7915_s20 + $0xd8] sm:$0xff] }
  0xc9   : > { %5500 = vmatpush3.msra.mxu1 %v643_v5  ;;  %5466 = vmatprep.subr.mxu0 %v626_v6  ;;  %v8364_v5 = vld [vmem:[%s7915_s20 + $0xc50] sm:$0xff]  ;;  %v7090_v6 = vld [vmem:[%s7915_s20 + $0x58] sm:$0xff] }
  0xca   : > { %5501 = vmatprep.subr.mxu1 %v658_v7  ;;  %5467 = vmatpush3.msra.mxu0 %v610_v8  ;;  %v7091_v7 = vld [vmem:[%s7915_s20 + $0xd0] sm:$0xff]  ;;  %v8371_v8 = vld [vmem:[%s7915_s20 + $0xc48] sm:$0xff] }
  0xcb   : > { %5502 = vmatpush3.msra.mxu1 %v642_v9  ;;  %5468 = vmatprep.subr.mxu0 %v625_v10  ;;  %v7092_v9 = vld [vmem:[%s7915_s20 + $0x50] sm:$0xff]  ;;  %v7093_v10 = vld [vmem:[%s7915_s20 + $0xc8] sm:$0xff] }
  0xcc   : > { %5503 = vmatprep.subr.mxu1 %v657_v11  ;;  %5469 = vmatpush3.msra.mxu0 %v609_v12  ;;  %v8378_v11 = vld [vmem:[%s7915_s20 + $0xc40] sm:$0xff]  ;;  %v7094_v12 = vld [vmem:[%s7915_s20 + $0x48] sm:$0xff] }
  0xcd   : > { %5504 = vmatpush3.msra.mxu1 %v641_v13  ;;  %5470 = vmatprep.subr.mxu0 %v624_v14  ;;  %v7095_v13 = vld [vmem:[%s7915_s20 + $0xc0] sm:$0xff]  ;;  %v8385_v14 = vld [vmem:[%s7915_s20 + $0xc38] sm:$0xff] }
  0xce   : > { %5505 = vmatprep.subr.mxu1 %v656_v15  ;;  %5471 = vmatpush3.msra.mxu0 %v608_v16  ;;  %v7096_v15 = vld [vmem:[%s7915_s20 + $0x40] sm:$0xff]  ;;  %v7097_v16 = vld [vmem:[%s7915_s20 + $0xb8] sm:$0xff] }
  0xcf   : > { %5506 = vmatpush3.msra.mxu1 %v640_v17  ;;  %5472 = vmatprep.subr.mxu0 %v623_v18  ;;  %v8392_v17 = vld [vmem:[%s7915_s20 + $0xc30] sm:$0xff]  ;;  %v7098_v18 = vld [vmem:[%s7915_s20 + $0x38] sm:$0xff] }
  0xd0   : > { %5507 = vmatprep.subr.mxu1 %v655_v19  ;;  %5473 = vmatpush3.msra.mxu0 %v607_v20  ;;  %v7099_v19 = vld [vmem:[%s7915_s20 + $0xb0] sm:$0xff]  ;;  %v8399_v20 = vld [vmem:[%s7915_s20 + $0xc28] sm:$0xff] }
  0xd1   : > { %5508 = vmatpush3.msra.mxu1 %v639_v21  ;;  %5474 = vmatprep.subr.mxu0 %v622_v22  ;;  %v7100_v21 = vld [vmem:[%s7915_s20 + $0x30] sm:$0xff]  ;;  %v7101_v22 = vld [vmem:[%s7915_s20 + $0xa8] sm:$0xff] }
  0xd2   : > { %5509 = vmatprep.subr.mxu1 %v654_v23  ;;  %5475 = vmatpush3.msra.mxu0 %v606_v24  ;;  %v8406_v23 = vld [vmem:[%s7915_s20 + $0xc20] sm:$0xff]  ;;  %v7102_v24 = vld [vmem:[%s7915_s20 + $0x28] sm:$0xff] }
  0xd3   : > { %5510 = vmatpush3.msra.mxu1 %v638_v25  ;;  %5476 = vmatprep.subr.mxu0 %v621_v27  ;;  %v7103_v27 = vld [vmem:[%s7915_s20 + $0xa0] sm:$0xff] }
  0xd4   : > { %5511 = vmatprep.subr.mxu1 %v653_v28  ;;  %5477 = vmatpush3.msra.mxu0 %v605_v29  ;;  %v8413_v28 = vld [vmem:[%s7915_s20 + $0xc18] sm:$0xff] }
  0xd5   : > { %5512 = vmatpush3.msra.mxu1 %v637_v30  ;;  %5478 = vmatprep.subr.mxu0 %v620_v31  ;;  %v8416_v29 = vld [vmem:[%s7965_s24 + $0x32] sm:$0xff]  ;;  %v7104_v30 = vld [vmem:[%s7915_s20 + $0x20] sm:$0xff] }
  0xd6   : > { %5513 = vmatprep.subr.mxu1 %v652_v32  ;;  %5479 = vmatpush3.msra.mxu0 %v604_v34  ;;  %v8423_v34 = vld [vmem:[%s7915_s20 + $0xc10] sm:$0xff] }
  0xd7   : > { %5514 = vmatpush3.msra.mxu1 %v636_v35  ;;  %5480 = vmatprep.subr.mxu0 %v619_v36 }
  0xd8   : > { %5515 = vmatprep.subr.mxu1 %v651_v37  ;;  %5481 = vmatpush3.msra.mxu0 %v603_v39  ;;  %v7106_v37 = vld [vmem:[%s7915_s20 + $0x18] sm:$0xff]  ;;  %v7107_v39 = vld [vmem:[%s7915_s20 + $0x90] sm:$0xff] }
  0xd9   : > { %5516 = vmatpush3.msra.mxu1 %v635_v40  ;;  %5482 = vmatprep.subr.mxu0 %v618_v41  ;;  %v8432_v40 = vld [vmem:[%s7915_s20 + $0xc08] sm:$0xff] }
  0xda   : > { %5517 = vmatprep.subr.mxu1 %v650_v43  ;;  %5483 = vmatpush3.msra.mxu0 %v602_v45  ;;  %v7108_v43 = vld [vmem:[%s7915_s20 + $0x10] sm:$0xff]  ;;  %v8441_v45 = vld [vmem:[%s7915_s20 + $0xc00] sm:$0xff] }
  0xdb   : > { %5518 = vmatpush3.msra.mxu1 %v634_v46  ;;  %5484 = vmatprep.subr.mxu0 %v617_v47  ;;  %v7110_v46 = vld [vmem:[%s7915_s20 + $0x8] sm:$0xff]  ;;  %v5097_v47 = vld.sshfl [vmem:[%s7965_s24 + $0x30] sm:$0x3 pattern:$0x76325410] }
  0xdc   : > { %5519 = vmatprep.subr.mxu1 %v649_v48  ;;  %5485 = vmatpush3.msra.mxu0 %v601_v50  ;;  %v7112_v50 = vld [vmem:[%s7915_s20] sm:$0xff] }
  0xdd   : > { %1586 = vmatprep.mubr.f32.mxu0 %v788_v49  ;;  %5520 = vmatpush3.msra.mxu1 %v633_v52  ;;  %v7111_v49 = vld [vmem:[%s7915_s20 + $0x80] sm:$0xff]  ;;  %v8453_v52 = vld [vmem:[%s7915_s20 + $0x1f8] sm:$0xff] }
  0xde   : > { %1587 = vmatmul.mubr.f32.vlgmr.msra.gmra.mxu0 %v780_v38  ;;  %1656 = vmatprep.mubr.f32.mxu1 %v789_v53  ;;  %v1746_v38 = vrot.slane %v8416_v29, %v7972_v51  ;;  %v7114_v53 = vld [vmem:[%s7915_s20 + $0x2f8] sm:$0xff] }
  0xdf   : > { %6869 = vmatprep.subr.mxu0 %v11110_v55  ;;  %5541 = vmatprep.subr.mxu1 %v7081_v56  ;;  %v8458_v56 = vld [vmem:[%s7915_s20 + $0x178] sm:$0xff] }
  0xe0   : > { %1657 = vmatmul.mubr.f32.vlgmr.msra.gmra.mxu1 %v787_v44  ;;  %6870 = vmatpush3.msra.mxu0 %v8331_v54  ;;  %v7109_v44 = vld [vmem:[%s7915_s20 + $0x88] sm:$0xff]  ;;  %v1754_v48 = vcombine.high %v1746_v38, %v1746_v38 }
  0xe1   : > { %5542 = vmatpush3.msra.mxu1 %v7082_v58  ;;  %6871 = vmatprep.subr.mxu0 %v11110_v55  ;;  %v7116_v58 = vld [vmem:[%s7915_s20 + $0x278] sm:$0xff] }
  0xe2   : > { %5543 = vmatprep.subr.mxu1 %v7083_v59  ;;  %6872 = vmatpush3.msra.mxu0 %v8336_v57  ;;  %v8463_v59 = vld [vmem:[%s7915_s20 + $0x1f0] sm:$0xff] }
  0xe3   : > { %5544 = vmatpush3.msra.mxu1 %v7084_v61  ;;  %6873 = vmatprep.subr.mxu0 %v11110_v55  ;;  %v7118_v61 = vld [vmem:[%s7915_s20 + $0x2f0] sm:$0xff] }
  0xe4   : > { %5545 = vmatprep.subr.mxu1 %v7085_v62  ;;  %6874 = vmatpush3.msra.mxu0 %v8343_v60  ;;  %v8468_v62 = vld [vmem:[%s7915_s20 + $0x170] sm:$0xff] }
  0xe5   : > { %5546 = vmatpush3.msra.mxu1 %v7086_v0  ;;  %6875 = vmatprep.subr.mxu0 %v11110_v55  ;;  %v7120_v0 = vld [vmem:[%s7915_s20 + $0x270] sm:$0xff] }
  0xe6   : > { %5547 = vmatprep.subr.mxu1 %v7087_v1  ;;  %6876 = vmatpush3.msra.mxu0 %v8350_v63  ;;  %v8473_v1 = vld [vmem:[%s7915_s20 + $0x1e8] sm:$0xff] }
  0xe7   : > { %5548 = vmatpush3.msra.mxu1 %v7088_v3  ;;  %6877 = vmatprep.subr.mxu0 %v11110_v55  ;;  %v7122_v3 = vld [vmem:[%s7915_s20 + $0x2e8] sm:$0xff] }
  0xe8   : > { %5549 = vmatprep.subr.mxu1 %v7089_v4  ;;  %6878 = vmatpush3.msra.mxu0 %v8357_v2  ;;  %v8478_v4 = vld [vmem:[%s7915_s20 + $0x168] sm:$0xff] }
  0xe9   : > { %5550 = vmatpush3.msra.mxu1 %v7090_v6  ;;  %6879 = vmatprep.subr.mxu0 %v11110_v55  ;;  %v7124_v6 = vld [vmem:[%s7915_s20 + $0x268] sm:$0xff] }
  0xea   : > { %5551 = vmatprep.subr.mxu1 %v7091_v7  ;;  %6880 = vmatpush3.msra.mxu0 %v8364_v5  ;;  %v8483_v7 = vld [vmem:[%s7915_s20 + $0x1e0] sm:$0xff] }
  0xeb   : > { %5552 = vmatpush3.msra.mxu1 %v7092_v9  ;;  %6881 = vmatprep.subr.mxu0 %v11110_v55  ;;  %v7126_v9 = vld [vmem:[%s7915_s20 + $0x2e0] sm:$0xff] }
  0xec   : > { %5553 = vmatprep.subr.mxu1 %v7093_v10  ;;  %6882 = vmatpush3.msra.mxu0 %v8371_v8  ;;  %v8488_v10 = vld [vmem:[%s7915_s20 + $0x160] sm:$0xff] }
  0xed   : > { %5554 = vmatpush3.msra.mxu1 %v7094_v12  ;;  %6883 = vmatprep.subr.mxu0 %v11110_v55  ;;  %v7128_v12 = vld [vmem:[%s7915_s20 + $0x260] sm:$0xff] }
  0xee   : > { %5555 = vmatprep.subr.mxu1 %v7095_v13  ;;  %6884 = vmatpush3.msra.mxu0 %v8378_v11  ;;  %v8493_v13 = vld [vmem:[%s7915_s20 + $0x1d8] sm:$0xff] }
  0xef   : > { %5556 = vmatpush3.msra.mxu1 %v7096_v15  ;;  %6885 = vmatprep.subr.mxu0 %v11110_v55  ;;  %v7130_v15 = vld [vmem:[%s7915_s20 + $0x2d8] sm:$0xff] }
  0xf0   : > { %5557 = vmatprep.subr.mxu1 %v7097_v16  ;;  %6886 = vmatpush3.msra.mxu0 %v8385_v14  ;;  %v8498_v16 = vld [vmem:[%s7915_s20 + $0x158] sm:$0xff] }
  0xf1   : > { %5558 = vmatpush3.msra.mxu1 %v7098_v18  ;;  %6887 = vmatprep.subr.mxu0 %v11110_v55  ;;  %v7132_v18 = vld [vmem:[%s7915_s20 + $0x258] sm:$0xff] }
  0xf2   : > { %5559 = vmatprep.subr.mxu1 %v7099_v19  ;;  %6888 = vmatpush3.msra.mxu0 %v8392_v17  ;;  %v8503_v19 = vld [vmem:[%s7915_s20 + $0x1d0] sm:$0xff] }
  0xf3   : > { %5560 = vmatpush3.msra.mxu1 %v7100_v21  ;;  %6889 = vmatprep.subr.mxu0 %v11110_v55  ;;  %v7134_v21 = vld [vmem:[%s7915_s20 + $0x2d0] sm:$0xff] }
  0xf4   : > { %5561 = vmatprep.subr.mxu1 %v7101_v22  ;;  %6890 = vmatpush3.msra.mxu0 %v8399_v20  ;;  %v5136_v25 = vpop.f32.mrf.mxu0  ;;  %v8508_v22 = vld [vmem:[%s7915_s20 + $0x150] sm:$0xff] }
  0xf5   : > { %5562 = vmatpush3.msra.mxu1 %v7102_v24  ;;  %v5171_v26 = vpop.f32.mrf.mxu1  ;;  %6891 = vmatprep.subr.mxu0 %v11110_v55  ;;  %v7136_v24 = vld [vmem:[%s7915_s20 + $0x250] sm:$0xff] }
  0xf6   : > { %5563 = vmatprep.subr.mxu1 %v7103_v27  ;;  %6892 = vmatpush3.msra.mxu0 %v8406_v23  ;;  %v5137_v31 = vpop.f32.mrf.mxu0  ;;  %v8518_v27 = vld [vmem:[%s7915_s20 + $0x148] sm:$0xff] }
  0xf7   : > { %5564 = vmatpush3.msra.mxu1 %v7104_v30  ;;  %v5172_v32 = vpop.f32.mrf.mxu1  ;;  %6893 = vmatprep.subr.mxu0 %v11110_v55  ;;  %v5138_v35 = vadd.f32 %v5137_v31, %v5136_v25  ;;  %v8513_v25 = vld [vmem:[%s7915_s20 + $0x1c8] sm:$0xff]  ;;  %v8523_v31 = vld [vmem:[%s7915_s20 + $0x1c0] sm:$0xff] }
  0xf8   : > { %5565 = vmatprep.subr.mxu1 %v7105_v33  ;;  %v5173_v36 = vadd.f32 %v5172_v32, %v5171_v26  ;;  %6894 = vmatpush3.msra.mxu0 %v8413_v28  ;;  %v7138_v26 = vld [vmem:[%s7915_s20 + $0x2c8] sm:$0xff]  ;;  %v7142_v32 = vld [vmem:[%s7915_s20 + $0x2c0] sm:$0xff] }
  0xf9   : > { %5566 = vmatpush3.msra.mxu1 %v7106_v37  ;;  %6895 = vmatprep.subr.mxu0 %v11110_v55  ;;  %v7140_v30 = vld [vmem:[%s7915_s20 + $0x248] sm:$0xff]  ;;  %v8528_v33 = vld [vmem:[%s7915_s20 + $0x140] sm:$0xff]  ;;  %v7146_v37 = vld [vmem:[%s7915_s20 + $0x2b8] sm:$0xff] }
  0xfa   : > { %5567 = vmatprep.subr.mxu1 %v7107_v39  ;;  %v8434_v41 = vadd.f32 %v5173_v36, %v5138_v35  ;;  %6896 = vmatpush3.msra.mxu0 %v8423_v34  ;;  %v7144_v35 = vld [vmem:[%s7915_s20 + $0x240] sm:$0xff]  ;;  %v8533_v36 = vld [vmem:[%s7915_s20 + $0x1b8] sm:$0xff] }
  0xfb   : > { %5568 = vmatpush3.msra.mxu1 %v7108_v43  ;;  %6897 = vmatprep.subr.mxu0 %v11110_v55  ;;  %v7148_v39 = vld [vmem:[%s7915_s20 + $0x238] sm:$0xff]  ;;  %v8543_v43 = vld [vmem:[%s7915_s20 + $0x1b0] sm:$0xff] }
  0xfc   : > { %5569 = vmatprep.subr.mxu1 %v7109_v44  ;;  %6898 = vmatpush3.msra.mxu0 %v8432_v40  ;;  %v7150_v44 = vld [vmem:[%s7915_s20 + $0x2b0] sm:$0xff] }
  0xfd   : > { %5570 = vmatpush3.msra.mxu1 %v7110_v46  ;;  %6899 = vmatprep.subr.mxu0 %v11110_v55  ;;  %v8548_v46 = vld [vmem:[%s7915_s20 + $0x130] sm:$0xff] }
  0xfe   : > { %5571 = vmatprep.subr.mxu1 %v7111_v49  ;;  %6900 = vmatpush3.msra.mxu0 %v8441_v45  ;;  %v8555_v49 = vld [vmem:[%s7915_s20 + $0x1a8] sm:$0xff] }
  0xff   : > { %6901 = vmatprep.mubr.msk.f32.mxu0 %vm7875_vm0, %v11110_v55  ;;  %5572 = vmatpush3.msra.mxu1 %v7112_v50  ;;  %v7154_v50 = vld [vmem:[%s7915_s20 + $0x2a8] sm:$0xff]  ;;  %v8664_v55 = vld [vmem:[%s7915_s20 + $0x3d8] sm:$0xff] }
 0x100   : > { %6902 = vmatmul.mubr.f32.vlgmr.msra.gmra.mxu0 %v5097_v47  ;;  %1937 = vmatprep.mubr.f32.mxu1 %v1754_v48  ;;  %v7152_v47 = vld [vmem:[%s7915_s20 + $0x230] sm:$0xff]  ;;  %v1739_v48 = vcombine.high %v8416_v29, %v8416_v29  ;;  %v7158_v29 = vld [vmem:[%s7915_s20 + $0x2a0] sm:$0xff]  ;;  %11403 = vst [vmem:[#allocation10_spill] sm:$0xff] %v8664_v55 }
 0x101   : > { %5576 = vmatprep.subr.mxu0 %v8453_v52  ;;  %5611 = vmatprep.subr.mxu1 %v7114_v53 }
 0x102   : > { %1938 = vmatmul.mubr.f32.vlgmr.msra.gmra.mxu1 %v1746_v38  ;;  %5577 = vmatpush3.msra.mxu0 %v8458_v56  ;;  %v8538_v38 = vld [vmem:[%s7915_s20 + $0x138] sm:$0xff] }
 0x103   : > { %5612 = vmatpush3.msra.mxu1 %v7116_v58  ;;  %5578 = vmatprep.subr.mxu0 %v8463_v59  ;;  %v8560_v58 = vld [vmem:[%s7915_s20 + $0x128] sm:$0xff] }
 0x104   : > { %5613 = vmatprep.subr.mxu1 %v7118_v61  ;;  %5579 = vmatpush3.msra.mxu0 %v8468_v62  ;;  %v7156_v61 = vld [vmem:[%s7915_s20 + $0x228] sm:$0xff] }
 0x105   : > { %5614 = vmatpush3.msra.mxu1 %v7120_v0  ;;  %5580 = vmatprep.subr.mxu0 %v8473_v1  ;;  %v8565_v0 = vld [vmem:[%s7915_s20 + $0x1a0] sm:$0xff] }
 0x106   : > { %5615 = vmatprep.subr.mxu1 %v7122_v3  ;;  %5581 = vmatpush3.msra.mxu0 %v8478_v4  ;;  %v8570_v3 = vld [vmem:[%s7965_s24 + $0x3a] sm:$0xff] }
 0x107   : > { %5616 = vmatpush3.msra.mxu1 %v7124_v6  ;;  %5582 = vmatprep.subr.mxu0 %v8483_v7 }
 0x108   : > { %5617 = vmatprep.subr.mxu1 %v7126_v9  ;;  %5583 = vmatpush3.msra.mxu0 %v8488_v10 }
 0x109   : > { %5618 = vmatpush3.msra.mxu1 %v7128_v12  ;;  %5584 = vmatprep.subr.mxu0 %v8493_v13  ;;  %v8573_v12 = vld [vmem:[%s7915_s20 + $0x120] sm:$0xff] }
 0x10a   : > { %5619 = vmatprep.subr.mxu1 %v7130_v15  ;;  %5585 = vmatpush3.msra.mxu0 %v8498_v16  ;;  %v7160_v15 = vld [vmem:[%s7915_s20 + $0x220] sm:$0xff] }
 0x10b   : > { %5620 = vmatpush3.msra.mxu1 %v7132_v18  ;;  %5586 = vmatprep.subr.mxu0 %v8503_v19  ;;  %v1753_v18 = vrot.slane %v1739_v48, %v7972_v51  ;;  %v7166_v48 = vld [vmem:[%s7915_s20 + $0x290] sm:$0xff] }
 0x10c   : > { %5621 = vmatprep.subr.mxu1 %v7134_v21  ;;  %5587 = vmatpush3.msra.mxu0 %v8508_v22 }
 0x10d   : > { %5622 = vmatpush3.msra.mxu1 %v7136_v24  ;;  %5588 = vmatprep.subr.mxu0 %v8513_v25  ;;  %v8579_v24 = vld [vmem:[%s7915_s20 + $0x198] sm:$0xff] }
 0x10e   : > { %5623 = vmatprep.subr.mxu1 %v7138_v26  ;;  %5589 = vmatpush3.msra.mxu0 %v8518_v27  ;;  %v7162_v26 = vld [vmem:[%s7915_s20 + $0x298] sm:$0xff] }
 0x10f   : > { %5624 = vmatpush3.msra.mxu1 %v7140_v30  ;;  %5590 = vmatprep.subr.mxu0 %v8523_v31 }
 0x110   : > { %5625 = vmatprep.subr.mxu1 %v7142_v32  ;;  %5591 = vmatpush3.msra.mxu0 %v8528_v33  ;;  %v8584_v32 = vld [vmem:[%s7915_s20 + $0x118] sm:$0xff] }
 0x111   : > { %5626 = vmatpush3.msra.mxu1 %v7144_v35  ;;  %5592 = vmatprep.subr.mxu0 %v8533_v36  ;;  %v7164_v35 = vld [vmem:[%s7915_s20 + $0x218] sm:$0xff] }
 0x112   : > { %5627 = vmatprep.subr.mxu1 %v7146_v37  ;;  %5593 = vmatpush3.msra.mxu0 %v8538_v38  ;;  %v1763_v37 = vrot.slane %v8570_v3, %v7972_v51 }
 0x113   : > { %5628 = vmatpush3.msra.mxu1 %v7148_v39  ;;  %5594 = vmatprep.subr.mxu0 %v8543_v43 }
 0x114   : > { %5629 = vmatprep.subr.mxu1 %v7150_v44  ;;  %5595 = vmatpush3.msra.mxu0 %v8548_v46 }
 0x115   : > { %5630 = vmatpush3.msra.mxu1 %v7152_v47  ;;  %5596 = vmatprep.subr.mxu0 %v8555_v49  ;;  %v8592_v47 = vld [vmem:[%s7915_s20 + $0x190] sm:$0xff] }
 0x116   : > { %5631 = vmatprep.subr.mxu1 %v7154_v50  ;;  %v5206_v53 = vpop.f32.mrf.mxu0  ;;  %5597 = vmatpush3.msra.mxu0 %v8560_v58  ;;  %v8597_v50 = vld [vmem:[%s7915_s20 + $0x110] sm:$0xff] }
 0x117   : > { %5632 = vmatpush3.msra.mxu1 %v7156_v61  ;;  %5598 = vmatprep.subr.mxu0 %v8565_v0  ;;  %v1755_v61 = vcombine.high %v1753_v18, %v1753_v18 }
 0x118   : > { %5633 = vmatprep.subr.mxu1 %v7158_v29  ;;  %v5207_v6 = vpop.f32.mrf.mxu0  ;;  %v5241_v9 = vpop.f32.mrf.mxu1  ;;  %5599 = vmatpush3.msra.mxu0 %v8573_v12  ;;  %v8604_v29 = vld [vmem:[%s7915_s20 + $0x188] sm:$0xff] }
 0x119   : > { %5634 = vmatpush3.msra.mxu1 %v7160_v15  ;;  %v5208_v21 = vadd.f32 %v5207_v6, %v5206_v53  ;;  %5600 = vmatprep.subr.mxu0 %v8579_v24  ;;  %v7168_v53 = vld [vmem:[%s7915_s20 + $0x210] sm:$0xff]  ;;  %v7170_v6 = vld [vmem:[%s7915_s20 + $0x288] sm:$0xff] }
 0x11a   : > { %5635 = vmatprep.subr.mxu1 %v7162_v26  ;;  %v5242_v30 = vpop.f32.mrf.mxu1  ;;  %5601 = vmatpush3.msra.mxu0 %v8584_v32  ;;  %v7172_v15 = vld [vmem:[%s7915_s20 + $0x208] sm:$0xff]  ;;  %v8614_v26 = vld [vmem:[%s7915_s20 + $0x180] sm:$0xff] }
 0x11b   : > { %5636 = vmatpush3.msra.mxu1 %v7164_v35  ;;  %v1029_v39 = vadd.f32 %v5208_v21, %v8434_v41  ;;  %v5243_v44 = vadd.f32 %v5242_v30, %v5241_v9  ;;  %5602 = vmatprep.subr.mxu0 %v8592_v47  ;;  %v8609_v9 = vld [vmem:[%s7915_s20 + $0x108] sm:$0xff]  ;;  %v1771_v21 = vcombine.high %v1763_v37, %v1763_v37  ;;  %v7174_v30 = vld [vmem:[%s7915_s20 + $0x280] sm:$0xff] }
 0x11c   : > { %5637 = vmatprep.subr.mxu1 %v7166_v48  ;;  %5603 = vmatpush3.msra.mxu0 %v8597_v50  ;;  %v8619_v35 = vld [vmem:[%s7915_s20 + $0x100] sm:$0xff]  ;;  %v7178_v48 = vld [vmem:[%s7915_s20 + $0x4f8] sm:$0xff] }
 0x11d   : > { %5638 = vmatpush3.msra.mxu1 %v7168_v53  ;;  %v8601_v41 = vadd.f32 %v5243_v44, %v1029_v39  ;;  %5604 = vmatprep.subr.mxu0 %v8604_v29  ;;  %v7176_v39 = vld [vmem:[%s7915_s20 + $0x200] sm:$0xff]  ;;  %v8624_v44 = vld [vmem:[%s7915_s20 + $0x3f8] sm:$0xff] }
 0x11e   : > { %5639 = vmatprep.subr.mxu1 %v7170_v6  ;;  %5605 = vmatpush3.msra.mxu0 %v8609_v9  ;;  %v8629_v53 = vld [vmem:[%s7915_s20 + $0x378] sm:$0xff]  ;;  %v7182_v6 = vld [vmem:[%s7915_s20 + $0x4f0] sm:$0xff] }
 0x11f   : > { %5640 = vmatpush3.msra.mxu1 %v7172_v15  ;;  %5606 = vmatprep.subr.mxu0 %v8614_v26  ;;  %11396 = vst [vmem:[#allocation3_spill] sm:$0xff] %v8629_v53  ;;  %v8639_v15 = vld [vmem:[%s7915_s20 + $0x370] sm:$0xff] }
 0x120   : > { %5641 = vmatprep.subr.mxu1 %v7174_v30  ;;  %5607 = vmatpush3.msra.mxu0 %v8619_v35  ;;  %11398 = vst [vmem:[#allocation5_spill] sm:$0xff] %v8639_v15  ;;  %v7186_v30 = vld [vmem:[%s7915_s20 + $0x4e8] sm:$0xff] }
 0x121   : > { %2007 = vmatprep.mubr.f32.mxu0 %v1755_v61  ;;  %5642 = vmatpush3.msra.mxu1 %v7176_v39  ;;  %v7180_v61 = vld [vmem:[%s7915_s20 + $0x478] sm:$0xff]  ;;  %v8649_v39 = vld [vmem:[%s7915_s20 + $0x368] sm:$0xff] }
 0x122   : > { %2008 = vmatmul.mubr.f32.vlgmr.msra.gmra.mxu0 %v1753_v18  ;;  %2077 = vmatprep.mubr.f32.mxu1 %v1771_v21  ;;  %v8634_v18 = vld [vmem:[%s7915_s20 + $0x3f0] sm:$0xff]  ;;  %v8644_v21 = vld [vmem:[%s7915_s20 + $0x3e8] sm:$0xff]  ;;  %11400 = vst [vmem:[#allocation7_spill] sm:$0xff] %v8649_v39 }
 0x123   : > { %5646 = vmatprep.subr.mxu0 %v8624_v44  ;;  %5681 = vmatprep.subr.mxu1 %v7178_v48  ;;  %11397 = vst [vmem:[#allocation4_spill] sm:$0xff] %v8634_v18  ;;  %11399 = vst [vmem:[#allocation6_spill] sm:$0xff] %v8644_v21  ;;  %v7188_v48 = vld [vmem:[%s7915_s20 + $0x468] sm:$0xff] }
 0x124   : > { %2078 = vmatmul.mubr.f32.vlgmr.msra.gmra.mxu1 %v1763_v37  ;;  %5647 = vmatpush3.msra.mxu0 %v8629_v53  ;;  %v7184_v37 = vld [vmem:[%s7915_s20 + $0x470] sm:$0xff]  ;;  %v8755_v53 = vld [vmem:[%s7915_s20 + $0x318] sm:$0xff] }
 0x125   : > { %5682 = vmatpush3.msra.mxu1 %v7180_v61  ;;  %5648 = vmatprep.subr.mxu0 %v8634_v18  ;;  %v8654_v61 = vld [vmem:[%s7915_s20 + $0x3e0] sm:$0xff]  ;;  %11420 = vst [vmem:[#allocation27_spill] sm:$0xff] %v8755_v53 }
 0x126   : > { %5683 = vmatprep.subr.mxu1 %v7182_v6  ;;  %5649 = vmatpush3.msra.mxu0 %v8639_v15  ;;  %11401 = vst [vmem:[#allocation8_spill] sm:$0xff] %v8654_v61  ;;  %v7190_v6 = vld [vmem:[%s7915_s20 + $0x4e0] sm:$0xff] }
 0x127   : > { %5684 = vmatpush3.msra.mxu1 %v7184_v37  ;;  %5650 = vmatprep.subr.mxu0 %v8644_v21  ;;  %v8659_v37 = vld [vmem:[%s7915_s20 + $0x360] sm:$0xff] }
 0x128   : > { %5685 = vmatprep.subr.mxu1 %v7186_v30  ;;  %5651 = vmatpush3.msra.mxu0 %v8649_v39  ;;  %11402 = vst [vmem:[#allocation9_spill] sm:$0xff] %v8659_v37  ;;  %v7192_v30 = vld [vmem:[%s7915_s20 + $0x460] sm:$0xff] }
 0x129   : > { %5686 = vmatpush3.msra.mxu1 %v7188_v48  ;;  %5652 = vmatprep.subr.mxu0 %v8654_v61  ;;  %v7194_v48 = vld [vmem:[%s7915_s20 + $0x4d8] sm:$0xff]  ;;  %v8714_v61 = vld [vmem:[%s7915_s20 + $0x3b0] sm:$0xff]  ;;  %v8744_v21 = vld [vmem:[%s7915_s20 + $0x320] sm:$0xff] }
 0x12a   : > { %5687 = vmatprep.subr.mxu1 %v7190_v6  ;;  %5653 = vmatpush3.msra.mxu0 %v8659_v37  ;;  %v7196_v6 = vld [vmem:[%s7915_s20 + $0x458] sm:$0xff]  ;;  %v8674_v37 = vld [vmem:[%s7915_s20 + $0x3d0] sm:$0xff]  ;;  %11413 = vst [vmem:[#allocation20_spill] sm:$0xff] %v8714_v61  ;;  %11418 = vst [vmem:[#allocation25_spill] sm:$0xff] %v8744_v21 }
 0x12b   : > { %5688 = vmatpush3.msra.mxu1 %v7192_v30  ;;  %5654 = vmatprep.subr.mxu0 %v8664_v55  ;;  %11405 = vst [vmem:[#allocation12_spill] sm:$0xff] %v8674_v37  ;;  %v7198_v30 = vld [vmem:[%s7915_s20 + $0x4d0] sm:$0xff] }
 0x12c   : > { %5689 = vmatprep.subr.mxu1 %v7194_v48  ;;  %5655 = vmatpush3.msra.mxu0 %v8669_v42  ;;  %v8679_v55 = vld [vmem:[%s7915_s20 + $0x350] sm:$0xff]  ;;  %v8684_v42 = vld [vmem:[%s7915_s20 + $0x3c8] sm:$0xff] }
 0x12d   : > { %5690 = vmatpush3.msra.mxu1 %v7196_v6  ;;  %5656 = vmatprep.subr.mxu0 %v8674_v37  ;;  %11406 = vst [vmem:[#allocation13_spill] sm:$0xff] %v8679_v55  ;;  %v7200_v48 = vld [vmem:[%s7915_s20 + $0x450] sm:$0xff]  ;;  %11407 = vst [vmem:[#allocation14_spill] sm:$0xff] %v8684_v42  ;;  %v7202_v6 = vld [vmem:[%s7915_s20 + $0x4c8] sm:$0xff] }
 0x12e   : > { %5691 = vmatprep.subr.mxu1 %v7198_v30  ;;  %5657 = vmatpush3.msra.mxu0 %v8679_v55  ;;  %v8689_v37 = vld [vmem:[%s7915_s20 + $0x348] sm:$0xff]  ;;  %v8694_v55 = vld [vmem:[%s7915_s20 + $0x3c0] sm:$0xff] }
 0x12f   : > { %5692 = vmatpush3.msra.mxu1 %v7200_v48  ;;  %5658 = vmatprep.subr.mxu0 %v8684_v42  ;;  %11408 = vst [vmem:[#allocation15_spill] sm:$0xff] %v8689_v37  ;;  %v7204_v30 = vld [vmem:[%s7915_s20 + $0x448] sm:$0xff]  ;;  %11409 = vst [vmem:[#allocation16_spill] sm:$0xff] %v8694_v55  ;;  %v7206_v48 = vld [vmem:[%s7915_s20 + $0x4c0] sm:$0xff] }
 0x130   : > { %5693 = vmatprep.subr.mxu1 %v7202_v6  ;;  %5659 = vmatpush3.msra.mxu0 %v8689_v37  ;;  %v8699_v42 = vld [vmem:[%s7915_s20 + $0x340] sm:$0xff]  ;;  %v8704_v37 = vld [vmem:[%s7915_s20 + $0x3b8] sm:$0xff] }
 0x131   : > { %5694 = vmatpush3.msra.mxu1 %v7204_v30  ;;  %5660 = vmatprep.subr.mxu0 %v8694_v55  ;;  %11410 = vst [vmem:[#allocation17_spill] sm:$0xff] %v8699_v42  ;;  %v7208_v6 = vld [vmem:[%s7915_s20 + $0x440] sm:$0xff]  ;;  %11411 = vst [vmem:[#allocation18_spill] sm:$0xff] %v8704_v37  ;;  %v7210_v30 = vld [vmem:[%s7915_s20 + $0x4b8] sm:$0xff] }
 0x132   : > { %5695 = vmatprep.subr.mxu1 %v7206_v48  ;;  %5661 = vmatpush3.msra.mxu0 %v8699_v42  ;;  %v8709_v55 = vld [vmem:[%s7915_s20 + $0x338] sm:$0xff]  ;;  %v8731_v42 = vld [vmem:[%s7915_s20 + $0x328] sm:$0xff] }
 0x133   : > { %5696 = vmatpush3.msra.mxu1 %v7208_v6  ;;  %5662 = vmatprep.subr.mxu0 %v8704_v37  ;;  %11412 = vst [vmem:[#allocation19_spill] sm:$0xff] %v8709_v55  ;;  %v7212_v48 = vld [vmem:[%s7915_s20 + $0x438] sm:$0xff]  ;;  %v7214_v6 = vld [vmem:[%s7915_s20 + $0x4b0] sm:$0xff]  ;;  %11416 = vst [vmem:[#allocation23_spill] sm:$0xff] %v8731_v42 }
 0x134   : > { %5697 = vmatprep.subr.mxu1 %v7210_v30  ;;  %5663 = vmatpush3.msra.mxu0 %v8709_v55  ;;  %v8719_v37 = vld [vmem:[%s7915_s20 + $0x330] sm:$0xff]  ;;  %v1756_v55 = vcombine.high %v8570_v3, %v8570_v3  ;;  %v7222_v3 = vld [vmem:[%s7915_s20 + $0x4a0] sm:$0xff] }
 0x135   : > { %5698 = vmatpush3.msra.mxu1 %v7212_v48  ;;  %5664 = vmatprep.subr.mxu0 %v8714_v61  ;;  %11414 = vst [vmem:[#allocation21_spill] sm:$0xff] %v8719_v37  ;;  %v7216_v30 = vld [vmem:[%s7915_s20 + $0x430] sm:$0xff]  ;;  %v8726_v48 = vld [vmem:[%s7915_s20 + $0x3a8] sm:$0xff] }
 0x136   : > { %5699 = vmatprep.subr.mxu1 %v7214_v6  ;;  %5665 = vmatpush3.msra.mxu0 %v8719_v37  ;;  %11415 = vst [vmem:[#allocation22_spill] sm:$0xff] %v8726_v48  ;;  %v7218_v61 = vld [vmem:[%s7915_s20 + $0x4a8] sm:$0xff] }
 0x137   : > { %5700 = vmatpush3.msra.mxu1 %v7216_v30  ;;  %5666 = vmatprep.subr.mxu0 %v8726_v48  ;;  %v7220_v37 = vld [vmem:[%s7915_s20 + $0x428] sm:$0xff]  ;;  %v8736_v30 = vld [vmem:[%s7915_s20 + $0x3a0] sm:$0xff] }
 0x138   : > { %5701 = vmatprep.subr.mxu1 %v7218_v61  ;;  %v5276_v6 = vpop.f32.mrf.mxu0  ;;  %5667 = vmatpush3.msra.mxu0 %v8731_v42  ;;  %11417 = vst [vmem:[#allocation24_spill] sm:$0xff] %v8736_v30  ;;  %v8741_v48 = vld [vmem:[%s7965_s24 + $0x42] sm:$0xff] }
 0x139   : > { %5702 = vmatpush3.msra.mxu1 %v7220_v37  ;;  %5668 = vmatprep.subr.mxu0 %v8736_v30  ;;  %v7224_v42 = vld [vmem:[%s7915_s20 + $0x420] sm:$0xff]  ;;  %v1770_v37 = vrot.slane %v1756_v55, %v7972_v51  ;;  %v8750_v30 = vld [vmem:[%s7915_s20 + $0x398] sm:$0xff] }
 0x13a   : > { %5703 = vmatprep.subr.mxu1 %v7222_v3  ;;  %v5277_v61 = vpop.f32.mrf.mxu0  ;;  %v5311_v39 = vpop.f32.mrf.mxu1  ;;  %5669 = vmatpush3.msra.mxu0 %v8744_v21  ;;  %11419 = vst [vmem:[#allocation26_spill] sm:$0xff] %v8750_v30  ;;  %v7226_v3 = vld [vmem:[%s7915_s20 + $0x498] sm:$0xff] }
 0x13b   : > { %5704 = vmatpush3.msra.mxu1 %v7224_v42  ;;  %v5278_v15 = vadd.f32 %v5277_v61, %v5276_v6  ;;  %5670 = vmatprep.subr.mxu0 %v8750_v30  ;;  %v7228_v21 = vld [vmem:[%s7915_s20 + $0x418] sm:$0xff]  ;;  %v1780_v42 = vrot.slane %v8741_v48, %v7972_v51  ;;  %v8763_v61 = vld [vmem:[%s7915_s20 + $0x390] sm:$0xff]  ;;  %v1772_v30 = vcombine.high %v1770_v37, %v1770_v37 }
 0x13c   : > { %5705 = vmatprep.subr.mxu1 %v7226_v3  ;;  %v5312_v18 = vpop.f32.mrf.mxu1  ;;  %5671 = vmatpush3.msra.mxu0 %v8755_v53  ;;  %11421 = vst [vmem:[#allocation28_spill] sm:$0xff] %v8763_v61  ;;  %v7230_v3 = vld [vmem:[%s7915_s20 + $0x490] sm:$0xff] }
 0x13d   : > { %5706 = vmatpush3.msra.mxu1 %v7228_v21  ;;  %v1169_v55 = vadd.f32 %v5278_v15, %v8601_v41  ;;  %v5313_v6 = vadd.f32 %v5312_v18, %v5311_v39  ;;  %5672 = vmatprep.subr.mxu0 %v8763_v61  ;;  %v8768_v53 = vld [vmem:[%s7915_s20 + $0x310] sm:$0xff]  ;;  %v8775_v18 = vld [vmem:[%s7915_s20 + $0x388] sm:$0xff]  ;;  %v8926_v61 = vld [vmem:[%s7915_s20 + $0x518] sm:$0xff] }
 0x13e   : > { %5707 = vmatprep.subr.mxu1 %v7230_v3  ;;  %11422 = vst [vmem:[#allocation29_spill] sm:$0xff] %v8768_v53  ;;  %5673 = vmatpush3.msra.mxu0 %v8768_v53  ;;  %v7232_v21 = vld [vmem:[%s7915_s20 + $0x410] sm:$0xff]  ;;  %11423 = vst [vmem:[#allocation30_spill] sm:$0xff] %v8775_v18  ;;  %v7234_v15 = vld [vmem:[%s7915_s20 + $0x488] sm:$0xff] }
 0x13f   : > { %5708 = vmatpush3.msra.mxu1 %v7232_v21  ;;  %v8772_v41 = vadd.f32 %v5313_v6, %v1169_v55  ;;  %5674 = vmatprep.subr.mxu0 %v8775_v18  ;;  %v8780_v39 = vld [vmem:[%s7915_s20 + $0x308] sm:$0xff]  ;;  %v1788_v21 = vcombine.high %v1780_v42, %v1780_v42  ;;  %v8785_v53 = vld [vmem:[%s7915_s20 + $0x380] sm:$0xff]  ;;  %11452 = vst [vmem:[#allocation59_spill] sm:$0xff] %v8926_v61 }
 0x140   : > { %5709 = vmatprep.subr.mxu1 %v7234_v15  ;;  %11424 = vst [vmem:[#allocation31_spill] sm:$0xff] %v8780_v39  ;;  %5675 = vmatpush3.msra.mxu0 %v8780_v39  ;;  %v7236_v3 = vld [vmem:[%s7915_s20 + $0x408] sm:$0xff]  ;;  %11425 = vst [vmem:[#allocation32_spill] sm:$0xff] %v8785_v53  ;;  %v7238_v55 = vld [vmem:[%s7915_s20 + $0x480] sm:$0xff] }
 0x141   : > { %5710 = vmatpush3.msra.mxu1 %v7236_v3  ;;  %5676 = vmatprep.subr.mxu0 %v8785_v53  ;;  %v8790_v6 = vld [vmem:[%s7915_s20 + $0x300] sm:$0xff]  ;;  %v8795_v3 = vld [vmem:[%s7915_s20 + $0x5f8] sm:$0xff] }
 0x142   : > { %5711 = vmatprep.subr.mxu1 %v7238_v55  ;;  %11426 = vst [vmem:[#allocation33_spill] sm:$0xff] %v8790_v6  ;;  %5677 = vmatpush3.msra.mxu0 %v8790_v6  ;;  %v7240_v15 = vld [vmem:[%s7915_s20 + $0x400] sm:$0xff]  ;;  %11427 = vst [vmem:[#allocation34_spill] sm:$0xff] %v8795_v3  ;;  %v7242_v53 = vld [vmem:[%s7915_s20 + $0x6f8] sm:$0xff] }
 0x143   : > { %2147 = vmatprep.mubr.f32.mxu0 %v1772_v30  ;;  %5712 = vmatpush3.msra.mxu1 %v7240_v15  ;;  %v8800_v55 = vld [vmem:[%s7915_s20 + $0x578] sm:$0xff]  ;;  %v8810_v15 = vld [vmem:[%s7915_s20 + $0x570] sm:$0xff]  ;;  %v8915_v6 = vld [vmem:[%s7915_s20 + $0x520] sm:$0xff] }
 0x144   : > { %2148 = vmatmul.mubr.f32.vlgmr.msra.gmra.mxu0 %v1770_v37  ;;  %2217 = vmatprep.mubr.f32.mxu1 %v1788_v21  ;;  %11428 = vst [vmem:[#allocation35_spill] sm:$0xff] %v8800_v55  ;;  %v7244_v30 = vld [vmem:[%s7915_s20 + $0x678] sm:$0xff]  ;;  %v8805_v37 = vld [vmem:[%s7915_s20 + $0x5f0] sm:$0xff]  ;;  %11430 = vst [vmem:[#allocation37_spill] sm:$0xff] %v8810_v15 }
 0x145   : > { %5716 = vmatprep.subr.mxu0 %v8795_v3  ;;  %5751 = vmatprep.subr.mxu1 %v7242_v53  ;;  %11429 = vst [vmem:[#allocation36_spill] sm:$0xff] %v8805_v37  ;;  %v7246_v21 = vld [vmem:[%s7915_s20 + $0x6f0] sm:$0xff]  ;;  %11450 = vst [vmem:[#allocation57_spill] sm:$0xff] %v8915_v6 }
 0x146   : > { %2218 = vmatmul.mubr.f32.vlgmr.msra.gmra.mxu1 %v1780_v42  ;;  %5717 = vmatpush3.msra.mxu0 %v8800_v55  ;;  %v7248_v53 = vld [vmem:[%s7915_s20 + $0x670] sm:$0xff]  ;;  %v8815_v42 = vld [vmem:[%s7915_s20 + $0x5e8] sm:$0xff] }
 0x147   : > { %5752 = vmatpush3.msra.mxu1 %v7244_v30  ;;  %5718 = vmatprep.subr.mxu0 %v8805_v37  ;;  %11431 = vst [vmem:[#allocation38_spill] sm:$0xff] %v8815_v42  ;;  %v7250_v30 = vld [vmem:[%s7915_s20 + $0x6e8] sm:$0xff]  ;;  %v8885_v55 = vld [vmem:[%s7915_s20 + $0x5b0] sm:$0xff] }
 0x148   : > { %5753 = vmatprep.subr.mxu1 %v7246_v21  ;;  %5719 = vmatpush3.msra.mxu0 %v8810_v15  ;;  %v8820_v37 = vld [vmem:[%s7915_s20 + $0x568] sm:$0xff]  ;;  %v8825_v15 = vld [vmem:[%s7915_s20 + $0x5e0] sm:$0xff]  ;;  %11445 = vst [vmem:[#allocation52_spill] sm:$0xff] %v8885_v55 }
 0x149   : > { %5754 = vmatpush3.msra.mxu1 %v7248_v53  ;;  %5720 = vmatprep.subr.mxu0 %v8815_v42  ;;  %11432 = vst [vmem:[#allocation39_spill] sm:$0xff] %v8820_v37  ;;  %v7252_v21 = vld [vmem:[%s7915_s20 + $0x668] sm:$0xff]  ;;  %11433 = vst [vmem:[#allocation40_spill] sm:$0xff] %v8825_v15  ;;  %v7254_v53 = vld [vmem:[%s7915_s20 + $0x6e0] sm:$0xff] }
 0x14a   : > { %5755 = vmatprep.subr.mxu1 %v7250_v30  ;;  %5721 = vmatpush3.msra.mxu0 %v8820_v37  ;;  %v8830_v42 = vld [vmem:[%s7915_s20 + $0x560] sm:$0xff]  ;;  %v8835_v37 = vld [vmem:[%s7915_s20 + $0x5d8] sm:$0xff] }
 0x14b   : > { %5756 = vmatpush3.msra.mxu1 %v7252_v21  ;;  %5722 = vmatprep.subr.mxu0 %v8825_v15  ;;  %11434 = vst [vmem:[#allocation41_spill] sm:$0xff] %v8830_v42  ;;  %v7256_v30 = vld [vmem:[%s7915_s20 + $0x660] sm:$0xff]  ;;  %11435 = vst [vmem:[#allocation42_spill] sm:$0xff] %v8835_v37  ;;  %v7258_v21 = vld [vmem:[%s7915_s20 + $0x6d8] sm:$0xff] }
 0x14c   : > { %5757 = vmatprep.subr.mxu1 %v7254_v53  ;;  %5723 = vmatpush3.msra.mxu0 %v8830_v42  ;;  %v8840_v15 = vld [vmem:[%s7915_s20 + $0x558] sm:$0xff]  ;;  %v8845_v42 = vld [vmem:[%s7915_s20 + $0x5d0] sm:$0xff] }
 0x14d   : > { %5758 = vmatpush3.msra.mxu1 %v7256_v30  ;;  %5724 = vmatprep.subr.mxu0 %v8835_v37  ;;  %11436 = vst [vmem:[#allocation43_spill] sm:$0xff] %v8840_v15  ;;  %v7260_v53 = vld [vmem:[%s7915_s20 + $0x658] sm:$0xff]  ;;  %11437 = vst [vmem:[#allocation44_spill] sm:$0xff] %v8845_v42  ;;  %v7262_v30 = vld [vmem:[%s7915_s20 + $0x6d0] sm:$0xff] }
 0x14e   : > { %5759 = vmatprep.subr.mxu1 %v7258_v21  ;;  %5725 = vmatpush3.msra.mxu0 %v8840_v15  ;;  %v8850_v37 = vld [vmem:[%s7915_s20 + $0x550] sm:$0xff]  ;;  %v8855_v15 = vld [vmem:[%s7915_s20 + $0x5c8] sm:$0xff] }
 0x14f   : > { %5760 = vmatpush3.msra.mxu1 %v7260_v53  ;;  %5726 = vmatprep.subr.mxu0 %v8845_v42  ;;  %11438 = vst [vmem:[#allocation45_spill] sm:$0xff] %v8850_v37  ;;  %v7264_v21 = vld [vmem:[%s7915_s20 + $0x650] sm:$0xff]  ;;  %11439 = vst [vmem:[#allocation46_spill] sm:$0xff] %v8855_v15  ;;  %v7266_v53 = vld [vmem:[%s7915_s20 + $0x6c8] sm:$0xff] }
 0x150   : > { %5761 = vmatprep.subr.mxu1 %v7262_v30  ;;  %5727 = vmatpush3.msra.mxu0 %v8850_v37  ;;  %v8860_v42 = vld [vmem:[%s7915_s20 + $0x548] sm:$0xff]  ;;  %v8865_v37 = vld [vmem:[%s7915_s20 + $0x5c0] sm:$0xff] }
 0x151   : > { %5762 = vmatpush3.msra.mxu1 %v7264_v21  ;;  %5728 = vmatprep.subr.mxu0 %v8855_v15  ;;  %11440 = vst [vmem:[#allocation47_spill] sm:$0xff] %v8860_v42  ;;  %v7268_v30 = vld [vmem:[%s7915_s20 + $0x648] sm:$0xff]  ;;  %11441 = vst [vmem:[#allocation48_spill] sm:$0xff] %v8865_v37  ;;  %v7270_v21 = vld [vmem:[%s7915_s20 + $0x6c0] sm:$0xff] }
 0x152   : > { %5763 = vmatprep.subr.mxu1 %v7266_v53  ;;  %5729 = vmatpush3.msra.mxu0 %v8860_v42  ;;  %v8870_v15 = vld [vmem:[%s7915_s20 + $0x540] sm:$0xff]  ;;  %v8875_v42 = vld [vmem:[%s7915_s20 + $0x5b8] sm:$0xff] }
 0x153   : > { %5764 = vmatpush3.msra.mxu1 %v7268_v30  ;;  %5730 = vmatprep.subr.mxu0 %v8865_v37  ;;  %11442 = vst [vmem:[#allocation49_spill] sm:$0xff] %v8870_v15  ;;  %v7272_v53 = vld [vmem:[%s7915_s20 + $0x640] sm:$0xff]  ;;  %11443 = vst [vmem:[#allocation50_spill] sm:$0xff] %v8875_v42  ;;  %v7274_v30 = vld [vmem:[%s7915_s20 + $0x6b8] sm:$0xff] }
 0x154   : > { %5765 = vmatprep.subr.mxu1 %v7270_v21  ;;  %5731 = vmatpush3.msra.mxu0 %v8870_v15  ;;  %v8880_v37 = vld [vmem:[%s7915_s20 + $0x538] sm:$0xff]  ;;  %v8902_v15 = vld [vmem:[%s7915_s20 + $0x528] sm:$0xff] }
 0x155   : > { %5766 = vmatpush3.msra.mxu1 %v7272_v53  ;;  %5732 = vmatprep.subr.mxu0 %v8875_v42  ;;  %11444 = vst [vmem:[#allocation51_spill] sm:$0xff] %v8880_v37  ;;  %v7276_v21 = vld [vmem:[%s7915_s20 + $0x638] sm:$0xff]  ;;  %v7278_v53 = vld [vmem:[%s7915_s20 + $0x6b0] sm:$0xff]  ;;  %11448 = vst [vmem:[#allocation55_spill] sm:$0xff] %v8902_v15 }
 0x156   : > { %5767 = vmatprep.subr.mxu1 %v7274_v30  ;;  %5733 = vmatpush3.msra.mxu0 %v8880_v37  ;;  %v8890_v42 = vld [vmem:[%s7915_s20 + $0x530] sm:$0xff]  ;;  %v1773_v37 = vcombine.high %v8741_v48, %v8741_v48  ;;  %v7286_v48 = vld [vmem:[%s7915_s20 + $0x6a0] sm:$0xff] }
 0x157   : > { %5768 = vmatpush3.msra.mxu1 %v7276_v21  ;;  %5734 = vmatprep.subr.mxu0 %v8885_v55  ;;  %11446 = vst [vmem:[#allocation53_spill] sm:$0xff] %v8890_v42  ;;  %v7280_v30 = vld [vmem:[%s7915_s20 + $0x630] sm:$0xff]  ;;  %v8897_v21 = vld [vmem:[%s7915_s20 + $0x5a8] sm:$0xff] }
 0x158   : > { %5769 = vmatprep.subr.mxu1 %v7278_v53  ;;  %5735 = vmatpush3.msra.mxu0 %v8890_v42  ;;  %11447 = vst [vmem:[#allocation54_spill] sm:$0xff] %v8897_v21  ;;  %v7282_v55 = vld [vmem:[%s7915_s20 + $0x6a8] sm:$0xff] }
 0x159   : > { %5770 = vmatpush3.msra.mxu1 %v7280_v30  ;;  %5736 = vmatprep.subr.mxu0 %v8897_v21  ;;  %v7284_v42 = vld [vmem:[%s7915_s20 + $0x628] sm:$0xff]  ;;  %v8907_v30 = vld [vmem:[%s7915_s20 + $0x5a0] sm:$0xff] }
 0x15a   : > { %5771 = vmatprep.subr.mxu1 %v7282_v55  ;;  %v5346_v53 = vpop.f32.mrf.mxu0  ;;  %5737 = vmatpush3.msra.mxu0 %v8902_v15  ;;  %11449 = vst [vmem:[#allocation56_spill] sm:$0xff] %v8907_v30  ;;  %v8912_v21 = vld [vmem:[%s7965_s24 + $0x4a] sm:$0xff]  ;;  %v7288_v15 = vld [vmem:[%s7915_s20 + $0x620] sm:$0xff] }
 0x15b   : > { %5772 = vmatpush3.msra.mxu1 %v7284_v42  ;;  %5738 = vmatprep.subr.mxu0 %v8907_v30  ;;  %v1787_v42 = vrot.slane %v1773_v37, %v7972_v51  ;;  %v8921_v30 = vld [vmem:[%s7915_s20 + $0x598] sm:$0xff]  ;;  %v1797_v37 = vrot.slane %v8912_v21, %v7972_v51 }
 0x15c   : > { %5773 = vmatprep.subr.mxu1 %v7286_v48  ;;  %v5347_v55 = vpop.f32.mrf.mxu0  ;;  %v5381_v3 = vpop.f32.mrf.mxu1  ;;  %5739 = vmatpush3.msra.mxu0 %v8915_v6  ;;  %11451 = vst [vmem:[#allocation58_spill] sm:$0xff] %v8921_v30  ;;  %v7290_v48 = vld [vmem:[%s7915_s20 + $0x698] sm:$0xff] }
 0x15d   : > { %5774 = vmatpush3.msra.mxu1 %v7288_v15  ;;  %v5348_v39 = vadd.f32 %v5347_v55, %v5346_v53  ;;  %5740 = vmatprep.subr.mxu0 %v8921_v30  ;;  %v7292_v6 = vld [vmem:[%s7915_s20 + $0x618] sm:$0xff]  ;;  %v8934_v55 = vld [vmem:[%s7915_s20 + $0x590] sm:$0xff]  ;;  %v1789_v30 = vcombine.high %v1787_v42, %v1787_v42 }
 0x15e   : > { %5775 = vmatprep.subr.mxu1 %v7290_v48  ;;  %v5382_v18 = vpop.f32.mrf.mxu1  ;;  %5741 = vmatpush3.msra.mxu0 %v8926_v61  ;;  %11453 = vst [vmem:[#allocation60_spill] sm:$0xff] %v8934_v55  ;;  %v7294_v48 = vld [vmem:[%s7915_s20 + $0x690] sm:$0xff] }
 0x15f   : > { %5776 = vmatpush3.msra.mxu1 %v7292_v6  ;;  %v1309_v15 = vadd.f32 %v5348_v39, %v8772_v41  ;;  %v5383_v53 = vadd.f32 %v5382_v18, %v5381_v3  ;;  %5742 = vmatprep.subr.mxu0 %v8934_v55  ;;  %v8939_v61 = vld [vmem:[%s7915_s20 + $0x510] sm:$0xff]  ;;  %v8946_v18 = vld [vmem:[%s7915_s20 + $0x588] sm:$0xff]  ;;  %v9097_v55 = vld [vmem:[%s7915_s20 + $0x718] sm:$0xff] }
 0x160   : > { %5777 = vmatprep.subr.mxu1 %v7294_v48  ;;  %11454 = vst [vmem:[#allocation61_spill] sm:$0xff] %v8939_v61  ;;  %5743 = vmatpush3.msra.mxu0 %v8939_v61  ;;  %v7296_v6 = vld [vmem:[%s7915_s20 + $0x610] sm:$0xff]  ;;  %11455 = vst [vmem:[#allocation62_spill] sm:$0xff] %v8946_v18  ;;  %v7298_v39 = vld [vmem:[%s7915_s20 + $0x688] sm:$0xff] }
 0x161   : > { %5778 = vmatpush3.msra.mxu1 %v7296_v6  ;;  %v8943_v41 = vadd.f32 %v5383_v53, %v1309_v15  ;;  %5744 = vmatprep.subr.mxu0 %v8946_v18  ;;  %v8951_v3 = vld [vmem:[%s7915_s20 + $0x508] sm:$0xff]  ;;  %v1805_v6 = vcombine.high %v1797_v37, %v1797_v37  ;;  %v8956_v61 = vld [vmem:[%s7915_s20 + $0x580] sm:$0xff]  ;;  %11484 = vst [vmem:[#allocation91_spill] sm:$0xff] %v9097_v55 }
 0x162   : > { %5779 = vmatprep.subr.mxu1 %v7298_v39  ;;  %11456 = vst [vmem:[#allocation63_spill] sm:$0xff] %v8951_v3  ;;  %5745 = vmatpush3.msra.mxu0 %v8951_v3  ;;  %v7300_v48 = vld [vmem:[%s7915_s20 + $0x608] sm:$0xff]  ;;  %11457 = vst [vmem:[#allocation64_spill] sm:$0xff] %v8956_v61  ;;  %v7302_v15 = vld [vmem:[%s7915_s20 + $0x680] sm:$0xff] }
 0x163   : > { %5780 = vmatpush3.msra.mxu1 %v7300_v48  ;;  %5746 = vmatprep.subr.mxu0 %v8956_v61  ;;  %v8961_v53 = vld [vmem:[%s7915_s20 + $0x500] sm:$0xff]  ;;  %v8966_v48 = vld [vmem:[%s7915_s20 + $0x7f8] sm:$0xff] }
 0x164   : > { %5781 = vmatprep.subr.mxu1 %v7302_v15  ;;  %11458 = vst [vmem:[#allocation65_spill] sm:$0xff] %v8961_v53  ;;  %5747 = vmatpush3.msra.mxu0 %v8961_v53  ;;  %v7304_v39 = vld [vmem:[%s7915_s20 + $0x600] sm:$0xff]  ;;  %11459 = vst [vmem:[#allocation66_spill] sm:$0xff] %v8966_v48  ;;  %v7306_v61 = vld [vmem:[%s7915_s20 + $0x8f8] sm:$0xff] }
 0x165   : > { %2287 = vmatprep.mubr.f32.mxu0 %v1789_v30  ;;  %5782 = vmatpush3.msra.mxu1 %v7304_v39  ;;  %v8971_v15 = vld [vmem:[%s7915_s20 + $0x778] sm:$0xff]  ;;  %v8981_v39 = vld [vmem:[%s7915_s20 + $0x770] sm:$0xff]  ;;  %v9086_v53 = vld [vmem:[%s7915_s20 + $0x720] sm:$0xff] }
 0x166   : > { %2288 = vmatmul.mubr.f32.vlgmr.msra.gmra.mxu0 %v1787_v42  ;;  %2357 = vmatprep.mubr.f32.mxu1 %v1805_v6  ;;  %11460 = vst [vmem:[#allocation67_spill] sm:$0xff] %v8971_v15  ;;  %v7308_v30 = vld [vmem:[%s7915_s20 + $0x878] sm:$0xff]  ;;  %v8976_v42 = vld [vmem:[%s7915_s20 + $0x7f0] sm:$0xff]  ;;  %11462 = vst [vmem:[#allocation69_spill] sm:$0xff] %v8981_v39 }
 0x167   : > { %5786 = vmatprep.subr.mxu0 %v8966_v48  ;;  %5821 = vmatprep.subr.mxu1 %v7306_v61  ;;  %11461 = vst [vmem:[#allocation68_spill] sm:$0xff] %v8976_v42  ;;  %v7310_v6 = vld [vmem:[%s7915_s20 + $0x8f0] sm:$0xff]  ;;  %11482 = vst [vmem:[#allocation89_spill] sm:$0xff] %v9086_v53 }
 0x168   : > { %2358 = vmatmul.mubr.f32.vlgmr.msra.gmra.mxu1 %v1797_v37  ;;  %5787 = vmatpush3.msra.mxu0 %v8971_v15  ;;  %v7312_v61 = vld [vmem:[%s7915_s20 + $0x870] sm:$0xff]  ;;  %v8986_v37 = vld [vmem:[%s7915_s20 + $0x7e8] sm:$0xff] }
 0x169   : > { %5822 = vmatpush3.msra.mxu1 %v7308_v30  ;;  %5788 = vmatprep.subr.mxu0 %v8976_v42  ;;  %11463 = vst [vmem:[#allocation70_spill] sm:$0xff] %v8986_v37  ;;  %v7314_v30 = vld [vmem:[%s7915_s20 + $0x8e8] sm:$0xff]  ;;  %v9056_v15 = vld [vmem:[%s7915_s20 + $0x7b0] sm:$0xff] }
 0x16a   : > { %5823 = vmatprep.subr.mxu1 %v7310_v6  ;;  %5789 = vmatpush3.msra.mxu0 %v8981_v39  ;;  %v8991_v42 = vld [vmem:[%s7915_s20 + $0x768] sm:$0xff]  ;;  %v8996_v39 = vld [vmem:[%s7915_s20 + $0x7e0] sm:$0xff]  ;;  %11477 = vst [vmem:[#allocation84_spill] sm:$0xff] %v9056_v15 }
 0x16b   : > { %5824 = vmatpush3.msra.mxu1 %v7312_v61  ;;  %5790 = vmatprep.subr.mxu0 %v8986_v37  ;;  %11464 = vst [vmem:[#allocation71_spill] sm:$0xff] %v8991_v42  ;;  %v7316_v6 = vld [vmem:[%s7915_s20 + $0x868] sm:$0xff]  ;;  %11465 = vst [vmem:[#allocation72_spill] sm:$0xff] %v8996_v39  ;;  %v7318_v61 = vld [vmem:[%s7915_s20 + $0x8e0] sm:$0xff] }
 0x16c   : > { %5825 = vmatprep.subr.mxu1 %v7314_v30  ;;  %5791 = vmatpush3.msra.mxu0 %v8991_v42  ;;  %v9001_v37 = vld [vmem:[%s7915_s20 + $0x760] sm:$0xff]  ;;  %v9006_v42 = vld [vmem:[%s7915_s20 + $0x7d8] sm:$0xff] }
 0x16d   : > { %5826 = vmatpush3.msra.mxu1 %v7316_v6  ;;  %5792 = vmatprep.subr.mxu0 %v8996_v39  ;;  %11466 = vst [vmem:[#allocation73_spill] sm:$0xff] %v9001_v37  ;;  %v7320_v30 = vld [vmem:[%s7915_s20 + $0x860] sm:$0xff]  ;;  %11467 = vst [vmem:[#allocation74_spill] sm:$0xff] %v9006_v42  ;;  %v7322_v6 = vld [vmem:[%s7915_s20 + $0x8d8] sm:$0xff] }
 0x16e   : > { %5827 = vmatprep.subr.mxu1 %v7318_v61  ;;  %5793 = vmatpush3.msra.mxu0 %v9001_v37  ;;  %v9011_v39 = vld [vmem:[%s7915_s20 + $0x758] sm:$0xff]  ;;  %v9016_v37 = vld [vmem:[%s7915_s20 + $0x7d0] sm:$0xff] }
 0x16f   : > { %5828 = vmatpush3.msra.mxu1 %v7320_v30  ;;  %5794 = vmatprep.subr.mxu0 %v9006_v42  ;;  %11468 = vst [vmem:[#allocation75_spill] sm:$0xff] %v9011_v39  ;;  %v7324_v61 = vld [vmem:[%s7915_s20 + $0x858] sm:$0xff]  ;;  %11469 = vst [vmem:[#allocation76_spill] sm:$0xff] %v9016_v37  ;;  %v7326_v30 = vld [vmem:[%s7915_s20 + $0x8d0] sm:$0xff] }
 0x170   : > { %5829 = vmatprep.subr.mxu1 %v7322_v6  ;;  %5795 = vmatpush3.msra.mxu0 %v9011_v39  ;;  %v9021_v42 = vld [vmem:[%s7915_s20 + $0x750] sm:$0xff]  ;;  %v9026_v39 = vld [vmem:[%s7915_s20 + $0x7c8] sm:$0xff] }
 0x171   : > { %5830 = vmatpush3.msra.mxu1 %v7324_v61  ;;  %5796 = vmatprep.subr.mxu0 %v9016_v37  ;;  %11470 = vst [vmem:[#allocation77_spill] sm:$0xff] %v9021_v42  ;;  %v7328_v6 = vld [vmem:[%s7915_s20 + $0x850] sm:$0xff]  ;;  %11471 = vst [vmem:[#allocation78_spill] sm:$0xff] %v9026_v39  ;;  %v7330_v61 = vld [vmem:[%s7915_s20 + $0x8c8] sm:$0xff] }
 0x172   : > { %5831 = vmatprep.subr.mxu1 %v7326_v30  ;;  %5797 = vmatpush3.msra.mxu0 %v9021_v42  ;;  %v9031_v37 = vld [vmem:[%s7915_s20 + $0x748] sm:$0xff]  ;;  %v9036_v42 = vld [vmem:[%s7915_s20 + $0x7c0] sm:$0xff] }
 0x173   : > { %5832 = vmatpush3.msra.mxu1 %v7328_v6  ;;  %5798 = vmatprep.subr.mxu0 %v9026_v39  ;;  %11472 = vst [vmem:[#allocation79_spill] sm:$0xff] %v9031_v37  ;;  %v7332_v30 = vld [vmem:[%s7915_s20 + $0x848] sm:$0xff]  ;;  %11473 = vst [vmem:[#allocation80_spill] sm:$0xff] %v9036_v42  ;;  %v7334_v6 = vld [vmem:[%s7915_s20 + $0x8c0] sm:$0xff] }
 0x174   : > { %5833 = vmatprep.subr.mxu1 %v7330_v61  ;;  %5799 = vmatpush3.msra.mxu0 %v9031_v37  ;;  %v9041_v39 = vld [vmem:[%s7915_s20 + $0x740] sm:$0xff]  ;;  %v9046_v37 = vld [vmem:[%s7915_s20 + $0x7b8] sm:$0xff] }
 0x175   : > { %5834 = vmatpush3.msra.mxu1 %v7332_v30  ;;  %5800 = vmatprep.subr.mxu0 %v9036_v42  ;;  %11474 = vst [vmem:[#allocation81_spill] sm:$0xff] %v9041_v39  ;;  %v7336_v61 = vld [vmem:[%s7915_s20 + $0x840] sm:$0xff]  ;;  %11475 = vst [vmem:[#allocation82_spill] sm:$0xff] %v9046_v37  ;;  %v7338_v30 = vld [vmem:[%s7915_s20 + $0x8b8] sm:$0xff] }
 0x176   : > { %5835 = vmatprep.subr.mxu1 %v7334_v6  ;;  %5801 = vmatpush3.msra.mxu0 %v9041_v39  ;;  %v9051_v42 = vld [vmem:[%s7915_s20 + $0x738] sm:$0xff]  ;;  %v9073_v39 = vld [vmem:[%s7915_s20 + $0x728] sm:$0xff] }
 0x177   : > { %5836 = vmatpush3.msra.mxu1 %v7336_v61  ;;  %5802 = vmatprep.subr.mxu0 %v9046_v37  ;;  %11476 = vst [vmem:[#allocation83_spill] sm:$0xff] %v9051_v42  ;;  %v7340_v6 = vld [vmem:[%s7915_s20 + $0x838] sm:$0xff]  ;;  %v7342_v61 = vld [vmem:[%s7915_s20 + $0x8b0] sm:$0xff]  ;;  %11480 = vst [vmem:[#allocation87_spill] sm:$0xff] %v9073_v39 }
 0x178   : > { %5837 = vmatprep.subr.mxu1 %v7338_v30  ;;  %5803 = vmatpush3.msra.mxu0 %v9051_v42  ;;  %v9061_v37 = vld [vmem:[%s7915_s20 + $0x730] sm:$0xff]  ;;  %v1790_v42 = vcombine.high %v8912_v21, %v8912_v21  ;;  %v7350_v21 = vld [vmem:[%s7915_s20 + $0x8a0] sm:$0xff] }
 0x179   : > { %5838 = vmatpush3.msra.mxu1 %v7340_v6  ;;  %5804 = vmatprep.subr.mxu0 %v9056_v15  ;;  %11478 = vst [vmem:[#allocation85_spill] sm:$0xff] %v9061_v37  ;;  %v7344_v30 = vld [vmem:[%s7915_s20 + $0x830] sm:$0xff]  ;;  %v9068_v6 = vld [vmem:[%s7915_s20 + $0x7a8] sm:$0xff] }
 0x17a   : > { %5839 = vmatprep.subr.mxu1 %v7342_v61  ;;  %5805 = vmatpush3.msra.mxu0 %v9061_v37  ;;  %11479 = vst [vmem:[#allocation86_spill] sm:$0xff] %v9068_v6  ;;  %v7346_v15 = vld [vmem:[%s7915_s20 + $0x8a8] sm:$0xff] }
 0x17b   : > { %5840 = vmatpush3.msra.mxu1 %v7344_v30  ;;  %5806 = vmatprep.subr.mxu0 %v9068_v6  ;;  %v7348_v37 = vld [vmem:[%s7915_s20 + $0x828] sm:$0xff]  ;;  %v9078_v30 = vld [vmem:[%s7915_s20 + $0x7a0] sm:$0xff]  ;;  %v9083_v6 = vld [vmem:[%s7965_s24 + $0x52] sm:$0xff] }
 0x17c   : > { %5841 = vmatprep.subr.mxu1 %v7346_v15  ;;  %v5416_v61 = vpop.f32.mrf.mxu0  ;;  %5807 = vmatpush3.msra.mxu0 %v9073_v39  ;;  %11481 = vst [vmem:[#allocation88_spill] sm:$0xff] %v9078_v30  ;;  %v7352_v39 = vld [vmem:[%s7915_s20 + $0x820] sm:$0xff] }
 0x17d   : > { %5842 = vmatpush3.msra.mxu1 %v7348_v37  ;;  %5808 = vmatprep.subr.mxu0 %v9078_v30  ;;  %v1804_v37 = vrot.slane %v1790_v42, %v7972_v51  ;;  %v9092_v30 = vld [vmem:[%s7915_s20 + $0x798] sm:$0xff]  ;;  %v1814_v42 = vrot.slane %v9083_v6, %v7972_v51 }
 0x17e   : > { %5843 = vmatprep.subr.mxu1 %v7350_v21  ;;  %v5417_v15 = vpop.f32.mrf.mxu0  ;;  %v5451_v48 = vpop.f32.mrf.mxu1  ;;  %5809 = vmatpush3.msra.mxu0 %v9086_v53  ;;  %11483 = vst [vmem:[#allocation90_spill] sm:$0xff] %v9092_v30  ;;  %v7354_v21 = vld [vmem:[%s7915_s20 + $0x898] sm:$0xff] }
 0x17f   : > { %5844 = vmatpush3.msra.mxu1 %v7352_v39  ;;  %v5418_v3 = vadd.f32 %v5417_v15, %v5416_v61  ;;  %5810 = vmatprep.subr.mxu0 %v9092_v30  ;;  %v7356_v53 = vld [vmem:[%s7915_s20 + $0x818] sm:$0xff]  ;;  %v9105_v15 = vld [vmem:[%s7915_s20 + $0x790] sm:$0xff]  ;;  %v1806_v30 = vcombine.high %v1804_v37, %v1804_v37 }
 0x180   : > { %5845 = vmatprep.subr.mxu1 %v7354_v21  ;;  %v5452_v18 = vpop.f32.mrf.mxu1  ;;  %5811 = vmatpush3.msra.mxu0 %v9097_v55  ;;  %11485 = vst [vmem:[#allocation92_spill] sm:$0xff] %v9105_v15  ;;  %v7358_v21 = vld [vmem:[%s7915_s20 + $0x890] sm:$0xff] }
 0x181   : > { %5846 = vmatpush3.msra.mxu1 %v7356_v53  ;;  %v1449_v39 = vadd.f32 %v5418_v3, %v8943_v41  ;;  %v5453_v61 = vadd.f32 %v5452_v18, %v5451_v48  ;;  %5812 = vmatprep.subr.mxu0 %v9105_v15  ;;  %v9110_v55 = vld [vmem:[%s7915_s20 + $0x710] sm:$0xff]  ;;  %v9117_v18 = vld [vmem:[%s7915_s20 + $0x788] sm:$0xff]  ;;  %v9268_v15 = vld [vmem:[%s7915_s20 + $0x918] sm:$0xff] }
 0x182   : > { %5847 = vmatprep.subr.mxu1 %v7358_v21  ;;  %11486 = vst [vmem:[#allocation93_spill] sm:$0xff] %v9110_v55  ;;  %5813 = vmatpush3.msra.mxu0 %v9110_v55  ;;  %v7360_v53 = vld [vmem:[%s7915_s20 + $0x810] sm:$0xff]  ;;  %11487 = vst [vmem:[#allocation94_spill] sm:$0xff] %v9117_v18  ;;  %v7362_v3 = vld [vmem:[%s7915_s20 + $0x888] sm:$0xff] }
 0x183   : > { %5848 = vmatpush3.msra.mxu1 %v7360_v53  ;;  %v9114_v41 = vadd.f32 %v5453_v61, %v1449_v39  ;;  %5814 = vmatprep.subr.mxu0 %v9117_v18  ;;  %v9122_v48 = vld [vmem:[%s7915_s20 + $0x708] sm:$0xff]  ;;  %v1822_v53 = vcombine.high %v1814_v42, %v1814_v42  ;;  %v9127_v55 = vld [vmem:[%s7915_s20 + $0x780] sm:$0xff]  ;;  %11516 = vst [vmem:[#allocation123_spill] sm:$0xff] %v9268_v15 }
 0x184   : > { %5849 = vmatprep.subr.mxu1 %v7362_v3  ;;  %11488 = vst [vmem:[#allocation95_spill] sm:$0xff] %v9122_v48  ;;  %5815 = vmatpush3.msra.mxu0 %v9122_v48  ;;  %v7364_v21 = vld [vmem:[%s7915_s20 + $0x808] sm:$0xff]  ;;  %11489 = vst [vmem:[#allocation96_spill] sm:$0xff] %v9127_v55  ;;  %v7366_v39 = vld [vmem:[%s7915_s20 + $0x880] sm:$0xff] }
 0x185   : > { %5850 = vmatpush3.msra.mxu1 %v7364_v21  ;;  %5816 = vmatprep.subr.mxu0 %v9127_v55  ;;  %v9132_v61 = vld [vmem:[%s7915_s20 + $0x700] sm:$0xff]  ;;  %v9137_v21 = vld [vmem:[%s7915_s20 + $0x9f8] sm:$0xff] }
 0x186   : > { %5851 = vmatprep.subr.mxu1 %v7366_v39  ;;  %11490 = vst [vmem:[#allocation97_spill] sm:$0xff] %v9132_v61  ;;  %5817 = vmatpush3.msra.mxu0 %v9132_v61  ;;  %v7368_v3 = vld [vmem:[%s7915_s20 + $0x800] sm:$0xff]  ;;  %11491 = vst [vmem:[#allocation98_spill] sm:$0xff] %v9137_v21  ;;  %v7370_v55 = vld [vmem:[%s7915_s20 + $0xaf8] sm:$0xff] }
 0x187   : > { %2427 = vmatprep.mubr.f32.mxu0 %v1806_v30  ;;  %5852 = vmatpush3.msra.mxu1 %v7368_v3  ;;  %v9142_v39 = vld [vmem:[%s7915_s20 + $0x978] sm:$0xff]  ;;  %v9152_v3 = vld [vmem:[%s7915_s20 + $0x970] sm:$0xff]  ;;  %v9257_v61 = vld [vmem:[%s7915_s20 + $0x920] sm:$0xff] }
 0x188   : > { %2428 = vmatmul.mubr.f32.vlgmr.msra.gmra.mxu0 %v1804_v37  ;;  %2497 = vmatprep.mubr.f32.mxu1 %v1822_v53  ;;  %11492 = vst [vmem:[#allocation99_spill] sm:$0xff] %v9142_v39  ;;  %v7372_v30 = vld [vmem:[%s7915_s20 + $0xa78] sm:$0xff]  ;;  %v9147_v37 = vld [vmem:[%s7915_s20 + $0x9f0] sm:$0xff]  ;;  %11494 = vst [vmem:[#allocation101_spill] sm:$0xff] %v9152_v3 }
 0x189   : > { %5856 = vmatprep.subr.mxu0 %v9137_v21  ;;  %5891 = vmatprep.subr.mxu1 %v7370_v55  ;;  %11493 = vst [vmem:[#allocation100_spill] sm:$0xff] %v9147_v37  ;;  %v7374_v53 = vld [vmem:[%s7915_s20 + $0xaf0] sm:$0xff]  ;;  %11514 = vst [vmem:[#allocation121_spill] sm:$0xff] %v9257_v61 }
 0x18a   : > { %2498 = vmatmul.mubr.f32.vlgmr.msra.gmra.mxu1 %v1814_v42  ;;  %5857 = vmatpush3.msra.mxu0 %v9142_v39  ;;  %v7376_v55 = vld [vmem:[%s7915_s20 + $0xa70] sm:$0xff]  ;;  %v9157_v42 = vld [vmem:[%s7915_s20 + $0x9e8] sm:$0xff] }
 0x18b   : > { %5892 = vmatpush3.msra.mxu1 %v7372_v30  ;;  %5858 = vmatprep.subr.mxu0 %v9147_v37  ;;  %11495 = vst [vmem:[#allocation102_spill] sm:$0xff] %v9157_v42  ;;  %v7378_v30 = vld [vmem:[%s7915_s20 + $0xae8] sm:$0xff]  ;;  %v9227_v39 = vld [vmem:[%s7915_s20 + $0x9b0] sm:$0xff] }
 0x18c   : > { %5893 = vmatprep.subr.mxu1 %v7374_v53  ;;  %5859 = vmatpush3.msra.mxu0 %v9152_v3  ;;  %v9162_v37 = vld [vmem:[%s7915_s20 + $0x968] sm:$0xff]  ;;  %v9167_v3 = vld [vmem:[%s7915_s20 + $0x9e0] sm:$0xff]  ;;  %11509 = vst [vmem:[#allocation116_spill] sm:$0xff] %v9227_v39 }
 0x18d   : > { %5894 = vmatpush3.msra.mxu1 %v7376_v55  ;;  %5860 = vmatprep.subr.mxu0 %v9157_v42  ;;  %11496 = vst [vmem:[#allocation103_spill] sm:$0xff] %v9162_v37  ;;  %v7380_v53 = vld [vmem:[%s7915_s20 + $0xa68] sm:$0xff]  ;;  %11497 = vst [vmem:[#allocation104_spill] sm:$0xff] %v9167_v3  ;;  %v7382_v55 = vld [vmem:[%s7915_s20 + $0xae0] sm:$0xff] }
 0x18e   : > { %5895 = vmatprep.subr.mxu1 %v7378_v30  ;;  %5861 = vmatpush3.msra.mxu0 %v9162_v37  ;;  %v9172_v42 = vld [vmem:[%s7915_s20 + $0x960] sm:$0xff]  ;;  %v9177_v37 = vld [vmem:[%s7915_s20 + $0x9d8] sm:$0xff] }
 0x18f   : > { %5896 = vmatpush3.msra.mxu1 %v7380_v53  ;;  %5862 = vmatprep.subr.mxu0 %v9167_v3  ;;  %11498 = vst [vmem:[#allocation105_spill] sm:$0xff] %v9172_v42  ;;  %v7384_v30 = vld [vmem:[%s7915_s20 + $0xa60] sm:$0xff]  ;;  %11499 = vst [vmem:[#allocation106_spill] sm:$0xff] %v9177_v37  ;;  %v7386_v53 = vld [vmem:[%s7915_s20 + $0xad8] sm:$0xff] }
 0x190   : > { %5897 = vmatprep.subr.mxu1 %v7382_v55  ;;  %5863 = vmatpush3.msra.mxu0 %v9172_v42  ;;  %v9182_v3 = vld [vmem:[%s7915_s20 + $0x958] sm:$0xff]  ;;  %v9187_v42 = vld [vmem:[%s7915_s20 + $0x9d0] sm:$0xff] }
 0x191   : > { %5898 = vmatpush3.msra.mxu1 %v7384_v30  ;;  %5864 = vmatprep.subr.mxu0 %v9177_v37  ;;  %11500 = vst [vmem:[#allocation107_spill] sm:$0xff] %v9182_v3  ;;  %v7388_v55 = vld [vmem:[%s7915_s20 + $0xa58] sm:$0xff]  ;;  %11501 = vst [vmem:[#allocation108_spill] sm:$0xff] %v9187_v42  ;;  %v7390_v30 = vld [vmem:[%s7915_s20 + $0xad0] sm:$0xff] }
 0x192   : > { %5899 = vmatprep.subr.mxu1 %v7386_v53  ;;  %5865 = vmatpush3.msra.mxu0 %v9182_v3  ;;  %v9192_v37 = vld [vmem:[%s7915_s20 + $0x950] sm:$0xff]  ;;  %v9197_v3 = vld [vmem:[%s7915_s20 + $0x9c8] sm:$0xff] }
 0x193   : > { %5900 = vmatpush3.msra.mxu1 %v7388_v55  ;;  %5866 = vmatprep.subr.mxu0 %v9187_v42  ;;  %11502 = vst [vmem:[#allocation109_spill] sm:$0xff] %v9192_v37  ;;  %v7392_v53 = vld [vmem:[%s7915_s20 + $0xa50] sm:$0xff]  ;;  %11503 = vst [vmem:[#allocation110_spill] sm:$0xff] %v9197_v3  ;;  %v7394_v55 = vld [vmem:[%s7915_s20 + $0xac8] sm:$0xff] }
 0x194   : > { %5901 = vmatprep.subr.mxu1 %v7390_v30  ;;  %5867 = vmatpush3.msra.mxu0 %v9192_v37  ;;  %v9202_v42 = vld [vmem:[%s7915_s20 + $0x948] sm:$0xff]  ;;  %v9207_v37 = vld [vmem:[%s7915_s20 + $0x9c0] sm:$0xff] }
 0x195   : > { %5902 = vmatpush3.msra.mxu1 %v7392_v53  ;;  %5868 = vmatprep.subr.mxu0 %v9197_v3  ;;  %11504 = vst [vmem:[#allocation111_spill] sm:$0xff] %v9202_v42  ;;  %v7396_v30 = vld [vmem:[%s7915_s20 + $0xa48] sm:$0xff]  ;;  %11505 = vst [vmem:[#allocation112_spill] sm:$0xff] %v9207_v37  ;;  %v7398_v53 = vld [vmem:[%s7915_s20 + $0xac0] sm:$0xff] }
 0x196   : > { %5903 = vmatprep.subr.mxu1 %v7394_v55  ;;  %5869 = vmatpush3.msra.mxu0 %v9202_v42  ;;  %v9212_v3 = vld [vmem:[%s7915_s20 + $0x940] sm:$0xff]  ;;  %v9217_v42 = vld [vmem:[%s7915_s20 + $0x9b8] sm:$0xff] }
 0x197   : > { %5904 = vmatpush3.msra.mxu1 %v7396_v30  ;;  %5870 = vmatprep.subr.mxu0 %v9207_v37  ;;  %11506 = vst [vmem:[#allocation113_spill] sm:$0xff] %v9212_v3  ;;  %v7400_v55 = vld [vmem:[%s7915_s20 + $0xa40] sm:$0xff]  ;;  %11507 = vst [vmem:[#allocation114_spill] sm:$0xff] %v9217_v42  ;;  %v7402_v30 = vld [vmem:[%s7915_s20 + $0xab8] sm:$0xff] }
 0x198   : > { %5905 = vmatprep.subr.mxu1 %v7398_v53  ;;  %5871 = vmatpush3.msra.mxu0 %v9212_v3  ;;  %v9222_v37 = vld [vmem:[%s7915_s20 + $0x938] sm:$0xff]  ;;  %v9244_v3 = vld [vmem:[%s7915_s20 + $0x928] sm:$0xff] }
 0x199   : > { %5906 = vmatpush3.msra.mxu1 %v7400_v55  ;;  %5872 = vmatprep.subr.mxu0 %v9217_v42  ;;  %11508 = vst [vmem:[#allocation115_spill] sm:$0xff] %v9222_v37  ;;  %v7404_v53 = vld [vmem:[%s7915_s20 + $0xa38] sm:$0xff]  ;;  %v7406_v55 = vld [vmem:[%s7915_s20 + $0xab0] sm:$0xff]  ;;  %11512 = vst [vmem:[#allocation119_spill] sm:$0xff] %v9244_v3 }
 0x19a   : > { %5907 = vmatprep.subr.mxu1 %v7402_v30  ;;  %5873 = vmatpush3.msra.mxu0 %v9222_v37  ;;  %v9232_v42 = vld [vmem:[%s7915_s20 + $0x930] sm:$0xff]  ;;  %v1807_v37 = vcombine.high %v9083_v6, %v9083_v6  ;;  %v7414_v6 = vld [vmem:[%s7915_s20 + $0xaa0] sm:$0xff] }
 0x19b   : > { %5908 = vmatpush3.msra.mxu1 %v7404_v53  ;;  %5874 = vmatprep.subr.mxu0 %v9227_v39  ;;  %11510 = vst [vmem:[#allocation117_spill] sm:$0xff] %v9232_v42  ;;  %v7408_v30 = vld [vmem:[%s7915_s20 + $0xa30] sm:$0xff]  ;;  %v9239_v53 = vld [vmem:[%s7915_s20 + $0x9a8] sm:$0xff] }
 0x19c   : > { %5909 = vmatprep.subr.mxu1 %v7406_v55  ;;  %5875 = vmatpush3.msra.mxu0 %v9232_v42  ;;  %11511 = vst [vmem:[#allocation118_spill] sm:$0xff] %v9239_v53  ;;  %v7410_v39 = vld [vmem:[%s7915_s20 + $0xaa8] sm:$0xff] }
 0x19d   : > { %5910 = vmatpush3.msra.mxu1 %v7408_v30  ;;  %5876 = vmatprep.subr.mxu0 %v9239_v53  ;;  %v7412_v42 = vld [vmem:[%s7915_s20 + $0xa28] sm:$0xff]  ;;  %v9249_v30 = vld [vmem:[%s7915_s20 + $0x9a0] sm:$0xff] }
 0x19e   : > { %5911 = vmatprep.subr.mxu1 %v7410_v39  ;;  %v5486_v55 = vpop.f32.mrf.mxu0  ;;  %5877 = vmatpush3.msra.mxu0 %v9244_v3  ;;  %11513 = vst [vmem:[#allocation120_spill] sm:$0xff] %v9249_v30  ;;  %v9254_v53 = vld [vmem:[%s7965_s24 + $0x5a] sm:$0xff] }
 0x19f   : > { %5912 = vmatpush3.msra.mxu1 %v7412_v42  ;;  %5878 = vmatprep.subr.mxu0 %v9249_v30  ;;  %v7416_v3 = vld [vmem:[%s7915_s20 + $0xa20] sm:$0xff]  ;;  %v1821_v42 = vrot.slane %v1807_v37, %v7972_v51  ;;  %v9263_v30 = vld [vmem:[%s7915_s20 + $0x998] sm:$0xff]  ;;  %v1831_v37 = vrot.slane %v9254_v53, %v7972_v51 }
 0x1a0   : > { %5913 = vmatprep.subr.mxu1 %v7414_v6  ;;  %v5487_v39 = vpop.f32.mrf.mxu0  ;;  %v5521_v21 = vpop.f32.mrf.mxu1  ;;  %5879 = vmatpush3.msra.mxu0 %v9257_v61  ;;  %11515 = vst [vmem:[#allocation122_spill] sm:$0xff] %v9263_v30  ;;  %v7418_v6 = vld [vmem:[%s7915_s20 + $0xa98] sm:$0xff] }
 0x1a1   : > { %5914 = vmatpush3.msra.mxu1 %v7416_v3  ;;  %v5488_v48 = vadd.f32 %v5487_v39, %v5486_v55  ;;  %5880 = vmatprep.subr.mxu0 %v9263_v30  ;;  %v7420_v61 = vld [vmem:[%s7915_s20 + $0xa18] sm:$0xff]  ;;  %v9276_v39 = vld [vmem:[%s7915_s20 + $0x990] sm:$0xff]  ;;  %v1823_v30 = vcombine.high %v1821_v42, %v1821_v42 }
 0x1a2   : > { %5915 = vmatprep.subr.mxu1 %v7418_v6  ;;  %v5522_v18 = vpop.f32.mrf.mxu1  ;;  %5881 = vmatpush3.msra.mxu0 %v9268_v15  ;;  %v7422_v6 = vld [vmem:[%s7915_s20 + $0xa90] sm:$0xff] }
 0x1a3   : > { %5916 = vmatpush3.msra.mxu1 %v7420_v61  ;;  %v1589_v3 = vadd.f32 %v5488_v48, %v9114_v41  ;;  %v5523_v55 = vadd.f32 %v5522_v18, %v5521_v21  ;;  %5882 = vmatprep.subr.mxu0 %v9276_v39  ;;  %v9281_v15 = vld [vmem:[%s7915_s20 + $0x910] sm:$0xff]  ;;  %v9288_v18 = vld [vmem:[%s7915_s20 + $0x988] sm:$0xff] }
 0x1a4   : > { %5917 = vmatprep.subr.mxu1 %v7422_v6  ;;  %11517 = vst [vmem:[#allocation124_spill] sm:$0xff] %v9281_v15  ;;  %5883 = vmatpush3.msra.mxu0 %v9281_v15  ;;  %v7424_v61 = vld [vmem:[%s7915_s20 + $0xa10] sm:$0xff]  ;;  %v7426_v48 = vld [vmem:[%s7915_s20 + $0xa88] sm:$0xff]  ;;  %v1839_v15 = vcombine.high %v1831_v37, %v1831_v37 }
 0x1a5   : > { %5918 = vmatpush3.msra.mxu1 %v7424_v61  ;;  %v9285_v41 = vadd.f32 %v5523_v55, %v1589_v3  ;;  %5884 = vmatprep.subr.mxu0 %v9288_v18  ;;  %v9293_v21 = vld [vmem:[%s7915_s20 + $0x908] sm:$0xff]  ;;  %v9298_v61 = vld [vmem:[%s7915_s20 + $0x980] sm:$0xff] }
 0x1a6   : > { %5919 = vmatprep.subr.mxu1 %v7426_v48  ;;  %5885 = vmatpush3.msra.mxu0 %v9293_v21  ;;  %v7428_v6 = vld [vmem:[%s7915_s20 + $0xa08] sm:$0xff]  ;;  %11518 = vst [vmem:[#allocation125_spill] sm:$0xff] %v9298_v61  ;;  %v7430_v3 = vld [vmem:[%s7915_s20 + $0xa80] sm:$0xff] }
 0x1a7   : > { %5920 = vmatpush3.msra.mxu1 %v7428_v6  ;;  %5886 = vmatprep.subr.mxu0 %v9298_v61  ;;  %v9303_v55 = vld [vmem:[%s7915_s20 + $0x900] sm:$0xff]  ;;  %v9308_v6 = vld [vmem:[%s7915_s20 + $0xbf8] sm:$0xff]  ;;  %v11519_v61 = vmov 0.0  }
 0x1a8   : > { %5921 = vmatprep.subr.mxu1 %v7430_v3  ;;  %5887 = vmatpush3.msra.mxu0 %v9303_v55  ;;  %v7432_v48 = vld [vmem:[%s7915_s20 + $0xa00] sm:$0xff]  ;;  %v9313_v3 = vld [vmem:[%s7915_s20 + $0xb78] sm:$0xff] }
 0x1a9   : > { %2567 = vmatprep.mubr.f32.mxu0 %v1823_v30  ;;  %5922 = vmatpush3.msra.mxu1 %v7432_v48  ;;  %v9318_v30 = vld [vmem:[%s7915_s20 + $0xbf0] sm:$0xff]  ;;  %v9348_v48 = vld [vmem:[%s7915_s20 + $0xbd8] sm:$0xff] }
 0x1aa   : > { %2568 = vmatmul.mubr.f32.vlgmr.msra.gmra.mxu0 %v1821_v42  ;;  %2637 = vmatprep.mubr.f32.mxu1 %v1839_v15  ;;  %v9323_v15 = vld [vmem:[%s7915_s20 + $0xb70] sm:$0xff]  ;;  %v9328_v42 = vld [vmem:[%s7915_s20 + $0xbe8] sm:$0xff]  ;;  %11521 = vst [vmem:[#allocation127_spill] sm:$0xff] %v9348_v48 }
 0x1ab   : > { %5926 = vmatprep.subr.mxu0 %v9308_v6  ;;  %6904 = vmatprep.subr.mxu1 %v11519_v61 }
 0x1ac   : > { %2638 = vmatmul.mubr.f32.vlgmr.msra.gmra.mxu1 %v1831_v37  ;;  %5927 = vmatpush3.msra.mxu0 %v9313_v3  ;;  %v9338_v37 = vld [vmem:[%s7915_s20 + $0xbe0] sm:$0xff] }
 0x1ad   : > { %6905 = vmatpush3.msra.mxu1 %v8331_v54  ;;  %5928 = vmatprep.subr.mxu0 %v9318_v30  ;;  %v9333_v54 = vld [vmem:[%s7915_s20 + $0xb68] sm:$0xff]  ;;  %11520 = vst [vmem:[#allocation126_spill] sm:$0xff] %v9338_v37 }
 0x1ae   : > { %6906 = vmatprep.subr.mxu1 %v11519_v61  ;;  %5929 = vmatpush3.msra.mxu0 %v9323_v15 }
 0x1af   : > { %6907 = vmatpush3.msra.mxu1 %v8336_v57  ;;  %5930 = vmatprep.subr.mxu0 %v9328_v42  ;;  %v9343_v57 = vld [vmem:[%s7915_s20 + $0xb60] sm:$0xff] }
 0x1b0   : > { %6908 = vmatprep.subr.mxu1 %v11519_v61  ;;  %5931 = vmatpush3.msra.mxu0 %v9333_v54 }
 0x1b1   : > { %6909 = vmatpush3.msra.mxu1 %v8343_v60  ;;  %5932 = vmatprep.subr.mxu0 %v9338_v37  ;;  %v9353_v60 = vld [vmem:[%s7915_s20 + $0xb58] sm:$0xff]  ;;  %v9358_v37 = vld [vmem:[%s7915_s20 + $0xbd0] sm:$0xff] }
 0x1b2   : > { %6910 = vmatprep.subr.mxu1 %v11519_v61  ;;  %5933 = vmatpush3.msra.mxu0 %v9343_v57  ;;  %11522 = vst [vmem:[#allocation128_spill] sm:$0xff] %v9358_v37 }
 0x1b3   : > { %6911 = vmatpush3.msra.mxu1 %v8350_v63  ;;  %5934 = vmatprep.subr.mxu0 %v9348_v48  ;;  %v9363_v63 = vld [vmem:[%s7915_s20 + $0xb50] sm:$0xff]  ;;  %v9368_v48 = vld [vmem:[%s7915_s20 + $0xbc8] sm:$0xff] }
 0x1b4   : > { %6912 = vmatprep.subr.mxu1 %v11519_v61  ;;  %5935 = vmatpush3.msra.mxu0 %v9353_v60  ;;  %11523 = vst [vmem:[#allocation129_spill] sm:$0xff] %v9368_v48 }
 0x1b5   : > { %6913 = vmatpush3.msra.mxu1 %v8357_v2  ;;  %5936 = vmatprep.subr.mxu0 %v9358_v37  ;;  %v9373_v2 = vld [vmem:[%s7915_s20 + $0xb48] sm:$0xff]  ;;  %v9378_v37 = vld [vmem:[%s7915_s20 + $0xbc0] sm:$0xff] }
 0x1b6   : > { %6914 = vmatprep.subr.mxu1 %v11519_v61  ;;  %5937 = vmatpush3.msra.mxu0 %v9363_v63  ;;  %11524 = vst [vmem:[#allocation130_spill] sm:$0xff] %v9378_v37 }
 0x1b7   : > { %6915 = vmatpush3.msra.mxu1 %v8364_v5  ;;  %5938 = vmatprep.subr.mxu0 %v9368_v48  ;;  %v9383_v5 = vld [vmem:[%s7915_s20 + $0xb40] sm:$0xff]  ;;  %v9388_v48 = vld [vmem:[%s7915_s20 + $0xbb8] sm:$0xff] }
 0x1b8   : > { %6916 = vmatprep.subr.mxu1 %v11519_v61  ;;  %5939 = vmatpush3.msra.mxu0 %v9373_v2  ;;  %11525 = vst [vmem:[#allocation131_spill] sm:$0xff] %v9383_v5  ;;  %11526 = vst [vmem:[#allocation132_spill] sm:$0xff] %v9388_v48 }
 0x1b9   : > { %6917 = vmatpush3.msra.mxu1 %v8371_v8  ;;  %5940 = vmatprep.subr.mxu0 %v9378_v37  ;;  %v9393_v8 = vld [vmem:[%s7915_s20 + $0xb38] sm:$0xff]  ;;  %v9398_v37 = vld [vmem:[%s7915_s20 + $0xbb0] sm:$0xff] }
 0x1ba   : > { %6918 = vmatprep.subr.mxu1 %v11519_v61  ;;  %5941 = vmatpush3.msra.mxu0 %v9383_v5  ;;  %11527 = vst [vmem:[#allocation133_spill] sm:$0xff] %v9393_v8  ;;  %11528 = vst [vmem:[#allocation134_spill] sm:$0xff] %v9398_v37  ;;  %v9428_v5 = vld [vmem:[%s7915_s20 + $0xb20] sm:$0xff] }
 0x1bb   : > { %6919 = vmatpush3.msra.mxu1 %v8378_v11  ;;  %5942 = vmatprep.subr.mxu0 %v9388_v48  ;;  %v9403_v11 = vld [vmem:[%s7915_s20 + $0xb30] sm:$0xff]  ;;  %v1824_v48 = vcombine.high %v9254_v53, %v9254_v53 }
 0x1bc   : > { %6920 = vmatprep.subr.mxu1 %v11519_v61  ;;  %5943 = vmatpush3.msra.mxu0 %v9393_v8  ;;  %11529 = vst [vmem:[#allocation135_spill] sm:$0xff] %v9403_v11  ;;  %v9410_v8 = vld [vmem:[%s7915_s20 + $0xba8] sm:$0xff] }
 0x1bd   : > { %6921 = vmatpush3.msra.mxu1 %v8385_v14  ;;  %5944 = vmatprep.subr.mxu0 %v9398_v37  ;;  %11530 = vst [vmem:[#allocation136_spill] sm:$0xff] %v9410_v8  ;;  %v9415_v37 = vld [vmem:[%s7915_s20 + $0xb28] sm:$0xff] }
 0x1be   : > { %6922 = vmatprep.subr.mxu1 %v11519_v61  ;;  %5945 = vmatpush3.msra.mxu0 %v9403_v11  ;;  %v9423_v11 = vld [vmem:[%s7915_s20 + $0xba0] sm:$0xff] }
 0x1bf   : > { %6923 = vmatpush3.msra.mxu1 %v8392_v17  ;;  %5946 = vmatprep.subr.mxu0 %v9410_v8 }
 0x1c0   : > { %6924 = vmatprep.subr.mxu1 %v11519_v61  ;;  %v1728_v14 = vpop.f32.mrf.mxu0  ;;  %5947 = vmatpush3.msra.mxu0 %v9415_v37 }
 0x1c1   : > { %6925 = vmatpush3.msra.mxu1 %v8399_v20  ;;  %v9420_v17 = vadd.f32 %v1728_v14, %v9285_v41  ;;  %5948 = vmatprep.subr.mxu0 %v9423_v11  ;;  %v1838_v20 = vrot.slane %v1824_v48, %v7972_v51  ;;  %v9434_v41 = vld [vmem:[%s7915_s20 + $0xb98] sm:$0xff]  ;;  %v9451_v48 = vld [vmem:[%s7915_s20 + $0xb10] sm:$0xff] }
 0x1c2   : > { %6926 = vmatprep.subr.mxu1 %v11519_v61  ;;  %v6903_v53 = vpop.f32.mrf.mxu0  ;;  %v5573_v8 = vpop.f32.mrf.mxu1  ;;  %5949 = vmatpush3.msra.mxu0 %v9428_v5  ;;  %11532 = vst [vmem:[#allocation138_spill] sm:$0xff] %v9434_v41 }
 0x1c3   : > { %11531 = vst [vmem:[#allocation137_spill] sm:$0xff] %v9420_v17  ;;  %6927 = vmatpush3.msra.mxu1 %v8406_v23  ;;  %5950 = vmatprep.subr.mxu0 %v9434_v41  ;;  %v9439_v53 = vld [vmem:[%s7915_s20 + $0xb18] sm:$0xff]  ;;  %v9446_v23 = vld [vmem:[%s7915_s20 + $0xb90] sm:$0xff]  ;;  %v9456_v41 = vld [vmem:[%s7915_s20 + $0xb88] sm:$0xff] }
 0x1c4   : > { %6928 = vmatprep.subr.mxu1 %v11519_v61  ;;  %v5574_v14 = vpop.f32.mrf.mxu1  ;;  %11533 = vst [vmem:[#allocation139_spill] sm:$0xff] %v9439_v53  ;;  %5951 = vmatpush3.msra.mxu0 %v9439_v53  ;;  %v1840_v53 = vcombine.high %v1838_v20, %v1838_v20 }
 0x1c5   : > { %6929 = vmatpush3.msra.mxu1 %v8413_v28  ;;  %v9443_v17 = vadd.f32 %v5574_v14, %v5573_v8  ;;  %5952 = vmatprep.subr.mxu0 %v9446_v23  ;;  %v9461_v28 = vld [vmem:[%s7915_s20 + $0xb08] sm:$0xff]  ;;  %v9466_v8 = vld [vmem:[%s7915_s20 + $0xb80] sm:$0xff] }
 0x1c6   : > { %6930 = vmatprep.subr.mxu1 %v11519_v61  ;;  %5953 = vmatpush3.msra.mxu0 %v9451_v48  ;;  %v5098_v14 = vld.sshfl [vmem:[%s7965_s24 + $0x62] sm:$0x3 pattern:$0x76325410] }
 0x1c7   : > { %6931 = vmatpush3.msra.mxu1 %v8423_v34  ;;  %5954 = vmatprep.subr.mxu0 %v9456_v41  ;;  %v9471_v34 = vld [vmem:[%s7915_s20 + $0xb00] sm:$0xff] }
 0x1c8   : > { %6932 = vmatprep.subr.mxu1 %v11519_v61  ;;  %5955 = vmatpush3.msra.mxu0 %v9461_v28  ;;  %11534 = vst [vmem:[#allocation140_spill] sm:$0xff] %v9471_v34 }
 0x1c9   : > { %6933 = vmatpush3.msra.mxu1 %v8432_v40  ;;  %5956 = vmatprep.subr.mxu0 %v9466_v8  ;;  %v9479_v40 = vld [vmem:[%s7915_s20 + $0xf8] sm:$0xff] }
 0x1ca   : > { %6934 = vmatprep.subr.mxu1 %v11519_v61  ;;  %5957 = vmatpush3.msra.mxu0 %v9471_v34  ;;  %v9484_v34 = vld [vmem:[%s7915_s20 + $0x78] sm:$0xff] }
 0x1cb   : > { %2707 = vmatprep.mubr.f32.mxu0 %v1840_v53  ;;  %6935 = vmatpush3.msra.mxu1 %v8441_v45  ;;  %v9489_v45 = vld [vmem:[%s7915_s20 + $0xf0] sm:$0xff] }
 0x1cc   : > { %2708 = vmatmul.mubr.f32.vlgmr.msra.gmra.mxu0 %v1838_v20  ;;  %6936 = vmatprep.mubr.msk.f32.mxu1 %vm7875_vm0, %v11519_v61  ;;  %v9494_v20 = vld [vmem:[%s7915_s20 + $0x70] sm:$0xff] }
 0x1cd   : > { %5978 = vmatprep.subr.mxu0 %v9479_v40  ;;  %6013 = vmatprep.subr.mxu1 %v8453_v52  ;;  %v9499_v52 = vld [vmem:[%s7915_s20 + $0xe8] sm:$0xff]  ;;  %v9570_v53 = vld [vmem:[%s7915_s20 + $0xb0] sm:$0xff] }
 0x1ce   : > { %6937 = vmatmul.mubr.f32.vlgmr.msra.gmra.mxu1 %v5098_v14  ;;  %5979 = vmatpush3.msra.mxu0 %v9484_v34  ;;  %11536 = vst [vmem:[#allocation142_spill] sm:$0xff] %v9570_v53 }
 0x1cf   : > { %6014 = vmatpush3.msra.mxu1 %v8458_v56  ;;  %5980 = vmatprep.subr.mxu0 %v9489_v45  ;;  %v9504_v56 = vld [vmem:[%s7915_s20 + $0x68] sm:$0xff] }
 0x1d0   : > { %6015 = vmatprep.subr.mxu1 %v8463_v59  ;;  %5981 = vmatpush3.msra.mxu0 %v9494_v20  ;;  %v9509_v59 = vld [vmem:[%s7915_s20 + $0xe0] sm:$0xff] }
 0x1d1   : > { %6016 = vmatpush3.msra.mxu1 %v8468_v62  ;;  %5982 = vmatprep.subr.mxu0 %v9499_v52  ;;  %v9514_v62 = vld [vmem:[%s7915_s20 + $0x60] sm:$0xff] }
 0x1d2   : > { %6017 = vmatprep.subr.mxu1 %v8473_v1  ;;  %5983 = vmatpush3.msra.mxu0 %v9504_v56  ;;  %v9519_v1 = vld [vmem:[%s7915_s20 + $0xd8] sm:$0xff] }
 0x1d3   : > { %6018 = vmatpush3.msra.mxu1 %v8478_v4  ;;  %5984 = vmatprep.subr.mxu0 %v9509_v59  ;;  %v9524_v4 = vld [vmem:[%s7915_s20 + $0x58] sm:$0xff] }
 0x1d4   : > { %6019 = vmatprep.subr.mxu1 %v8483_v7  ;;  %5985 = vmatpush3.msra.mxu0 %v9514_v62  ;;  %v9529_v7 = vld [vmem:[%s7915_s20 + $0xd0] sm:$0xff] }
 0x1d5   : > { %6020 = vmatpush3.msra.mxu1 %v8488_v10  ;;  %5986 = vmatprep.subr.mxu0 %v9519_v1  ;;  %v9534_v10 = vld [vmem:[%s7915_s20 + $0x50] sm:$0xff] }
 0x1d6   : > { %6021 = vmatprep.subr.mxu1 %v8493_v13  ;;  %5987 = vmatpush3.msra.mxu0 %v9524_v4  ;;  %v9539_v13 = vld [vmem:[%s7915_s20 + $0xc8] sm:$0xff] }
 0x1d7   : > { %6022 = vmatpush3.msra.mxu1 %v8498_v16  ;;  %5988 = vmatprep.subr.mxu0 %v9529_v7  ;;  %v9544_v16 = vld [vmem:[%s7915_s20 + $0x48] sm:$0xff] }
 0x1d8   : > { %6023 = vmatprep.subr.mxu1 %v8503_v19  ;;  %5989 = vmatpush3.msra.mxu0 %v9534_v10  ;;  %v9549_v19 = vld [vmem:[%s7915_s20 + $0xc0] sm:$0xff] }
 0x1d9   : > { %6024 = vmatpush3.msra.mxu1 %v8508_v22  ;;  %5990 = vmatprep.subr.mxu0 %v9539_v13  ;;  %v9554_v22 = vld [vmem:[%s7915_s20 + $0x40] sm:$0xff] }
 0x1da   : > { %6025 = vmatprep.subr.mxu1 %v8513_v25  ;;  %5991 = vmatpush3.msra.mxu0 %v9544_v16  ;;  %v9559_v25 = vld [vmem:[%s7915_s20 + $0xb8] sm:$0xff] }
 0x1db   : > { %6026 = vmatpush3.msra.mxu1 %v8518_v27  ;;  %5992 = vmatprep.subr.mxu0 %v9549_v19  ;;  %v9564_v27 = vld [vmem:[%s7915_s20 + $0x38] sm:$0xff] }
 0x1dc   : > { %6027 = vmatprep.subr.mxu1 %v8523_v31  ;;  %5993 = vmatpush3.msra.mxu0 %v9554_v22  ;;  %11535 = vst [vmem:[#allocation141_spill] sm:$0xff] %v9564_v27  ;;  %v267_v31 = vld [vmem:[%s7965_s24 + $0x64] sm:$0xff] }
 0x1dd   : > { %6028 = vmatpush3.msra.mxu1 %v8528_v33  ;;  %5994 = vmatprep.subr.mxu0 %v9559_v25  ;;  %v9575_v33 = vld [vmem:[%s7915_s20 + $0x30] sm:$0xff] }
 0x1de   : > { %6029 = vmatprep.subr.mxu1 %v8533_v36  ;;  %5995 = vmatpush3.msra.mxu0 %v9564_v27  ;;  %11537 = vst [vmem:[#allocation143_spill] sm:$0xff] %v9575_v33  ;;  %v9580_v36 = vld [vmem:[%s7915_s20 + $0xa8] sm:$0xff] }
 0x1df   : > { %6030 = vmatpush3.msra.mxu1 %v8538_v38  ;;  %5996 = vmatprep.subr.mxu0 %v9570_v53  ;;  %11538 = vst [vmem:[#allocation144_spill] sm:$0xff] %v9580_v36  ;;  %v2791_v38 = vcombine.high %v267_v31, %v267_v31  ;;  %v9585_v27 = vld [vmem:[%s7915_s20 + $0x28] sm:$0xff]  ;;  %v9607_v53 = vld [vmem:[%s7915_s20 + $0x18] sm:$0xff] }
 0x1e0   : > { %6031 = vmatprep.subr.mxu1 %v8543_v43  ;;  %5997 = vmatpush3.msra.mxu0 %v9575_v33  ;;  %11539 = vst [vmem:[#allocation145_spill] sm:$0xff] %v9585_v27  ;;  %v9590_v43 = vld [vmem:[%s7915_s20 + $0xa0] sm:$0xff]  ;;  %v9601_v33 = vld [vmem:[%s7915_s20 + $0x98] sm:$0xff] }
 0x1e1   : > { %6032 = vmatpush3.msra.mxu1 %v8548_v46  ;;  %5998 = vmatprep.subr.mxu0 %v9580_v36  ;;  %11540 = vst [vmem:[#allocation146_spill] sm:$0xff] %v9590_v43 }
 0x1e2   : > { %6033 = vmatprep.subr.mxu1 %v8555_v49  ;;  %v5608_v14 = vpop.f32.mrf.mxu0  ;;  %5999 = vmatpush3.msra.mxu0 %v9585_v27  ;;  %v9595_v49 = vld [vmem:[%s7915_s20 + $0x20] sm:$0xff]  ;;  %v2798_v27 = vrot.slane %v267_v31, %v7972_v51 }
 0x1e3   : > { %6034 = vmatpush3.msra.mxu1 %v8560_v58  ;;  %6000 = vmatprep.subr.mxu0 %v9590_v43 }
 0x1e4   : > { %6035 = vmatprep.subr.mxu1 %v8565_v0  ;;  %v5609_v46 = vpop.f32.mrf.mxu0  ;;  %v5643_v36 = vpop.f32.mrf.mxu1  ;;  %6001 = vmatpush3.msra.mxu0 %v9595_v49  ;;  %v2805_v0 = vrot.slane %v2791_v38, %v7972_v51  ;;  %v2806_v38 = vcombine.high %v2798_v27, %v2798_v27 }
 0x1e5   : > { %6036 = vmatpush3.msra.mxu1 %v8573_v12  ;;  %v5610_v58 = vadd.f32 %v5609_v46, %v5608_v14  ;;  %6002 = vmatprep.subr.mxu0 %v9601_v33  ;;  %v9613_v14 = vld [vmem:[%s7915_s20 + $0x90] sm:$0xff] }
 0x1e6   : > { %6037 = vmatprep.subr.mxu1 %v8579_v24  ;;  %v5644_v43 = vpop.f32.mrf.mxu1  ;;  %6003 = vmatpush3.msra.mxu0 %v9607_v53  ;;  %v9618_v24 = vld [vmem:[%s7915_s20 + $0x10] sm:$0xff] }
 0x1e7   : > { %6038 = vmatpush3.msra.mxu1 %v8584_v32  ;;  %v2010_v12 = vadd.f32 %v5610_v58, %v9443_v17  ;;  %v5645_v31 = vadd.f32 %v5644_v43, %v5643_v36  ;;  %6004 = vmatprep.subr.mxu0 %v9613_v14  ;;  %v9625_v32 = vld [vmem:[%s7915_s20 + $0x88] sm:$0xff]  ;;  %v2807_v17 = vcombine.high %v2805_v0, %v2805_v0  ;;  %v9660_v43 = vld [vmem:[%s7915_s20 + $0x270] sm:$0xff] }
 0x1e8   : > { %6039 = vmatprep.subr.mxu1 %v8592_v47  ;;  %6005 = vmatpush3.msra.mxu0 %v9618_v24  ;;  %v9630_v36 = vld [vmem:[%s7915_s20 + $0x8] sm:$0xff]  ;;  %v9635_v47 = vld [vmem:[%s7915_s20 + $0x80] sm:$0xff] }
 0x1e9   : > { %6040 = vmatpush3.msra.mxu1 %v8597_v50  ;;  %v9622_v46 = vadd.f32 %v5645_v31, %v2010_v12  ;;  %6006 = vmatprep.subr.mxu0 %v9625_v32  ;;  %v9640_v50 = vld [vmem:[%s7915_s20] sm:$0xff]  ;;  %v9665_v58 = vld [vmem:[%s7915_s20 + $0x2e8] sm:$0xff] }
 0x1ea   : > { %6041 = vmatprep.subr.mxu1 %v8604_v29  ;;  %6007 = vmatpush3.msra.mxu0 %v9630_v36  ;;  %11541 = vst [vmem:[#allocation147_spill] sm:$0xff] %v9640_v50  ;;  %v9645_v29 = vld [vmem:[%s7915_s20 + $0x2f8] sm:$0xff]  ;;  %v9670_v12 = vld [vmem:[%s7915_s20 + $0x268] sm:$0xff] }
 0x1eb   : > { %6042 = vmatpush3.msra.mxu1 %v8609_v9  ;;  %6008 = vmatprep.subr.mxu0 %v9635_v47  ;;  %11542 = vst [vmem:[#allocation148_spill] sm:$0xff] %v9645_v29  ;;  %v9650_v9 = vld [vmem:[%s7915_s20 + $0x278] sm:$0xff]  ;;  %v11552_v31 = vld [vmem:[#allocation7_spill] sm:$0xff] }
 0x1ec   : > { %6043 = vmatprep.subr.mxu1 %v8614_v26  ;;  %6009 = vmatpush3.msra.mxu0 %v9640_v50  ;;  %11543 = vst [vmem:[#allocation149_spill] sm:$0xff] %v9650_v9  ;;  %v11544_v26 = vld [vmem:[#allocation3_spill] sm:$0xff] }
 0x1ed   : > { %2989 = vmatprep.mubr.f32.mxu0 %v2806_v38  ;;  %6044 = vmatpush3.msra.mxu1 %v8619_v35  ;;  %v9655_v35 = vld [vmem:[%s7915_s20 + $0x2f0] sm:$0xff]  ;;  %v9675_v38 = vld [vmem:[%s7915_s20 + $0x2e0] sm:$0xff]  ;;  %v11592_v50 = vld [vmem:[#allocation27_spill] sm:$0xff] }
 0x1ee   : > { %3059 = vmatprep.mubr.f32.mxu1 %v2807_v17  ;;  %2990 = vmatmul.mubr.f32.vlgmr.msra.gmra.mxu0 %v2798_v27  ;;  %11545 = vst [vmem:[#allocation3_spill] sm:$0xff] %v9655_v35  ;;  %v11546_v27 = vld [vmem:[#allocation4_spill] sm:$0xff]  ;;  %11553 = vst [vmem:[#allocation7_spill] sm:$0xff] %v9675_v38 }
 0x1ef   : > { %3060 = vmatmul.mubr.f32.vlgmr.msra.gmra.mxu1 %v2805_v0  ;;  %6048 = vmatprep.subr.mxu0 %v9645_v29  ;;  %11547 = vst [vmem:[#allocation4_spill] sm:$0xff] %v9660_v43  ;;  %v11550_v0 = vld [vmem:[#allocation6_spill] sm:$0xff]  ;;  %v11554_v17 = vld [vmem:[#allocation8_spill] sm:$0xff]  ;;  %v9772_v29 = vld [vmem:[%s7915_s20 + $0x218] sm:$0xff] }
 0x1f0   : > { %6083 = vmatprep.subr.mxu1 %v8624_v44  ;;  %6049 = vmatpush3.msra.mxu0 %v9650_v9  ;;  %v11548_v44 = vld [vmem:[#allocation5_spill] sm:$0xff]  ;;  %11551 = vst [vmem:[#allocation6_spill] sm:$0xff] %v9670_v12 }
 0x1f1   : > { %6084 = vmatpush3.msra.mxu1 %v11544_v26  ;;  %6050 = vmatprep.subr.mxu0 %v9655_v35  ;;  %11549 = vst [vmem:[#allocation5_spill] sm:$0xff] %v9665_v58  ;;  %v9680_v26 = vld [vmem:[%s7915_s20 + $0x260] sm:$0xff]  ;;  %v11588_v9 = vld [vmem:[#allocation25_spill] sm:$0xff] }
 0x1f2   : > { %6085 = vmatprep.subr.mxu1 %v11546_v27  ;;  %6051 = vmatpush3.msra.mxu0 %v9660_v43  ;;  %11555 = vst [vmem:[#allocation8_spill] sm:$0xff] %v9680_v26  ;;  %v11556_v27 = vld [vmem:[#allocation9_spill] sm:$0xff]  ;;  %v9757_v43 = vld [vmem:[%s7915_s20 + $0x2a0] sm:$0xff] }
 0x1f3   : > { %6086 = vmatpush3.msra.mxu1 %v11548_v44  ;;  %6052 = vmatprep.subr.mxu0 %v9665_v58  ;;  %v9685_v44 = vld [vmem:[%s7915_s20 + $0x2d8] sm:$0xff]  ;;  %v9762_v35 = vld [vmem:[%s7915_s20 + $0x220] sm:$0xff] }
 0x1f4   : > { %6087 = vmatprep.subr.mxu1 %v11550_v0  ;;  %6053 = vmatpush3.msra.mxu0 %v9670_v12  ;;  %11557 = vst [vmem:[#allocation9_spill] sm:$0xff] %v9685_v44  ;;  %v11558_v0 = vld [vmem:[#allocation10_spill] sm:$0xff]  ;;  %v9736_v12 = vld [vmem:[%s7915_s20 + $0x2b0] sm:$0xff] }
 0x1f5   : > { %6088 = vmatpush3.msra.mxu1 %v11552_v31  ;;  %6054 = vmatprep.subr.mxu0 %v9675_v38  ;;  %v9690_v31 = vld [vmem:[%s7915_s20 + $0x258] sm:$0xff]  ;;  %v9695_v38 = vld [vmem:[%s7915_s20 + $0x2d0] sm:$0xff] }
 0x1f6   : > { %6089 = vmatprep.subr.mxu1 %v11554_v17  ;;  %6055 = vmatpush3.msra.mxu0 %v9680_v26  ;;  %11559 = vst [vmem:[#allocation10_spill] sm:$0xff] %v9690_v31  ;;  %v11560_v17 = vld [vmem:[#allocation11_spill] sm:$0xff]  ;;  %v9700_v26 = vld [vmem:[%s7915_s20 + $0x250] sm:$0xff] }
 0x1f7   : > { %6090 = vmatpush3.msra.mxu1 %v11556_v27  ;;  %6056 = vmatprep.subr.mxu0 %v9685_v44  ;;  %11561 = vst [vmem:[#allocation11_spill] sm:$0xff] %v9695_v38  ;;  %v11562_v27 = vld [vmem:[#allocation12_spill] sm:$0xff]  ;;  %v9705_v44 = vld [vmem:[%s7915_s20 + $0x2c8] sm:$0xff] }
 0x1f8   : > { %6091 = vmatprep.subr.mxu1 %v11558_v0  ;;  %6057 = vmatpush3.msra.mxu0 %v9690_v31  ;;  %11563 = vst [vmem:[#allocation12_spill] sm:$0xff] %v9700_v26  ;;  %v11564_v0 = vld [vmem:[#allocation13_spill] sm:$0xff]  ;;  %v9710_v31 = vld [vmem:[%s7915_s20 + $0x248] sm:$0xff] }
 0x1f9   : > { %6092 = vmatpush3.msra.mxu1 %v11560_v17  ;;  %6058 = vmatprep.subr.mxu0 %v9695_v38  ;;  %11565 = vst [vmem:[#allocation13_spill] sm:$0xff] %v9705_v44  ;;  %v11566_v17 = vld [vmem:[#allocation14_spill] sm:$0xff] }
 0x1fa   : > { %6093 = vmatprep.subr.mxu1 %v11562_v27  ;;  %6059 = vmatpush3.msra.mxu0 %v9700_v26  ;;  %11567 = vst [vmem:[#allocation14_spill] sm:$0xff] %v9710_v31  ;;  %v11568_v27 = vld [vmem:[#allocation15_spill] sm:$0xff]  ;;  %v9715_v38 = vld [vmem:[%s7915_s20 + $0x2c0] sm:$0xff] }
 0x1fb   : > { %6094 = vmatpush3.msra.mxu1 %v11564_v0  ;;  %6060 = vmatprep.subr.mxu0 %v9705_v44  ;;  %11569 = vst [vmem:[#allocation15_spill] sm:$0xff] %v9715_v38  ;;  %v11570_v0 = vld [vmem:[#allocation16_spill] sm:$0xff]  ;;  %v9720_v26 = vld [vmem:[%s7915_s20 + $0x240] sm:$0xff]  ;;  %v9725_v44 = vld [vmem:[%s7915_s20 + $0x2b8] sm:$0xff] }
 0x1fc   : > { %6095 = vmatprep.subr.mxu1 %v11566_v17  ;;  %6061 = vmatpush3.msra.mxu0 %v9710_v31  ;;  %11571 = vst [vmem:[#allocation16_spill] sm:$0xff] %v9720_v26  ;;  %v11572_v17 = vld [vmem:[#allocation17_spill] sm:$0xff]  ;;  %v11574_v31 = vld [vmem:[#allocation18_spill] sm:$0xff] }
 0x1fd   : > { %6096 = vmatpush3.msra.mxu1 %v11568_v27  ;;  %6062 = vmatprep.subr.mxu0 %v9715_v38  ;;  %11573 = vst [vmem:[#allocation17_spill] sm:$0xff] %v9725_v44  ;;  %v9730_v27 = vld [vmem:[%s7915_s20 + $0x238] sm:$0xff]  ;;  %v11576_v38 = vld [vmem:[#allocation19_spill] sm:$0xff] }
 0x1fe   : > { %6097 = vmatprep.subr.mxu1 %v11570_v0  ;;  %6063 = vmatpush3.msra.mxu0 %v9720_v26  ;;  %11575 = vst [vmem:[#allocation18_spill] sm:$0xff] %v9730_v27  ;;  %v268_v0 = vld [vmem:[%s7965_s24 + $0x6c] sm:$0xff]  ;;  %11577 = vst [vmem:[#allocation19_spill] sm:$0xff] %v9736_v12 }
 0x1ff   : > { %6098 = vmatpush3.msra.mxu1 %v11572_v17  ;;  %6064 = vmatprep.subr.mxu0 %v9725_v44  ;;  %v11578_v17 = vld [vmem:[#allocation20_spill] sm:$0xff]  ;;  %v9746_v44 = vld [vmem:[%s7915_s20 + $0x2a8] sm:$0xff] }
 0x200   : > { %6099 = vmatprep.subr.mxu1 %v11574_v31  ;;  %6065 = vmatpush3.msra.mxu0 %v9730_v27  ;;  %v9741_v26 = vld [vmem:[%s7915_s20 + $0x230] sm:$0xff]  ;;  %v11580_v31 = vld [vmem:[#allocation21_spill] sm:$0xff]  ;;  %v2815_v27 = vrot.slane %v268_v0, %v7972_v51 }
 0x201   : > { %6100 = vmatpush3.msra.mxu1 %v11576_v38  ;;  %6066 = vmatprep.subr.mxu0 %v9736_v12  ;;  %11579 = vst [vmem:[#allocation20_spill] sm:$0xff] %v9741_v26  ;;  %11581 = vst [vmem:[#allocation21_spill] sm:$0xff] %v9746_v44  ;;  %v11582_v38 = vld [vmem:[#allocation22_spill] sm:$0xff]  ;;  %v9752_v12 = vld [vmem:[%s7915_s20 + $0x228] sm:$0xff] }
 0x202   : > { %6101 = vmatprep.subr.mxu1 %v11578_v17  ;;  %6067 = vmatpush3.msra.mxu0 %v9741_v26  ;;  %11583 = vst [vmem:[#allocation22_spill] sm:$0xff] %v9752_v12  ;;  %v11584_v17 = vld [vmem:[#allocation23_spill] sm:$0xff]  ;;  %v2808_v26 = vcombine.high %v268_v0, %v268_v0  ;;  %v11590_v0 = vld [vmem:[#allocation26_spill] sm:$0xff] }
 0x203   : > { %6102 = vmatpush3.msra.mxu1 %v11580_v31  ;;  %6068 = vmatprep.subr.mxu0 %v9746_v44  ;;  %11585 = vst [vmem:[#allocation23_spill] sm:$0xff] %v9757_v43  ;;  %v11586_v31 = vld [vmem:[#allocation24_spill] sm:$0xff]  ;;  %11591 = vst [vmem:[#allocation26_spill] sm:$0xff] %v9772_v29 }
 0x204   : > { %6103 = vmatprep.subr.mxu1 %v11582_v38  ;;  %v5678_v58 = vpop.f32.mrf.mxu0  ;;  %6069 = vmatpush3.msra.mxu0 %v9752_v12  ;;  %11587 = vst [vmem:[#allocation24_spill] sm:$0xff] %v9762_v35 }
 0x205   : > { %6104 = vmatpush3.msra.mxu1 %v11584_v17  ;;  %6070 = vmatprep.subr.mxu0 %v9757_v43  ;;  %v9767_v17 = vld [vmem:[%s7915_s20 + $0x298] sm:$0xff]  ;;  %v2823_v43 = vcombine.high %v2815_v27, %v2815_v27 }
 0x206   : > { %6105 = vmatprep.subr.mxu1 %v11586_v31  ;;  %v5679_v44 = vpop.f32.mrf.mxu0  ;;  %v5713_v38 = vpop.f32.mrf.mxu1  ;;  %6071 = vmatpush3.msra.mxu0 %v9762_v35  ;;  %11589 = vst [vmem:[#allocation25_spill] sm:$0xff] %v9767_v17  ;;  %v9779_v35 = vld [vmem:[%s7915_s20 + $0x290] sm:$0xff] }
 0x207   : > { %6106 = vmatpush3.msra.mxu1 %v11588_v9  ;;  %v5680_v12 = vadd.f32 %v5679_v44, %v5678_v58  ;;  %6072 = vmatprep.subr.mxu0 %v9767_v17  ;;  %v2822_v9 = vrot.slane %v2808_v26, %v7972_v51  ;;  %11593 = vst [vmem:[#allocation27_spill] sm:$0xff] %v9779_v35  ;;  %v9784_v17 = vld [vmem:[%s7915_s20 + $0x210] sm:$0xff]  ;;  %v9791_v26 = vld [vmem:[%s7915_s20 + $0x288] sm:$0xff] }
 0x208   : > { %6107 = vmatprep.subr.mxu1 %v11590_v0  ;;  %v5714_v31 = vpop.f32.mrf.mxu1  ;;  %6073 = vmatpush3.msra.mxu0 %v9772_v29  ;;  %v11594_v0 = vld [vmem:[#allocation28_spill] sm:$0xff]  ;;  %v11596_v29 = vld [vmem:[#allocation29_spill] sm:$0xff] }
 0x209   : > { %6108 = vmatpush3.msra.mxu1 %v11592_v50  ;;  %v2150_v58 = vadd.f32 %v5680_v12, %v9622_v46  ;;  %v5715_v44 = vadd.f32 %v5714_v31, %v5713_v38  ;;  %6074 = vmatprep.subr.mxu0 %v9779_v35  ;;  %11595 = vst [vmem:[#allocation28_spill] sm:$0xff] %v9784_v17  ;;  %11597 = vst [vmem:[#allocation29_spill] sm:$0xff] %v9791_v26  ;;  %v11598_v46 = vld [vmem:[#allocation30_spill] sm:$0xff]  ;;  %v9796_v12 = vld [vmem:[%s7915_s20 + $0x208] sm:$0xff] }
 0x20a   : > { %6109 = vmatprep.subr.mxu1 %v11594_v0  ;;  %6075 = vmatpush3.msra.mxu0 %v9784_v17  ;;  %11599 = vst [vmem:[#allocation30_spill] sm:$0xff] %v9796_v12  ;;  %v2824_v38 = vcombine.high %v2822_v9, %v2822_v9  ;;  %v9800_v31 = vld [vmem:[%s7915_s20 + $0x280] sm:$0xff]  ;;  %v9810_v0 = vld [vmem:[%s7915_s20 + $0x4f8] sm:$0xff]  ;;  %v9953_v35 = vld [vmem:[%s7915_s20 + $0x488] sm:$0xff] }
 0x20b   : > { %6110 = vmatpush3.msra.mxu1 %v11596_v29  ;;  %v9788_v50 = vadd.f32 %v5715_v44, %v2150_v58  ;;  %6076 = vmatprep.subr.mxu0 %v9791_v26  ;;  %11600 = vst [vmem:[#allocation150_spill] sm:$0xff] %v9800_v31  ;;  %v11601_v29 = vld [vmem:[#allocation31_spill] sm:$0xff]  ;;  %v9805_v58 = vld [vmem:[%s7915_s20 + $0x200] sm:$0xff]  ;;  %v11603_v44 = vld [vmem:[#allocation32_spill] sm:$0xff] }
 0x20c   : > { %6111 = vmatprep.subr.mxu1 %v11598_v46  ;;  %6077 = vmatpush3.msra.mxu0 %v9796_v12  ;;  %11602 = vst [vmem:[#allocation31_spill] sm:$0xff] %v9805_v58  ;;  %11604 = vst [vmem:[#allocation32_spill] sm:$0xff] %v9810_v0  ;;  %v9815_v46 = vld [vmem:[%s7915_s20 + $0x478] sm:$0xff]  ;;  %v11656_v17 = vld [vmem:[#allocation58_spill] sm:$0xff] }
 0x20d   : > { %3129 = vmatprep.mubr.f32.mxu0 %v2823_v43  ;;  %6078 = vmatprep.subr.mxu0 %v9800_v31  ;;  %v11605_v43 = vld [vmem:[#allocation33_spill] sm:$0xff] }
 0x20e   : > { %6112 = vmatpush3.msra.mxu1 %v11601_v29  ;;  %6079 = vmatpush3.msra.mxu0 %v9805_v58  ;;  %11606 = vst [vmem:[#allocation33_spill] sm:$0xff] %v9815_v46  ;;  %v9819_v29 = vld [vmem:[%s7915_s20 + $0x4f0] sm:$0xff]  ;;  %v9920_v58 = vld [vmem:[%s7915_s20 + $0x4a0] sm:$0xff]  ;;  %v9931_v12 = vld [vmem:[%s7915_s20 + $0x498] sm:$0xff] }
 0x20f   : > { %6113 = vmatprep.subr.mxu1 %v11603_v44  ;;  %3130 = vmatmul.mubr.f32.vlgmr.msra.gmra.mxu0 %v2815_v27  ;;  %11607 = vst [vmem:[#allocation151_spill] sm:$0xff] %v9819_v29  ;;  %v11608_v27 = vld [vmem:[#allocation34_spill] sm:$0xff]  ;;  %v9824_v44 = vld [vmem:[%s7915_s20 + $0x470] sm:$0xff]  ;;  %v9936_v26 = vld [vmem:[%s7915_s20 + $0x418] sm:$0xff] }
 0x210   : > { %6118 = vmatprep.subr.mxu0 %v9810_v0  ;;  %6114 = vmatpush3.msra.mxu1 %v11605_v43  ;;  %11609 = vst [vmem:[#allocation34_spill] sm:$0xff] %v9824_v44  ;;  %v11610_v43 = vld [vmem:[#allocation35_spill] sm:$0xff] }
 0x211   : > { %3199 = vmatprep.mubr.f32.mxu1 %v2824_v38  ;;  %6119 = vmatpush3.msra.mxu0 %v9815_v46  ;;  %v9829_v38 = vld [vmem:[%s7915_s20 + $0x4e8] sm:$0xff] }
 0x212   : > { %3200 = vmatmul.mubr.f32.vlgmr.msra.gmra.mxu1 %v2822_v9  ;;  %6120 = vmatprep.subr.mxu0 %v9819_v29  ;;  %11611 = vst [vmem:[#allocation35_spill] sm:$0xff] %v9829_v38  ;;  %v11612_v9 = vld [vmem:[#allocation36_spill] sm:$0xff]  ;;  %v9834_v46 = vld [vmem:[%s7915_s20 + $0x468] sm:$0xff]  ;;  %v9839_v29 = vld [vmem:[%s7915_s20 + $0x4e0] sm:$0xff] }
 0x213   : > { %6153 = vmatprep.subr.mxu1 %v11608_v27  ;;  %6121 = vmatpush3.msra.mxu0 %v9824_v44  ;;  %11613 = vst [vmem:[#allocation36_spill] sm:$0xff] %v9834_v46  ;;  %v11614_v27 = vld [vmem:[#allocation37_spill] sm:$0xff]  ;;  %v9844_v44 = vld [vmem:[%s7915_s20 + $0x460] sm:$0xff]  ;;  %v9910_v0 = vld [vmem:[%s7915_s20 + $0x4a8] sm:$0xff] }
 0x214   : > { %6154 = vmatpush3.msra.mxu1 %v11610_v43  ;;  %6122 = vmatprep.subr.mxu0 %v9829_v38  ;;  %11615 = vst [vmem:[#allocation37_spill] sm:$0xff] %v9839_v29  ;;  %v11616_v43 = vld [vmem:[#allocation38_spill] sm:$0xff]  ;;  %v9849_v38 = vld [vmem:[%s7915_s20 + $0x4d8] sm:$0xff] }
 0x215   : > { %6155 = vmatprep.subr.mxu1 %v11612_v9  ;;  %6123 = vmatpush3.msra.mxu0 %v9834_v46  ;;  %11617 = vst [vmem:[#allocation38_spill] sm:$0xff] %v9844_v44  ;;  %v11618_v9 = vld [vmem:[#allocation39_spill] sm:$0xff]  ;;  %v9854_v46 = vld [vmem:[%s7915_s20 + $0x458] sm:$0xff] }
 0x216   : > { %6156 = vmatpush3.msra.mxu1 %v11614_v27  ;;  %6124 = vmatprep.subr.mxu0 %v9839_v29  ;;  %11619 = vst [vmem:[#allocation39_spill] sm:$0xff] %v9849_v38  ;;  %v11620_v27 = vld [vmem:[#allocation40_spill] sm:$0xff] }
 0x217   : > { %6157 = vmatprep.subr.mxu1 %v11616_v43  ;;  %6125 = vmatpush3.msra.mxu0 %v9844_v44  ;;  %11621 = vst [vmem:[#allocation40_spill] sm:$0xff] %v9854_v46  ;;  %v11622_v43 = vld [vmem:[#allocation41_spill] sm:$0xff]  ;;  %v9859_v29 = vld [vmem:[%s7915_s20 + $0x4d0] sm:$0xff] }
 0x218   : > { %6158 = vmatpush3.msra.mxu1 %v11618_v9  ;;  %6126 = vmatprep.subr.mxu0 %v9849_v38  ;;  %11623 = vst [vmem:[#allocation41_spill] sm:$0xff] %v9859_v29  ;;  %v11624_v9 = vld [vmem:[#allocation42_spill] sm:$0xff]  ;;  %v9864_v44 = vld [vmem:[%s7915_s20 + $0x450] sm:$0xff]  ;;  %v9869_v38 = vld [vmem:[%s7915_s20 + $0x4c8] sm:$0xff] }
 0x219   : > { %6159 = vmatprep.subr.mxu1 %v11620_v27  ;;  %6127 = vmatpush3.msra.mxu0 %v9854_v46  ;;  %11625 = vst [vmem:[#allocation42_spill] sm:$0xff] %v9864_v44  ;;  %v11626_v27 = vld [vmem:[#allocation43_spill] sm:$0xff] }
 0x21a   : > { %6160 = vmatpush3.msra.mxu1 %v11622_v43  ;;  %6128 = vmatprep.subr.mxu0 %v9859_v29  ;;  %11627 = vst [vmem:[#allocation43_spill] sm:$0xff] %v9869_v38  ;;  %v11628_v43 = vld [vmem:[#allocation44_spill] sm:$0xff]  ;;  %v9874_v46 = vld [vmem:[%s7915_s20 + $0x448] sm:$0xff]  ;;  %v9879_v29 = vld [vmem:[%s7915_s20 + $0x4c0] sm:$0xff] }
 0x21b   : > { %6161 = vmatprep.subr.mxu1 %v11624_v9  ;;  %6129 = vmatpush3.msra.mxu0 %v9864_v44  ;;  %11629 = vst [vmem:[#allocation44_spill] sm:$0xff] %v9874_v46  ;;  %v11630_v9 = vld [vmem:[#allocation45_spill] sm:$0xff]  ;;  %v9884_v44 = vld [vmem:[%s7915_s20 + $0x440] sm:$0xff] }
 0x21c   : > { %6162 = vmatpush3.msra.mxu1 %v11626_v27  ;;  %6130 = vmatprep.subr.mxu0 %v9869_v38  ;;  %11631 = vst [vmem:[#allocation45_spill] sm:$0xff] %v9879_v29  ;;  %v11632_v27 = vld [vmem:[#allocation46_spill] sm:$0xff]  ;;  %v9889_v38 = vld [vmem:[%s7915_s20 + $0x4b8] sm:$0xff] }
 0x21d   : > { %6163 = vmatprep.subr.mxu1 %v11628_v43  ;;  %6131 = vmatpush3.msra.mxu0 %v9874_v46  ;;  %11633 = vst [vmem:[#allocation46_spill] sm:$0xff] %v9884_v44  ;;  %v11634_v43 = vld [vmem:[#allocation47_spill] sm:$0xff]  ;;  %v9894_v46 = vld [vmem:[%s7915_s20 + $0x438] sm:$0xff] }
 0x21e   : > { %6164 = vmatpush3.msra.mxu1 %v11630_v9  ;;  %6132 = vmatprep.subr.mxu0 %v9879_v29  ;;  %11635 = vst [vmem:[#allocation47_spill] sm:$0xff] %v9889_v38  ;;  %v11636_v9 = vld [vmem:[#allocation48_spill] sm:$0xff] }
 0x21f   : > { %6165 = vmatprep.subr.mxu1 %v11632_v27  ;;  %6133 = vmatpush3.msra.mxu0 %v9884_v44  ;;  %11637 = vst [vmem:[#allocation48_spill] sm:$0xff] %v9894_v46  ;;  %v11638_v27 = vld [vmem:[#allocation49_spill] sm:$0xff]  ;;  %v9899_v29 = vld [vmem:[%s7915_s20 + $0x4b0] sm:$0xff]  ;;  %v11640_v44 = vld [vmem:[#allocation50_spill] sm:$0xff] }
 0x220   : > { %6166 = vmatpush3.msra.mxu1 %v11634_v43  ;;  %6134 = vmatprep.subr.mxu0 %v9889_v38  ;;  %11639 = vst [vmem:[#allocation49_spill] sm:$0xff] %v9899_v29  ;;  %v9904_v43 = vld [vmem:[%s7915_s20 + $0x430] sm:$0xff]  ;;  %v11642_v38 = vld [vmem:[#allocation51_spill] sm:$0xff] }
 0x221   : > { %6167 = vmatprep.subr.mxu1 %v11636_v9  ;;  %6135 = vmatpush3.msra.mxu0 %v9894_v46  ;;  %11641 = vst [vmem:[#allocation50_spill] sm:$0xff] %v9904_v43  ;;  %v269_v9 = vld [vmem:[%s7965_s24 + $0x74] sm:$0xff]  ;;  %11643 = vst [vmem:[#allocation51_spill] sm:$0xff] %v9910_v0 }
 0x222   : > { %6168 = vmatpush3.msra.mxu1 %v11638_v27  ;;  %6136 = vmatprep.subr.mxu0 %v9899_v29  ;;  %v11644_v46 = vld [vmem:[#allocation52_spill] sm:$0xff]  ;;  %v9915_v27 = vld [vmem:[%s7915_s20 + $0x428] sm:$0xff] }
 0x223   : > { %6169 = vmatprep.subr.mxu1 %v11640_v44  ;;  %6137 = vmatpush3.msra.mxu0 %v9904_v43  ;;  %11645 = vst [vmem:[#allocation52_spill] sm:$0xff] %v9915_v27  ;;  %v11646_v44 = vld [vmem:[#allocation53_spill] sm:$0xff]  ;;  %v2825_v43 = vcombine.high %v269_v9, %v269_v9 }
 0x224   : > { %6170 = vmatpush3.msra.mxu1 %v11642_v38  ;;  %6138 = vmatprep.subr.mxu0 %v9910_v0  ;;  %11647 = vst [vmem:[#allocation53_spill] sm:$0xff] %v9920_v58  ;;  %v11648_v38 = vld [vmem:[#allocation54_spill] sm:$0xff] }
 0x225   : > { %6171 = vmatprep.subr.mxu1 %v11644_v46  ;;  %6139 = vmatpush3.msra.mxu0 %v9915_v27  ;;  %v9925_v0 = vld [vmem:[%s7915_s20 + $0x420] sm:$0xff]  ;;  %v11650_v46 = vld [vmem:[#allocation55_spill] sm:$0xff]  ;;  %v2832_v27 = vrot.slane %v269_v9, %v7972_v51  ;;  %v9941_v9 = vld [vmem:[%s7915_s20 + $0x490] sm:$0xff] }
 0x226   : > { %6172 = vmatpush3.msra.mxu1 %v11646_v44  ;;  %v5748_v29 = vpop.f32.mrf.mxu0  ;;  %6140 = vmatprep.subr.mxu0 %v9920_v58  ;;  %11649 = vst [vmem:[#allocation54_spill] sm:$0xff] %v9925_v0  ;;  %11651 = vst [vmem:[#allocation55_spill] sm:$0xff] %v9931_v12  ;;  %v11652_v58 = vld [vmem:[#allocation56_spill] sm:$0xff] }
 0x227   : > { %6173 = vmatprep.subr.mxu1 %v11648_v38  ;;  %6141 = vmatpush3.msra.mxu0 %v9925_v0  ;;  %11653 = vst [vmem:[#allocation56_spill] sm:$0xff] %v9936_v26  ;;  %v11654_v0 = vld [vmem:[#allocation57_spill] sm:$0xff] }
 0x228   : > { %6174 = vmatpush3.msra.mxu1 %v11650_v46  ;;  %v5749_v31 = vpop.f32.mrf.mxu0  ;;  %v5783_v44 = vpop.f32.mrf.mxu1  ;;  %6142 = vmatprep.subr.mxu0 %v9931_v12  ;;  %11655 = vst [vmem:[#allocation57_spill] sm:$0xff] %v9941_v9  ;;  %v2839_v12 = vrot.slane %v2825_v43, %v7972_v51  ;;  %v9960_v43 = vld [vmem:[%s7915_s20 + $0x408] sm:$0xff] }
 0x229   : > { %6175 = vmatprep.subr.mxu1 %v11652_v58  ;;  %v5750_v38 = vadd.f32 %v5749_v31, %v5748_v29  ;;  %6143 = vmatpush3.msra.mxu0 %v9936_v26  ;;  %v9948_v29 = vld [vmem:[%s7915_s20 + $0x410] sm:$0xff]  ;;  %v2840_v26 = vcombine.high %v2832_v27, %v2832_v27 }
 0x22a   : > { %6176 = vmatpush3.msra.mxu1 %v11654_v0  ;;  %v5784_v46 = vpop.f32.mrf.mxu1  ;;  %6144 = vmatprep.subr.mxu0 %v9941_v9  ;;  %11657 = vst [vmem:[#allocation58_spill] sm:$0xff] %v9948_v29  ;;  %v11658_v0 = vld [vmem:[#allocation59_spill] sm:$0xff]  ;;  %v11660_v9 = vld [vmem:[#allocation60_spill] sm:$0xff] }
 0x22b   : > { %6177 = vmatprep.subr.mxu1 %v11656_v17  ;;  %v2290_v58 = vadd.f32 %v5750_v38, %v9788_v50  ;;  %v5785_v31 = vadd.f32 %v5784_v46, %v5783_v44  ;;  %6145 = vmatpush3.msra.mxu0 %v9948_v29  ;;  %11659 = vst [vmem:[#allocation59_spill] sm:$0xff] %v9953_v35  ;;  %11661 = vst [vmem:[#allocation60_spill] sm:$0xff] %v9960_v43  ;;  %v11662_v50 = vld [vmem:[#allocation61_spill] sm:$0xff]  ;;  %v9965_v44 = vld [vmem:[%s7915_s20 + $0x480] sm:$0xff] }
 0x22c   : > { %6178 = vmatpush3.msra.mxu1 %v11658_v0  ;;  %6146 = vmatprep.subr.mxu0 %v9953_v35  ;;  %11663 = vst [vmem:[#allocation61_spill] sm:$0xff] %v9965_v44  ;;  %v11664_v38 = vld [vmem:[#allocation62_spill] sm:$0xff]  ;;  %v2841_v46 = vcombine.high %v2839_v12, %v2839_v12  ;;  %v10119_v29 = vld [vmem:[%s7915_s20 + $0x688] sm:$0xff] }
 0x22d   : > { %6179 = vmatprep.subr.mxu1 %v11660_v9  ;;  %v9957_v17 = vadd.f32 %v5785_v31, %v2290_v58  ;;  %6147 = vmatpush3.msra.mxu0 %v9960_v43  ;;  %v9970_v0 = vld [vmem:[%s7915_s20 + $0x400] sm:$0xff]  ;;  %v11666_v9 = vld [vmem:[#allocation63_spill] sm:$0xff]  ;;  %v11667_v58 = vld [vmem:[#allocation64_spill] sm:$0xff] }
 0x22e   : > { %6180 = vmatpush3.msra.mxu1 %v11662_v50  ;;  %6148 = vmatprep.subr.mxu0 %v9965_v44  ;;  %11665 = vst [vmem:[#allocation62_spill] sm:$0xff] %v9970_v0  ;;  %v9976_v31 = vld [vmem:[%s7915_s20 + $0x6f8] sm:$0xff]  ;;  %v11720_v35 = vld [vmem:[#allocation90_spill] sm:$0xff] }
 0x22f   : > { %6181 = vmatprep.subr.mxu1 %v11664_v38  ;;  %6149 = vmatpush3.msra.mxu0 %v9970_v0  ;;  %11668 = vst [vmem:[#allocation63_spill] sm:$0xff] %v9976_v31  ;;  %v11669_v50 = vld [vmem:[#allocation65_spill] sm:$0xff] }
 0x230   : > { %3269 = vmatprep.mubr.f32.mxu0 %v2840_v26  ;;  %6182 = vmatpush3.msra.mxu1 %v11666_v9  ;;  %v9981_v38 = vld [vmem:[%s7915_s20 + $0x678] sm:$0xff]  ;;  %v9985_v26 = vld [vmem:[%s7915_s20 + $0x6f0] sm:$0xff] }
 0x231   : > { %3270 = vmatmul.mubr.f32.vlgmr.msra.gmra.mxu0 %v2832_v27  ;;  %6183 = vmatprep.subr.mxu1 %v11667_v58  ;;  %11670 = vst [vmem:[#allocation64_spill] sm:$0xff] %v9981_v38  ;;  %11671 = vst [vmem:[#allocation65_spill] sm:$0xff] %v9985_v26  ;;  %v11672_v27 = vld [vmem:[#allocation66_spill] sm:$0xff]  ;;  %v9990_v9 = vld [vmem:[%s7915_s20 + $0x670] sm:$0xff] }
 0x232   : > { %6188 = vmatprep.subr.mxu0 %v9976_v31  ;;  %6184 = vmatpush3.msra.mxu1 %v11669_v50  ;;  %11673 = vst [vmem:[#allocation66_spill] sm:$0xff] %v9990_v9  ;;  %v11674_v58 = vld [vmem:[#allocation67_spill] sm:$0xff]  ;;  %v10086_v31 = vld [vmem:[%s7915_s20 + $0x6a0] sm:$0xff]  ;;  %v10097_v44 = vld [vmem:[%s7915_s20 + $0x698] sm:$0xff] }
 0x233   : > { %3339 = vmatprep.mubr.f32.mxu1 %v2841_v46  ;;  %6189 = vmatpush3.msra.mxu0 %v9981_v38  ;;  %v9995_v46 = vld [vmem:[%s7915_s20 + $0x6e8] sm:$0xff]  ;;  %v10102_v43 = vld [vmem:[%s7915_s20 + $0x618] sm:$0xff] }
 0x234   : > { %3340 = vmatmul.mubr.f32.vlgmr.msra.gmra.mxu1 %v2839_v12  ;;  %6190 = vmatprep.subr.mxu0 %v9985_v26  ;;  %11675 = vst [vmem:[#allocation67_spill] sm:$0xff] %v9995_v46  ;;  %v11676_v12 = vld [vmem:[#allocation68_spill] sm:$0xff]  ;;  %v10000_v50 = vld [vmem:[%s7915_s20 + $0x668] sm:$0xff]  ;;  %v10005_v26 = vld [vmem:[%s7915_s20 + $0x6e0] sm:$0xff] }
 0x235   : > { %6223 = vmatprep.subr.mxu1 %v11672_v27  ;;  %6191 = vmatpush3.msra.mxu0 %v9990_v9  ;;  %11677 = vst [vmem:[#allocation68_spill] sm:$0xff] %v10000_v50  ;;  %v11678_v27 = vld [vmem:[#allocation69_spill] sm:$0xff]  ;;  %v10010_v9 = vld [vmem:[%s7915_s20 + $0x660] sm:$0xff]  ;;  %v10076_v38 = vld [vmem:[%s7915_s20 + $0x6a8] sm:$0xff] }
 0x236   : > { %6224 = vmatpush3.msra.mxu1 %v11674_v58  ;;  %6192 = vmatprep.subr.mxu0 %v9995_v46  ;;  %11679 = vst [vmem:[#allocation69_spill] sm:$0xff] %v10005_v26  ;;  %v11680_v58 = vld [vmem:[#allocation70_spill] sm:$0xff]  ;;  %v10015_v46 = vld [vmem:[%s7915_s20 + $0x6d8] sm:$0xff] }
 0x237   : > { %6225 = vmatprep.subr.mxu1 %v11676_v12  ;;  %6193 = vmatpush3.msra.mxu0 %v10000_v50  ;;  %11681 = vst [vmem:[#allocation70_spill] sm:$0xff] %v10010_v9  ;;  %v11682_v12 = vld [vmem:[#allocation71_spill] sm:$0xff]  ;;  %v10020_v50 = vld [vmem:[%s7915_s20 + $0x658] sm:$0xff] }
 0x238   : > { %6226 = vmatpush3.msra.mxu1 %v11678_v27  ;;  %6194 = vmatprep.subr.mxu0 %v10005_v26  ;;  %11683 = vst [vmem:[#allocation71_spill] sm:$0xff] %v10015_v46  ;;  %v11684_v27 = vld [vmem:[#allocation72_spill] sm:$0xff] }
 0x239   : > { %6227 = vmatprep.subr.mxu1 %v11680_v58  ;;  %6195 = vmatpush3.msra.mxu0 %v10010_v9  ;;  %11685 = vst [vmem:[#allocation72_spill] sm:$0xff] %v10020_v50  ;;  %v11686_v58 = vld [vmem:[#allocation73_spill] sm:$0xff]  ;;  %v10025_v26 = vld [vmem:[%s7915_s20 + $0x6d0] sm:$0xff] }
 0x23a   : > { %6228 = vmatpush3.msra.mxu1 %v11682_v12  ;;  %6196 = vmatprep.subr.mxu0 %v10015_v46  ;;  %11687 = vst [vmem:[#allocation73_spill] sm:$0xff] %v10025_v26  ;;  %v11688_v12 = vld [vmem:[#allocation74_spill] sm:$0xff]  ;;  %v10030_v9 = vld [vmem:[%s7915_s20 + $0x650] sm:$0xff]  ;;  %v10035_v46 = vld [vmem:[%s7915_s20 + $0x6c8] sm:$0xff] }
 0x23b   : > { %6229 = vmatprep.subr.mxu1 %v11684_v27  ;;  %6197 = vmatpush3.msra.mxu0 %v10020_v50  ;;  %11689 = vst [vmem:[#allocation74_spill] sm:$0xff] %v10030_v9  ;;  %v11690_v27 = vld [vmem:[#allocation75_spill] sm:$0xff] }
 0x23c   : > { %6230 = vmatpush3.msra.mxu1 %v11686_v58  ;;  %6198 = vmatprep.subr.mxu0 %v10025_v26  ;;  %11691 = vst [vmem:[#allocation75_spill] sm:$0xff] %v10035_v46  ;;  %v11692_v58 = vld [vmem:[#allocation76_spill] sm:$0xff]  ;;  %v10040_v50 = vld [vmem:[%s7915_s20 + $0x648] sm:$0xff]  ;;  %v10045_v26 = vld [vmem:[%s7915_s20 + $0x6c0] sm:$0xff] }
 0x23d   : > { %6231 = vmatprep.subr.mxu1 %v11688_v12  ;;  %6199 = vmatpush3.msra.mxu0 %v10030_v9  ;;  %11693 = vst [vmem:[#allocation76_spill] sm:$0xff] %v10040_v50  ;;  %v11694_v12 = vld [vmem:[#allocation77_spill] sm:$0xff]  ;;  %v10050_v9 = vld [vmem:[%s7915_s20 + $0x640] sm:$0xff] }
 0x23e   : > { %6232 = vmatpush3.msra.mxu1 %v11690_v27  ;;  %6200 = vmatprep.subr.mxu0 %v10035_v46  ;;  %11695 = vst [vmem:[#allocation77_spill] sm:$0xff] %v10045_v26  ;;  %v11696_v27 = vld [vmem:[#allocation78_spill] sm:$0xff]  ;;  %v10055_v46 = vld [vmem:[%s7915_s20 + $0x6b8] sm:$0xff] }
 0x23f   : > { %6233 = vmatprep.subr.mxu1 %v11692_v58  ;;  %6201 = vmatpush3.msra.mxu0 %v10040_v50  ;;  %11697 = vst [vmem:[#allocation78_spill] sm:$0xff] %v10050_v9  ;;  %v11698_v58 = vld [vmem:[#allocation79_spill] sm:$0xff]  ;;  %v10060_v50 = vld [vmem:[%s7915_s20 + $0x638] sm:$0xff] }
 0x240   : > { %6234 = vmatpush3.msra.mxu1 %v11694_v12  ;;  %6202 = vmatprep.subr.mxu0 %v10045_v26  ;;  %11699 = vst [vmem:[#allocation79_spill] sm:$0xff] %v10055_v46  ;;  %v11700_v12 = vld [vmem:[#allocation80_spill] sm:$0xff] }
 0x241   : > { %6235 = vmatprep.subr.mxu1 %v11696_v27  ;;  %6203 = vmatpush3.msra.mxu0 %v10050_v9  ;;  %11701 = vst [vmem:[#allocation80_spill] sm:$0xff] %v10060_v50  ;;  %v11702_v27 = vld [vmem:[#allocation81_spill] sm:$0xff]  ;;  %v10065_v26 = vld [vmem:[%s7915_s20 + $0x6b0] sm:$0xff]  ;;  %v11704_v9 = vld [vmem:[#allocation82_spill] sm:$0xff] }
 0x242   : > { %6236 = vmatpush3.msra.mxu1 %v11698_v58  ;;  %6204 = vmatprep.subr.mxu0 %v10055_v46  ;;  %11703 = vst [vmem:[#allocation81_spill] sm:$0xff] %v10065_v26  ;;  %v10070_v58 = vld [vmem:[%s7915_s20 + $0x630] sm:$0xff]  ;;  %v11706_v46 = vld [vmem:[#allocation83_spill] sm:$0xff] }
 0x243   : > { %6237 = vmatprep.subr.mxu1 %v11700_v12  ;;  %6205 = vmatpush3.msra.mxu0 %v10060_v50  ;;  %11705 = vst [vmem:[#allocation82_spill] sm:$0xff] %v10070_v58  ;;  %v270_v12 = vld [vmem:[%s7965_s24 + $0x7c] sm:$0xff]  ;;  %11707 = vst [vmem:[#allocation83_spill] sm:$0xff] %v10076_v38  ;;  %v11708_v50 = vld [vmem:[#allocation84_spill] sm:$0xff] }
 0x244   : > { %6238 = vmatpush3.msra.mxu1 %v11702_v27  ;;  %6206 = vmatprep.subr.mxu0 %v10065_v26  ;;  %v10081_v27 = vld [vmem:[%s7915_s20 + $0x628] sm:$0xff] }
 0x245   : > { %6239 = vmatprep.subr.mxu1 %v11704_v9  ;;  %6207 = vmatpush3.msra.mxu0 %v10070_v58  ;;  %11709 = vst [vmem:[#allocation84_spill] sm:$0xff] %v10081_v27  ;;  %v11710_v9 = vld [vmem:[#allocation85_spill] sm:$0xff]  ;;  %v2842_v58 = vcombine.high %v270_v12, %v270_v12 }
 0x246   : > { %6240 = vmatpush3.msra.mxu1 %v11706_v46  ;;  %6208 = vmatprep.subr.mxu0 %v10076_v38  ;;  %11711 = vst [vmem:[#allocation85_spill] sm:$0xff] %v10086_v31  ;;  %v11712_v46 = vld [vmem:[#allocation86_spill] sm:$0xff] }
 0x247   : > { %6241 = vmatprep.subr.mxu1 %v11708_v50  ;;  %6209 = vmatpush3.msra.mxu0 %v10081_v27  ;;  %v10091_v38 = vld [vmem:[%s7915_s20 + $0x620] sm:$0xff]  ;;  %v11714_v50 = vld [vmem:[#allocation87_spill] sm:$0xff]  ;;  %v2849_v27 = vrot.slane %v270_v12, %v7972_v51  ;;  %v10107_v12 = vld [vmem:[%s7915_s20 + $0x690] sm:$0xff] }
 0x248   : > { %6242 = vmatpush3.msra.mxu1 %v11710_v9  ;;  %v5818_v26 = vpop.f32.mrf.mxu0  ;;  %6210 = vmatprep.subr.mxu0 %v10086_v31  ;;  %11713 = vst [vmem:[#allocation86_spill] sm:$0xff] %v10091_v38  ;;  %11715 = vst [vmem:[#allocation87_spill] sm:$0xff] %v10097_v44  ;;  %v11716_v31 = vld [vmem:[#allocation88_spill] sm:$0xff] }
 0x249   : > { %6243 = vmatprep.subr.mxu1 %v11712_v46  ;;  %6211 = vmatpush3.msra.mxu0 %v10091_v38  ;;  %11717 = vst [vmem:[#allocation88_spill] sm:$0xff] %v10102_v43  ;;  %v11718_v38 = vld [vmem:[#allocation89_spill] sm:$0xff] }
 0x24a   : > { %6244 = vmatpush3.msra.mxu1 %v11714_v50  ;;  %v5819_v0 = vpop.f32.mrf.mxu0  ;;  %v5853_v9 = vpop.f32.mrf.mxu1  ;;  %6212 = vmatprep.subr.mxu0 %v10097_v44  ;;  %11719 = vst [vmem:[#allocation89_spill] sm:$0xff] %v10107_v12  ;;  %v2856_v44 = vrot.slane %v2842_v58, %v7972_v51  ;;  %v10126_v58 = vld [vmem:[%s7915_s20 + $0x608] sm:$0xff] }
 0x24b   : > { %6245 = vmatprep.subr.mxu1 %v11716_v31  ;;  %v5820_v46 = vadd.f32 %v5819_v0, %v5818_v26  ;;  %6213 = vmatpush3.msra.mxu0 %v10102_v43  ;;  %v10114_v26 = vld [vmem:[%s7915_s20 + $0x610] sm:$0xff]  ;;  %v2857_v43 = vcombine.high %v2849_v27, %v2849_v27 }
 0x24c   : > { %6246 = vmatpush3.msra.mxu1 %v11718_v38  ;;  %v5854_v50 = vpop.f32.mrf.mxu1  ;;  %6214 = vmatprep.subr.mxu0 %v10107_v12  ;;  %11721 = vst [vmem:[#allocation90_spill] sm:$0xff] %v10114_v26  ;;  %v11722_v38 = vld [vmem:[#allocation91_spill] sm:$0xff]  ;;  %v11724_v12 = vld [vmem:[#allocation92_spill] sm:$0xff] }
 0x24d   : > { %6247 = vmatprep.subr.mxu1 %v11720_v35  ;;  %v2430_v31 = vadd.f32 %v5820_v46, %v9957_v17  ;;  %v5855_v0 = vadd.f32 %v5854_v50, %v5853_v9  ;;  %6215 = vmatpush3.msra.mxu0 %v10114_v26  ;;  %11723 = vst [vmem:[#allocation91_spill] sm:$0xff] %v10119_v29  ;;  %11725 = vst [vmem:[#allocation92_spill] sm:$0xff] %v10126_v58  ;;  %v11726_v17 = vld [vmem:[#allocation93_spill] sm:$0xff]  ;;  %v10131_v9 = vld [vmem:[%s7915_s20 + $0x680] sm:$0xff] }
 0x24e   : > { %6248 = vmatpush3.msra.mxu1 %v11722_v38  ;;  %6216 = vmatprep.subr.mxu0 %v10119_v29  ;;  %11727 = vst [vmem:[#allocation93_spill] sm:$0xff] %v10131_v9  ;;  %v11728_v46 = vld [vmem:[#allocation94_spill] sm:$0xff]  ;;  %v2858_v50 = vcombine.high %v2856_v44, %v2856_v44  ;;  %v10285_v26 = vld [vmem:[%s7915_s20 + $0x888] sm:$0xff] }
 0x24f   : > { %6249 = vmatprep.subr.mxu1 %v11724_v12  ;;  %v10123_v35 = vadd.f32 %v5855_v0, %v2430_v31  ;;  %6217 = vmatpush3.msra.mxu0 %v10126_v58  ;;  %v10136_v38 = vld [vmem:[%s7915_s20 + $0x600] sm:$0xff]  ;;  %v11730_v12 = vld [vmem:[#allocation95_spill] sm:$0xff]  ;;  %v11731_v31 = vld [vmem:[#allocation96_spill] sm:$0xff] }
 0x250   : > { %6250 = vmatpush3.msra.mxu1 %v11726_v17  ;;  %6218 = vmatprep.subr.mxu0 %v10131_v9  ;;  %11729 = vst [vmem:[#allocation94_spill] sm:$0xff] %v10136_v38  ;;  %v10142_v0 = vld [vmem:[%s7915_s20 + $0x8f8] sm:$0xff]  ;;  %v11783_v29 = vld [vmem:[#allocation122_spill] sm:$0xff] }
 0x251   : > { %6251 = vmatprep.subr.mxu1 %v11728_v46  ;;  %6219 = vmatpush3.msra.mxu0 %v10136_v38  ;;  %11732 = vst [vmem:[#allocation95_spill] sm:$0xff] %v10142_v0  ;;  %v11733_v17 = vld [vmem:[#allocation97_spill] sm:$0xff] }
 0x252   : > { %3409 = vmatprep.mubr.f32.mxu0 %v2857_v43  ;;  %6252 = vmatpush3.msra.mxu1 %v11730_v12  ;;  %v10147_v46 = vld [vmem:[%s7915_s20 + $0x878] sm:$0xff]  ;;  %v10151_v43 = vld [vmem:[%s7915_s20 + $0x8f0] sm:$0xff] }
 0x253   : > { %3410 = vmatmul.mubr.f32.vlgmr.msra.gmra.mxu0 %v2849_v27  ;;  %6253 = vmatprep.subr.mxu1 %v11731_v31  ;;  %11734 = vst [vmem:[#allocation96_spill] sm:$0xff] %v10147_v46  ;;  %11735 = vst [vmem:[#allocation97_spill] sm:$0xff] %v10151_v43  ;;  %v11736_v27 = vld [vmem:[#allocation98_spill] sm:$0xff]  ;;  %v10156_v12 = vld [vmem:[%s7915_s20 + $0x870] sm:$0xff] }
 0x254   : > { %6258 = vmatprep.subr.mxu0 %v10142_v0  ;;  %6254 = vmatpush3.msra.mxu1 %v11733_v17  ;;  %11737 = vst [vmem:[#allocation98_spill] sm:$0xff] %v10156_v12  ;;  %v11738_v31 = vld [vmem:[#allocation99_spill] sm:$0xff]  ;;  %v10252_v0 = vld [vmem:[%s7915_s20 + $0x8a0] sm:$0xff]  ;;  %v10263_v9 = vld [vmem:[%s7915_s20 + $0x898] sm:$0xff] }
 0x255   : > { %3479 = vmatprep.mubr.f32.mxu1 %v2858_v50  ;;  %6259 = vmatpush3.msra.mxu0 %v10147_v46  ;;  %v10161_v50 = vld [vmem:[%s7915_s20 + $0x8e8] sm:$0xff]  ;;  %v10268_v58 = vld [vmem:[%s7915_s20 + $0x818] sm:$0xff] }
 0x256   : > { %3480 = vmatmul.mubr.f32.vlgmr.msra.gmra.mxu1 %v2856_v44  ;;  %6260 = vmatprep.subr.mxu0 %v10151_v43  ;;  %11739 = vst [vmem:[#allocation99_spill] sm:$0xff] %v10161_v50  ;;  %v11740_v44 = vld [vmem:[#allocation100_spill] sm:$0xff]  ;;  %v10166_v17 = vld [vmem:[%s7915_s20 + $0x868] sm:$0xff]  ;;  %v10171_v43 = vld [vmem:[%s7915_s20 + $0x8e0] sm:$0xff] }
 0x257   : > { %6293 = vmatprep.subr.mxu1 %v11736_v27  ;;  %6261 = vmatpush3.msra.mxu0 %v10156_v12  ;;  %11741 = vst [vmem:[#allocation100_spill] sm:$0xff] %v10166_v17  ;;  %v11742_v27 = vld [vmem:[#allocation101_spill] sm:$0xff]  ;;  %v10176_v12 = vld [vmem:[%s7915_s20 + $0x860] sm:$0xff]  ;;  %v10242_v46 = vld [vmem:[%s7915_s20 + $0x8a8] sm:$0xff] }
 0x258   : > { %6294 = vmatpush3.msra.mxu1 %v11738_v31  ;;  %6262 = vmatprep.subr.mxu0 %v10161_v50  ;;  %11743 = vst [vmem:[#allocation101_spill] sm:$0xff] %v10171_v43  ;;  %v11744_v31 = vld [vmem:[#allocation102_spill] sm:$0xff]  ;;  %v10181_v50 = vld [vmem:[%s7915_s20 + $0x8d8] sm:$0xff] }
 0x259   : > { %6295 = vmatprep.subr.mxu1 %v11740_v44  ;;  %6263 = vmatpush3.msra.mxu0 %v10166_v17  ;;  %11745 = vst [vmem:[#allocation102_spill] sm:$0xff] %v10176_v12  ;;  %v11746_v44 = vld [vmem:[#allocation103_spill] sm:$0xff]  ;;  %v10186_v17 = vld [vmem:[%s7915_s20 + $0x858] sm:$0xff] }
 0x25a   : > { %6296 = vmatpush3.msra.mxu1 %v11742_v27  ;;  %6264 = vmatprep.subr.mxu0 %v10171_v43  ;;  %11747 = vst [vmem:[#allocation103_spill] sm:$0xff] %v10181_v50  ;;  %v11748_v27 = vld [vmem:[#allocation104_spill] sm:$0xff] }
 0x25b   : > { %6297 = vmatprep.subr.mxu1 %v11744_v31  ;;  %6265 = vmatpush3.msra.mxu0 %v10176_v12  ;;  %11749 = vst [vmem:[#allocation104_spill] sm:$0xff] %v10186_v17  ;;  %v11750_v31 = vld [vmem:[#allocation105_spill] sm:$0xff]  ;;  %v10191_v43 = vld [vmem:[%s7915_s20 + $0x8d0] sm:$0xff] }
 0x25c   : > { %6298 = vmatpush3.msra.mxu1 %v11746_v44  ;;  %6266 = vmatprep.subr.mxu0 %v10181_v50  ;;  %11751 = vst [vmem:[#allocation105_spill] sm:$0xff] %v10191_v43  ;;  %v11752_v44 = vld [vmem:[#allocation106_spill] sm:$0xff]  ;;  %v10196_v12 = vld [vmem:[%s7915_s20 + $0x850] sm:$0xff]  ;;  %v10201_v50 = vld [vmem:[%s7915_s20 + $0x8c8] sm:$0xff] }
 0x25d   : > { %6299 = vmatprep.subr.mxu1 %v11748_v27  ;;  %6267 = vmatpush3.msra.mxu0 %v10186_v17  ;;  %11753 = vst [vmem:[#allocation106_spill] sm:$0xff] %v10196_v12  ;;  %v11754_v27 = vld [vmem:[#allocation107_spill] sm:$0xff] }
 0x25e   : > { %6300 = vmatpush3.msra.mxu1 %v11750_v31  ;;  %6268 = vmatprep.subr.mxu0 %v10191_v43  ;;  %11755 = vst [vmem:[#allocation107_spill] sm:$0xff] %v10201_v50  ;;  %v11756_v31 = vld [vmem:[#allocation108_spill] sm:$0xff]  ;;  %v10206_v17 = vld [vmem:[%s7915_s20 + $0x848] sm:$0xff]  ;;  %v10211_v43 = vld [vmem:[%s7915_s20 + $0x8c0] sm:$0xff] }
 0x25f   : > { %6301 = vmatprep.subr.mxu1 %v11752_v44  ;;  %6269 = vmatpush3.msra.mxu0 %v10196_v12  ;;  %11757 = vst [vmem:[#allocation108_spill] sm:$0xff] %v10206_v17  ;;  %v11758_v44 = vld [vmem:[#allocation109_spill] sm:$0xff]  ;;  %v10216_v12 = vld [vmem:[%s7915_s20 + $0x840] sm:$0xff] }
 0x260   : > { %6302 = vmatpush3.msra.mxu1 %v11754_v27  ;;  %6270 = vmatprep.subr.mxu0 %v10201_v50  ;;  %11759 = vst [vmem:[#allocation109_spill] sm:$0xff] %v10211_v43  ;;  %v11760_v27 = vld [vmem:[#allocation110_spill] sm:$0xff]  ;;  %v10221_v50 = vld [vmem:[%s7915_s20 + $0x8b8] sm:$0xff] }
 0x261   : > { %6303 = vmatprep.subr.mxu1 %v11756_v31  ;;  %6271 = vmatpush3.msra.mxu0 %v10206_v17  ;;  %11761 = vst [vmem:[#allocation110_spill] sm:$0xff] %v10216_v12  ;;  %v11762_v31 = vld [vmem:[#allocation111_spill] sm:$0xff]  ;;  %v10226_v17 = vld [vmem:[%s7915_s20 + $0x838] sm:$0xff] }
 0x262   : > { %6304 = vmatpush3.msra.mxu1 %v11758_v44  ;;  %6272 = vmatprep.subr.mxu0 %v10211_v43  ;;  %11763 = vst [vmem:[#allocation111_spill] sm:$0xff] %v10221_v50  ;;  %v11764_v44 = vld [vmem:[#allocation112_spill] sm:$0xff] }
 0x263   : > { %6305 = vmatprep.subr.mxu1 %v11760_v27  ;;  %6273 = vmatpush3.msra.mxu0 %v10216_v12  ;;  %11765 = vst [vmem:[#allocation112_spill] sm:$0xff] %v10226_v17  ;;  %v11766_v27 = vld [vmem:[#allocation113_spill] sm:$0xff]  ;;  %v10231_v43 = vld [vmem:[%s7915_s20 + $0x8b0] sm:$0xff]  ;;  %v11768_v12 = vld [vmem:[#allocation114_spill] sm:$0xff] }
 0x264   : > { %6306 = vmatpush3.msra.mxu1 %v11762_v31  ;;  %6274 = vmatprep.subr.mxu0 %v10221_v50  ;;  %11767 = vst [vmem:[#allocation113_spill] sm:$0xff] %v10231_v43  ;;  %v10236_v31 = vld [vmem:[%s7915_s20 + $0x830] sm:$0xff]  ;;  %v11770_v50 = vld [vmem:[#allocation115_spill] sm:$0xff] }
 0x265   : > { %6307 = vmatprep.subr.mxu1 %v11764_v44  ;;  %6275 = vmatpush3.msra.mxu0 %v10226_v17  ;;  %11769 = vst [vmem:[#allocation114_spill] sm:$0xff] %v10236_v31  ;;  %v271_v44 = vld [vmem:[%s7965_s24 + $0x84] sm:$0xff]  ;;  %11771 = vst [vmem:[#allocation115_spill] sm:$0xff] %v10242_v46  ;;  %v11772_v17 = vld [vmem:[#allocation116_spill] sm:$0xff] }
 0x266   : > { %6308 = vmatpush3.msra.mxu1 %v11766_v27  ;;  %6276 = vmatprep.subr.mxu0 %v10231_v43  ;;  %v10247_v27 = vld [vmem:[%s7915_s20 + $0x828] sm:$0xff] }
 0x267   : > { %6309 = vmatprep.subr.mxu1 %v11768_v12  ;;  %6277 = vmatpush3.msra.mxu0 %v10236_v31  ;;  %11773 = vst [vmem:[#allocation116_spill] sm:$0xff] %v10247_v27  ;;  %v11774_v12 = vld [vmem:[#allocation117_spill] sm:$0xff]  ;;  %v2859_v31 = vcombine.high %v271_v44, %v271_v44 }
 0x268   : > { %6310 = vmatpush3.msra.mxu1 %v11770_v50  ;;  %6278 = vmatprep.subr.mxu0 %v10242_v46  ;;  %11775 = vst [vmem:[#allocation117_spill] sm:$0xff] %v10252_v0  ;;  %v11776_v50 = vld [vmem:[#allocation118_spill] sm:$0xff] }
 0x269   : > { %6311 = vmatprep.subr.mxu1 %v11772_v17  ;;  %6279 = vmatpush3.msra.mxu0 %v10247_v27  ;;  %v10257_v46 = vld [vmem:[%s7915_s20 + $0x820] sm:$0xff]  ;;  %v11778_v17 = vld [vmem:[#allocation119_spill] sm:$0xff]  ;;  %v2866_v27 = vrot.slane %v271_v44, %v7972_v51  ;;  %v10273_v44 = vld [vmem:[%s7915_s20 + $0x890] sm:$0xff] }
 0x26a   : > { %6312 = vmatpush3.msra.mxu1 %v11774_v12  ;;  %v5888_v43 = vpop.f32.mrf.mxu0  ;;  %6280 = vmatprep.subr.mxu0 %v10252_v0  ;;  %11777 = vst [vmem:[#allocation118_spill] sm:$0xff] %v10257_v46  ;;  %11779 = vst [vmem:[#allocation119_spill] sm:$0xff] %v10263_v9  ;;  %v11780_v0 = vld [vmem:[#allocation120_spill] sm:$0xff] }
 0x26b   : > { %6313 = vmatprep.subr.mxu1 %v11776_v50  ;;  %6281 = vmatpush3.msra.mxu0 %v10257_v46  ;;  %11781 = vst [vmem:[#allocation120_spill] sm:$0xff] %v10268_v58  ;;  %v11782_v46 = vld [vmem:[#allocation121_spill] sm:$0xff] }
 0x26c   : > { %6314 = vmatpush3.msra.mxu1 %v11778_v17  ;;  %v5889_v38 = vpop.f32.mrf.mxu0  ;;  %v5923_v12 = vpop.f32.mrf.mxu1  ;;  %6282 = vmatprep.subr.mxu0 %v10263_v9  ;;  %v2873_v9 = vrot.slane %v2859_v31, %v7972_v51  ;;  %v10292_v31 = vld [vmem:[%s7915_s20 + $0x808] sm:$0xff] }
 0x26d   : > { %6315 = vmatprep.subr.mxu1 %v11780_v0  ;;  %v5890_v50 = vadd.f32 %v5889_v38, %v5888_v43  ;;  %6283 = vmatpush3.msra.mxu0 %v10268_v58  ;;  %v10280_v43 = vld [vmem:[%s7915_s20 + $0x810] sm:$0xff]  ;;  %v2874_v58 = vcombine.high %v2866_v27, %v2866_v27 }
 0x26e   : > { %6316 = vmatpush3.msra.mxu1 %v11782_v46  ;;  %v5924_v17 = vpop.f32.mrf.mxu1  ;;  %6284 = vmatprep.subr.mxu0 %v10273_v44  ;;  %v11784_v46 = vld [vmem:[#allocation123_spill] sm:$0xff] }
 0x26f   : > { %6317 = vmatprep.subr.mxu1 %v11783_v29  ;;  %v2570_v0 = vadd.f32 %v5890_v50, %v10123_v35  ;;  %v5925_v38 = vadd.f32 %v5924_v17, %v5923_v12  ;;  %6285 = vmatpush3.msra.mxu0 %v10280_v43  ;;  %v11785_v35 = vld [vmem:[#allocation124_spill] sm:$0xff]  ;;  %v10297_v12 = vld [vmem:[%s7915_s20 + $0x880] sm:$0xff]  ;;  %v2875_v50 = vcombine.high %v2873_v9, %v2873_v9 }
 0x270   : > { %6318 = vmatpush3.msra.mxu1 %v11784_v46  ;;  %6286 = vmatprep.subr.mxu0 %v10285_v26  ;;  %v10302_v17 = vld [vmem:[%s7915_s20 + $0x800] sm:$0xff]  ;;  %v10367_v46 = vld [vmem:[%s7915_s20 + $0xac8] sm:$0xff] }
 0x271   : > { %6319 = vmatprep.subr.mxu1 %v9276_v39  ;;  %v10289_v29 = vadd.f32 %v5925_v38, %v2570_v0  ;;  %6287 = vmatpush3.msra.mxu0 %v10292_v31  ;;  %v11786_v39 = vld [vmem:[#allocation125_spill] sm:$0xff]  ;;  %v10362_v38 = vld [vmem:[%s7915_s20 + $0xa50] sm:$0xff]  ;;  %11789 = vst [vmem:[#allocation121_spill] sm:$0xff] %v10367_v46 }
 0x272   : > { %6320 = vmatpush3.msra.mxu1 %v11785_v35  ;;  %6288 = vmatprep.subr.mxu0 %v10297_v12  ;;  %v10308_v0 = vld [vmem:[%s7915_s20 + $0xaf8] sm:$0xff]  ;;  %v10372_v35 = vld [vmem:[%s7915_s20 + $0xa48] sm:$0xff] }
 0x273   : > { %6321 = vmatprep.subr.mxu1 %v9288_v18  ;;  %6289 = vmatpush3.msra.mxu0 %v10302_v17  ;;  %v10313_v18 = vld [vmem:[%s7915_s20 + $0xa78] sm:$0xff]  ;;  %11791 = vst [vmem:[#allocation122_spill] sm:$0xff] %v10372_v35 }
 0x274   : > { %3549 = vmatprep.mubr.f32.mxu0 %v2874_v58  ;;  %6322 = vmatpush3.msra.mxu1 %v9293_v21  ;;  %v10317_v21 = vld [vmem:[%s7915_s20 + $0xaf0] sm:$0xff] }
 0x275   : > { %3550 = vmatmul.mubr.f32.vlgmr.msra.gmra.mxu0 %v2866_v27  ;;  %6323 = vmatprep.subr.mxu1 %v11786_v39  ;;  %v10322_v58 = vld [vmem:[%s7915_s20 + $0xa70] sm:$0xff]  ;;  %v10352_v27 = vld [vmem:[%s7915_s20 + $0xa58] sm:$0xff]  ;;  %v10382_v39 = vld [vmem:[%s7915_s20 + $0xa40] sm:$0xff] }
 0x276   : > { %6328 = vmatprep.subr.mxu0 %v10308_v0  ;;  %6324 = vmatpush3.msra.mxu1 %v9303_v55  ;;  %v10327_v55 = vld [vmem:[%s7915_s20 + $0xae8] sm:$0xff]  ;;  %11794 = vst [vmem:[#allocation124_spill] sm:$0xff] %v10382_v39 }
 0x277   : > { %3619 = vmatprep.mubr.f32.mxu1 %v2875_v50  ;;  %6329 = vmatpush3.msra.mxu0 %v10313_v18  ;;  %v10377_v50 = vld [vmem:[%s7915_s20 + $0xac0] sm:$0xff] }
 0x278   : > { %3620 = vmatmul.mubr.f32.vlgmr.msra.gmra.mxu1 %v2873_v9  ;;  %6330 = vmatprep.subr.mxu0 %v10317_v21  ;;  %v10332_v9 = vld [vmem:[%s7915_s20 + $0xa68] sm:$0xff]  ;;  %11792 = vst [vmem:[#allocation123_spill] sm:$0xff] %v10377_v50 }
 0x279   : > { %6363 = vmatprep.subr.mxu1 %v9308_v6  ;;  %6331 = vmatpush3.msra.mxu0 %v10322_v58  ;;  %v10337_v6 = vld [vmem:[%s7915_s20 + $0xae0] sm:$0xff] }
 0x27a   : > { %6364 = vmatpush3.msra.mxu1 %v9313_v3  ;;  %6332 = vmatprep.subr.mxu0 %v10327_v55  ;;  %v10342_v3 = vld [vmem:[%s7915_s20 + $0xa60] sm:$0xff] }
 0x27b   : > { %6365 = vmatprep.subr.mxu1 %v9318_v30  ;;  %6333 = vmatpush3.msra.mxu0 %v10332_v9  ;;  %v10347_v30 = vld [vmem:[%s7915_s20 + $0xad8] sm:$0xff] }
 0x27c   : > { %6366 = vmatpush3.msra.mxu1 %v9323_v15  ;;  %6334 = vmatprep.subr.mxu0 %v10337_v6  ;;  %v11787_v15 = vld [vmem:[#allocation126_spill] sm:$0xff] }
 0x27d   : > { %6367 = vmatprep.subr.mxu1 %v9328_v42  ;;  %6335 = vmatpush3.msra.mxu0 %v10342_v3  ;;  %v10357_v42 = vld [vmem:[%s7915_s20 + $0xad0] sm:$0xff] }
 0x27e   : > { %6368 = vmatpush3.msra.mxu1 %v9333_v54  ;;  %6336 = vmatprep.subr.mxu0 %v10347_v30  ;;  %v11788_v54 = vld [vmem:[#allocation127_spill] sm:$0xff] }
 0x27f   : > { %6369 = vmatprep.subr.mxu1 %v11787_v15  ;;  %6337 = vmatpush3.msra.mxu0 %v10352_v27  ;;  %v10387_v15 = vld [vmem:[%s7915_s20 + $0xab8] sm:$0xff] }
 0x280   : > { %6370 = vmatpush3.msra.mxu1 %v9343_v57  ;;  %6338 = vmatprep.subr.mxu0 %v10357_v42  ;;  %v11790_v57 = vld [vmem:[#allocation128_spill] sm:$0xff]  ;;  %11795 = vst [vmem:[#allocation125_spill] sm:$0xff] %v10387_v15 }
 0x281   : > { %6371 = vmatprep.subr.mxu1 %v11788_v54  ;;  %6339 = vmatpush3.msra.mxu0 %v10362_v38  ;;  %v10392_v54 = vld [vmem:[%s7915_s20 + $0xa38] sm:$0xff] }
 0x282   : > { %6372 = vmatpush3.msra.mxu1 %v9353_v60  ;;  %6340 = vmatprep.subr.mxu0 %v10367_v46  ;;  %v11793_v60 = vld [vmem:[#allocation129_spill] sm:$0xff]  ;;  %11797 = vst [vmem:[#allocation126_spill] sm:$0xff] %v10392_v54 }
 0x283   : > { %6373 = vmatprep.subr.mxu1 %v11790_v57  ;;  %6341 = vmatpush3.msra.mxu0 %v10372_v35  ;;  %v11798_v57 = vld [vmem:[#allocation131_spill] sm:$0xff]  ;;  %v10418_v35 = vld [vmem:[%s7915_s20 + $0xaa0] sm:$0xff]  ;;  %v10429_v46 = vld [vmem:[%s7915_s20 + $0xa98] sm:$0xff] }
 0x284   : > { %6374 = vmatpush3.msra.mxu1 %v9363_v63  ;;  %6342 = vmatprep.subr.mxu0 %v10377_v50  ;;  %v11796_v63 = vld [vmem:[#allocation130_spill] sm:$0xff]  ;;  %v10408_v50 = vld [vmem:[%s7915_s20 + $0xaa8] sm:$0xff]  ;;  %11807 = vst [vmem:[#allocation131_spill] sm:$0xff] %v10418_v35 }
 0x285   : > { %6375 = vmatprep.subr.mxu1 %v11793_v60  ;;  %6343 = vmatpush3.msra.mxu0 %v10382_v39  ;;  %v10397_v60 = vld [vmem:[%s7915_s20 + $0xab0] sm:$0xff]  ;;  %11803 = vst [vmem:[#allocation129_spill] sm:$0xff] %v10408_v50 }
 0x286   : > { %6376 = vmatpush3.msra.mxu1 %v9373_v2  ;;  %6344 = vmatprep.subr.mxu0 %v10387_v15  ;;  %11799 = vst [vmem:[#allocation127_spill] sm:$0xff] %v10397_v60  ;;  %v11800_v39 = vld [vmem:[#allocation132_spill] sm:$0xff]  ;;  %v11802_v15 = vld [vmem:[#allocation133_spill] sm:$0xff] }
 0x287   : > { %6377 = vmatprep.subr.mxu1 %v11796_v63  ;;  %6345 = vmatpush3.msra.mxu0 %v10392_v54  ;;  %v10402_v2 = vld [vmem:[%s7915_s20 + $0xa30] sm:$0xff]  ;;  %v11804_v54 = vld [vmem:[#allocation134_spill] sm:$0xff]  ;;  %11810 = vst [vmem:[#allocation133_spill] sm:$0xff] %v10429_v46 }
 0x288   : > { %6378 = vmatpush3.msra.mxu1 %v11798_v57  ;;  %6346 = vmatprep.subr.mxu0 %v10397_v60  ;;  %11801 = vst [vmem:[#allocation128_spill] sm:$0xff] %v10402_v2  ;;  %v272_v63 = vld [vmem:[%s7965_s24 + $0x8c] sm:$0xff] }
 0x289   : > { %6379 = vmatprep.subr.mxu1 %v11800_v39  ;;  %6347 = vmatpush3.msra.mxu0 %v10402_v2  ;;  %v10413_v57 = vld [vmem:[%s7915_s20 + $0xa28] sm:$0xff]  ;;  %v2876_v2 = vcombine.high %v272_v63, %v272_v63 }
 0x28a   : > { %6380 = vmatpush3.msra.mxu1 %v11802_v15  ;;  %6348 = vmatprep.subr.mxu0 %v10408_v50  ;;  %11805 = vst [vmem:[#allocation130_spill] sm:$0xff] %v10413_v57  ;;  %v11806_v39 = vld [vmem:[#allocation135_spill] sm:$0xff]  ;;  %v11808_v15 = vld [vmem:[#allocation136_spill] sm:$0xff]  ;;  %v10423_v50 = vld [vmem:[%s7915_s20 + $0xa20] sm:$0xff] }
 0x28b   : > { %6381 = vmatprep.subr.mxu1 %v11804_v54  ;;  %6349 = vmatpush3.msra.mxu0 %v10413_v57  ;;  %11809 = vst [vmem:[#allocation132_spill] sm:$0xff] %v10423_v50  ;;  %v2883_v54 = vrot.slane %v272_v63, %v7972_v51  ;;  %v10439_v63 = vld [vmem:[%s7915_s20 + $0xa90] sm:$0xff] }
 0x28c   : > { %6382 = vmatpush3.msra.mxu1 %v11806_v39  ;;  %v5958_v60 = vpop.f32.mrf.mxu0  ;;  %6350 = vmatprep.subr.mxu0 %v10418_v35  ;;  %v10434_v35 = vld [vmem:[%s7915_s20 + $0xa18] sm:$0xff]  ;;  %11811 = vst [vmem:[#allocation134_spill] sm:$0xff] %v10439_v63 }
 0x28d   : > { %6383 = vmatprep.subr.mxu1 %v11808_v15  ;;  %6351 = vmatpush3.msra.mxu0 %v10423_v50  ;;  %v11812_v50 = vld [vmem:[#allocation138_spill] sm:$0xff] }
 0x28e   : > { %6384 = vmatpush3.msra.mxu1 %v9415_v37  ;;  %v5959_v39 = vpop.f32.mrf.mxu0  ;;  %v2779_v57 = vpop.f32.mrf.mxu1  ;;  %6352 = vmatprep.subr.mxu0 %v10429_v46  ;;  %v2890_v46 = vrot.slane %v2876_v2, %v7972_v51 }
 0x28f   : > { %6385 = vmatprep.subr.mxu1 %v9423_v11  ;;  %v5960_v15 = vadd.f32 %v5959_v39, %v5958_v60  ;;  %6353 = vmatpush3.msra.mxu0 %v10434_v35  ;;  %v10446_v60 = vld [vmem:[%s7915_s20 + $0xa10] sm:$0xff]  ;;  %v11813_v39 = vld [vmem:[#allocation139_spill] sm:$0xff] }
 0x290   : > { %6386 = vmatpush3.msra.mxu1 %v9428_v5  ;;  %v6938_v37 = vpop.f32.mrf.mxu1  ;;  %6354 = vmatprep.subr.mxu0 %v10439_v63  ;;  %v2891_v5 = vcombine.high %v2883_v54, %v2883_v54  ;;  %v2892_v2 = vcombine.high %v2890_v46, %v2890_v46 }
 0x291   : > { %6387 = vmatprep.subr.mxu1 %v11812_v50  ;;  %v2710_v11 = vadd.f32 %v5960_v15, %v10289_v29  ;;  %6355 = vmatpush3.msra.mxu0 %v10446_v60  ;;  %v10451_v37 = vld [vmem:[%s7915_s20 + $0xa88] sm:$0xff]  ;;  %v10463_v29 = vld [vmem:[%s7915_s20 + $0xa80] sm:$0xff]  ;;  %v11814_v15 = vld [vmem:[#allocation137_spill] sm:$0xff] }
 0x292   : > { %6388 = vmatpush3.msra.mxu1 %v11813_v39  ;;  %6356 = vmatprep.subr.mxu0 %v10451_v37  ;;  %v10458_v50 = vld [vmem:[%s7915_s20 + $0xa08] sm:$0xff]  ;;  %v10573_v39 = vld [vmem:[%s7915_s20 + $0xc10] sm:$0xff] }
 0x293   : > { %6389 = vmatprep.subr.mxu1 %v9446_v23  ;;  %v10455_v63 = vadd.f32 %v2779_v57, %v2710_v11  ;;  %6357 = vmatpush3.msra.mxu0 %v10458_v50  ;;  %v10470_v57 = vld [vmem:[%s7915_s20 + $0xa00] sm:$0xff] }
 0x294   : > { %6390 = vmatpush3.msra.mxu1 %v9451_v48  ;;  %6358 = vmatprep.subr.mxu0 %v10463_v29  ;;  %v11815_v48 = vld [vmem:[#allocation140_spill] sm:$0xff] }
 0x295   : > { %6391 = vmatprep.subr.mxu1 %v9456_v41  ;;  %v2783_v23 = vmax.f32 %v11814_v15, %v10455_v63  ;;  %6359 = vmatpush3.msra.mxu0 %v10470_v57  ;;  %v10478_v41 = vld [vmem:[%s7915_s20 + $0xc78] sm:$0xff] }
 0x296   : > { %3689 = vmatprep.mubr.f32.mxu0 %v2891_v5  ;;  %6392 = vmatpush3.msra.mxu1 %v9461_v28  ;;  %v10484_v28 = vld [vmem:[%s7915_s20 + $0xc70] sm:$0xff] }
 0x297   : > { %3690 = vmatmul.mubr.f32.vlgmr.msra.gmra.mxu0 %v2883_v54  ;;  %6393 = vmatprep.subr.mxu1 %v9466_v8  ;;  %v10491_v8 = vld [vmem:[%s7915_s20 + $0xc68] sm:$0xff]  ;;  %v10564_v54 = vld [vmem:[%s7915_s20 + $0xc18] sm:$0xff] }
 0x298   : > { %6939 = vmatprep.subr.mxu0 %v11519_v61  ;;  %6394 = vmatpush3.msra.mxu1 %v11815_v48  ;;  %v7675_v48 = vld [vmem:[%s7915_s20 + $0x1f0] sm:$0xff] }
 0x299   : > { %3759 = vmatprep.mubr.f32.mxu1 %v2892_v2  ;;  %6940 = vmatpush3.msra.mxu0 %v10478_v41  ;;  %v11822_v2 = vld [vmem:[#allocation147_spill] sm:$0xff] }
 0x29a   : > { %3760 = vmatmul.mubr.f32.vlgmr.msra.gmra.mxu1 %v2890_v46  ;;  %6941 = vmatprep.subr.mxu0 %v11519_v61  ;;  %v10561_v46 = vld [vmem:[%s7965_s24 + $0x96] sm:$0xff] }
 0x29b   : > { %6415 = vmatprep.subr.mxu1 %v9479_v40  ;;  %6942 = vmatpush3.msra.mxu0 %v10484_v28  ;;  %v10498_v40 = vld [vmem:[%s7915_s20 + $0xc60] sm:$0xff]  ;;  %v3849_v5 = vrot.slane %v10561_v46, %v7972_v51 }
 0x29c   : > { %6416 = vmatpush3.msra.mxu1 %v9484_v34  ;;  %6943 = vmatprep.subr.mxu0 %v11519_v61  ;;  %v10505_v34 = vld [vmem:[%s7915_s20 + $0xc58] sm:$0xff] }
 0x29d   : > { %6417 = vmatprep.subr.mxu1 %v9489_v45  ;;  %6944 = vmatpush3.msra.mxu0 %v10491_v8  ;;  %v10512_v45 = vld [vmem:[%s7915_s20 + $0xc50] sm:$0xff] }
 0x29e   : > { %6418 = vmatpush3.msra.mxu1 %v9494_v20  ;;  %6945 = vmatprep.subr.mxu0 %v11519_v61  ;;  %v10519_v20 = vld [vmem:[%s7915_s20 + $0xc48] sm:$0xff] }
 0x29f   : > { %6419 = vmatprep.subr.mxu1 %v9499_v52  ;;  %6946 = vmatpush3.msra.mxu0 %v10498_v40  ;;  %v10526_v52 = vld [vmem:[%s7915_s20 + $0xc40] sm:$0xff] }
 0x2a0   : > { %6420 = vmatpush3.msra.mxu1 %v9504_v56  ;;  %6947 = vmatprep.subr.mxu0 %v11519_v61  ;;  %v10533_v56 = vld [vmem:[%s7915_s20 + $0xc38] sm:$0xff] }
 0x2a1   : > { %6421 = vmatprep.subr.mxu1 %v9509_v59  ;;  %6948 = vmatpush3.msra.mxu0 %v10505_v34  ;;  %v10540_v59 = vld [vmem:[%s7915_s20 + $0xc30] sm:$0xff] }
 0x2a2   : > { %6422 = vmatpush3.msra.mxu1 %v9514_v62  ;;  %6949 = vmatprep.subr.mxu0 %v11519_v61  ;;  %v11816_v62 = vld [vmem:[#allocation141_spill] sm:$0xff] }
 0x2a3   : > { %6423 = vmatprep.subr.mxu1 %v9519_v1  ;;  %6950 = vmatpush3.msra.mxu0 %v10512_v45  ;;  %v11817_v1 = vld [vmem:[#allocation142_spill] sm:$0xff] }
 0x2a4   : > { %6424 = vmatpush3.msra.mxu1 %v9524_v4  ;;  %6951 = vmatprep.subr.mxu0 %v11519_v61  ;;  %v10547_v4 = vld [vmem:[%s7915_s20 + $0xc28] sm:$0xff] }
 0x2a5   : > { %6425 = vmatprep.subr.mxu1 %v9529_v7  ;;  %6952 = vmatpush3.msra.mxu0 %v10519_v20  ;;  %v11818_v7 = vld [vmem:[#allocation143_spill] sm:$0xff] }
 0x2a6   : > { %6426 = vmatpush3.msra.mxu1 %v9534_v10  ;;  %6953 = vmatprep.subr.mxu0 %v11519_v61  ;;  %v11819_v10 = vld [vmem:[#allocation144_spill] sm:$0xff] }
 0x2a7   : > { %6427 = vmatprep.subr.mxu1 %v9539_v13  ;;  %6954 = vmatpush3.msra.mxu0 %v10526_v52 }
 0x2a8   : > { %6428 = vmatpush3.msra.mxu1 %v9544_v16  ;;  %6955 = vmatprep.subr.mxu0 %v11519_v61  ;;  %v10554_v16 = vld [vmem:[%s7915_s20 + $0xc20] sm:$0xff] }
 0x2a9   : > { %6429 = vmatprep.subr.mxu1 %v9549_v19  ;;  %6956 = vmatpush3.msra.mxu0 %v10533_v56  ;;  %v11820_v19 = vld [vmem:[#allocation145_spill] sm:$0xff] }
 0x2aa   : > { %6430 = vmatpush3.msra.mxu1 %v9554_v22  ;;  %6957 = vmatprep.subr.mxu0 %v11519_v61  ;;  %v11821_v22 = vld [vmem:[#allocation146_spill] sm:$0xff] }
 0x2ab   : > { %6431 = vmatprep.subr.mxu1 %v9559_v25  ;;  %6958 = vmatpush3.msra.mxu0 %v10540_v59 }
 0x2ac   : > { %6432 = vmatpush3.msra.mxu1 %v11816_v62  ;;  %6959 = vmatprep.subr.mxu0 %v11519_v61  ;;  %v11823_v62 = vld [vmem:[#allocation148_spill] sm:$0xff] }
 0x2ad   : > { %6433 = vmatprep.subr.mxu1 %v11817_v1  ;;  %6960 = vmatpush3.msra.mxu0 %v10547_v4  ;;  %v11824_v1 = vld [vmem:[#allocation149_spill] sm:$0xff] }
 0x2ae   : > { %6434 = vmatpush3.msra.mxu1 %v11818_v7  ;;  %6961 = vmatprep.subr.mxu0 %v11519_v61  ;;  %v6010_v13 = vpop.f32.mrf.mxu0  ;;  %v11825_v7 = vld [vmem:[#allocation3_spill] sm:$0xff] }
 0x2af   : > { %6435 = vmatprep.subr.mxu1 %v11819_v10  ;;  %6962 = vmatpush3.msra.mxu0 %v10554_v16  ;;  %v7678_v10 = vld [vmem:[%s7915_s20 + $0x168] sm:$0xff] }
 0x2b0   : > { %6436 = vmatpush3.msra.mxu1 %v11820_v19  ;;  %6963 = vmatprep.subr.mxu0 %v11519_v61  ;;  %v6011_v25 = vpop.f32.mrf.mxu0  ;;  %v7679_v19 = vld [vmem:[%s7915_s20 + $0x1e0] sm:$0xff] }
 0x2b1   : > { %6437 = vmatprep.subr.mxu1 %v11821_v22  ;;  %6964 = vmatpush3.msra.mxu0 %v10564_v54  ;;  %v10568_v11 = vadd.f32 %v6011_v25, %v6010_v13  ;;  %v11826_v13 = vld [vmem:[#allocation4_spill] sm:$0xff]  ;;  %v11827_v22 = vld [vmem:[#allocation5_spill] sm:$0xff]  ;;  %v7680_v25 = vld [vmem:[%s7915_s20 + $0x160] sm:$0xff] }
 0x2b2   : > { %6438 = vmatpush3.msra.mxu1 %v9595_v49  ;;  %6965 = vmatprep.subr.mxu0 %v11519_v61  ;;  %v10582_v49 = vld [vmem:[%s7915_s20 + $0xc08] sm:$0xff] }
 0x2b3   : > { %6439 = vmatprep.subr.mxu1 %v9601_v33  ;;  %6966 = vmatpush3.msra.mxu0 %v10573_v39  ;;  %v5099_v33 = vld.sshfl [vmem:[%s7965_s24 + $0x94] sm:$0x3 pattern:$0x76325410] }
 0x2b4   : > { %6440 = vmatpush3.msra.mxu1 %v9607_v53  ;;  %6967 = vmatprep.subr.mxu0 %v11519_v61  ;;  %v10590_v53 = vld [vmem:[%s7915_s20 + $0xc00] sm:$0xff] }
 0x2b5   : > { %6441 = vmatprep.subr.mxu1 %v9613_v14  ;;  %6968 = vmatpush3.msra.mxu0 %v10582_v49  ;;  %v3857_v14 = vcombine.high %v3849_v5, %v3849_v5 }
 0x2b6   : > { %6442 = vmatpush3.msra.mxu1 %v9618_v24  ;;  %6969 = vmatprep.subr.mxu0 %v11519_v61  ;;  %v7673_v24 = vld [vmem:[%s7915_s20 + $0x1f8] sm:$0xff] }
 0x2b7   : > { %6443 = vmatprep.subr.mxu1 %v9625_v32  ;;  %6970 = vmatpush3.msra.mxu0 %v10590_v53  ;;  %v7674_v32 = vld [vmem:[%s7915_s20 + $0x178] sm:$0xff] }
 0x2b8   : > { %6971 = vmatprep.mubr.msk.f32.mxu0 %vm7875_vm0, %v11519_v61  ;;  %6444 = vmatpush3.msra.mxu1 %v9630_v36  ;;  %v7676_v36 = vld [vmem:[%s7915_s20 + $0x170] sm:$0xff] }
 0x2b9   : > { %6972 = vmatmul.mubr.f32.vlgmr.msra.gmra.mxu0 %v5099_v33  ;;  %6445 = vmatprep.subr.mxu1 %v9635_v47  ;;  %v7677_v47 = vld [vmem:[%s7915_s20 + $0x1e8] sm:$0xff]  ;;  %v7681_v33 = vld [vmem:[%s7915_s20 + $0x1d8] sm:$0xff] }
 0x2ba   : > { %6450 = vmatprep.subr.mxu0 %v7673_v24  ;;  %6446 = vmatpush3.msra.mxu1 %v11822_v2  ;;  %v7682_v24 = vld [vmem:[%s7915_s20 + $0x158] sm:$0xff]  ;;  %v11830_v2 = vld [vmem:[#allocation8_spill] sm:$0xff] }
 0x2bb   : > { %6451 = vmatpush3.msra.mxu0 %v7674_v32  ;;  %4040 = vmatprep.mubr.f32.mxu1 %v3857_v14  ;;  %v11829_v14 = vld [vmem:[#allocation7_spill] sm:$0xff]  ;;  %v7683_v32 = vld [vmem:[%s7915_s20 + $0x1d0] sm:$0xff] }
 0x2bc   : > { %6452 = vmatprep.subr.mxu0 %v7675_v48  ;;  %6485 = vmatprep.subr.mxu1 %v11823_v62  ;;  %v11831_v48 = vld [vmem:[#allocation9_spill] sm:$0xff]  ;;  %v7684_v62 = vld [vmem:[%s7915_s20 + $0x150] sm:$0xff] }
 0x2bd   : > { %4041 = vmatmul.mubr.f32.vlgmr.msra.gmra.mxu1 %v3849_v5  ;;  %6453 = vmatpush3.msra.mxu0 %v7676_v36  ;;  %v11828_v5 = vld [vmem:[#allocation6_spill] sm:$0xff] }
 0x2be   : > { %6486 = vmatpush3.msra.mxu1 %v11824_v1  ;;  %6454 = vmatprep.subr.mxu0 %v7677_v47  ;;  %v11832_v36 = vld [vmem:[#allocation10_spill] sm:$0xff]  ;;  %v7685_v1 = vld [vmem:[%s7915_s20 + $0x1c8] sm:$0xff] }
 0x2bf   : > { %6487 = vmatprep.subr.mxu1 %v11825_v7  ;;  %6455 = vmatpush3.msra.mxu0 %v7678_v10  ;;  %v11833_v47 = vld [vmem:[#allocation11_spill] sm:$0xff]  ;;  %v6045_v7 = vpop.f32.mrf.mxu1 }
 0x2c0   : > { %6488 = vmatpush3.msra.mxu1 %v11826_v13  ;;  %6456 = vmatprep.subr.mxu0 %v7679_v19  ;;  %v7686_v10 = vld [vmem:[%s7915_s20 + $0x148] sm:$0xff]  ;;  %v11834_v13 = vld [vmem:[#allocation12_spill] sm:$0xff]  ;;  %v7687_v19 = vld [vmem:[%s7915_s20 + $0x1c0] sm:$0xff] }
 0x2c1   : > { %6489 = vmatprep.subr.mxu1 %v11827_v22  ;;  %6457 = vmatpush3.msra.mxu0 %v7680_v25  ;;  %v11835_v22 = vld [vmem:[#allocation13_spill] sm:$0xff]  ;;  %v7688_v25 = vld [vmem:[%s7915_s20 + $0x140] sm:$0xff] }
 0x2c2   : > { %6490 = vmatpush3.msra.mxu1 %v11828_v5  ;;  %6458 = vmatprep.subr.mxu0 %v7681_v33  ;;  %v11836_v5 = vld [vmem:[#allocation14_spill] sm:$0xff]  ;;  %v7689_v33 = vld [vmem:[%s7915_s20 + $0x1b8] sm:$0xff] }
 0x2c3   : > { %6491 = vmatprep.subr.mxu1 %v11829_v14  ;;  %6459 = vmatpush3.msra.mxu0 %v7682_v24  ;;  %v11837_v14 = vld [vmem:[#allocation15_spill] sm:$0xff]  ;;  %v6046_v24 = vpop.f32.mrf.mxu1 }
 0x2c4   : > { %6492 = vmatpush3.msra.mxu1 %v11830_v2  ;;  %6460 = vmatprep.subr.mxu0 %v7683_v32  ;;  %v7690_v2 = vld [vmem:[%s7915_s20 + $0x138] sm:$0xff]  ;;  %v11838_v32 = vld [vmem:[#allocation16_spill] sm:$0xff] }
 0x2c5   : > { %6493 = vmatprep.subr.mxu1 %v11831_v48  ;;  %6461 = vmatpush3.msra.mxu0 %v7684_v62  ;;  %v7691_v48 = vld [vmem:[%s7915_s20 + $0x1b0] sm:$0xff]  ;;  %v11839_v62 = vld [vmem:[#allocation17_spill] sm:$0xff] }
 0x2c6   : > { %6494 = vmatpush3.msra.mxu1 %v11832_v36  ;;  %6462 = vmatprep.subr.mxu0 %v7685_v1  ;;  %v7692_v36 = vld [vmem:[%s7915_s20 + $0x130] sm:$0xff]  ;;  %v11840_v1 = vld [vmem:[#allocation18_spill] sm:$0xff] }
 0x2c7   : > { %6495 = vmatprep.subr.mxu1 %v11833_v47  ;;  %6463 = vmatpush3.msra.mxu0 %v7686_v10  ;;  %v3842_v47 = vcombine.high %v10561_v46, %v10561_v46  ;;  %v6047_v10 = vadd.f32 %v6046_v24, %v6045_v7  ;;  %v11844_v46 = vld [vmem:[#allocation22_spill] sm:$0xff] }
 0x2c8   : > { %6496 = vmatpush3.msra.mxu1 %v11834_v13  ;;  %6464 = vmatprep.subr.mxu0 %v7687_v19  ;;  %v7693_v13 = vld [vmem:[%s7915_s20 + $0x1a8] sm:$0xff]  ;;  %v10648_v24 = vld [vmem:[%s7965_s24 + $0x9e] sm:$0xff] }
 0x2c9   : > { %6497 = vmatprep.subr.mxu1 %v11835_v22  ;;  %6465 = vmatpush3.msra.mxu0 %v7688_v25  ;;  %v11841_v19 = vld [vmem:[#allocation19_spill] sm:$0xff]  ;;  %v11842_v25 = vld [vmem:[#allocation20_spill] sm:$0xff]  ;;  %v3856_v7 = vrot.slane %v3842_v47, %v7972_v51  ;;  %v11847_v47 = vld [vmem:[#allocation25_spill] sm:$0xff] }
 0x2ca   : > { %6498 = vmatpush3.msra.mxu1 %v11836_v5  ;;  %6466 = vmatprep.subr.mxu0 %v7689_v33  ;;  %v7694_v22 = vld [vmem:[%s7915_s20 + $0x128] sm:$0xff]  ;;  %v7695_v33 = vld [vmem:[%s7915_s20 + $0x1a0] sm:$0xff] }
 0x2cb   : > { %6499 = vmatprep.subr.mxu1 %v11837_v14  ;;  %6467 = vmatpush3.msra.mxu0 %v7690_v2  ;;  %v11843_v14 = vld [vmem:[#allocation21_spill] sm:$0xff]  ;;  %v7696_v2 = vld [vmem:[%s7915_s20 + $0x120] sm:$0xff] }
 0x2cc   : > { %6500 = vmatpush3.msra.mxu1 %v11838_v32  ;;  %6468 = vmatprep.subr.mxu0 %v7691_v48  ;;  %v3062_v48 = vadd.f32 %v6047_v10, %v10568_v11  ;;  %v7700_v10 = vld [vmem:[%s7915_s20 + $0x110] sm:$0xff] }
 0x2cd   : > { %6501 = vmatprep.subr.mxu1 %v11839_v62  ;;  %6469 = vmatpush3.msra.mxu0 %v7692_v36  ;;  %v7697_v62 = vld [vmem:[%s7915_s20 + $0x198] sm:$0xff]  ;;  %v11845_v36 = vld [vmem:[#allocation23_spill] sm:$0xff] }
 0x2ce   : > { %6502 = vmatpush3.msra.mxu1 %v11840_v1  ;;  %6470 = vmatprep.subr.mxu0 %v7693_v13  ;;  %v7698_v13 = vld [vmem:[%s7915_s20 + $0x118] sm:$0xff] }
 0x2cf   : > { %6503 = vmatprep.subr.mxu1 %v11841_v19  ;;  %6471 = vmatpush3.msra.mxu0 %v7694_v22  ;;  %v6080_v5 = vpop.f32.mrf.mxu0  ;;  %v11846_v19 = vld [vmem:[#allocation24_spill] sm:$0xff] }
 0x2d0   : > { %6504 = vmatpush3.msra.mxu1 %v11842_v25  ;;  %6472 = vmatprep.subr.mxu0 %v7695_v33  ;;  %v7699_v22 = vld [vmem:[%s7915_s20 + $0x190] sm:$0xff]  ;;  %v3866_v25 = vrot.slane %v10648_v24, %v7972_v51  ;;  %v11848_v33 = vld [vmem:[#allocation26_spill] sm:$0xff] }
 0x2d1   : > { %6505 = vmatprep.subr.mxu1 %v11843_v14  ;;  %6473 = vmatpush3.msra.mxu0 %v7696_v2  ;;  %v6081_v32 = vpop.f32.mrf.mxu0  ;;  %v7701_v14 = vld [vmem:[%s7915_s20 + $0x188] sm:$0xff] }
 0x2d2   : > { %6506 = vmatpush3.msra.mxu1 %v11844_v46  ;;  %6474 = vmatprep.subr.mxu0 %v7697_v62  ;;  %v6082_v1 = vadd.f32 %v6081_v32, %v6080_v5  ;;  %v3858_v5 = vcombine.high %v3856_v7, %v3856_v7  ;;  %v11849_v2 = vld [vmem:[#allocation27_spill] sm:$0xff]  ;;  %v11850_v32 = vld [vmem:[#allocation28_spill] sm:$0xff]  ;;  %v7703_v62 = vld [vmem:[%s7915_s20 + $0x180] sm:$0xff] }
 0x2d3   : > { %6507 = vmatprep.subr.mxu1 %v11845_v36  ;;  %6475 = vmatpush3.msra.mxu0 %v7698_v13  ;;  %v7702_v46 = vld [vmem:[%s7915_s20 + $0x108] sm:$0xff]  ;;  %v11851_v36 = vld [vmem:[#allocation29_spill] sm:$0xff]  ;;  %v11852_v13 = vld [vmem:[#allocation30_spill] sm:$0xff] }
 0x2d4   : > { %6508 = vmatpush3.msra.mxu1 %v11846_v19  ;;  %6476 = vmatprep.subr.mxu0 %v7699_v22  ;;  %v10659_v11 = vadd.f32 %v6082_v1, %v3062_v48  ;;  %v3874_v48 = vcombine.high %v3866_v25, %v3866_v25  ;;  %v7704_v1 = vld [vmem:[%s7915_s20 + $0x100] sm:$0xff]  ;;  %v7705_v22 = vld [vmem:[%s7915_s20 + $0x3f8] sm:$0xff] }
 0x2d5   : > { %6509 = vmatprep.subr.mxu1 %v11847_v47  ;;  %6477 = vmatpush3.msra.mxu0 %v7700_v10  ;;  %v11853_v19 = vld [vmem:[#allocation150_spill] sm:$0xff]  ;;  %v11854_v47 = vld [vmem:[#allocation31_spill] sm:$0xff]  ;;  %v7706_v10 = vld [vmem:[%s7915_s20 + $0x378] sm:$0xff] }
 0x2d6   : > { %6510 = vmatpush3.msra.mxu1 %v11848_v33  ;;  %6478 = vmatprep.subr.mxu0 %v7701_v14  ;;  %v7707_v33 = vld [vmem:[%s7915_s20 + $0x3f0] sm:$0xff] }
 0x2d7   : > { %6511 = vmatprep.subr.mxu1 %v11849_v2  ;;  %6479 = vmatpush3.msra.mxu0 %v7702_v46  ;;  %v7708_v14 = vld [vmem:[%s7915_s20 + $0x370] sm:$0xff]  ;;  %v7709_v2 = vld [vmem:[%s7915_s20 + $0x3e8] sm:$0xff] }
 0x2d8   : > { %6512 = vmatpush3.msra.mxu1 %v11850_v32  ;;  %6480 = vmatprep.subr.mxu0 %v7703_v62  ;;  %v11857_v46 = vld [vmem:[#allocation151_spill] sm:$0xff]  ;;  %v11858_v62 = vld [vmem:[#allocation34_spill] sm:$0xff] }
 0x2d9   : > { %6513 = vmatprep.subr.mxu1 %v11851_v36  ;;  %6481 = vmatpush3.msra.mxu0 %v7704_v1  ;;  %v7710_v32 = vld [vmem:[%s7915_s20 + $0x368] sm:$0xff]  ;;  %v11860_v1 = vld [vmem:[#allocation36_spill] sm:$0xff] }
 0x2da   : > { %4110 = vmatprep.mubr.f32.mxu0 %v3858_v5  ;;  %6514 = vmatpush3.msra.mxu1 %v11852_v13  ;;  %v11855_v5 = vld [vmem:[#allocation32_spill] sm:$0xff]  ;;  %v11859_v36 = vld [vmem:[#allocation35_spill] sm:$0xff]  ;;  %v7713_v13 = vld [vmem:[%s7915_s20 + $0x3d8] sm:$0xff] }
 0x2db   : > { %4111 = vmatmul.mubr.f32.vlgmr.msra.gmra.mxu0 %v3856_v7  ;;  %6515 = vmatprep.subr.mxu1 %v11853_v19  ;;  %v11856_v7 = vld [vmem:[#allocation33_spill] sm:$0xff] }
 0x2dc   : > { %6520 = vmatprep.subr.mxu0 %v7705_v22  ;;  %6516 = vmatpush3.msra.mxu1 %v11854_v47  ;;  %v11861_v19 = vld [vmem:[#allocation37_spill] sm:$0xff]  ;;  %v11862_v47 = vld [vmem:[#allocation38_spill] sm:$0xff] }
 0x2dd   : > { %4180 = vmatprep.mubr.f32.mxu1 %v3874_v48  ;;  %6521 = vmatpush3.msra.mxu0 %v7706_v10  ;;  %v7712_v48 = vld [vmem:[%s7915_s20 + $0x360] sm:$0xff]  ;;  %v7714_v22 = vld [vmem:[%s7915_s20 + $0x358] sm:$0xff]  ;;  %v7715_v10 = vld [vmem:[%s7915_s20 + $0x3d0] sm:$0xff] }
 0x2de   : > { %4181 = vmatmul.mubr.f32.vlgmr.msra.gmra.mxu1 %v3866_v25  ;;  %6522 = vmatprep.subr.mxu0 %v7707_v33  ;;  %v7711_v25 = vld [vmem:[%s7915_s20 + $0x3e0] sm:$0xff]  ;;  %v11863_v33 = vld [vmem:[#allocation39_spill] sm:$0xff] }
 0x2df   : > { %6555 = vmatprep.subr.mxu1 %v11855_v5  ;;  %6523 = vmatpush3.msra.mxu0 %v7708_v14  ;;  %v7716_v5 = vld [vmem:[%s7915_s20 + $0x350] sm:$0xff] }
 0x2e0   : > { %6556 = vmatpush3.msra.mxu1 %v11856_v7  ;;  %6524 = vmatprep.subr.mxu0 %v7709_v2  ;;  %v11864_v14 = vld [vmem:[#allocation40_spill] sm:$0xff]  ;;  %v6115_v7 = vpop.f32.mrf.mxu1  ;;  %v7717_v2 = vld [vmem:[%s7915_s20 + $0x3c8] sm:$0xff] }
 0x2e1   : > { %6557 = vmatprep.subr.mxu1 %v11857_v46  ;;  %6525 = vmatpush3.msra.mxu0 %v7710_v32  ;;  %v11865_v46 = vld [vmem:[#allocation41_spill] sm:$0xff]  ;;  %v7718_v32 = vld [vmem:[%s7915_s20 + $0x348] sm:$0xff] }
 0x2e2   : > { %6558 = vmatpush3.msra.mxu1 %v11858_v62  ;;  %6526 = vmatprep.subr.mxu0 %v7711_v25  ;;  %v11866_v62 = vld [vmem:[#allocation42_spill] sm:$0xff] }
 0x2e3   : > { %6559 = vmatprep.subr.mxu1 %v11859_v36  ;;  %6527 = vmatpush3.msra.mxu0 %v7712_v48  ;;  %v7719_v25 = vld [vmem:[%s7915_s20 + $0x3c0] sm:$0xff]  ;;  %v11867_v36 = vld [vmem:[#allocation43_spill] sm:$0xff] }
 0x2e4   : > { %6560 = vmatpush3.msra.mxu1 %v11860_v1  ;;  %6528 = vmatprep.subr.mxu0 %v7713_v13  ;;  %v7720_v48 = vld [vmem:[%s7915_s20 + $0x340] sm:$0xff]  ;;  %v11868_v1 = vld [vmem:[#allocation44_spill] sm:$0xff]  ;;  %v6116_v13 = vpop.f32.mrf.mxu1 }
 0x2e5   : > { %6561 = vmatprep.subr.mxu1 %v11861_v19  ;;  %6529 = vmatpush3.msra.mxu0 %v7714_v22  ;;  %v7721_v19 = vld [vmem:[%s7915_s20 + $0x3b8] sm:$0xff] }
 0x2e6   : > { %6562 = vmatpush3.msra.mxu1 %v11862_v47  ;;  %6530 = vmatprep.subr.mxu0 %v7715_v10  ;;  %v11869_v22 = vld [vmem:[#allocation45_spill] sm:$0xff]  ;;  %v11870_v10 = vld [vmem:[#allocation46_spill] sm:$0xff] }
 0x2e7   : > { %6563 = vmatprep.subr.mxu1 %v11863_v33  ;;  %6531 = vmatpush3.msra.mxu0 %v7716_v5  ;;  %v7722_v47 = vld [vmem:[%s7915_s20 + $0x338] sm:$0xff]  ;;  %v7723_v33 = vld [vmem:[%s7915_s20 + $0x3b0] sm:$0xff]  ;;  %v11871_v5 = vld [vmem:[#allocation47_spill] sm:$0xff] }
 0x2e8   : > { %6564 = vmatpush3.msra.mxu1 %v11864_v14  ;;  %6532 = vmatprep.subr.mxu0 %v7717_v2  ;;  %v6117_v14 = vadd.f32 %v6116_v13, %v6115_v7  ;;  %v7724_v2 = vld [vmem:[%s7915_s20 + $0x330] sm:$0xff]  ;;  %v7727_v7 = vld [vmem:[%s7915_s20 + $0x3a0] sm:$0xff]  ;;  %v11875_v13 = vld [vmem:[#allocation51_spill] sm:$0xff] }
 0x2e9   : > { %6565 = vmatprep.subr.mxu1 %v11865_v46  ;;  %6533 = vmatpush3.msra.mxu0 %v7718_v32  ;;  %v11872_v46 = vld [vmem:[#allocation48_spill] sm:$0xff]  ;;  %v3859_v32 = vcombine.high %v10648_v24, %v10648_v24 }
 0x2ea   : > { %6566 = vmatpush3.msra.mxu1 %v11866_v62  ;;  %6534 = vmatprep.subr.mxu0 %v7719_v25  ;;  %v7725_v62 = vld [vmem:[%s7915_s20 + $0x3a8] sm:$0xff]  ;;  %v11873_v25 = vld [vmem:[#allocation49_spill] sm:$0xff]  ;;  %v3202_v24 = vadd.f32 %v6117_v14, %v10659_v11  ;;  %v7731_v14 = vld [vmem:[%s7915_s20 + $0x390] sm:$0xff] }
 0x2eb   : > { %6567 = vmatprep.subr.mxu1 %v11867_v36  ;;  %6535 = vmatpush3.msra.mxu0 %v7720_v48  ;;  %v7726_v48 = vld [vmem:[%s7915_s20 + $0x328] sm:$0xff] }
 0x2ec   : > { %6568 = vmatpush3.msra.mxu1 %v11868_v1  ;;  %6536 = vmatprep.subr.mxu0 %v7721_v19  ;;  %v11874_v1 = vld [vmem:[#allocation50_spill] sm:$0xff] }
 0x2ed   : > { %6569 = vmatprep.subr.mxu1 %v11869_v22  ;;  %6537 = vmatpush3.msra.mxu0 %v7722_v47  ;;  %v7728_v22 = vld [vmem:[%s7915_s20 + $0x320] sm:$0xff]  ;;  %v11876_v47 = vld [vmem:[#allocation52_spill] sm:$0xff] }
 0x2ee   : > { %6570 = vmatpush3.msra.mxu1 %v11870_v10  ;;  %6538 = vmatprep.subr.mxu0 %v7723_v33  ;;  %v3873_v10 = vrot.slane %v3859_v32, %v7972_v51  ;;  %v10724_v33 = vld [vmem:[%s7965_s24 + $0xa6] sm:$0xff] }
 0x2ef   : > { %6571 = vmatprep.subr.mxu1 %v11871_v5  ;;  %6539 = vmatpush3.msra.mxu0 %v7724_v2  ;;  %v7729_v2 = vld [vmem:[%s7915_s20 + $0x398] sm:$0xff]  ;;  %v3883_v32 = vrot.slane %v10724_v33, %v7972_v51 }
 0x2f0   : > { %6572 = vmatpush3.msra.mxu1 %v11872_v46  ;;  %6540 = vmatprep.subr.mxu0 %v7725_v62  ;;  %v11877_v46 = vld [vmem:[#allocation53_spill] sm:$0xff] }
 0x2f1   : > { %6573 = vmatprep.subr.mxu1 %v11873_v25  ;;  %v6150_v36 = vpop.f32.mrf.mxu0  ;;  %6541 = vmatpush3.msra.mxu0 %v7726_v48  ;;  %v7730_v62 = vld [vmem:[%s7915_s20 + $0x318] sm:$0xff]  ;;  %v11878_v25 = vld [vmem:[#allocation54_spill] sm:$0xff]  ;;  %v11879_v48 = vld [vmem:[#allocation55_spill] sm:$0xff] }
 0x2f2   : > { %6574 = vmatpush3.msra.mxu1 %v11874_v1  ;;  %6542 = vmatprep.subr.mxu0 %v7727_v7  ;;  %v11880_v1 = vld [vmem:[#allocation56_spill] sm:$0xff]  ;;  %v3875_v7 = vcombine.high %v3873_v10, %v3873_v10 }
 0x2f3   : > { %6575 = vmatprep.subr.mxu1 %v11875_v13  ;;  %v6151_v19 = vpop.f32.mrf.mxu0  ;;  %6543 = vmatpush3.msra.mxu0 %v7728_v22  ;;  %v7733_v13 = vld [vmem:[%s7915_s20 + $0x388] sm:$0xff]  ;;  %v11882_v22 = vld [vmem:[#allocation58_spill] sm:$0xff] }
 0x2f4   : > { %6576 = vmatpush3.msra.mxu1 %v11876_v47  ;;  %v6152_v5 = vadd.f32 %v6151_v19, %v6150_v36  ;;  %6544 = vmatprep.subr.mxu0 %v7729_v2  ;;  %v7732_v36 = vld [vmem:[%s7915_s20 + $0x310] sm:$0xff]  ;;  %v11881_v19 = vld [vmem:[#allocation57_spill] sm:$0xff]  ;;  %v7735_v47 = vld [vmem:[%s7915_s20 + $0x380] sm:$0xff]  ;;  %v3891_v2 = vcombine.high %v3883_v32, %v3883_v32 }
 0x2f5   : > { %6577 = vmatprep.subr.mxu1 %v11877_v46  ;;  %6545 = vmatpush3.msra.mxu0 %v7730_v62  ;;  %v7736_v46 = vld [vmem:[%s7915_s20 + $0x300] sm:$0xff]  ;;  %v11884_v62 = vld [vmem:[#allocation60_spill] sm:$0xff] }
 0x2f6   : > { %6578 = vmatpush3.msra.mxu1 %v11878_v25  ;;  %v10730_v11 = vadd.f32 %v6152_v5, %v3202_v24  ;;  %6546 = vmatprep.subr.mxu0 %v7731_v14  ;;  %v7734_v24 = vld [vmem:[%s7915_s20 + $0x308] sm:$0xff]  ;;  %v11885_v25 = vld [vmem:[#allocation61_spill] sm:$0xff] }
 0x2f7   : > { %6579 = vmatprep.subr.mxu1 %v11879_v48  ;;  %6547 = vmatpush3.msra.mxu0 %v7732_v36  ;;  %v11883_v5 = vld [vmem:[#allocation59_spill] sm:$0xff]  ;;  %v7737_v14 = vld [vmem:[%s7915_s20 + $0x5f8] sm:$0xff]  ;;  %v11886_v48 = vld [vmem:[#allocation62_spill] sm:$0xff] }
 0x2f8   : > { %6580 = vmatpush3.msra.mxu1 %v11880_v1  ;;  %6548 = vmatprep.subr.mxu0 %v7733_v13  ;;  %v7738_v36 = vld [vmem:[%s7915_s20 + $0x578] sm:$0xff]  ;;  %v7739_v1 = vld [vmem:[%s7915_s20 + $0x5f0] sm:$0xff] }
 0x2f9   : > { %6581 = vmatprep.subr.mxu1 %v11881_v19  ;;  %6549 = vmatpush3.msra.mxu0 %v7734_v24  ;;  %v7740_v13 = vld [vmem:[%s7915_s20 + $0x570] sm:$0xff]  ;;  %v7741_v19 = vld [vmem:[%s7915_s20 + $0x5e8] sm:$0xff]  ;;  %v11889_v24 = vld [vmem:[#allocation65_spill] sm:$0xff] }
 0x2fa   : > { %6582 = vmatpush3.msra.mxu1 %v11882_v22  ;;  %6550 = vmatprep.subr.mxu0 %v7735_v47  ;;  %v7742_v22 = vld [vmem:[%s7915_s20 + $0x568] sm:$0xff]  ;;  %v11890_v47 = vld [vmem:[#allocation66_spill] sm:$0xff] }
 0x2fb   : > { %6583 = vmatprep.subr.mxu1 %v11883_v5  ;;  %6551 = vmatpush3.msra.mxu0 %v7736_v46  ;;  %v11891_v5 = vld [vmem:[#allocation67_spill] sm:$0xff]  ;;  %v11892_v46 = vld [vmem:[#allocation68_spill] sm:$0xff] }
 0x2fc   : > { %4250 = vmatprep.mubr.f32.mxu0 %v3875_v7  ;;  %6584 = vmatpush3.msra.mxu1 %v11884_v62  ;;  %v11887_v7 = vld [vmem:[#allocation63_spill] sm:$0xff]  ;;  %v7745_v62 = vld [vmem:[%s7915_s20 + $0x5d8] sm:$0xff] }
 0x2fd   : > { %4251 = vmatmul.mubr.f32.vlgmr.msra.gmra.mxu0 %v3873_v10  ;;  %6585 = vmatprep.subr.mxu1 %v11885_v25  ;;  %v11888_v10 = vld [vmem:[#allocation64_spill] sm:$0xff]  ;;  %v11893_v25 = vld [vmem:[#allocation69_spill] sm:$0xff] }
 0x2fe   : > { %6590 = vmatprep.subr.mxu0 %v7737_v14  ;;  %6586 = vmatpush3.msra.mxu1 %v11886_v48  ;;  %v7746_v14 = vld [vmem:[%s7915_s20 + $0x558] sm:$0xff]  ;;  %v11894_v48 = vld [vmem:[#allocation70_spill] sm:$0xff] }
 0x2ff   : > { %4320 = vmatprep.mubr.f32.mxu1 %v3891_v2  ;;  %6591 = vmatpush3.msra.mxu0 %v7738_v36  ;;  %v7744_v2 = vld [vmem:[%s7915_s20 + $0x560] sm:$0xff]  ;;  %v7747_v36 = vld [vmem:[%s7915_s20 + $0x5d0] sm:$0xff] }
 0x300   : > { %4321 = vmatmul.mubr.f32.vlgmr.msra.gmra.mxu1 %v3883_v32  ;;  %6592 = vmatprep.subr.mxu0 %v7739_v1  ;;  %v7743_v32 = vld [vmem:[%s7915_s20 + $0x5e0] sm:$0xff]  ;;  %v11895_v1 = vld [vmem:[#allocation71_spill] sm:$0xff] }
 0x301   : > { %6625 = vmatprep.subr.mxu1 %v11887_v7  ;;  %6593 = vmatpush3.msra.mxu0 %v7740_v13  ;;  %v7748_v7 = vld [vmem:[%s7915_s20 + $0x550] sm:$0xff] }
 0x302   : > { %6626 = vmatpush3.msra.mxu1 %v11888_v10  ;;  %6594 = vmatprep.subr.mxu0 %v7741_v19  ;;  %v11896_v13 = vld [vmem:[#allocation72_spill] sm:$0xff]  ;;  %v6185_v10 = vpop.f32.mrf.mxu1  ;;  %v7749_v19 = vld [vmem:[%s7915_s20 + $0x5c8] sm:$0xff] }
 0x303   : > { %6627 = vmatprep.subr.mxu1 %v11889_v24  ;;  %6595 = vmatpush3.msra.mxu0 %v7742_v22  ;;  %v11897_v24 = vld [vmem:[#allocation73_spill] sm:$0xff]  ;;  %v7750_v22 = vld [vmem:[%s7915_s20 + $0x548] sm:$0xff] }
 0x304   : > { %6628 = vmatpush3.msra.mxu1 %v11890_v47  ;;  %6596 = vmatprep.subr.mxu0 %v7743_v32  ;;  %v11898_v47 = vld [vmem:[#allocation74_spill] sm:$0xff] }
 0x305   : > { %6629 = vmatprep.subr.mxu1 %v11891_v5  ;;  %6597 = vmatpush3.msra.mxu0 %v7744_v2  ;;  %v7751_v32 = vld [vmem:[%s7915_s20 + $0x5c0] sm:$0xff]  ;;  %v11899_v5 = vld [vmem:[#allocation75_spill] sm:$0xff] }
 0x306   : > { %6630 = vmatpush3.msra.mxu1 %v11892_v46  ;;  %6598 = vmatprep.subr.mxu0 %v7745_v62  ;;  %v7752_v2 = vld [vmem:[%s7915_s20 + $0x540] sm:$0xff]  ;;  %v11900_v46 = vld [vmem:[#allocation76_spill] sm:$0xff]  ;;  %v6186_v62 = vpop.f32.mrf.mxu1 }
 0x307   : > { %6631 = vmatprep.subr.mxu1 %v11893_v25  ;;  %6599 = vmatpush3.msra.mxu0 %v7746_v14  ;;  %v7753_v25 = vld [vmem:[%s7915_s20 + $0x5b8] sm:$0xff] }
 0x308   : > { %6632 = vmatpush3.msra.mxu1 %v11894_v48  ;;  %6600 = vmatprep.subr.mxu0 %v7747_v36  ;;  %v11901_v14 = vld [vmem:[#allocation77_spill] sm:$0xff]  ;;  %v11902_v36 = vld [vmem:[#allocation78_spill] sm:$0xff] }
 0x309   : > { %6633 = vmatprep.subr.mxu1 %v11895_v1  ;;  %6601 = vmatpush3.msra.mxu0 %v7748_v7  ;;  %v7754_v48 = vld [vmem:[%s7915_s20 + $0x538] sm:$0xff]  ;;  %v7755_v1 = vld [vmem:[%s7915_s20 + $0x5b0] sm:$0xff]  ;;  %v11903_v7 = vld [vmem:[#allocation79_spill] sm:$0xff] }
 0x30a   : > { %6634 = vmatpush3.msra.mxu1 %v11896_v13  ;;  %6602 = vmatprep.subr.mxu0 %v7749_v19  ;;  %v6187_v13 = vadd.f32 %v6186_v62, %v6185_v10  ;;  %v7756_v19 = vld [vmem:[%s7915_s20 + $0x530] sm:$0xff]  ;;  %v7759_v10 = vld [vmem:[%s7915_s20 + $0x5a0] sm:$0xff]  ;;  %v11907_v62 = vld [vmem:[#allocation83_spill] sm:$0xff] }
 0x30b   : > { %6635 = vmatprep.subr.mxu1 %v11897_v24  ;;  %6603 = vmatpush3.msra.mxu0 %v7750_v22  ;;  %v11904_v24 = vld [vmem:[#allocation80_spill] sm:$0xff]  ;;  %v3876_v22 = vcombine.high %v10724_v33, %v10724_v33 }
 0x30c   : > { %6636 = vmatpush3.msra.mxu1 %v11898_v47  ;;  %6604 = vmatprep.subr.mxu0 %v7751_v32  ;;  %v7757_v47 = vld [vmem:[%s7915_s20 + $0x5a8] sm:$0xff]  ;;  %v11905_v32 = vld [vmem:[#allocation81_spill] sm:$0xff]  ;;  %v3342_v33 = vadd.f32 %v6187_v13, %v10730_v11  ;;  %v7763_v13 = vld [vmem:[%s7915_s20 + $0x590] sm:$0xff] }
 0x30d   : > { %6637 = vmatprep.subr.mxu1 %v11899_v5  ;;  %6605 = vmatpush3.msra.mxu0 %v7752_v2  ;;  %v7758_v2 = vld [vmem:[%s7915_s20 + $0x528] sm:$0xff] }
 0x30e   : > { %6638 = vmatpush3.msra.mxu1 %v11900_v46  ;;  %6606 = vmatprep.subr.mxu0 %v7753_v25  ;;  %v11906_v46 = vld [vmem:[#allocation82_spill] sm:$0xff] }
 0x30f   : > { %6639 = vmatprep.subr.mxu1 %v11901_v14  ;;  %6607 = vmatpush3.msra.mxu0 %v7754_v48  ;;  %v7760_v14 = vld [vmem:[%s7915_s20 + $0x520] sm:$0xff]  ;;  %v11908_v48 = vld [vmem:[#allocation84_spill] sm:$0xff] }
 0x310   : > { %6640 = vmatpush3.msra.mxu1 %v11902_v36  ;;  %6608 = vmatprep.subr.mxu0 %v7755_v1  ;;  %v3890_v36 = vrot.slane %v3876_v22, %v7972_v51  ;;  %v10799_v1 = vld [vmem:[%s7965_s24 + $0xae] sm:$0xff] }
 0x311   : > { %6641 = vmatprep.subr.mxu1 %v11903_v7  ;;  %6609 = vmatpush3.msra.mxu0 %v7756_v19  ;;  %v7761_v19 = vld [vmem:[%s7915_s20 + $0x598] sm:$0xff]  ;;  %v3900_v22 = vrot.slane %v10799_v1, %v7972_v51 }
 0x312   : > { %6642 = vmatpush3.msra.mxu1 %v11904_v24  ;;  %6610 = vmatprep.subr.mxu0 %v7757_v47  ;;  %v11909_v24 = vld [vmem:[#allocation85_spill] sm:$0xff] }
 0x313   : > { %6643 = vmatprep.subr.mxu1 %v11905_v32  ;;  %v6220_v5 = vpop.f32.mrf.mxu0  ;;  %6611 = vmatpush3.msra.mxu0 %v7758_v2  ;;  %v7762_v47 = vld [vmem:[%s7915_s20 + $0x518] sm:$0xff]  ;;  %v11910_v32 = vld [vmem:[#allocation86_spill] sm:$0xff]  ;;  %v11911_v2 = vld [vmem:[#allocation87_spill] sm:$0xff] }
 0x314   : > { %6644 = vmatpush3.msra.mxu1 %v11906_v46  ;;  %6612 = vmatprep.subr.mxu0 %v7759_v10  ;;  %v11912_v46 = vld [vmem:[#allocation88_spill] sm:$0xff]  ;;  %v3892_v10 = vcombine.high %v3890_v36, %v3890_v36 }
 0x315   : > { %6645 = vmatprep.subr.mxu1 %v11907_v62  ;;  %v6221_v25 = vpop.f32.mrf.mxu0  ;;  %6613 = vmatpush3.msra.mxu0 %v7760_v14  ;;  %v7765_v62 = vld [vmem:[%s7915_s20 + $0x588] sm:$0xff]  ;;  %v11914_v14 = vld [vmem:[#allocation90_spill] sm:$0xff] }
 0x316   : > { %6646 = vmatpush3.msra.mxu1 %v11908_v48  ;;  %v6222_v7 = vadd.f32 %v6221_v25, %v6220_v5  ;;  %6614 = vmatprep.subr.mxu0 %v7761_v19  ;;  %v7764_v5 = vld [vmem:[%s7915_s20 + $0x510] sm:$0xff]  ;;  %v11913_v25 = vld [vmem:[#allocation89_spill] sm:$0xff]  ;;  %v7767_v48 = vld [vmem:[%s7915_s20 + $0x580] sm:$0xff]  ;;  %v3908_v19 = vcombine.high %v3900_v22, %v3900_v22 }
 0x317   : > { %6647 = vmatprep.subr.mxu1 %v11909_v24  ;;  %6615 = vmatpush3.msra.mxu0 %v7762_v47  ;;  %v7768_v24 = vld [vmem:[%s7915_s20 + $0x500] sm:$0xff]  ;;  %v11916_v47 = vld [vmem:[#allocation92_spill] sm:$0xff] }
 0x318   : > { %6648 = vmatpush3.msra.mxu1 %v11910_v32  ;;  %v10805_v11 = vadd.f32 %v6222_v7, %v3342_v33  ;;  %6616 = vmatprep.subr.mxu0 %v7763_v13  ;;  %v7766_v33 = vld [vmem:[%s7915_s20 + $0x508] sm:$0xff]  ;;  %v11917_v32 = vld [vmem:[#allocation93_spill] sm:$0xff] }
 0x319   : > { %6649 = vmatprep.subr.mxu1 %v11911_v2  ;;  %6617 = vmatpush3.msra.mxu0 %v7764_v5  ;;  %v11915_v7 = vld [vmem:[#allocation91_spill] sm:$0xff]  ;;  %v7769_v13 = vld [vmem:[%s7915_s20 + $0x7f8] sm:$0xff]  ;;  %v11918_v2 = vld [vmem:[#allocation94_spill] sm:$0xff] }
 0x31a   : > { %6650 = vmatpush3.msra.mxu1 %v11912_v46  ;;  %6618 = vmatprep.subr.mxu0 %v7765_v62  ;;  %v7770_v5 = vld [vmem:[%s7915_s20 + $0x778] sm:$0xff]  ;;  %v7771_v46 = vld [vmem:[%s7915_s20 + $0x7f0] sm:$0xff] }
 0x31b   : > { %6651 = vmatprep.subr.mxu1 %v11913_v25  ;;  %6619 = vmatpush3.msra.mxu0 %v7766_v33  ;;  %v7772_v62 = vld [vmem:[%s7915_s20 + $0x770] sm:$0xff]  ;;  %v7773_v25 = vld [vmem:[%s7915_s20 + $0x7e8] sm:$0xff]  ;;  %v11921_v33 = vld [vmem:[#allocation97_spill] sm:$0xff] }
 0x31c   : > { %6652 = vmatpush3.msra.mxu1 %v11914_v14  ;;  %6620 = vmatprep.subr.mxu0 %v7767_v48  ;;  %v7774_v14 = vld [vmem:[%s7915_s20 + $0x768] sm:$0xff]  ;;  %v11922_v48 = vld [vmem:[#allocation98_spill] sm:$0xff] }
 0x31d   : > { %6653 = vmatprep.subr.mxu1 %v11915_v7  ;;  %6621 = vmatpush3.msra.mxu0 %v7768_v24  ;;  %v11923_v7 = vld [vmem:[#allocation99_spill] sm:$0xff]  ;;  %v11924_v24 = vld [vmem:[#allocation100_spill] sm:$0xff] }
 0x31e   : > { %4390 = vmatprep.mubr.f32.mxu0 %v3892_v10  ;;  %6654 = vmatpush3.msra.mxu1 %v11916_v47  ;;  %v11919_v10 = vld [vmem:[#allocation95_spill] sm:$0xff]  ;;  %v7777_v47 = vld [vmem:[%s7915_s20 + $0x7d8] sm:$0xff] }
 0x31f   : > { %4391 = vmatmul.mubr.f32.vlgmr.msra.gmra.mxu0 %v3890_v36  ;;  %6655 = vmatprep.subr.mxu1 %v11917_v32  ;;  %v11920_v36 = vld [vmem:[#allocation96_spill] sm:$0xff]  ;;  %v11925_v32 = vld [vmem:[#allocation101_spill] sm:$0xff] }
 0x320   : > { %6660 = vmatprep.subr.mxu0 %v7769_v13  ;;  %6656 = vmatpush3.msra.mxu1 %v11918_v2  ;;  %v7778_v13 = vld [vmem:[%s7915_s20 + $0x758] sm:$0xff]  ;;  %v11926_v2 = vld [vmem:[#allocation102_spill] sm:$0xff] }
 0x321   : > { %4460 = vmatprep.mubr.f32.mxu1 %v3908_v19  ;;  %6661 = vmatpush3.msra.mxu0 %v7770_v5  ;;  %v7776_v19 = vld [vmem:[%s7915_s20 + $0x760] sm:$0xff]  ;;  %v7779_v5 = vld [vmem:[%s7915_s20 + $0x7d0] sm:$0xff] }
 0x322   : > { %4461 = vmatmul.mubr.f32.vlgmr.msra.gmra.mxu1 %v3900_v22  ;;  %6662 = vmatprep.subr.mxu0 %v7771_v46  ;;  %v7775_v22 = vld [vmem:[%s7915_s20 + $0x7e0] sm:$0xff]  ;;  %v11927_v46 = vld [vmem:[#allocation103_spill] sm:$0xff] }
 0x323   : > { %6695 = vmatprep.subr.mxu1 %v11919_v10  ;;  %6663 = vmatpush3.msra.mxu0 %v7772_v62  ;;  %v7780_v10 = vld [vmem:[%s7915_s20 + $0x750] sm:$0xff] }
 0x324   : > { %6696 = vmatpush3.msra.mxu1 %v11920_v36  ;;  %6664 = vmatprep.subr.mxu0 %v7773_v25  ;;  %v11928_v62 = vld [vmem:[#allocation104_spill] sm:$0xff]  ;;  %v6255_v36 = vpop.f32.mrf.mxu1  ;;  %v7781_v25 = vld [vmem:[%s7915_s20 + $0x7c8] sm:$0xff] }
 0x325   : > { %6697 = vmatprep.subr.mxu1 %v11921_v33  ;;  %6665 = vmatpush3.msra.mxu0 %v7774_v14  ;;  %v11929_v33 = vld [vmem:[#allocation105_spill] sm:$0xff]  ;;  %v7782_v14 = vld [vmem:[%s7915_s20 + $0x748] sm:$0xff] }
 0x326   : > { %6698 = vmatpush3.msra.mxu1 %v11922_v48  ;;  %6666 = vmatprep.subr.mxu0 %v7775_v22  ;;  %v11930_v48 = vld [vmem:[#allocation106_spill] sm:$0xff] }
 0x327   : > { %6699 = vmatprep.subr.mxu1 %v11923_v7  ;;  %6667 = vmatpush3.msra.mxu0 %v7776_v19  ;;  %v7783_v22 = vld [vmem:[%s7915_s20 + $0x7c0] sm:$0xff]  ;;  %v11931_v7 = vld [vmem:[#allocation107_spill] sm:$0xff] }
 0x328   : > { %6700 = vmatpush3.msra.mxu1 %v11924_v24  ;;  %6668 = vmatprep.subr.mxu0 %v7777_v47  ;;  %v7784_v19 = vld [vmem:[%s7915_s20 + $0x740] sm:$0xff]  ;;  %v11932_v24 = vld [vmem:[#allocation108_spill] sm:$0xff]  ;;  %v6256_v47 = vpop.f32.mrf.mxu1 }
 0x329   : > { %6701 = vmatprep.subr.mxu1 %v11925_v32  ;;  %6669 = vmatpush3.msra.mxu0 %v7778_v13  ;;  %v7785_v32 = vld [vmem:[%s7915_s20 + $0x7b8] sm:$0xff] }
 0x32a   : > { %6702 = vmatpush3.msra.mxu1 %v11926_v2  ;;  %6670 = vmatprep.subr.mxu0 %v7779_v5  ;;  %v11933_v13 = vld [vmem:[#allocation109_spill] sm:$0xff]  ;;  %v11934_v5 = vld [vmem:[#allocation110_spill] sm:$0xff] }
 0x32b   : > { %6703 = vmatprep.subr.mxu1 %v11927_v46  ;;  %6671 = vmatpush3.msra.mxu0 %v7780_v10  ;;  %v7786_v2 = vld [vmem:[%s7915_s20 + $0x738] sm:$0xff]  ;;  %v7787_v46 = vld [vmem:[%s7915_s20 + $0x7b0] sm:$0xff]  ;;  %v11935_v10 = vld [vmem:[#allocation111_spill] sm:$0xff] }
 0x32c   : > { %6704 = vmatpush3.msra.mxu1 %v11928_v62  ;;  %6672 = vmatprep.subr.mxu0 %v7781_v25  ;;  %v6257_v62 = vadd.f32 %v6256_v47, %v6255_v36  ;;  %v7788_v25 = vld [vmem:[%s7915_s20 + $0x730] sm:$0xff]  ;;  %v7791_v36 = vld [vmem:[%s7915_s20 + $0x7a0] sm:$0xff]  ;;  %v11939_v47 = vld [vmem:[#allocation115_spill] sm:$0xff] }
 0x32d   : > { %6705 = vmatprep.subr.mxu1 %v11929_v33  ;;  %6673 = vmatpush3.msra.mxu0 %v7782_v14  ;;  %v11936_v33 = vld [vmem:[#allocation112_spill] sm:$0xff]  ;;  %v3893_v14 = vcombine.high %v10799_v1, %v10799_v1 }
 0x32e   : > { %6706 = vmatpush3.msra.mxu1 %v11930_v48  ;;  %6674 = vmatprep.subr.mxu0 %v7783_v22  ;;  %v7789_v48 = vld [vmem:[%s7915_s20 + $0x7a8] sm:$0xff]  ;;  %v11937_v22 = vld [vmem:[#allocation113_spill] sm:$0xff]  ;;  %v3482_v1 = vadd.f32 %v6257_v62, %v10805_v11  ;;  %v7795_v62 = vld [vmem:[%s7915_s20 + $0x790] sm:$0xff] }
 0x32f   : > { %6707 = vmatprep.subr.mxu1 %v11931_v7  ;;  %6675 = vmatpush3.msra.mxu0 %v7784_v19  ;;  %v7790_v19 = vld [vmem:[%s7915_s20 + $0x728] sm:$0xff] }
 0x330   : > { %6708 = vmatpush3.msra.mxu1 %v11932_v24  ;;  %6676 = vmatprep.subr.mxu0 %v7785_v32  ;;  %v11938_v24 = vld [vmem:[#allocation114_spill] sm:$0xff] }
 0x331   : > { %6709 = vmatprep.subr.mxu1 %v11933_v13  ;;  %6677 = vmatpush3.msra.mxu0 %v7786_v2  ;;  %v7792_v13 = vld [vmem:[%s7915_s20 + $0x720] sm:$0xff]  ;;  %v11940_v2 = vld [vmem:[#allocation116_spill] sm:$0xff] }
 0x332   : > { %6710 = vmatpush3.msra.mxu1 %v11934_v5  ;;  %6678 = vmatprep.subr.mxu0 %v7787_v46  ;;  %v3907_v5 = vrot.slane %v3893_v14, %v7972_v51  ;;  %v10874_v46 = vld [vmem:[%s7965_s24 + $0xb6] sm:$0xff] }
 0x333   : > { %6711 = vmatprep.subr.mxu1 %v11935_v10  ;;  %6679 = vmatpush3.msra.mxu0 %v7788_v25  ;;  %v7793_v25 = vld [vmem:[%s7915_s20 + $0x798] sm:$0xff]  ;;  %v3917_v14 = vrot.slane %v10874_v46, %v7972_v51 }
 0x334   : > { %6712 = vmatpush3.msra.mxu1 %v11936_v33  ;;  %6680 = vmatprep.subr.mxu0 %v7789_v48  ;;  %v11941_v33 = vld [vmem:[#allocation117_spill] sm:$0xff] }
 0x335   : > { %6713 = vmatprep.subr.mxu1 %v11937_v22  ;;  %v6290_v7 = vpop.f32.mrf.mxu0  ;;  %6681 = vmatpush3.msra.mxu0 %v7790_v19  ;;  %v7794_v48 = vld [vmem:[%s7915_s20 + $0x718] sm:$0xff]  ;;  %v11942_v22 = vld [vmem:[#allocation118_spill] sm:$0xff]  ;;  %v11943_v19 = vld [vmem:[#allocation119_spill] sm:$0xff] }
 0x336   : > { %6714 = vmatpush3.msra.mxu1 %v11938_v24  ;;  %6682 = vmatprep.subr.mxu0 %v7791_v36  ;;  %v11944_v24 = vld [vmem:[#allocation120_spill] sm:$0xff]  ;;  %v3909_v36 = vcombine.high %v3907_v5, %v3907_v5 }
 0x337   : > { %6715 = vmatprep.subr.mxu1 %v11939_v47  ;;  %v6291_v32 = vpop.f32.mrf.mxu0  ;;  %6683 = vmatpush3.msra.mxu0 %v7792_v13  ;;  %v7797_v47 = vld [vmem:[%s7915_s20 + $0x788] sm:$0xff]  ;;  %v3925_v13 = vcombine.high %v3917_v14, %v3917_v14 }
 0x338   : > { %6716 = vmatpush3.msra.mxu1 %v11940_v2  ;;  %v6292_v10 = vadd.f32 %v6291_v32, %v6290_v7  ;;  %6684 = vmatprep.subr.mxu0 %v7793_v25  ;;  %v7796_v7 = vld [vmem:[%s7915_s20 + $0x710] sm:$0xff]  ;;  %v7798_v32 = vld [vmem:[%s7915_s20 + $0x708] sm:$0xff]  ;;  %v7800_v2 = vld [vmem:[%s7915_s20 + $0x700] sm:$0xff] }
 0x339   : > { %6717 = vmatprep.subr.mxu1 %v11941_v33  ;;  %6685 = vmatpush3.msra.mxu0 %v7794_v48  ;;  %v11945_v25 = vld [vmem:[#allocation121_spill] sm:$0xff]  ;;  %v11946_v33 = vld [vmem:[#allocation122_spill] sm:$0xff] }
 0x33a   : > { %6718 = vmatpush3.msra.mxu1 %v11942_v22  ;;  %v10880_v11 = vadd.f32 %v6292_v10, %v3482_v1  ;;  %6686 = vmatprep.subr.mxu0 %v7795_v62  ;;  %v7799_v1 = vld [vmem:[%s7915_s20 + $0x780] sm:$0xff]  ;;  %v7813_v10 = vld [vmem:[%s7915_s20 + $0x9c8] sm:$0xff]  ;;  %v7817_v48 = vld [vmem:[%s7915_s20 + $0x9b8] sm:$0xff] }
 0x33b   : > { %6719 = vmatprep.subr.mxu1 %v11943_v19  ;;  %6687 = vmatpush3.msra.mxu0 %v7796_v7  ;;  %v11947_v22 = vld [vmem:[#allocation123_spill] sm:$0xff]  ;;  %v11948_v62 = vld [vmem:[#allocation124_spill] sm:$0xff]  ;;  %v11949_v19 = vld [vmem:[#allocation125_spill] sm:$0xff] }
 0x33c   : > { %6720 = vmatpush3.msra.mxu1 %v11944_v24  ;;  %6688 = vmatprep.subr.mxu0 %v7797_v47  ;;  %v7820_v7 = vld [vmem:[%s7915_s20 + $0x930] sm:$0xff]  ;;  %v11950_v24 = vld [vmem:[#allocation126_spill] sm:$0xff]  ;;  %v7821_v47 = vld [vmem:[%s7915_s20 + $0x9a8] sm:$0xff] }
 0x33d   : > { %6721 = vmatprep.subr.mxu1 %v10273_v44  ;;  %6689 = vmatpush3.msra.mxu0 %v7798_v32  ;;  %v7801_v44 = vld [vmem:[%s7915_s20 + $0x9f8] sm:$0xff]  ;;  %v11951_v32 = vld [vmem:[#allocation127_spill] sm:$0xff] }
 0x33e   : > { %6722 = vmatpush3.msra.mxu1 %v10280_v43  ;;  %6690 = vmatprep.subr.mxu0 %v7799_v1  ;;  %v7802_v43 = vld [vmem:[%s7915_s20 + $0x978] sm:$0xff] }
 0x33f   : > { %6723 = vmatprep.subr.mxu1 %v10285_v26  ;;  %6691 = vmatpush3.msra.mxu0 %v7800_v2  ;;  %v7803_v26 = vld [vmem:[%s7915_s20 + $0x9f0] sm:$0xff] }
 0x340   : > { %4530 = vmatprep.mubr.f32.mxu0 %v3909_v36  ;;  %6724 = vmatpush3.msra.mxu1 %v10292_v31  ;;  %v7804_v31 = vld [vmem:[%s7915_s20 + $0x970] sm:$0xff]  ;;  %v3910_v36 = vcombine.high %v10874_v46, %v10874_v46 }
 0x341   : > { %4531 = vmatmul.mubr.f32.vlgmr.msra.gmra.mxu0 %v3907_v5  ;;  %6725 = vmatprep.subr.mxu1 %v10297_v12  ;;  %v7805_v12 = vld [vmem:[%s7915_s20 + $0x9e8] sm:$0xff]  ;;  %v7807_v5 = vld [vmem:[%s7915_s20 + $0x9e0] sm:$0xff]  ;;  %v11952_v2 = vld [vmem:[#allocation128_spill] sm:$0xff] }
 0x342   : > { %6730 = vmatprep.subr.mxu0 %v7801_v44  ;;  %6726 = vmatpush3.msra.mxu1 %v10302_v17  ;;  %v7806_v17 = vld [vmem:[%s7915_s20 + $0x968] sm:$0xff]  ;;  %v7823_v44 = vld [vmem:[%s7915_s20 + $0x9a0] sm:$0xff] }
 0x343   : > { %4600 = vmatprep.mubr.f32.mxu1 %v3925_v13  ;;  %6731 = vmatpush3.msra.mxu0 %v7802_v43  ;;  %v7822_v13 = vld [vmem:[%s7915_s20 + $0x928] sm:$0xff]  ;;  %v11953_v43 = vld [vmem:[#allocation129_spill] sm:$0xff] }
 0x344   : > { %4601 = vmatmul.mubr.f32.vlgmr.msra.gmra.mxu1 %v3917_v14  ;;  %6732 = vmatprep.subr.mxu0 %v7803_v26 }
 0x345   : > { %6765 = vmatprep.subr.mxu1 %v10308_v0  ;;  %6733 = vmatpush3.msra.mxu0 %v7804_v31  ;;  %v7808_v0 = vld [vmem:[%s7915_s20 + $0x960] sm:$0xff] }
 0x346   : > { %6766 = vmatpush3.msra.mxu1 %v10313_v18  ;;  %6734 = vmatprep.subr.mxu0 %v7805_v12  ;;  %v7809_v18 = vld [vmem:[%s7915_s20 + $0x9d8] sm:$0xff]  ;;  %v7824_v31 = vld [vmem:[%s7915_s20 + $0x920] sm:$0xff] }
 0x347   : > { %6767 = vmatprep.subr.mxu1 %v10317_v21  ;;  %6735 = vmatpush3.msra.mxu0 %v7806_v17  ;;  %v7810_v21 = vld [vmem:[%s7915_s20 + $0x958] sm:$0xff]  ;;  %v11954_v12 = vld [vmem:[#allocation130_spill] sm:$0xff]  ;;  %v3924_v17 = vrot.slane %v3910_v36, %v7972_v51  ;;  %v7846_v36 = vld [vmem:[%s7915_s20 + $0xb48] sm:$0xff] }
 0x348   : > { %6768 = vmatpush3.msra.mxu1 %v10322_v58  ;;  %6736 = vmatprep.subr.mxu0 %v7807_v5  ;;  %v7811_v58 = vld [vmem:[%s7915_s20 + $0x9d0] sm:$0xff]  ;;  %v10949_v5 = vld [vmem:[%s7965_s24 + $0xbe] sm:$0xff] }
 0x349   : > { %6769 = vmatprep.subr.mxu1 %v10327_v55  ;;  %6737 = vmatpush3.msra.mxu0 %v7808_v0  ;;  %v7812_v55 = vld [vmem:[%s7915_s20 + $0x950] sm:$0xff] }
 0x34a   : > { %6770 = vmatpush3.msra.mxu1 %v10332_v9  ;;  %6738 = vmatprep.subr.mxu0 %v7809_v18  ;;  %v6325_v9 = vpop.f32.mrf.mxu1  ;;  %v7825_v18 = vld [vmem:[%s7915_s20 + $0x998] sm:$0xff] }
 0x34b   : > { %6771 = vmatprep.subr.mxu1 %v10337_v6  ;;  %6739 = vmatpush3.msra.mxu0 %v7810_v21  ;;  %v7814_v6 = vld [vmem:[%s7915_s20 + $0x948] sm:$0xff] }
 0x34c   : > { %6772 = vmatpush3.msra.mxu1 %v10342_v3  ;;  %6740 = vmatprep.subr.mxu0 %v7811_v58  ;;  %v7815_v3 = vld [vmem:[%s7915_s20 + $0x9c0] sm:$0xff]  ;;  %v11955_v21 = vld [vmem:[#allocation131_spill] sm:$0xff]  ;;  %v7826_v58 = vld [vmem:[%s7915_s20 + $0x918] sm:$0xff] }
 0x34d   : > { %6773 = vmatprep.subr.mxu1 %v10347_v30  ;;  %6741 = vmatpush3.msra.mxu0 %v7812_v55  ;;  %v7816_v30 = vld [vmem:[%s7915_s20 + $0x940] sm:$0xff]  ;;  %v11956_v55 = vld [vmem:[#allocation132_spill] sm:$0xff] }
 0x34e   : > { %6774 = vmatpush3.msra.mxu1 %v10352_v27  ;;  %6742 = vmatprep.subr.mxu0 %v7813_v10  ;;  %v6326_v27 = vpop.f32.mrf.mxu1  ;;  %v11957_v10 = vld [vmem:[#allocation133_spill] sm:$0xff] }
 0x34f   : > { %6775 = vmatprep.subr.mxu1 %v10357_v42  ;;  %6743 = vmatpush3.msra.mxu0 %v7814_v6  ;;  %v7818_v42 = vld [vmem:[%s7915_s20 + $0x938] sm:$0xff]  ;;  %v6327_v14 = vadd.f32 %v6326_v27, %v6325_v9  ;;  %v7827_v9 = vld [vmem:[%s7915_s20 + $0x990] sm:$0xff]  ;;  %v3934_v6 = vrot.slane %v10949_v5, %v7972_v51  ;;  %v7830_v27 = vld [vmem:[%s7915_s20 + $0x908] sm:$0xff] }
 0x350   : > { %6776 = vmatpush3.msra.mxu1 %v10362_v38  ;;  %6744 = vmatprep.subr.mxu0 %v7815_v3  ;;  %v7819_v38 = vld [vmem:[%s7915_s20 + $0x9b0] sm:$0xff] }
 0x351   : > { %6777 = vmatprep.subr.mxu1 %v11945_v25  ;;  %6745 = vmatpush3.msra.mxu0 %v7816_v30  ;;  %v3622_v46 = vadd.f32 %v6327_v14, %v10880_v11  ;;  %v7828_v3 = vld [vmem:[%s7915_s20 + $0x910] sm:$0xff]  ;;  %v3926_v25 = vcombine.high %v3924_v17, %v3924_v17  ;;  %v7829_v30 = vld [vmem:[%s7915_s20 + $0x988] sm:$0xff]  ;;  %v7842_v14 = vld [vmem:[%s7915_s20 + $0xb58] sm:$0xff] }
 0x352   : > { %6778 = vmatpush3.msra.mxu1 %v11946_v33  ;;  %6746 = vmatprep.subr.mxu0 %v7817_v48  ;;  %v11958_v33 = vld [vmem:[#allocation134_spill] sm:$0xff] }
 0x353   : > { %6779 = vmatprep.subr.mxu1 %v11947_v22  ;;  %6747 = vmatpush3.msra.mxu0 %v7818_v42  ;;  %v7831_v48 = vld [vmem:[%s7915_s20 + $0x980] sm:$0xff]  ;;  %v3942_v22 = vcombine.high %v3934_v6, %v3934_v6 }
 0x354   : > { %6780 = vmatpush3.msra.mxu1 %v11948_v62  ;;  %6748 = vmatprep.subr.mxu0 %v7819_v38  ;;  %v7832_v42 = vld [vmem:[%s7915_s20 + $0x900] sm:$0xff] }
 0x355   : > { %6781 = vmatprep.subr.mxu1 %v11949_v19  ;;  %6749 = vmatpush3.msra.mxu0 %v7820_v7  ;;  %v7839_v62 = vld [vmem:[%s7915_s20 + $0xbe0] sm:$0xff]  ;;  %v7841_v19 = vld [vmem:[%s7915_s20 + $0xbd8] sm:$0xff]  ;;  %v7844_v7 = vld [vmem:[%s7915_s20 + $0xb50] sm:$0xff] }
 0x356   : > { %6782 = vmatpush3.msra.mxu1 %v11950_v24  ;;  %6750 = vmatprep.subr.mxu0 %v7821_v47  ;;  %v7840_v38 = vld [vmem:[%s7915_s20 + $0xb60] sm:$0xff]  ;;  %v7845_v24 = vld [vmem:[%s7915_s20 + $0xbc8] sm:$0xff] }
 0x357   : > { %6783 = vmatprep.subr.mxu1 %v11951_v32  ;;  %v6360_v1 = vpop.f32.mrf.mxu0  ;;  %6751 = vmatpush3.msra.mxu0 %v7822_v13  ;;  %v7848_v32 = vld [vmem:[%s7915_s20 + $0xb40] sm:$0xff]  ;;  %v7851_v13 = vld [vmem:[%s7915_s20 + $0xbb0] sm:$0xff] }
 0x358   : > { %6784 = vmatpush3.msra.mxu1 %v11952_v2  ;;  %6752 = vmatprep.subr.mxu0 %v7823_v44  ;;  %v7852_v2 = vld [vmem:[%s7915_s20 + $0xb30] sm:$0xff]  ;;  %v7853_v44 = vld [vmem:[%s7915_s20 + $0xba8] sm:$0xff] }
 0x359   : > { %6785 = vmatprep.subr.mxu1 %v11953_v43  ;;  %v6361_v26 = vpop.f32.mrf.mxu0  ;;  %6753 = vmatpush3.msra.mxu0 %v7824_v31  ;;  %v7854_v43 = vld [vmem:[%s7915_s20 + $0xb28] sm:$0xff]  ;;  %v7855_v31 = vld [vmem:[%s7915_s20 + $0xba0] sm:$0xff] }
 0x35a   : > { %6786 = vmatpush3.msra.mxu1 %v11954_v12  ;;  %v6362_v0 = vadd.f32 %v6361_v26, %v6360_v1  ;;  %6754 = vmatprep.subr.mxu0 %v7825_v18  ;;  %v7850_v1 = vld [vmem:[%s7915_s20 + $0xb38] sm:$0xff]  ;;  %v7856_v12 = vld [vmem:[%s7915_s20 + $0xb20] sm:$0xff]  ;;  %v7862_v18 = vld [vmem:[%s7915_s20 + $0xb08] sm:$0xff] }
 0x35b   : > { %6787 = vmatprep.subr.mxu1 %v11955_v21  ;;  %6755 = vmatpush3.msra.mxu0 %v7826_v58  ;;  %v7864_v21 = vld [vmem:[%s7915_s20 + $0xb00] sm:$0xff] }
 0x35c   : > { %6788 = vmatpush3.msra.mxu1 %v11956_v55  ;;  %v10955_v11 = vadd.f32 %v6362_v0, %v3622_v46  ;;  %6756 = vmatprep.subr.mxu0 %v7827_v9  ;;  %v7860_v0 = vld [vmem:[%s7915_s20 + $0xb10] sm:$0xff]  ;;  %v4917_v58 = vld [vmem:[%s11053_s28 + $0x60] sm:$0xff]  ;;  %v4916_v55 = vld [vmem:[%s11053_s28 + $0x58] sm:$0xff] }
 0x35d   : > { %6789 = vmatprep.subr.mxu1 %v11957_v10  ;;  %6757 = vmatpush3.msra.mxu0 %v7828_v3  ;;  %v4914_v9 = vld [vmem:[%s11053_s28 + $0x48] sm:$0xff]  ;;  %v4913_v10 = vld [vmem:[%s11053_s28 + $0x40] sm:$0xff]  ;;  %v4911_v3 = vld [vmem:[%s11053_s28 + $0x30] sm:$0xff] }
 0x35e   : > { %6790 = vmatpush3.msra.mxu1 %v10434_v35  ;;  %6758 = vmatprep.subr.mxu0 %v7829_v30  ;;  %v7833_v35 = vld [vmem:[%s7915_s20 + $0xbf8] sm:$0xff]  ;;  %v4909_v30 = vld [vmem:[%s11053_s28 + $0x20] sm:$0xff] }
 0x35f   : > { %6791 = vmatprep.subr.mxu1 %v11958_v33  ;;  %6759 = vmatpush3.msra.mxu0 %v7830_v27  ;;  %v4908_v33 = vld [vmem:[%s11053_s28 + $0x18] sm:$0xff]  ;;  %v4907_v27 = vld [vmem:[%s11053_s28 + $0x10] sm:$0xff] }
 0x360   : > { %6792 = vmatpush3.msra.mxu1 %v10446_v60  ;;  %6760 = vmatprep.subr.mxu0 %v7831_v48  ;;  %v7834_v60 = vld [vmem:[%s7915_s20 + $0xb78] sm:$0xff]  ;;  %v4906_v48 = vld [vmem:[%s11053_s28 + $0x8] sm:$0xff] }
 0x361   : > { %6793 = vmatprep.subr.mxu1 %v10451_v37  ;;  %6761 = vmatpush3.msra.mxu0 %v7832_v42  ;;  %v7835_v37 = vld [vmem:[%s7915_s20 + $0xbf0] sm:$0xff] }
 0x362   : > { %4670 = vmatprep.mubr.f32.mxu0 %v3926_v25  ;;  %6794 = vmatpush3.msra.mxu1 %v10458_v50  ;;  %v7836_v50 = vld [vmem:[%s7915_s20 + $0xb70] sm:$0xff]  ;;  %v4910_v25 = vld [vmem:[%s11053_s28 + $0x28] sm:$0xff] }
 0x363   : > { %4671 = vmatmul.mubr.f32.vlgmr.msra.gmra.mxu0 %v3924_v17  ;;  %6795 = vmatprep.subr.mxu1 %v10463_v29  ;;  %v7837_v29 = vld [vmem:[%s7915_s20 + $0xbe8] sm:$0xff]  ;;  %v7857_v17 = vld [vmem:[%s7915_s20 + $0xb98] sm:$0xff] }
 0x364   : > { %6800 = vmatprep.subr.mxu0 %v7833_v35  ;;  %6796 = vmatpush3.msra.mxu1 %v10470_v57  ;;  %v7838_v57 = vld [vmem:[%s7915_s20 + $0xb68] sm:$0xff] }
 0x365   : > { %4740 = vmatprep.mubr.f32.mxu1 %v3942_v22  ;;  %6801 = vmatpush3.msra.mxu0 %v7834_v60  ;;  %v4905_v22 = vld [vmem:[%s11053_s28] sm:$0xff] }
 0x366   : > { %4741 = vmatmul.mubr.f32.vlgmr.msra.gmra.mxu1 %v3934_v6  ;;  %6802 = vmatprep.subr.mxu0 %v7835_v37  ;;  %v4912_v6 = vld [vmem:[%s11053_s28 + $0x38] sm:$0xff] }
 0x367   : > { %6974 = vmatprep.subr.mxu1 %v11519_v61  ;;  %6803 = vmatpush3.msra.mxu0 %v7836_v50 }
 0x368   : > { %6975 = vmatpush3.msra.mxu1 %v10478_v41  ;;  %6804 = vmatprep.subr.mxu0 %v7837_v29  ;;  %v6395_v41 = vpop.f32.mrf.mxu1 }
 0x369   : > { %6976 = vmatprep.subr.mxu1 %v11519_v61  ;;  %6805 = vmatpush3.msra.mxu0 %v7838_v57 }
 0x36a   : > { %6977 = vmatpush3.msra.mxu1 %v10484_v28  ;;  %6806 = vmatprep.subr.mxu0 %v7839_v62  ;;  %v7843_v28 = vld [vmem:[%s7915_s20 + $0xbd0] sm:$0xff] }
 0x36b   : > { %6978 = vmatprep.subr.mxu1 %v11519_v61  ;;  %6807 = vmatpush3.msra.mxu0 %v7840_v38 }
 0x36c   : > { %6979 = vmatpush3.msra.mxu1 %v10491_v8  ;;  %6808 = vmatprep.subr.mxu0 %v7841_v19  ;;  %v6396_v8 = vpop.f32.mrf.mxu1 }
 0x36d   : > { %6980 = vmatprep.subr.mxu1 %v11519_v61  ;;  %6809 = vmatpush3.msra.mxu0 %v7842_v14  ;;  %v6397_v47 = vadd.f32 %v6396_v8, %v6395_v41 }
 0x36e   : > { %6981 = vmatpush3.msra.mxu1 %v10498_v40  ;;  %6810 = vmatprep.subr.mxu0 %v7843_v28  ;;  %v7847_v40 = vld [vmem:[%s7915_s20 + $0xbc0] sm:$0xff] }
 0x36f   : > { %6982 = vmatprep.subr.mxu1 %v11519_v61  ;;  %6811 = vmatpush3.msra.mxu0 %v7844_v7 }
 0x370   : > { %6983 = vmatpush3.msra.mxu1 %v10505_v34  ;;  %6812 = vmatprep.subr.mxu0 %v7845_v24  ;;  %v7849_v34 = vld [vmem:[%s7915_s20 + $0xbb8] sm:$0xff] }
 0x371   : > { %6984 = vmatprep.subr.mxu1 %v11519_v61  ;;  %6813 = vmatpush3.msra.mxu0 %v7846_v36 }
 0x372   : > { %6985 = vmatpush3.msra.mxu1 %v10512_v45  ;;  %6814 = vmatprep.subr.mxu0 %v7847_v40  ;;  %v3927_v45 = vcombine.high %v10949_v5, %v10949_v5  ;;  %v7859_v5 = vld [vmem:[%s7915_s20 + $0xb90] sm:$0xff] }
 0x373   : > { %6986 = vmatprep.subr.mxu1 %v11519_v61  ;;  %6815 = vmatpush3.msra.mxu0 %v7848_v32 }
 0x374   : > { %6987 = vmatpush3.msra.mxu1 %v10519_v20  ;;  %6816 = vmatprep.subr.mxu0 %v7849_v34  ;;  %v3762_v20 = vadd.f32 %v6397_v47, %v10955_v11  ;;  %v3941_v26 = vrot.slane %v3927_v45, %v7972_v51  ;;  %v7858_v51 = vld [vmem:[%s7915_s20 + $0xb18] sm:$0xff]  ;;  %v4915_v11 = vld [vmem:[%s11053_s28 + $0x50] sm:$0xff] }
 0x375   : > { %6988 = vmatprep.subr.mxu1 %v11519_v61  ;;  %6817 = vmatpush3.msra.mxu0 %v7850_v1 }
 0x376   : > { %6989 = vmatpush3.msra.mxu1 %v10526_v52  ;;  %6818 = vmatprep.subr.mxu0 %v7851_v13 }
 0x377   : > { %6990 = vmatprep.subr.mxu1 %v11519_v61  ;;  %6819 = vmatpush3.msra.mxu0 %v7852_v2 }
 0x378   : > { %6991 = vmatpush3.msra.mxu1 %v10533_v56  ;;  %6820 = vmatprep.subr.mxu0 %v7853_v44 }
 0x379   : > { %6992 = vmatprep.subr.mxu1 %v11519_v61  ;;  %v3831_v52 = vpop.f32.mrf.mxu0  ;;  %6821 = vmatpush3.msra.mxu0 %v7854_v43 }
 0x37a   : > { %6993 = vmatpush3.msra.mxu1 %v10540_v59  ;;  %v11019_v46 = vadd.f32 %v3831_v52, %v3762_v20  ;;  %6822 = vmatprep.subr.mxu0 %v7855_v31  ;;  %v3943_v59 = vcombine.high %v3941_v26, %v3941_v26 }
 0x37b   : > { %6994 = vmatprep.subr.mxu1 %v11519_v61  ;;  %v6973_v56 = vpop.f32.mrf.mxu0  ;;  %6823 = vmatpush3.msra.mxu0 %v7856_v12 }
 0x37c   : > { %6995 = vmatpush3.msra.mxu1 %v10547_v4  ;;  %6824 = vmatprep.subr.mxu0 %v7857_v17  ;;  %v7861_v4 = vld [vmem:[%s7915_s20 + $0xb88] sm:$0xff] }
 0x37d   : > { %6996 = vmatprep.subr.mxu1 %v11519_v61  ;;  %6825 = vmatpush3.msra.mxu0 %v7858_v51  ;;  %v6447_v42 = vpop.f32.mrf.mxu1 }
 0x37e   : > { %6997 = vmatpush3.msra.mxu1 %v10554_v16  ;;  %6826 = vmatprep.subr.mxu0 %v7859_v5  ;;  %v7863_v16 = vld [vmem:[%s7915_s20 + $0xb80] sm:$0xff] }
 0x37f   : > { %6998 = vmatprep.subr.mxu1 %v11519_v61  ;;  %6827 = vmatpush3.msra.mxu0 %v7860_v0  ;;  %v6448_v60 = vpop.f32.mrf.mxu1 }
 0x380   : > { %6999 = vmatpush3.msra.mxu1 %v10564_v54  ;;  %6828 = vmatprep.subr.mxu0 %v7861_v4  ;;  %v5100_v54 = vld.sshfl [vmem:[%s7965_s24 + $0xc6] sm:$0x3 pattern:$0x76325410]  ;;  %v6449_v38 = vadd.f32 %v6448_v60, %v6447_v42 }
 0x381   : > { %7000 = vmatprep.subr.mxu1 %v11519_v61  ;;  %6829 = vmatpush3.msra.mxu0 %v7862_v18 }
 0x382   : > { %4810 = vmatprep.mubr.f32.mxu0 %v3943_v59  ;;  %6830 = vmatprep.subr.mxu0 %v7863_v16 }
 0x383   : > { %7001 = vmatpush3.msra.mxu1 %v10573_v39  ;;  %6831 = vmatpush3.msra.mxu0 %v7864_v21  ;;  %v4920_v39 = vld [vmem:[%s11053_s28 + $0x78] sm:$0xff] }
 0x384   : > { %7002 = vmatprep.subr.mxu1 %v11519_v61  ;;  %4811 = vmatmul.mubr.f32.vlgmr.msra.gmra.mxu0 %v3941_v26 }
 0x385   : > { %7003 = vmatpush3.msra.mxu1 %v10582_v49  ;;  %7006 = vmatprep.mubr.msk.f32.mxu1 %vm7875_vm0, %v11519_v61  ;;  %v4919_v49 = vld [vmem:[%s11053_s28 + $0x70] sm:$0xff] }
 0x386   : > { %7004 = vmatprep.subr.mxu1 %v11519_v61  ;;  %7009 = vmatprep.subr.mxu0 %v11519_v61 }
 0x387   : > { %7005 = vmatpush3.msra.mxu1 %v10590_v53  ;;  %7041 = vmatprep.mubr.msk.f32.mxu0 %vm7875_vm0, %v11519_v61  ;;  %v4918_v53 = vld [vmem:[%s11053_s28 + $0x68] sm:$0xff] }
 0x388   : > { %7007 = vmatmul.mubr.f32.vlgmr.msra.gmra.mxu1 %v5100_v54  ;;  %7010 = vmatpush3.msra.mxu0 %v4920_v39 }
 0x389   : > { %7011 = vmatprep.subr.mxu0 %v11519_v61 }
 0x38a   : > { %7012 = vmatpush3.msra.mxu0 %v4919_v49 }
 0x38b   : > { %7013 = vmatprep.subr.mxu0 %v11519_v61 }
 0x38c   : > { %7014 = vmatpush3.msra.mxu0 %v4918_v53 }
 0x38d   : > { %7015 = vmatprep.subr.mxu0 %v11519_v61 }
 0x38e   : > { %7016 = vmatpush3.msra.mxu0 %v4917_v58 }
 0x38f   : > { %7017 = vmatprep.subr.mxu0 %v11519_v61 }
 0x390   : > { %7018 = vmatpush3.msra.mxu0 %v4916_v55  ;;  %v11959_v55 = vld [vmem:[#allocation2_spill] sm:$0xff] }
 0x391   : > { %7019 = vmatprep.subr.mxu0 %v11519_v61 }
 0x392   : > { %7020 = vmatpush3.msra.mxu0 %v4915_v11  ;;  %v4891_v11 = vsub.s32 0, %v11959_v55 }
 0x393   : > { %7021 = vmatprep.subr.mxu0 %v11519_v61 }
 0x394   : > { %7022 = vmatpush3.msra.mxu0 %v4914_v9 }
 0x395   : > { %7023 = vmatprep.subr.mxu0 %v11519_v61 }
 0x396   : > { %7024 = vmatpush3.msra.mxu0 %v4913_v10  ;;  %v4888_v10 = vld [vmem:[%s248_s6] sm:$0xf] }
 0x397   : > { %7025 = vmatprep.subr.mxu0 %v11519_v61 }
 0x398   : > { %7026 = vmatpush3.msra.mxu0 %v4912_v6 }
 0x399   : > { %7027 = vmatprep.subr.mxu0 %v11519_v61 }
 0x39a   : > { %7028 = vmatpush3.msra.mxu0 %v4911_v3  ;;  %v4896_v3 = vsub.s32 1, %v11959_v55 }
 0x39b   : > { %7029 = vmatprep.subr.mxu0 %v11519_v61  ;;  %v6482_v35 = vpop.f32.mrf.mxu0 }
 0x39c   : > { %7030 = vmatpush3.msra.mxu0 %v4910_v25 }
 0x39d   : > { %7031 = vmatprep.subr.mxu0 %v11519_v61  ;;  %v6483_v37 = vpop.f32.mrf.mxu0 }
 0x39e   : > { %7032 = vmatpush3.msra.mxu0 %v4909_v30  ;;  %v6517_v50 = vpop.f32.mrf.mxu1  ;;  %v6484_v57 = vadd.f32 %v6483_v37, %v6482_v35  ;;  %v4892_v30 = vrot.slane %v4888_v10, %v4891_v11 }
 0x39f   : > { %7033 = vmatprep.subr.mxu0 %v11519_v61 }
 0x3a0   : > { %7034 = vmatpush3.msra.mxu0 %v4908_v33  ;;  %v6518_v62 = vpop.f32.mrf.mxu1  ;;  %v4113_v14 = vadd.f32 %v6484_v57, %v6449_v38  ;;  %v4901_v33 = vsub.s32 2, %v11959_v55 }
 0x3a1   : > { %7035 = vmatprep.subr.mxu0 %v11519_v61  ;;  %v6519_v28 = vadd.f32 %v6518_v62, %v6517_v50  ;;  %v4923_v50 = vsub.s32 3, %v11959_v55 }
 0x3a2   : > { %7036 = vmatpush3.msra.mxu0 %v4907_v27  ;;  %v4902_v42 = vrot.slane %v4888_v10, %v4901_v33 }
 0x3a3   : > { %7037 = vmatprep.subr.mxu0 %v11519_v61  ;;  %v4183_v36 = vadd.f32 %v6519_v28, %v4113_v14 }
 0x3a4   : > { %7038 = vmatpush3.msra.mxu0 %v4906_v48  ;;  %v4897_v48 = vrot.slane %v4888_v10, %v4896_v3 }
 0x3a5   : > { %7039 = vmatprep.subr.mxu0 %v11519_v61 }
 0x3a6   : > { %7040 = vmatpush3.msra.mxu0 %v4905_v22 }
 0x3bd   : > { %v6552_v29 = vpop.f32.mrf.mxu0 }
 0x3bf   : > { %v6553_v41 = vpop.f32.mrf.mxu0 }
 0x3c0   : > { %v6587_v19 = vpop.f32.mrf.mxu1  ;;  %v6554_v8 = vadd.f32 %v6553_v41, %v6552_v29  ;;  %v4924_v29 = vrot.slane %v4888_v10, %v4923_v50 }
 0x3c2   : > { %v6588_v24 = vpop.f32.mrf.mxu1  ;;  %v4253_v47 = vadd.f32 %v6554_v8, %v4183_v36 }
 0x3c3   : > { %v6589_v32 = vadd.f32 %v6588_v24, %v6587_v19 }
 0x3c5   : > { %v4323_v13 = vadd.f32 %v6589_v32, %v4253_v47 }
 0x3df   : > { %v6622_v7 = vpop.f32.mrf.mxu0 }
 0x3e1   : > { %v6623_v40 = vpop.f32.mrf.mxu0 }
 0x3e2   : > { %v6657_v61 = vpop.f32.mrf.mxu1  ;;  %v6624_v1 = vadd.f32 %v6623_v40, %v6622_v7 }
 0x3e4   : > { %v6658_v45 = vpop.f32.mrf.mxu1  ;;  %v4393_v44 = vadd.f32 %v6624_v1, %v4323_v13 }
 0x3e5   : > { %v6659_v52 = vadd.f32 %v6658_v45, %v6657_v61 }
 0x3e7   : > { %v4463_v56 = vadd.f32 %v6659_v52, %v4393_v44 }
 0x401   : > { %v6692_v34 = vpop.f32.mrf.mxu0 }
 0x403   : > { %v6693_v2 = vpop.f32.mrf.mxu0 }
 0x404   : > { %v6727_v20 = vpop.f32.mrf.mxu1  ;;  %v6694_v26 = vadd.f32 %v6693_v2, %v6692_v34 }
 0x406   : > { %v6728_v31 = vpop.f32.mrf.mxu1  ;;  %v4533_v51 = vadd.f32 %v6694_v26, %v4463_v56 }
 0x407   : > { %v6729_v59 = vadd.f32 %v6728_v31, %v6727_v20 }
 0x409   : > { %v4603_v4 = vadd.f32 %v6729_v59, %v4533_v51 }
 0x423   : > { %v6762_v43 = vpop.f32.mrf.mxu0 }
 0x425   : > { %v6763_v12 = vpop.f32.mrf.mxu0 }
 0x426   : > { %v6797_v17 = vpop.f32.mrf.mxu1  ;;  %v6764_v5 = vadd.f32 %v6763_v12, %v6762_v43 }
 0x428   : > { %v6798_v0 = vpop.f32.mrf.mxu1  ;;  %v4673_v18 = vadd.f32 %v6764_v5, %v4603_v4 }
 0x429   : > { %v6799_v16 = vadd.f32 %v6798_v0, %v6797_v17 }
 0x42b   : > { %v4743_v39 = vadd.f32 %v6799_v16, %v4673_v18 }
 0x444   : > { %v6832_v21 = vpop.f32.mrf.mxu0 }
 0x446   : > { %v6833_v54 = vpop.f32.mrf.mxu0 }
 0x447   : > { %v6834_v49 = vadd.f32 %v6833_v54, %v6832_v21 }
 0x448   : > { %v4882_v53 = vpop.f32.mrf.mxu1 }
 0x449   : > { %v4813_v58 = vadd.f32 %v6834_v49, %v4743_v39 }
 0x44a   : > { %v7008_v9 = vpop.f32.mrf.mxu1 }
 0x44b   : > { %v4883_v6 = vadd.f32 %v4882_v53, %v4813_v58 }
 0x44d   : > { %v4886_v25 = vmax.f32 %v11019_v46, %v4883_v6 }
 0x44f   : > { %v4887_v27 = vmax.f32 %v2783_v23, %v4886_v25 }
 0x451   : > { %v4893_v22 = vadd.f32 %v4892_v30, %v4887_v27 }
 0x453   : > { %v4898_v35 = vmul.f32 %v4897_v48, %v4893_v22 }
 0x455   : > { %v4903_v60 = vadd.f32 %v4902_v42, %v4898_v35 }
 0x457   : > { %v4904_v37 = vmax.f32 %v4903_v60, 0.0 }
 0x459   : > { %7042 = vmatmul.mubr.f32.vlgmr.msra.gmra.mxu0 %v4904_v37 }
 0x519   : > { %v4991_v57 = vpop.f32.mrf.mxu0 }
 0x51a   : > { %v4992_v46 = vadd.f32 %v4991_v57, %v4924_v29 }
 0x51b   : > { %v7043_v62 = vpop.f32.mrf.mxu0 }
 0x51c   : > { %v4995_v63 = vmax.f32 %v4992_v46, 0.0 }
 0x51e   : > { %4996 = vst [vmem:[%s252_s10] sm:$0x3] %v4995_v63 }
 0x51f PF: > { %s14_s15 = sadd.s32 1, %s7871_s15  }
 0x520   : > { %p11_p4 = scmp.ge.s32.totalorder %s14_s15, 6  }
 0x522   :  { %13 = sbr.rel (!%p11_p4) target bundleno = 1 (0x1), region = 75 }

</bundles_post_ra>
